<compile_context>
chip_gen: v7x
topology: tpu7x:2x2x1
jax: 0.10.0
libtpu: 0.0.40
codegen_flags: <defaults>
</compile_context>

<pallas_src>
import math
from functools import partial

import jax
import jax.numpy as jnp
from jax import lax
from jax.experimental import pallas as pl
from jax.experimental.pallas import tpu as pltpu

# ----------------------- scaled-down configuration --------------------------
BATCH = 2
IN_CH = 3
IN_HW = 32            # input image spatial size
IMG = 32              # "model" image size (stands in for 384)
PATCH = 8             # patch size (stands in for 16)
GRID = IMG // PATCH   # 4
N_TOK = GRID * GRID   # 16 patch tokens
SEQ = N_TOK + 1       # + cls token
D_VIT = 64            # stands in for 768
VIT_HEADS = 4
VIT_MLP = 4 * D_VIT
N_VIT_BLOCKS = 4
EXTRACT_LAYERS = (1, 2, 3)   # stands in for (3, 6, 9)
COND_LAYER = 0
D_COND = 32           # stands in for 512 (CLIP text-embedding dim)
REDUCE_DIM = 32       # stands in for 128
DEC_HEADS = 4
DEC_FF = 64           # stands in for 2048
TRANS_KS = 16         # ConvTranspose2d kernel == stride

_MXU_DT = jnp.bfloat16           # MXU operand dtype; accumulation is always f32
_VMEM_LIMIT = 32 * 1024 * 1024   # explicit scoped-VMEM limit (v5e default is 16 MiB)


# --------------------------- in-kernel math helpers --------------------------
def _mm(x, w, b=None):
    """Matmul with bf16 MXU operands and f32 accumulation (+ optional bias row)."""
    y = jnp.dot(x.astype(_MXU_DT), w.astype(_MXU_DT),
                preferred_element_type=jnp.float32)
    if b is not None:
        y = y + b
    return y


def _ln(x, g, b, eps):
    """LayerNorm over the last (lane) dim, f32 math."""
    mu = jnp.mean(x, axis=-1, keepdims=True)
    var = jnp.mean(jnp.square(x - mu), axis=-1, keepdims=True)
    return (x - mu) * lax.rsqrt(var + eps) * g + b


def _mhsa(x, wqkv, bqkv, wo, bo, num_heads):
    """Fused multi-head self-attention on one image's (S, D) tokens.

    One lane-dense (S, D) x (D, 3D) QKV matmul with merged bias; only the
    S x S logits and P.V are per-head (static lane slices of the QKV result);
    head outputs are lane-concatenated and fed to a single (S, D) x (D, D)
    out-projection.
    """
    d = x.shape[-1]
    dh = d // num_heads
    scale = 1.0 / math.sqrt(dh)
    qkv = _mm(x, wqkv, bqkv)                               # (S, 3D), f32
    parts = []
    for h in range(num_heads):
        qh = qkv[:, h * dh:(h + 1) * dh] * scale           # (S, dh)
        kh = qkv[:, d + h * dh:d + (h + 1) * dh]           # (S, dh)
        vh = qkv[:, 2 * d + h * dh:2 * d + (h + 1) * dh]   # (S, dh)
        s = lax.dot_general(                               # (S, S), "NT" matmul
            qh.astype(_MXU_DT), kh.astype(_MXU_DT),
            (((1,), (1,)), ((), ())), preferred_element_type=jnp.float32)
        s = s - jnp.max(s, axis=-1, keepdims=True)
        p = jnp.exp(s)
        p = p * pl.reciprocal(jnp.sum(p, axis=-1, keepdims=True), approx=True)
        parts.append(jnp.dot(p.astype(_MXU_DT), vh.astype(_MXU_DT),
                             preferred_element_type=jnp.float32))  # (S, dh)
    o = jnp.concatenate(parts, axis=-1)                    # (S, D) lane-concat
    return _mm(o, wo, bo)


# ------------------------------ fused kernels --------------------------------
def _vit_trunk_kernel(patch_ref, pew, peb, pos_ref, cls_ref,
                      ln1g, ln1b, qkvw, qkvb, projw, projb,
                      ln2g, ln2b, fc1w, fc1b, fc2w, fc2b,
                      *out_refs, num_heads, extract):
    """Patch embed (+pos) and ALL ViT blocks fused for one image.

    Per-block weights are stacked on a leading block axis; blocks are a static
    in-kernel loop; extract-layer activations go to separate output refs.
    """
    tok = _mm(patch_ref[0], pew[...], peb[...]) + pos_ref[0]   # (N_TOK, D)
    x = jnp.concatenate([cls_ref[0], tok], axis=0)             # (S, D), pos_drop=id
    for l in range(N_VIT_BLOCKS):
        h = _ln(x, ln1g[l], ln1b[l], 1e-6)
        x = x + _mhsa(h, qkvw[l], qkvb[l], projw[l], projb[l], num_heads)
        h = _ln(x, ln2g[l], ln2b[l], 1e-6)
        # TODO(synk): timm uses exact erf-GELU; tanh approximation used here.
        h = jax.nn.gelu(_mm(h, fc1w[l], fc1b[l]), approximate=True)
        x = x + _mm(h, fc2w[l], fc2b[l])
        if l in extract:
            out_refs[extract.index(l)][0] = x.astype(out_refs[0].dtype)


def _decoder_kernel(act3_ref, act2_ref, act1_ref, cond_ref,
                    fmw, fmb, faw, fab, redw, redb,
                    qkvw, qkvb, ow, ob, ln1g, ln1b,
                    l1w, l1b, l2w, l2b, ln2g, ln2b,
                    tcw, tcb, out_ref, *, num_heads, cond_layer):
    """ALL decoder stages (reduce + skip-add + FiLM + post-norm
    TransformerEncoderLayer with ReLU FF, dropout = identity) plus the
    trans_conv matmul, fused for one image.  `a` never leaves VMEM and the
    final store is lane-dense (N_TOK, 256)."""
    acts = (act3_ref[0], act2_ref[0], act1_ref[0])             # deepest first
    a = None
    for i in range(len(acts)):
        r = _mm(acts[i], redw[i], redb[i])                     # (S, RD)
        a = r if a is None else r + a                          # skip-add (stage>0)
        if i == cond_layer:                                    # FiLM, once per image
            c = cond_ref[0]                                    # (1, D_COND)
            a = _mm(c, fmw[...], fmb[...]) * a + _mm(c, faw[...], fab[...])
        attn = _mhsa(a, qkvw[i], qkvb[i], ow[i], ob[i], num_heads)
        x = _ln(a + attn, ln1g[i], ln1b[i], 1e-5)
        ff = _mm(jnp.maximum(_mm(x, l1w[i], l1b[i]), 0.0), l2w[i], l2b[i])
        a = _ln(x + ff, ln2g[i], ln2b[i], 1e-5)
    # drop cls token, then ConvTranspose2d(ks=stride=16) as a (RD -> 256) matmul
    feat = a[1:, :]                                            # (N_TOK, RD)
    out_ref[0] = _mm(feat, tcw[...], tcb[...]).astype(out_ref.dtype)


# ------------------------------ call wrappers --------------------------------
def _full_spec(arr):
    """Whole-array block (weights/biases), broadcast to every grid step."""
    zeros = (0,) * arr.ndim
    return pl.BlockSpec(arr.shape, lambda i, _z=zeros: _z)


def _stack(blocks, name, sub):
    return jnp.stack([blk[name][sub] for blk in blocks])


def vit_trunk(patches, params):
    """One fused pallas_call for the whole ViT trunk, grid over the batch."""
    B, N, CPP = patches.shape
    D = D_VIT
    blocks = params["vit_blocks"]

    pew = params["patch_embed"]["w"].astype(_MXU_DT)
    peb = params["patch_embed"]["b"].reshape(1, D)
    pos = params["pos_embed"]
    pos_tok = pos[:, 1:, :]                                    # (1, N, D)
    cls = params["cls_token"] + pos[:, :1, :]                  # (1, 1, D)

    args = [
        patches, pew, peb, pos_tok, cls,
        _stack(blocks, "ln1", "g").reshape(-1, 1, D),
        _stack(blocks, "ln1", "b").reshape(-1, 1, D),
        _stack(blocks, "qkv", "w").astype(_MXU_DT),            # (L, D, 3D)
        _stack(blocks, "qkv", "b").reshape(-1, 1, 3 * D),
        _stack(blocks, "proj", "w").astype(_MXU_DT),           # (L, D, D)
        _stack(blocks, "proj", "b").reshape(-1, 1, D),
        _stack(blocks, "ln2", "g").reshape(-1, 1, D),
        _stack(blocks, "ln2", "b").reshape(-1, 1, D),
        _stack(blocks, "fc1", "w").astype(_MXU_DT),            # (L, D, MLP)
        _stack(blocks, "fc1", "b").reshape(-1, 1, VIT_MLP),
        _stack(blocks, "fc2", "w").astype(_MXU_DT),            # (L, MLP, D)
        _stack(blocks, "fc2", "b").reshape(-1, 1, D),
    ]
    in_specs = ([pl.BlockSpec((1, N, CPP), lambda i: (i, 0, 0))]
                + [_full_spec(a) for a in args[1:]])
    n_out = len(EXTRACT_LAYERS)
    return pl.pallas_call(
        partial(_vit_trunk_kernel, num_heads=VIT_HEADS, extract=EXTRACT_LAYERS),
        out_shape=tuple(jax.ShapeDtypeStruct((B, SEQ, D), jnp.float32)
                        for _ in range(n_out)),
        grid=(B,),
        in_specs=in_specs,
        out_specs=tuple(pl.BlockSpec((1, SEQ, D), lambda i: (i, 0, 0))
                        for _ in range(n_out)),
        compiler_params=pltpu.CompilerParams(
            dimension_semantics=("parallel",),
            vmem_limit_bytes=_VMEM_LIMIT),
    )(*args)


def decoder(act3, act2, act1, cond, params):
    """One fused pallas_call for all decoder stages + trans_conv."""
    B, S, Dv = act3.shape
    RD = REDUCE_DIM
    dec = params["dec_blocks"]
    red = params["reduces"]

    tcw = params["trans_conv"]["w"].astype(_MXU_DT)            # (RD, 256)
    tcb = jnp.broadcast_to(params["trans_conv"]["b"], (1, TRANS_KS * TRANS_KS))

    args = [
        act3, act2, act1, cond.reshape(B, 1, D_COND),
        params["film_mul"]["w"].astype(_MXU_DT),
        params["film_mul"]["b"].reshape(1, RD),
        params["film_add"]["w"].astype(_MXU_DT),
        params["film_add"]["b"].reshape(1, RD),
        jnp.stack([r["w"] for r in red]).astype(_MXU_DT),      # (3, Dv, RD)
        jnp.stack([r["b"] for r in red]).reshape(-1, 1, RD),
        _stack(dec, "in_proj", "w").astype(_MXU_DT),           # (3, RD, 3RD)
        _stack(dec, "in_proj", "b").reshape(-1, 1, 3 * RD),
        _stack(dec, "out_proj", "w").astype(_MXU_DT),          # (3, RD, RD)
        _stack(dec, "out_proj", "b").reshape(-1, 1, RD),
        _stack(dec, "ln1", "g").reshape(-1, 1, RD),
        _stack(dec, "ln1", "b").reshape(-1, 1, RD),
        _stack(dec, "lin1", "w").astype(_MXU_DT),              # (3, RD, FF)
        _stack(dec, "lin1", "b").reshape(-1, 1, DEC_FF),
        _stack(dec, "lin2", "w").astype(_MXU_DT),              # (3, FF, RD)
        _stack(dec, "lin2", "b").reshape(-1, 1, RD),
        _stack(dec, "ln2", "g").reshape(-1, 1, RD),
        _stack(dec, "ln2", "b").reshape(-1, 1, RD),
        tcw, tcb,
    ]
    in_specs = ([pl.BlockSpec((1, S, Dv), lambda i: (i, 0, 0))] * 3
                + [pl.BlockSpec((1, 1, D_COND), lambda i: (i, 0, 0))]
                + [_full_spec(a) for a in args[4:]])
    return pl.pallas_call(
        partial(_decoder_kernel, num_heads=DEC_HEADS, cond_layer=COND_LAYER),
        out_shape=jax.ShapeDtypeStruct((B, N_TOK, TRANS_KS * TRANS_KS),
                                       jnp.float32),
        grid=(B,),
        in_specs=in_specs,
        out_specs=pl.BlockSpec((1, N_TOK, TRANS_KS * TRANS_KS),
                               lambda i: (i, 0, 0)),
        compiler_params=pltpu.CompilerParams(
            dimension_semantics=("parallel",),
            vmem_limit_bytes=_VMEM_LIMIT),
    )(*args)


# --------------------------- XLA-level glue (cheap) ---------------------------
def interpolate_nearest(x, size):
    """nnf.interpolate(mode='nearest') on NCHW."""
    B, C, H, W = x.shape
    Ho, Wo = size
    if (H, W) == (Ho, Wo):
        return x
    rows = (jnp.arange(Ho) * H) // Ho
    cols = (jnp.arange(Wo) * W) // Wo
    return x[:, :, rows][:, :, :, cols]


def forward(params, inp_image, conditional):
    """VITDensePredT.forward (return_features=False, mask=None, tensor cond)."""
    bs = inp_image.shape[0]
    inp_image_size = inp_image.shape[2:]
    cond = conditional                       # 2-D tensor branch of get_cond_vec

    # ---------------- visual_forward: single fused trunk kernel ----------------
    x = interpolate_nearest(inp_image, (IMG, IMG))
    # TODO(synk): at production scale the patch unfold would be expressed via
    #             the trunk kernel's BlockSpec instead of an XLA relayout.
    patches = (x.reshape(bs, IN_CH, GRID, PATCH, GRID, PATCH)
                 .transpose(0, 2, 4, 1, 3, 5)
                 .reshape(bs, N_TOK, IN_CH * PATCH * PATCH))
    act1, act2, act3 = vit_trunk(patches, params)     # extract layers 1, 2, 3
    # visual_q (final norm + head on cls token) is dead when
    # return_features=False, so it is not computed at all.

    # ---------------- decoder + trans_conv: single fused kernel ----------------
    out_patches = decoder(act3, act2, act1, cond, params)     # (B, N_TOK, 256)

    size = GRID
    out = out_patches.reshape(bs, size, size, TRANS_KS, TRANS_KS)
    out = out.transpose(0, 1, 3, 2, 4).reshape(
        bs, 1, size * TRANS_KS, size * TRANS_KS)
    out = interpolate_nearest(out, inp_image_size)
    return (out,)


# ------------------------------ parameter init --------------------------------
def _dense(key, kin, kout, scale=0.05):
    kw, kb = jax.random.split(key)
    return {"w": jax.random.normal(kw, (kin, kout), jnp.float32) * scale,
            "b": jax.random.normal(kb, (kout,), jnp.float32) * 0.02}


def _ln_p(d):
    return {"g": jnp.ones((d,), jnp.float32), "b": jnp.zeros((d,), jnp.float32)}


def init_params(key):
    keys = iter(jax.random.split(key, 128))
    nk = lambda: next(keys)
    return {
        "patch_embed": _dense(nk(), IN_CH * PATCH * PATCH, D_VIT),
        "cls_token": jax.random.normal(nk(), (1, 1, D_VIT), jnp.float32) * 0.02,
        "pos_embed": jax.random.normal(nk(), (1, SEQ, D_VIT), jnp.float32) * 0.02,
        "vit_blocks": [
            {"ln1": _ln_p(D_VIT),
             "qkv": _dense(nk(), D_VIT, 3 * D_VIT),
             "proj": _dense(nk(), D_VIT, D_VIT),
             "ln2": _ln_p(D_VIT),
             "fc1": _dense(nk(), D_VIT, VIT_MLP),
             "fc2": _dense(nk(), VIT_MLP, D_VIT)}
            for _ in range(N_VIT_BLOCKS)
        ],
        "reduces": [_dense(nk(), D_VIT, REDUCE_DIM)
                    for _ in range(len(EXTRACT_LAYERS))],
        "film_mul": _dense(nk(), D_COND, REDUCE_DIM),
        "film_add": _dense(nk(), D_COND, REDUCE_DIM),
        "dec_blocks": [
            {"in_proj": _dense(nk(), REDUCE_DIM, 3 * REDUCE_DIM),
             "out_proj": _dense(nk(), REDUCE_DIM, REDUCE_DIM),
             "ln1": _ln_p(REDUCE_DIM),
             "lin1": _dense(nk(), REDUCE_DIM, DEC_FF),
             "lin2": _dense(nk(), DEC_FF, REDUCE_DIM),
             "ln2": _ln_p(REDUCE_DIM)}
            for _ in range(len(EXTRACT_LAYERS))
        ],
        "trans_conv": {
            "w": jax.random.normal(nk(), (REDUCE_DIM, TRANS_KS * TRANS_KS),
                                   jnp.float32) * 0.05,
            "b": jax.random.normal(nk(), (1,), jnp.float32) * 0.02,
        },
    }


# ----------------------------------- main --------------------------------------
if __name__ == "__main__":
    key = jax.random.PRNGKey(0)
    kp, kx, kc = jax.random.split(key, 3)
    params = init_params(kp)
    inp_image = jax.random.normal(kx, (BATCH, IN_CH, IN_HW, IN_HW), jnp.float32)
    conditional = jax.random.normal(kc, (BATCH, D_COND), jnp.float32)  # tensor cond

    (out,) = jax.jit(forward)(params, inp_image, conditional)
    jax.block_until_ready(out)
    assert out.shape == (BATCH, 1, IN_HW, IN_HW), out.shape
    assert bool(jnp.all(jnp.isfinite(out)))
    print("KERNEL_OK")
</pallas_src>

<mosaic_0001>
module attributes {stable_mosaic.version = 11 : i64} {
  func.func @_vit_trunk_kernel(%arg0: i32, %arg1: memref<1x16x192xf32, #tpu.memory_space<vmem>>, %arg2: memref<192x64xbf16, #tpu.memory_space<vmem>>, %arg3: memref<1x64xf32, #tpu.memory_space<vmem>>, %arg4: memref<1x16x64xf32, #tpu.memory_space<vmem>>, %arg5: memref<1x1x64xf32, #tpu.memory_space<vmem>>, %arg6: memref<4x1x64xf32, #tpu.memory_space<vmem>>, %arg7: memref<4x1x64xf32, #tpu.memory_space<vmem>>, %arg8: memref<4x64x192xbf16, #tpu.memory_space<vmem>>, %arg9: memref<4x1x192xf32, #tpu.memory_space<vmem>>, %arg10: memref<4x64x64xbf16, #tpu.memory_space<vmem>>, %arg11: memref<4x1x64xf32, #tpu.memory_space<vmem>>, %arg12: memref<4x1x64xf32, #tpu.memory_space<vmem>>, %arg13: memref<4x1x64xf32, #tpu.memory_space<vmem>>, %arg14: memref<4x64x256xbf16, #tpu.memory_space<vmem>>, %arg15: memref<4x1x256xf32, #tpu.memory_space<vmem>>, %arg16: memref<4x256x64xbf16, #tpu.memory_space<vmem>>, %arg17: memref<4x1x64xf32, #tpu.memory_space<vmem>>, %arg18: memref<1x17x64xf32, #tpu.memory_space<vmem>>, %arg19: memref<1x17x64xf32, #tpu.memory_space<vmem>>, %arg20: memref<1x17x64xf32, #tpu.memory_space<vmem>>) attributes {dimension_semantics = [#tpu.dimension_semantics<parallel>], iteration_bounds = array<i64: 2>, scalar_prefetch = 0 : i64, scratch_operands = 0 : i64, tpu.core_type = #tpu.core_type<tc>, window_params = [{transform_indices = @transform_0, window_bounds = array<i64: 1, 16, 192>}, {pipeline_mode = #tpu.pipeline_mode<synchronous>, transform_indices = @transform_1, window_bounds = array<i64: 192, 64>}, {pipeline_mode = #tpu.pipeline_mode<synchronous>, transform_indices = @transform_2, window_bounds = array<i64: 1, 64>}, {pipeline_mode = #tpu.pipeline_mode<synchronous>, transform_indices = @transform_3, window_bounds = array<i64: 1, 16, 64>}, {pipeline_mode = #tpu.pipeline_mode<synchronous>, transform_indices = @transform_4, window_bounds = array<i64: 1, 1, 64>}, {pipeline_mode = #tpu.pipeline_mode<synchronous>, transform_indices = @transform_5, window_bounds = array<i64: 4, 1, 64>}, {pipeline_mode = #tpu.pipeline_mode<synchronous>, transform_indices = @transform_6, window_bounds = array<i64: 4, 1, 64>}, {pipeline_mode = #tpu.pipeline_mode<synchronous>, transform_indices = @transform_7, window_bounds = array<i64: 4, 64, 192>}, {pipeline_mode = #tpu.pipeline_mode<synchronous>, transform_indices = @transform_8, window_bounds = array<i64: 4, 1, 192>}, {pipeline_mode = #tpu.pipeline_mode<synchronous>, transform_indices = @transform_9, window_bounds = array<i64: 4, 64, 64>}, {pipeline_mode = #tpu.pipeline_mode<synchronous>, transform_indices = @transform_10, window_bounds = array<i64: 4, 1, 64>}, {pipeline_mode = #tpu.pipeline_mode<synchronous>, transform_indices = @transform_11, window_bounds = array<i64: 4, 1, 64>}, {pipeline_mode = #tpu.pipeline_mode<synchronous>, transform_indices = @transform_12, window_bounds = array<i64: 4, 1, 64>}, {pipeline_mode = #tpu.pipeline_mode<synchronous>, transform_indices = @transform_13, window_bounds = array<i64: 4, 64, 256>}, {pipeline_mode = #tpu.pipeline_mode<synchronous>, transform_indices = @transform_14, window_bounds = array<i64: 4, 1, 256>}, {pipeline_mode = #tpu.pipeline_mode<synchronous>, transform_indices = @transform_15, window_bounds = array<i64: 4, 256, 64>}, {pipeline_mode = #tpu.pipeline_mode<synchronous>, transform_indices = @transform_16, window_bounds = array<i64: 4, 1, 64>}, {transform_indices = @transform_17, window_bounds = array<i64: 1, 17, 64>}, {transform_indices = @transform_18, window_bounds = array<i64: 1, 17, 64>}, {transform_indices = @transform_19, window_bounds = array<i64: 1, 17, 64>}]} {
    %c0 = arith.constant 0 : index
    %c0_0 = arith.constant 0 : index
    %c0_1 = arith.constant 0 : index
    %0 = vector.load %arg1[%c0, %c0_0, %c0_1] : memref<1x16x192xf32, #tpu.memory_space<vmem>>, vector<1x16x192xf32>
    %1 = vector.shape_cast %0 : vector<1x16x192xf32> to vector<16x192xf32>
    %c0_2 = arith.constant 0 : index
    %c0_3 = arith.constant 0 : index
    %2 = vector.load %arg2[%c0_2, %c0_3] : memref<192x64xbf16, #tpu.memory_space<vmem>>, vector<192x64xbf16>
    %c0_4 = arith.constant 0 : index
    %c0_5 = arith.constant 0 : index
    %3 = vector.load %arg3[%c0_4, %c0_5] : memref<1x64xf32, #tpu.memory_space<vmem>>, vector<1x64xf32>
    %4 = arith.truncf %1 : vector<16x192xf32> to vector<16x192xbf16>
    %cst = arith.constant dense<0.000000e+00> : vector<16x64xf32>
    %5 = tpu.matmul %4, %2, %cst {dimension_numbers = #tpu.dot_dimension_numbers<[1], [0], [0], [1], [0, 0, 1, 1], [], []>} : vector<16x192xbf16>, vector<192x64xbf16>, vector<16x64xf32> -> vector<16x64xf32>
    %6 = vector.broadcast %3 : vector<1x64xf32> to vector<16x64xf32>
    %7 = arith.addf %5, %6 : vector<16x64xf32>
    %c0_6 = arith.constant 0 : index
    %c0_7 = arith.constant 0 : index
    %c0_8 = arith.constant 0 : index
    %8 = vector.load %arg4[%c0_6, %c0_7, %c0_8] : memref<1x16x64xf32, #tpu.memory_space<vmem>>, vector<1x16x64xf32>
    %9 = vector.shape_cast %8 : vector<1x16x64xf32> to vector<16x64xf32>
    %10 = arith.addf %7, %9 : vector<16x64xf32>
    %c0_9 = arith.constant 0 : index
    %c0_10 = arith.constant 0 : index
    %c0_11 = arith.constant 0 : index
    %11 = vector.load %arg5[%c0_9, %c0_10, %c0_11] : memref<1x1x64xf32, #tpu.memory_space<vmem>>, vector<1x1x64xf32>
    %12 = vector.shape_cast %11 : vector<1x1x64xf32> to vector<1x64xf32>
    %13 = tpu.concatenate %12, %10 in 0 : vector<1x64xf32>, vector<16x64xf32> -> vector<17x64xf32>
    %c0_12 = arith.constant 0 : index
    %c0_13 = arith.constant 0 : index
    %c0_14 = arith.constant 0 : index
    %14 = vector.load %arg6[%c0_12, %c0_13, %c0_14] : memref<4x1x64xf32, #tpu.memory_space<vmem>>, vector<1x1x64xf32>
    %15 = vector.shape_cast %14 : vector<1x1x64xf32> to vector<1x64xf32>
    %c0_15 = arith.constant 0 : index
    %c0_16 = arith.constant 0 : index
    %c0_17 = arith.constant 0 : index
    %16 = vector.load %arg7[%c0_15, %c0_16, %c0_17] : memref<4x1x64xf32, #tpu.memory_space<vmem>>, vector<1x1x64xf32>
    %17 = vector.shape_cast %16 : vector<1x1x64xf32> to vector<1x64xf32>
    %cst_18 = arith.constant dense<0.000000e+00> : vector<17xf32>
    %18 = vector.multi_reduction <add>, %13, %cst_18 [1] : vector<17x64xf32> to vector<17xf32>
    %19 = vector.shape_cast %18 : vector<17xf32> to vector<17x1xf32>
    %cst_19 = arith.constant 6.400000e+01 : f32
    %20 = vector.broadcast %cst_19 : f32 to vector<17x1xf32>
    %21 = arith.divf %19, %20 : vector<17x1xf32>
    %22 = vector.broadcast %21 : vector<17x1xf32> to vector<17x64xf32>
    %23 = arith.subf %13, %22 : vector<17x64xf32>
    %24 = arith.mulf %23, %23 : vector<17x64xf32>
    %cst_20 = arith.constant dense<0.000000e+00> : vector<17xf32>
    %25 = vector.multi_reduction <add>, %24, %cst_20 [1] : vector<17x64xf32> to vector<17xf32>
    %26 = vector.shape_cast %25 : vector<17xf32> to vector<17x1xf32>
    %cst_21 = arith.constant 6.400000e+01 : f32
    %27 = vector.broadcast %cst_21 : f32 to vector<17x1xf32>
    %28 = arith.divf %26, %27 : vector<17x1xf32>
    %29 = vector.broadcast %21 : vector<17x1xf32> to vector<17x64xf32>
    %30 = arith.subf %13, %29 : vector<17x64xf32>
    %cst_22 = arith.constant 9.99999997E-7 : f32
    %31 = vector.broadcast %cst_22 : f32 to vector<17x1xf32>
    %32 = arith.addf %28, %31 : vector<17x1xf32>
    %33 = math.rsqrt %32 : vector<17x1xf32>
    %34 = vector.broadcast %33 : vector<17x1xf32> to vector<17x64xf32>
    %35 = arith.mulf %30, %34 : vector<17x64xf32>
    %36 = vector.broadcast %15 : vector<1x64xf32> to vector<17x64xf32>
    %37 = arith.mulf %35, %36 : vector<17x64xf32>
    %38 = vector.broadcast %17 : vector<1x64xf32> to vector<17x64xf32>
    %39 = arith.addf %37, %38 : vector<17x64xf32>
    %c0_23 = arith.constant 0 : index
    %c0_24 = arith.constant 0 : index
    %c0_25 = arith.constant 0 : index
    %40 = vector.load %arg8[%c0_23, %c0_24, %c0_25] : memref<4x64x192xbf16, #tpu.memory_space<vmem>>, vector<1x64x192xbf16>
    %41 = vector.shape_cast %40 : vector<1x64x192xbf16> to vector<64x192xbf16>
    %c0_26 = arith.constant 0 : index
    %c0_27 = arith.constant 0 : index
    %c0_28 = arith.constant 0 : index
    %42 = vector.load %arg9[%c0_26, %c0_27, %c0_28] : memref<4x1x192xf32, #tpu.memory_space<vmem>>, vector<1x1x192xf32>
    %43 = vector.shape_cast %42 : vector<1x1x192xf32> to vector<1x192xf32>
    %c0_29 = arith.constant 0 : index
    %c0_30 = arith.constant 0 : index
    %c0_31 = arith.constant 0 : index
    %44 = vector.load %arg10[%c0_29, %c0_30, %c0_31] : memref<4x64x64xbf16, #tpu.memory_space<vmem>>, vector<1x64x64xbf16>
    %45 = vector.shape_cast %44 : vector<1x64x64xbf16> to vector<64x64xbf16>
    %c0_32 = arith.constant 0 : index
    %c0_33 = arith.constant 0 : index
    %c0_34 = arith.constant 0 : index
    %46 = vector.load %arg11[%c0_32, %c0_33, %c0_34] : memref<4x1x64xf32, #tpu.memory_space<vmem>>, vector<1x1x64xf32>
    %47 = vector.shape_cast %46 : vector<1x1x64xf32> to vector<1x64xf32>
    %48 = arith.truncf %39 : vector<17x64xf32> to vector<17x64xbf16>
    %cst_35 = arith.constant dense<0.000000e+00> : vector<17x192xf32>
    %49 = tpu.matmul %48, %41, %cst_35 {dimension_numbers = #tpu.dot_dimension_numbers<[1], [0], [0], [1], [0, 0, 1, 1], [], []>} : vector<17x64xbf16>, vector<64x192xbf16>, vector<17x192xf32> -> vector<17x192xf32>
    %50 = vector.broadcast %43 : vector<1x192xf32> to vector<17x192xf32>
    %51 = arith.addf %49, %50 : vector<17x192xf32>
    %52 = vector.extract_strided_slice %51 {offsets = [0, 0], sizes = [17, 16], strides = [1, 1]} : vector<17x192xf32> to vector<17x16xf32>
    %cst_36 = arith.constant 2.500000e-01 : f32
    %53 = vector.broadcast %cst_36 : f32 to vector<17x16xf32>
    %54 = arith.mulf %52, %53 : vector<17x16xf32>
    %55 = vector.extract_strided_slice %51 {offsets = [0, 64], sizes = [17, 16], strides = [1, 1]} : vector<17x192xf32> to vector<17x16xf32>
    %56 = vector.extract_strided_slice %51 {offsets = [0, 128], sizes = [17, 16], strides = [1, 1]} : vector<17x192xf32> to vector<17x16xf32>
    %57 = arith.truncf %54 : vector<17x16xf32> to vector<17x16xbf16>
    %58 = arith.truncf %55 : vector<17x16xf32> to vector<17x16xbf16>
    %cst_37 = arith.constant dense<0.000000e+00> : vector<17x17xf32>
    %59 = tpu.matmul %57, %58, %cst_37 {dimension_numbers = #tpu.dot_dimension_numbers<[1], [1], [0], [0], [0, 0, 1, 0], [], []>} : vector<17x16xbf16>, vector<17x16xbf16>, vector<17x17xf32> -> vector<17x17xf32>
    %cst_38 = arith.constant dense<0xFF800000> : vector<17xf32>
    %60 = vector.multi_reduction <maximumf>, %59, %cst_38 [1] : vector<17x17xf32> to vector<17xf32>
    %61 = vector.shape_cast %60 : vector<17xf32> to vector<17x1xf32>
    %62 = vector.broadcast %61 : vector<17x1xf32> to vector<17x17xf32>
    %63 = arith.subf %59, %62 : vector<17x17xf32>
    %64 = math.exp %63 : vector<17x17xf32>
    %cst_39 = arith.constant dense<0.000000e+00> : vector<17xf32>
    %65 = vector.multi_reduction <add>, %64, %cst_39 [1] : vector<17x17xf32> to vector<17xf32>
    %66 = vector.shape_cast %65 : vector<17xf32> to vector<17x1xf32>
    %67 = tpu.reciprocal %66 {approx = true} : vector<17x1xf32> -> vector<17x1xf32>
    %68 = vector.broadcast %67 : vector<17x1xf32> to vector<17x17xf32>
    %69 = arith.mulf %64, %68 : vector<17x17xf32>
    %70 = arith.truncf %69 : vector<17x17xf32> to vector<17x17xbf16>
    %71 = arith.truncf %56 : vector<17x16xf32> to vector<17x16xbf16>
    %cst_40 = arith.constant dense<0.000000e+00> : vector<17x16xf32>
    %72 = tpu.matmul %70, %71, %cst_40 {dimension_numbers = #tpu.dot_dimension_numbers<[1], [0], [0], [1], [0, 0, 1, 1], [], []>} : vector<17x17xbf16>, vector<17x16xbf16>, vector<17x16xf32> -> vector<17x16xf32>
    %73 = vector.extract_strided_slice %51 {offsets = [0, 16], sizes = [17, 16], strides = [1, 1]} : vector<17x192xf32> to vector<17x16xf32>
    %cst_41 = arith.constant 2.500000e-01 : f32
    %74 = vector.broadcast %cst_41 : f32 to vector<17x16xf32>
    %75 = arith.mulf %73, %74 : vector<17x16xf32>
    %76 = vector.extract_strided_slice %51 {offsets = [0, 80], sizes = [17, 16], strides = [1, 1]} : vector<17x192xf32> to vector<17x16xf32>
    %77 = vector.extract_strided_slice %51 {offsets = [0, 144], sizes = [17, 16], strides = [1, 1]} : vector<17x192xf32> to vector<17x16xf32>
    %78 = arith.truncf %75 : vector<17x16xf32> to vector<17x16xbf16>
    %79 = arith.truncf %76 : vector<17x16xf32> to vector<17x16xbf16>
    %cst_42 = arith.constant dense<0.000000e+00> : vector<17x17xf32>
    %80 = tpu.matmul %78, %79, %cst_42 {dimension_numbers = #tpu.dot_dimension_numbers<[1], [1], [0], [0], [0, 0, 1, 0], [], []>} : vector<17x16xbf16>, vector<17x16xbf16>, vector<17x17xf32> -> vector<17x17xf32>
    %cst_43 = arith.constant dense<0xFF800000> : vector<17xf32>
    %81 = vector.multi_reduction <maximumf>, %80, %cst_43 [1] : vector<17x17xf32> to vector<17xf32>
    %82 = vector.shape_cast %81 : vector<17xf32> to vector<17x1xf32>
    %83 = vector.broadcast %82 : vector<17x1xf32> to vector<17x17xf32>
    %84 = arith.subf %80, %83 : vector<17x17xf32>
    %85 = math.exp %84 : vector<17x17xf32>
    %cst_44 = arith.constant dense<0.000000e+00> : vector<17xf32>
    %86 = vector.multi_reduction <add>, %85, %cst_44 [1] : vector<17x17xf32> to vector<17xf32>
    %87 = vector.shape_cast %86 : vector<17xf32> to vector<17x1xf32>
    %88 = tpu.reciprocal %87 {approx = true} : vector<17x1xf32> -> vector<17x1xf32>
    %89 = vector.broadcast %88 : vector<17x1xf32> to vector<17x17xf32>
    %90 = arith.mulf %85, %89 : vector<17x17xf32>
    %91 = arith.truncf %90 : vector<17x17xf32> to vector<17x17xbf16>
    %92 = arith.truncf %77 : vector<17x16xf32> to vector<17x16xbf16>
    %cst_45 = arith.constant dense<0.000000e+00> : vector<17x16xf32>
    %93 = tpu.matmul %91, %92, %cst_45 {dimension_numbers = #tpu.dot_dimension_numbers<[1], [0], [0], [1], [0, 0, 1, 1], [], []>} : vector<17x17xbf16>, vector<17x16xbf16>, vector<17x16xf32> -> vector<17x16xf32>
    %94 = vector.extract_strided_slice %51 {offsets = [0, 32], sizes = [17, 16], strides = [1, 1]} : vector<17x192xf32> to vector<17x16xf32>
    %cst_46 = arith.constant 2.500000e-01 : f32
    %95 = vector.broadcast %cst_46 : f32 to vector<17x16xf32>
    %96 = arith.mulf %94, %95 : vector<17x16xf32>
    %97 = vector.extract_strided_slice %51 {offsets = [0, 96], sizes = [17, 16], strides = [1, 1]} : vector<17x192xf32> to vector<17x16xf32>
    %98 = vector.extract_strided_slice %51 {offsets = [0, 160], sizes = [17, 16], strides = [1, 1]} : vector<17x192xf32> to vector<17x16xf32>
    %99 = arith.truncf %96 : vector<17x16xf32> to vector<17x16xbf16>
    %100 = arith.truncf %97 : vector<17x16xf32> to vector<17x16xbf16>
    %cst_47 = arith.constant dense<0.000000e+00> : vector<17x17xf32>
    %101 = tpu.matmul %99, %100, %cst_47 {dimension_numbers = #tpu.dot_dimension_numbers<[1], [1], [0], [0], [0, 0, 1, 0], [], []>} : vector<17x16xbf16>, vector<17x16xbf16>, vector<17x17xf32> -> vector<17x17xf32>
    %cst_48 = arith.constant dense<0xFF800000> : vector<17xf32>
    %102 = vector.multi_reduction <maximumf>, %101, %cst_48 [1] : vector<17x17xf32> to vector<17xf32>
    %103 = vector.shape_cast %102 : vector<17xf32> to vector<17x1xf32>
    %104 = vector.broadcast %103 : vector<17x1xf32> to vector<17x17xf32>
    %105 = arith.subf %101, %104 : vector<17x17xf32>
    %106 = math.exp %105 : vector<17x17xf32>
    %cst_49 = arith.constant dense<0.000000e+00> : vector<17xf32>
    %107 = vector.multi_reduction <add>, %106, %cst_49 [1] : vector<17x17xf32> to vector<17xf32>
    %108 = vector.shape_cast %107 : vector<17xf32> to vector<17x1xf32>
    %109 = tpu.reciprocal %108 {approx = true} : vector<17x1xf32> -> vector<17x1xf32>
    %110 = vector.broadcast %109 : vector<17x1xf32> to vector<17x17xf32>
    %111 = arith.mulf %106, %110 : vector<17x17xf32>
    %112 = arith.truncf %111 : vector<17x17xf32> to vector<17x17xbf16>
    %113 = arith.truncf %98 : vector<17x16xf32> to vector<17x16xbf16>
    %cst_50 = arith.constant dense<0.000000e+00> : vector<17x16xf32>
    %114 = tpu.matmul %112, %113, %cst_50 {dimension_numbers = #tpu.dot_dimension_numbers<[1], [0], [0], [1], [0, 0, 1, 1], [], []>} : vector<17x17xbf16>, vector<17x16xbf16>, vector<17x16xf32> -> vector<17x16xf32>
    %115 = vector.extract_strided_slice %51 {offsets = [0, 48], sizes = [17, 16], strides = [1, 1]} : vector<17x192xf32> to vector<17x16xf32>
    %cst_51 = arith.constant 2.500000e-01 : f32
    %116 = vector.broadcast %cst_51 : f32 to vector<17x16xf32>
    %117 = arith.mulf %115, %116 : vector<17x16xf32>
    %118 = vector.extract_strided_slice %51 {offsets = [0, 112], sizes = [17, 16], strides = [1, 1]} : vector<17x192xf32> to vector<17x16xf32>
    %119 = vector.extract_strided_slice %51 {offsets = [0, 176], sizes = [17, 16], strides = [1, 1]} : vector<17x192xf32> to vector<17x16xf32>
    %120 = arith.truncf %117 : vector<17x16xf32> to vector<17x16xbf16>
    %121 = arith.truncf %118 : vector<17x16xf32> to vector<17x16xbf16>
    %cst_52 = arith.constant dense<0.000000e+00> : vector<17x17xf32>
    %122 = tpu.matmul %120, %121, %cst_52 {dimension_numbers = #tpu.dot_dimension_numbers<[1], [1], [0], [0], [0, 0, 1, 0], [], []>} : vector<17x16xbf16>, vector<17x16xbf16>, vector<17x17xf32> -> vector<17x17xf32>
    %cst_53 = arith.constant dense<0xFF800000> : vector<17xf32>
    %123 = vector.multi_reduction <maximumf>, %122, %cst_53 [1] : vector<17x17xf32> to vector<17xf32>
    %124 = vector.shape_cast %123 : vector<17xf32> to vector<17x1xf32>
    %125 = vector.broadcast %124 : vector<17x1xf32> to vector<17x17xf32>
    %126 = arith.subf %122, %125 : vector<17x17xf32>
    %127 = math.exp %126 : vector<17x17xf32>
    %cst_54 = arith.constant dense<0.000000e+00> : vector<17xf32>
    %128 = vector.multi_reduction <add>, %127, %cst_54 [1] : vector<17x17xf32> to vector<17xf32>
    %129 = vector.shape_cast %128 : vector<17xf32> to vector<17x1xf32>
    %130 = tpu.reciprocal %129 {approx = true} : vector<17x1xf32> -> vector<17x1xf32>
    %131 = vector.broadcast %130 : vector<17x1xf32> to vector<17x17xf32>
    %132 = arith.mulf %127, %131 : vector<17x17xf32>
    %133 = arith.truncf %132 : vector<17x17xf32> to vector<17x17xbf16>
    %134 = arith.truncf %119 : vector<17x16xf32> to vector<17x16xbf16>
    %cst_55 = arith.constant dense<0.000000e+00> : vector<17x16xf32>
    %135 = tpu.matmul %133, %134, %cst_55 {dimension_numbers = #tpu.dot_dimension_numbers<[1], [0], [0], [1], [0, 0, 1, 1], [], []>} : vector<17x17xbf16>, vector<17x16xbf16>, vector<17x16xf32> -> vector<17x16xf32>
    %136 = tpu.concatenate %72, %93, %114, %135 in 1 : vector<17x16xf32>, vector<17x16xf32>, vector<17x16xf32>, vector<17x16xf32> -> vector<17x64xf32>
    %137 = arith.truncf %136 : vector<17x64xf32> to vector<17x64xbf16>
    %cst_56 = arith.constant dense<0.000000e+00> : vector<17x64xf32>
    %138 = tpu.matmul %137, %45, %cst_56 {dimension_numbers = #tpu.dot_dimension_numbers<[1], [0], [0], [1], [0, 0, 1, 1], [], []>} : vector<17x64xbf16>, vector<64x64xbf16>, vector<17x64xf32> -> vector<17x64xf32>
    %139 = vector.broadcast %47 : vector<1x64xf32> to vector<17x64xf32>
    %140 = arith.addf %138, %139 : vector<17x64xf32>
    %141 = arith.addf %13, %140 : vector<17x64xf32>
    %c0_57 = arith.constant 0 : index
    %c0_58 = arith.constant 0 : index
    %c0_59 = arith.constant 0 : index
    %142 = vector.load %arg12[%c0_57, %c0_58, %c0_59] : memref<4x1x64xf32, #tpu.memory_space<vmem>>, vector<1x1x64xf32>
    %143 = vector.shape_cast %142 : vector<1x1x64xf32> to vector<1x64xf32>
    %c0_60 = arith.constant 0 : index
    %c0_61 = arith.constant 0 : index
    %c0_62 = arith.constant 0 : index
    %144 = vector.load %arg13[%c0_60, %c0_61, %c0_62] : memref<4x1x64xf32, #tpu.memory_space<vmem>>, vector<1x1x64xf32>
    %145 = vector.shape_cast %144 : vector<1x1x64xf32> to vector<1x64xf32>
    %cst_63 = arith.constant dense<0.000000e+00> : vector<17xf32>
    %146 = vector.multi_reduction <add>, %141, %cst_63 [1] : vector<17x64xf32> to vector<17xf32>
    %147 = vector.shape_cast %146 : vector<17xf32> to vector<17x1xf32>
    %cst_64 = arith.constant 6.400000e+01 : f32
    %148 = vector.broadcast %cst_64 : f32 to vector<17x1xf32>
    %149 = arith.divf %147, %148 : vector<17x1xf32>
    %150 = vector.broadcast %149 : vector<17x1xf32> to vector<17x64xf32>
    %151 = arith.subf %141, %150 : vector<17x64xf32>
    %152 = arith.mulf %151, %151 : vector<17x64xf32>
    %cst_65 = arith.constant dense<0.000000e+00> : vector<17xf32>
    %153 = vector.multi_reduction <add>, %152, %cst_65 [1] : vector<17x64xf32> to vector<17xf32>
    %154 = vector.shape_cast %153 : vector<17xf32> to vector<17x1xf32>
    %cst_66 = arith.constant 6.400000e+01 : f32
    %155 = vector.broadcast %cst_66 : f32 to vector<17x1xf32>
    %156 = arith.divf %154, %155 : vector<17x1xf32>
    %157 = vector.broadcast %149 : vector<17x1xf32> to vector<17x64xf32>
    %158 = arith.subf %141, %157 : vector<17x64xf32>
    %cst_67 = arith.constant 9.99999997E-7 : f32
    %159 = vector.broadcast %cst_67 : f32 to vector<17x1xf32>
    %160 = arith.addf %156, %159 : vector<17x1xf32>
    %161 = math.rsqrt %160 : vector<17x1xf32>
    %162 = vector.broadcast %161 : vector<17x1xf32> to vector<17x64xf32>
    %163 = arith.mulf %158, %162 : vector<17x64xf32>
    %164 = vector.broadcast %143 : vector<1x64xf32> to vector<17x64xf32>
    %165 = arith.mulf %163, %164 : vector<17x64xf32>
    %166 = vector.broadcast %145 : vector<1x64xf32> to vector<17x64xf32>
    %167 = arith.addf %165, %166 : vector<17x64xf32>
    %c0_68 = arith.constant 0 : index
    %c0_69 = arith.constant 0 : index
    %c0_70 = arith.constant 0 : index
    %168 = vector.load %arg14[%c0_68, %c0_69, %c0_70] : memref<4x64x256xbf16, #tpu.memory_space<vmem>>, vector<1x64x256xbf16>
    %169 = vector.shape_cast %168 : vector<1x64x256xbf16> to vector<64x256xbf16>
    %c0_71 = arith.constant 0 : index
    %c0_72 = arith.constant 0 : index
    %c0_73 = arith.constant 0 : index
    %170 = vector.load %arg15[%c0_71, %c0_72, %c0_73] : memref<4x1x256xf32, #tpu.memory_space<vmem>>, vector<1x1x256xf32>
    %171 = vector.shape_cast %170 : vector<1x1x256xf32> to vector<1x256xf32>
    %172 = arith.truncf %167 : vector<17x64xf32> to vector<17x64xbf16>
    %cst_74 = arith.constant dense<0.000000e+00> : vector<17x256xf32>
    %173 = tpu.matmul %172, %169, %cst_74 {dimension_numbers = #tpu.dot_dimension_numbers<[1], [0], [0], [1], [0, 0, 1, 1], [], []>} : vector<17x64xbf16>, vector<64x256xbf16>, vector<17x256xf32> -> vector<17x256xf32>
    %174 = vector.broadcast %171 : vector<1x256xf32> to vector<17x256xf32>
    %175 = arith.addf %173, %174 : vector<17x256xf32>
    %176 = arith.mulf %175, %175 : vector<17x256xf32>
    %177 = arith.mulf %175, %176 : vector<17x256xf32>
    %cst_75 = arith.constant 4.471500e-02 : f32
    %178 = vector.broadcast %cst_75 : f32 to vector<17x256xf32>
    %179 = arith.mulf %178, %177 : vector<17x256xf32>
    %180 = arith.addf %175, %179 : vector<17x256xf32>
    %cst_76 = arith.constant 0.797884583 : f32
    %181 = vector.broadcast %cst_76 : f32 to vector<17x256xf32>
    %182 = arith.mulf %181, %180 : vector<17x256xf32>
    %183 = math.tanh %182 : vector<17x256xf32>
    %cst_77 = arith.constant 1.000000e+00 : f32
    %184 = vector.broadcast %cst_77 : f32 to vector<17x256xf32>
    %185 = arith.addf %184, %183 : vector<17x256xf32>
    %cst_78 = arith.constant 5.000000e-01 : f32
    %186 = vector.broadcast %cst_78 : f32 to vector<17x256xf32>
    %187 = arith.mulf %186, %185 : vector<17x256xf32>
    %188 = arith.mulf %175, %187 : vector<17x256xf32>
    %c0_79 = arith.constant 0 : index
    %c0_80 = arith.constant 0 : index
    %c0_81 = arith.constant 0 : index
    %189 = vector.load %arg16[%c0_79, %c0_80, %c0_81] : memref<4x256x64xbf16, #tpu.memory_space<vmem>>, vector<1x256x64xbf16>
    %190 = vector.shape_cast %189 : vector<1x256x64xbf16> to vector<256x64xbf16>
    %c0_82 = arith.constant 0 : index
    %c0_83 = arith.constant 0 : index
    %c0_84 = arith.constant 0 : index
    %191 = vector.load %arg17[%c0_82, %c0_83, %c0_84] : memref<4x1x64xf32, #tpu.memory_space<vmem>>, vector<1x1x64xf32>
    %192 = vector.shape_cast %191 : vector<1x1x64xf32> to vector<1x64xf32>
    %193 = arith.truncf %188 : vector<17x256xf32> to vector<17x256xbf16>
    %cst_85 = arith.constant dense<0.000000e+00> : vector<17x64xf32>
    %194 = tpu.matmul %193, %190, %cst_85 {dimension_numbers = #tpu.dot_dimension_numbers<[1], [0], [0], [1], [0, 0, 1, 1], [], []>} : vector<17x256xbf16>, vector<256x64xbf16>, vector<17x64xf32> -> vector<17x64xf32>
    %195 = vector.broadcast %192 : vector<1x64xf32> to vector<17x64xf32>
    %196 = arith.addf %194, %195 : vector<17x64xf32>
    %197 = arith.addf %141, %196 : vector<17x64xf32>
    %c1 = arith.constant 1 : index
    %c0_86 = arith.constant 0 : index
    %c0_87 = arith.constant 0 : index
    %198 = vector.load %arg6[%c1, %c0_86, %c0_87] : memref<4x1x64xf32, #tpu.memory_space<vmem>>, vector<1x1x64xf32>
    %199 = vector.shape_cast %198 : vector<1x1x64xf32> to vector<1x64xf32>
    %c1_88 = arith.constant 1 : index
    %c0_89 = arith.constant 0 : index
    %c0_90 = arith.constant 0 : index
    %200 = vector.load %arg7[%c1_88, %c0_89, %c0_90] : memref<4x1x64xf32, #tpu.memory_space<vmem>>, vector<1x1x64xf32>
    %201 = vector.shape_cast %200 : vector<1x1x64xf32> to vector<1x64xf32>
    %cst_91 = arith.constant dense<0.000000e+00> : vector<17xf32>
    %202 = vector.multi_reduction <add>, %197, %cst_91 [1] : vector<17x64xf32> to vector<17xf32>
    %203 = vector.shape_cast %202 : vector<17xf32> to vector<17x1xf32>
    %cst_92 = arith.constant 6.400000e+01 : f32
    %204 = vector.broadcast %cst_92 : f32 to vector<17x1xf32>
    %205 = arith.divf %203, %204 : vector<17x1xf32>
    %206 = vector.broadcast %205 : vector<17x1xf32> to vector<17x64xf32>
    %207 = arith.subf %197, %206 : vector<17x64xf32>
    %208 = arith.mulf %207, %207 : vector<17x64xf32>
    %cst_93 = arith.constant dense<0.000000e+00> : vector<17xf32>
    %209 = vector.multi_reduction <add>, %208, %cst_93 [1] : vector<17x64xf32> to vector<17xf32>
    %210 = vector.shape_cast %209 : vector<17xf32> to vector<17x1xf32>
    %cst_94 = arith.constant 6.400000e+01 : f32
    %211 = vector.broadcast %cst_94 : f32 to vector<17x1xf32>
    %212 = arith.divf %210, %211 : vector<17x1xf32>
    %213 = vector.broadcast %205 : vector<17x1xf32> to vector<17x64xf32>
    %214 = arith.subf %197, %213 : vector<17x64xf32>
    %cst_95 = arith.constant 9.99999997E-7 : f32
    %215 = vector.broadcast %cst_95 : f32 to vector<17x1xf32>
    %216 = arith.addf %212, %215 : vector<17x1xf32>
    %217 = math.rsqrt %216 : vector<17x1xf32>
    %218 = vector.broadcast %217 : vector<17x1xf32> to vector<17x64xf32>
    %219 = arith.mulf %214, %218 : vector<17x64xf32>
    %220 = vector.broadcast %199 : vector<1x64xf32> to vector<17x64xf32>
    %221 = arith.mulf %219, %220 : vector<17x64xf32>
    %222 = vector.broadcast %201 : vector<1x64xf32> to vector<17x64xf32>
    %223 = arith.addf %221, %222 : vector<17x64xf32>
    %c1_96 = arith.constant 1 : index
    %c0_97 = arith.constant 0 : index
    %c0_98 = arith.constant 0 : index
    %224 = vector.load %arg8[%c1_96, %c0_97, %c0_98] : memref<4x64x192xbf16, #tpu.memory_space<vmem>>, vector<1x64x192xbf16>
    %225 = vector.shape_cast %224 : vector<1x64x192xbf16> to vector<64x192xbf16>
    %c1_99 = arith.constant 1 : index
    %c0_100 = arith.constant 0 : index
    %c0_101 = arith.constant 0 : index
    %226 = vector.load %arg9[%c1_99, %c0_100, %c0_101] : memref<4x1x192xf32, #tpu.memory_space<vmem>>, vector<1x1x192xf32>
    %227 = vector.shape_cast %226 : vector<1x1x192xf32> to vector<1x192xf32>
    %c1_102 = arith.constant 1 : index
    %c0_103 = arith.constant 0 : index
    %c0_104 = arith.constant 0 : index
    %228 = vector.load %arg10[%c1_102, %c0_103, %c0_104] : memref<4x64x64xbf16, #tpu.memory_space<vmem>>, vector<1x64x64xbf16>
    %229 = vector.shape_cast %228 : vector<1x64x64xbf16> to vector<64x64xbf16>
    %c1_105 = arith.constant 1 : index
    %c0_106 = arith.constant 0 : index
    %c0_107 = arith.constant 0 : index
    %230 = vector.load %arg11[%c1_105, %c0_106, %c0_107] : memref<4x1x64xf32, #tpu.memory_space<vmem>>, vector<1x1x64xf32>
    %231 = vector.shape_cast %230 : vector<1x1x64xf32> to vector<1x64xf32>
    %232 = arith.truncf %223 : vector<17x64xf32> to vector<17x64xbf16>
    %cst_108 = arith.constant dense<0.000000e+00> : vector<17x192xf32>
    %233 = tpu.matmul %232, %225, %cst_108 {dimension_numbers = #tpu.dot_dimension_numbers<[1], [0], [0], [1], [0, 0, 1, 1], [], []>} : vector<17x64xbf16>, vector<64x192xbf16>, vector<17x192xf32> -> vector<17x192xf32>
    %234 = vector.broadcast %227 : vector<1x192xf32> to vector<17x192xf32>
    %235 = arith.addf %233, %234 : vector<17x192xf32>
    %236 = vector.extract_strided_slice %235 {offsets = [0, 0], sizes = [17, 16], strides = [1, 1]} : vector<17x192xf32> to vector<17x16xf32>
    %cst_109 = arith.constant 2.500000e-01 : f32
    %237 = vector.broadcast %cst_109 : f32 to vector<17x16xf32>
    %238 = arith.mulf %236, %237 : vector<17x16xf32>
    %239 = vector.extract_strided_slice %235 {offsets = [0, 64], sizes = [17, 16], strides = [1, 1]} : vector<17x192xf32> to vector<17x16xf32>
    %240 = vector.extract_strided_slice %235 {offsets = [0, 128], sizes = [17, 16], strides = [1, 1]} : vector<17x192xf32> to vector<17x16xf32>
    %241 = arith.truncf %238 : vector<17x16xf32> to vector<17x16xbf16>
    %242 = arith.truncf %239 : vector<17x16xf32> to vector<17x16xbf16>
    %cst_110 = arith.constant dense<0.000000e+00> : vector<17x17xf32>
    %243 = tpu.matmul %241, %242, %cst_110 {dimension_numbers = #tpu.dot_dimension_numbers<[1], [1], [0], [0], [0, 0, 1, 0], [], []>} : vector<17x16xbf16>, vector<17x16xbf16>, vector<17x17xf32> -> vector<17x17xf32>
    %cst_111 = arith.constant dense<0xFF800000> : vector<17xf32>
    %244 = vector.multi_reduction <maximumf>, %243, %cst_111 [1] : vector<17x17xf32> to vector<17xf32>
    %245 = vector.shape_cast %244 : vector<17xf32> to vector<17x1xf32>
    %246 = vector.broadcast %245 : vector<17x1xf32> to vector<17x17xf32>
    %247 = arith.subf %243, %246 : vector<17x17xf32>
    %248 = math.exp %247 : vector<17x17xf32>
    %cst_112 = arith.constant dense<0.000000e+00> : vector<17xf32>
    %249 = vector.multi_reduction <add>, %248, %cst_112 [1] : vector<17x17xf32> to vector<17xf32>
    %250 = vector.shape_cast %249 : vector<17xf32> to vector<17x1xf32>
    %251 = tpu.reciprocal %250 {approx = true} : vector<17x1xf32> -> vector<17x1xf32>
    %252 = vector.broadcast %251 : vector<17x1xf32> to vector<17x17xf32>
    %253 = arith.mulf %248, %252 : vector<17x17xf32>
    %254 = arith.truncf %253 : vector<17x17xf32> to vector<17x17xbf16>
    %255 = arith.truncf %240 : vector<17x16xf32> to vector<17x16xbf16>
    %cst_113 = arith.constant dense<0.000000e+00> : vector<17x16xf32>
    %256 = tpu.matmul %254, %255, %cst_113 {dimension_numbers = #tpu.dot_dimension_numbers<[1], [0], [0], [1], [0, 0, 1, 1], [], []>} : vector<17x17xbf16>, vector<17x16xbf16>, vector<17x16xf32> -> vector<17x16xf32>
    %257 = vector.extract_strided_slice %235 {offsets = [0, 16], sizes = [17, 16], strides = [1, 1]} : vector<17x192xf32> to vector<17x16xf32>
    %cst_114 = arith.constant 2.500000e-01 : f32
    %258 = vector.broadcast %cst_114 : f32 to vector<17x16xf32>
    %259 = arith.mulf %257, %258 : vector<17x16xf32>
    %260 = vector.extract_strided_slice %235 {offsets = [0, 80], sizes = [17, 16], strides = [1, 1]} : vector<17x192xf32> to vector<17x16xf32>
    %261 = vector.extract_strided_slice %235 {offsets = [0, 144], sizes = [17, 16], strides = [1, 1]} : vector<17x192xf32> to vector<17x16xf32>
    %262 = arith.truncf %259 : vector<17x16xf32> to vector<17x16xbf16>
    %263 = arith.truncf %260 : vector<17x16xf32> to vector<17x16xbf16>
    %cst_115 = arith.constant dense<0.000000e+00> : vector<17x17xf32>
    %264 = tpu.matmul %262, %263, %cst_115 {dimension_numbers = #tpu.dot_dimension_numbers<[1], [1], [0], [0], [0, 0, 1, 0], [], []>} : vector<17x16xbf16>, vector<17x16xbf16>, vector<17x17xf32> -> vector<17x17xf32>
    %cst_116 = arith.constant dense<0xFF800000> : vector<17xf32>
    %265 = vector.multi_reduction <maximumf>, %264, %cst_116 [1] : vector<17x17xf32> to vector<17xf32>
    %266 = vector.shape_cast %265 : vector<17xf32> to vector<17x1xf32>
    %267 = vector.broadcast %266 : vector<17x1xf32> to vector<17x17xf32>
    %268 = arith.subf %264, %267 : vector<17x17xf32>
    %269 = math.exp %268 : vector<17x17xf32>
    %cst_117 = arith.constant dense<0.000000e+00> : vector<17xf32>
    %270 = vector.multi_reduction <add>, %269, %cst_117 [1] : vector<17x17xf32> to vector<17xf32>
    %271 = vector.shape_cast %270 : vector<17xf32> to vector<17x1xf32>
    %272 = tpu.reciprocal %271 {approx = true} : vector<17x1xf32> -> vector<17x1xf32>
    %273 = vector.broadcast %272 : vector<17x1xf32> to vector<17x17xf32>
    %274 = arith.mulf %269, %273 : vector<17x17xf32>
    %275 = arith.truncf %274 : vector<17x17xf32> to vector<17x17xbf16>
    %276 = arith.truncf %261 : vector<17x16xf32> to vector<17x16xbf16>
    %cst_118 = arith.constant dense<0.000000e+00> : vector<17x16xf32>
    %277 = tpu.matmul %275, %276, %cst_118 {dimension_numbers = #tpu.dot_dimension_numbers<[1], [0], [0], [1], [0, 0, 1, 1], [], []>} : vector<17x17xbf16>, vector<17x16xbf16>, vector<17x16xf32> -> vector<17x16xf32>
    %278 = vector.extract_strided_slice %235 {offsets = [0, 32], sizes = [17, 16], strides = [1, 1]} : vector<17x192xf32> to vector<17x16xf32>
    %cst_119 = arith.constant 2.500000e-01 : f32
    %279 = vector.broadcast %cst_119 : f32 to vector<17x16xf32>
    %280 = arith.mulf %278, %279 : vector<17x16xf32>
    %281 = vector.extract_strided_slice %235 {offsets = [0, 96], sizes = [17, 16], strides = [1, 1]} : vector<17x192xf32> to vector<17x16xf32>
    %282 = vector.extract_strided_slice %235 {offsets = [0, 160], sizes = [17, 16], strides = [1, 1]} : vector<17x192xf32> to vector<17x16xf32>
    %283 = arith.truncf %280 : vector<17x16xf32> to vector<17x16xbf16>
    %284 = arith.truncf %281 : vector<17x16xf32> to vector<17x16xbf16>
    %cst_120 = arith.constant dense<0.000000e+00> : vector<17x17xf32>
    %285 = tpu.matmul %283, %284, %cst_120 {dimension_numbers = #tpu.dot_dimension_numbers<[1], [1], [0], [0], [0, 0, 1, 0], [], []>} : vector<17x16xbf16>, vector<17x16xbf16>, vector<17x17xf32> -> vector<17x17xf32>
    %cst_121 = arith.constant dense<0xFF800000> : vector<17xf32>
    %286 = vector.multi_reduction <maximumf>, %285, %cst_121 [1] : vector<17x17xf32> to vector<17xf32>
    %287 = vector.shape_cast %286 : vector<17xf32> to vector<17x1xf32>
    %288 = vector.broadcast %287 : vector<17x1xf32> to vector<17x17xf32>
    %289 = arith.subf %285, %288 : vector<17x17xf32>
    %290 = math.exp %289 : vector<17x17xf32>
    %cst_122 = arith.constant dense<0.000000e+00> : vector<17xf32>
    %291 = vector.multi_reduction <add>, %290, %cst_122 [1] : vector<17x17xf32> to vector<17xf32>
    %292 = vector.shape_cast %291 : vector<17xf32> to vector<17x1xf32>
    %293 = tpu.reciprocal %292 {approx = true} : vector<17x1xf32> -> vector<17x1xf32>
    %294 = vector.broadcast %293 : vector<17x1xf32> to vector<17x17xf32>
    %295 = arith.mulf %290, %294 : vector<17x17xf32>
    %296 = arith.truncf %295 : vector<17x17xf32> to vector<17x17xbf16>
    %297 = arith.truncf %282 : vector<17x16xf32> to vector<17x16xbf16>
    %cst_123 = arith.constant dense<0.000000e+00> : vector<17x16xf32>
    %298 = tpu.matmul %296, %297, %cst_123 {dimension_numbers = #tpu.dot_dimension_numbers<[1], [0], [0], [1], [0, 0, 1, 1], [], []>} : vector<17x17xbf16>, vector<17x16xbf16>, vector<17x16xf32> -> vector<17x16xf32>
    %299 = vector.extract_strided_slice %235 {offsets = [0, 48], sizes = [17, 16], strides = [1, 1]} : vector<17x192xf32> to vector<17x16xf32>
    %cst_124 = arith.constant 2.500000e-01 : f32
    %300 = vector.broadcast %cst_124 : f32 to vector<17x16xf32>
    %301 = arith.mulf %299, %300 : vector<17x16xf32>
    %302 = vector.extract_strided_slice %235 {offsets = [0, 112], sizes = [17, 16], strides = [1, 1]} : vector<17x192xf32> to vector<17x16xf32>
    %303 = vector.extract_strided_slice %235 {offsets = [0, 176], sizes = [17, 16], strides = [1, 1]} : vector<17x192xf32> to vector<17x16xf32>
    %304 = arith.truncf %301 : vector<17x16xf32> to vector<17x16xbf16>
    %305 = arith.truncf %302 : vector<17x16xf32> to vector<17x16xbf16>
    %cst_125 = arith.constant dense<0.000000e+00> : vector<17x17xf32>
    %306 = tpu.matmul %304, %305, %cst_125 {dimension_numbers = #tpu.dot_dimension_numbers<[1], [1], [0], [0], [0, 0, 1, 0], [], []>} : vector<17x16xbf16>, vector<17x16xbf16>, vector<17x17xf32> -> vector<17x17xf32>
    %cst_126 = arith.constant dense<0xFF800000> : vector<17xf32>
    %307 = vector.multi_reduction <maximumf>, %306, %cst_126 [1] : vector<17x17xf32> to vector<17xf32>
    %308 = vector.shape_cast %307 : vector<17xf32> to vector<17x1xf32>
    %309 = vector.broadcast %308 : vector<17x1xf32> to vector<17x17xf32>
    %310 = arith.subf %306, %309 : vector<17x17xf32>
    %311 = math.exp %310 : vector<17x17xf32>
    %cst_127 = arith.constant dense<0.000000e+00> : vector<17xf32>
    %312 = vector.multi_reduction <add>, %311, %cst_127 [1] : vector<17x17xf32> to vector<17xf32>
    %313 = vector.shape_cast %312 : vector<17xf32> to vector<17x1xf32>
    %314 = tpu.reciprocal %313 {approx = true} : vector<17x1xf32> -> vector<17x1xf32>
    %315 = vector.broadcast %314 : vector<17x1xf32> to vector<17x17xf32>
    %316 = arith.mulf %311, %315 : vector<17x17xf32>
    %317 = arith.truncf %316 : vector<17x17xf32> to vector<17x17xbf16>
    %318 = arith.truncf %303 : vector<17x16xf32> to vector<17x16xbf16>
    %cst_128 = arith.constant dense<0.000000e+00> : vector<17x16xf32>
    %319 = tpu.matmul %317, %318, %cst_128 {dimension_numbers = #tpu.dot_dimension_numbers<[1], [0], [0], [1], [0, 0, 1, 1], [], []>} : vector<17x17xbf16>, vector<17x16xbf16>, vector<17x16xf32> -> vector<17x16xf32>
    %320 = tpu.concatenate %256, %277, %298, %319 in 1 : vector<17x16xf32>, vector<17x16xf32>, vector<17x16xf32>, vector<17x16xf32> -> vector<17x64xf32>
    %321 = arith.truncf %320 : vector<17x64xf32> to vector<17x64xbf16>
    %cst_129 = arith.constant dense<0.000000e+00> : vector<17x64xf32>
    %322 = tpu.matmul %321, %229, %cst_129 {dimension_numbers = #tpu.dot_dimension_numbers<[1], [0], [0], [1], [0, 0, 1, 1], [], []>} : vector<17x64xbf16>, vector<64x64xbf16>, vector<17x64xf32> -> vector<17x64xf32>
    %323 = vector.broadcast %231 : vector<1x64xf32> to vector<17x64xf32>
    %324 = arith.addf %322, %323 : vector<17x64xf32>
    %325 = arith.addf %197, %324 : vector<17x64xf32>
    %c1_130 = arith.constant 1 : index
    %c0_131 = arith.constant 0 : index
    %c0_132 = arith.constant 0 : index
    %326 = vector.load %arg12[%c1_130, %c0_131, %c0_132] : memref<4x1x64xf32, #tpu.memory_space<vmem>>, vector<1x1x64xf32>
    %327 = vector.shape_cast %326 : vector<1x1x64xf32> to vector<1x64xf32>
    %c1_133 = arith.constant 1 : index
    %c0_134 = arith.constant 0 : index
    %c0_135 = arith.constant 0 : index
    %328 = vector.load %arg13[%c1_133, %c0_134, %c0_135] : memref<4x1x64xf32, #tpu.memory_space<vmem>>, vector<1x1x64xf32>
    %329 = vector.shape_cast %328 : vector<1x1x64xf32> to vector<1x64xf32>
    %cst_136 = arith.constant dense<0.000000e+00> : vector<17xf32>
    %330 = vector.multi_reduction <add>, %325, %cst_136 [1] : vector<17x64xf32> to vector<17xf32>
    %331 = vector.shape_cast %330 : vector<17xf32> to vector<17x1xf32>
    %cst_137 = arith.constant 6.400000e+01 : f32
    %332 = vector.broadcast %cst_137 : f32 to vector<17x1xf32>
    %333 = arith.divf %331, %332 : vector<17x1xf32>
    %334 = vector.broadcast %333 : vector<17x1xf32> to vector<17x64xf32>
    %335 = arith.subf %325, %334 : vector<17x64xf32>
    %336 = arith.mulf %335, %335 : vector<17x64xf32>
    %cst_138 = arith.constant dense<0.000000e+00> : vector<17xf32>
    %337 = vector.multi_reduction <add>, %336, %cst_138 [1] : vector<17x64xf32> to vector<17xf32>
    %338 = vector.shape_cast %337 : vector<17xf32> to vector<17x1xf32>
    %cst_139 = arith.constant 6.400000e+01 : f32
    %339 = vector.broadcast %cst_139 : f32 to vector<17x1xf32>
    %340 = arith.divf %338, %339 : vector<17x1xf32>
    %341 = vector.broadcast %333 : vector<17x1xf32> to vector<17x64xf32>
    %342 = arith.subf %325, %341 : vector<17x64xf32>
    %cst_140 = arith.constant 9.99999997E-7 : f32
    %343 = vector.broadcast %cst_140 : f32 to vector<17x1xf32>
    %344 = arith.addf %340, %343 : vector<17x1xf32>
    %345 = math.rsqrt %344 : vector<17x1xf32>
    %346 = vector.broadcast %345 : vector<17x1xf32> to vector<17x64xf32>
    %347 = arith.mulf %342, %346 : vector<17x64xf32>
    %348 = vector.broadcast %327 : vector<1x64xf32> to vector<17x64xf32>
    %349 = arith.mulf %347, %348 : vector<17x64xf32>
    %350 = vector.broadcast %329 : vector<1x64xf32> to vector<17x64xf32>
    %351 = arith.addf %349, %350 : vector<17x64xf32>
    %c1_141 = arith.constant 1 : index
    %c0_142 = arith.constant 0 : index
    %c0_143 = arith.constant 0 : index
    %352 = vector.load %arg14[%c1_141, %c0_142, %c0_143] : memref<4x64x256xbf16, #tpu.memory_space<vmem>>, vector<1x64x256xbf16>
    %353 = vector.shape_cast %352 : vector<1x64x256xbf16> to vector<64x256xbf16>
    %c1_144 = arith.constant 1 : index
    %c0_145 = arith.constant 0 : index
    %c0_146 = arith.constant 0 : index
    %354 = vector.load %arg15[%c1_144, %c0_145, %c0_146] : memref<4x1x256xf32, #tpu.memory_space<vmem>>, vector<1x1x256xf32>
    %355 = vector.shape_cast %354 : vector<1x1x256xf32> to vector<1x256xf32>
    %356 = arith.truncf %351 : vector<17x64xf32> to vector<17x64xbf16>
    %cst_147 = arith.constant dense<0.000000e+00> : vector<17x256xf32>
    %357 = tpu.matmul %356, %353, %cst_147 {dimension_numbers = #tpu.dot_dimension_numbers<[1], [0], [0], [1], [0, 0, 1, 1], [], []>} : vector<17x64xbf16>, vector<64x256xbf16>, vector<17x256xf32> -> vector<17x256xf32>
    %358 = vector.broadcast %355 : vector<1x256xf32> to vector<17x256xf32>
    %359 = arith.addf %357, %358 : vector<17x256xf32>
    %360 = arith.mulf %359, %359 : vector<17x256xf32>
    %361 = arith.mulf %359, %360 : vector<17x256xf32>
    %cst_148 = arith.constant 4.471500e-02 : f32
    %362 = vector.broadcast %cst_148 : f32 to vector<17x256xf32>
    %363 = arith.mulf %362, %361 : vector<17x256xf32>
    %364 = arith.addf %359, %363 : vector<17x256xf32>
    %cst_149 = arith.constant 0.797884583 : f32
    %365 = vector.broadcast %cst_149 : f32 to vector<17x256xf32>
    %366 = arith.mulf %365, %364 : vector<17x256xf32>
    %367 = math.tanh %366 : vector<17x256xf32>
    %cst_150 = arith.constant 1.000000e+00 : f32
    %368 = vector.broadcast %cst_150 : f32 to vector<17x256xf32>
    %369 = arith.addf %368, %367 : vector<17x256xf32>
    %cst_151 = arith.constant 5.000000e-01 : f32
    %370 = vector.broadcast %cst_151 : f32 to vector<17x256xf32>
    %371 = arith.mulf %370, %369 : vector<17x256xf32>
    %372 = arith.mulf %359, %371 : vector<17x256xf32>
    %c1_152 = arith.constant 1 : index
    %c0_153 = arith.constant 0 : index
    %c0_154 = arith.constant 0 : index
    %373 = vector.load %arg16[%c1_152, %c0_153, %c0_154] : memref<4x256x64xbf16, #tpu.memory_space<vmem>>, vector<1x256x64xbf16>
    %374 = vector.shape_cast %373 : vector<1x256x64xbf16> to vector<256x64xbf16>
    %c1_155 = arith.constant 1 : index
    %c0_156 = arith.constant 0 : index
    %c0_157 = arith.constant 0 : index
    %375 = vector.load %arg17[%c1_155, %c0_156, %c0_157] : memref<4x1x64xf32, #tpu.memory_space<vmem>>, vector<1x1x64xf32>
    %376 = vector.shape_cast %375 : vector<1x1x64xf32> to vector<1x64xf32>
    %377 = arith.truncf %372 : vector<17x256xf32> to vector<17x256xbf16>
    %cst_158 = arith.constant dense<0.000000e+00> : vector<17x64xf32>
    %378 = tpu.matmul %377, %374, %cst_158 {dimension_numbers = #tpu.dot_dimension_numbers<[1], [0], [0], [1], [0, 0, 1, 1], [], []>} : vector<17x256xbf16>, vector<256x64xbf16>, vector<17x64xf32> -> vector<17x64xf32>
    %379 = vector.broadcast %376 : vector<1x64xf32> to vector<17x64xf32>
    %380 = arith.addf %378, %379 : vector<17x64xf32>
    %381 = arith.addf %325, %380 : vector<17x64xf32>
    %c0_159 = arith.constant 0 : index
    %c0_160 = arith.constant 0 : index
    %c0_161 = arith.constant 0 : index
    %382 = vector.load %arg18[%c0_159, %c0_160, %c0_161] : memref<1x17x64xf32, #tpu.memory_space<vmem>>, vector<1x17x64xf32>
    %383 = vector.shape_cast %382 : vector<1x17x64xf32> to vector<17x64xf32>
    %384 = vector.shape_cast %381 : vector<17x64xf32> to vector<1x17x64xf32>
    tpu.vector_store %arg18[%c0_159, %c0_160, %c0_161], %384 {strides = array<i32>} : memref<1x17x64xf32, #tpu.memory_space<vmem>>, vector<1x17x64xf32>,
    %c2 = arith.constant 2 : index
    %c0_162 = arith.constant 0 : index
    %c0_163 = arith.constant 0 : index
    %385 = vector.load %arg6[%c2, %c0_162, %c0_163] : memref<4x1x64xf32, #tpu.memory_space<vmem>>, vector<1x1x64xf32>
    %386 = vector.shape_cast %385 : vector<1x1x64xf32> to vector<1x64xf32>
    %c2_164 = arith.constant 2 : index
    %c0_165 = arith.constant 0 : index
    %c0_166 = arith.constant 0 : index
    %387 = vector.load %arg7[%c2_164, %c0_165, %c0_166] : memref<4x1x64xf32, #tpu.memory_space<vmem>>, vector<1x1x64xf32>
    %388 = vector.shape_cast %387 : vector<1x1x64xf32> to vector<1x64xf32>
    %cst_167 = arith.constant dense<0.000000e+00> : vector<17xf32>
    %389 = vector.multi_reduction <add>, %381, %cst_167 [1] : vector<17x64xf32> to vector<17xf32>
    %390 = vector.shape_cast %389 : vector<17xf32> to vector<17x1xf32>
    %cst_168 = arith.constant 6.400000e+01 : f32
    %391 = vector.broadcast %cst_168 : f32 to vector<17x1xf32>
    %392 = arith.divf %390, %391 : vector<17x1xf32>
    %393 = vector.broadcast %392 : vector<17x1xf32> to vector<17x64xf32>
    %394 = arith.subf %381, %393 : vector<17x64xf32>
    %395 = arith.mulf %394, %394 : vector<17x64xf32>
    %cst_169 = arith.constant dense<0.000000e+00> : vector<17xf32>
    %396 = vector.multi_reduction <add>, %395, %cst_169 [1] : vector<17x64xf32> to vector<17xf32>
    %397 = vector.shape_cast %396 : vector<17xf32> to vector<17x1xf32>
    %cst_170 = arith.constant 6.400000e+01 : f32
    %398 = vector.broadcast %cst_170 : f32 to vector<17x1xf32>
    %399 = arith.divf %397, %398 : vector<17x1xf32>
    %400 = vector.broadcast %392 : vector<17x1xf32> to vector<17x64xf32>
    %401 = arith.subf %381, %400 : vector<17x64xf32>
    %cst_171 = arith.constant 9.99999997E-7 : f32
    %402 = vector.broadcast %cst_171 : f32 to vector<17x1xf32>
    %403 = arith.addf %399, %402 : vector<17x1xf32>
    %404 = math.rsqrt %403 : vector<17x1xf32>
    %405 = vector.broadcast %404 : vector<17x1xf32> to vector<17x64xf32>
    %406 = arith.mulf %401, %405 : vector<17x64xf32>
    %407 = vector.broadcast %386 : vector<1x64xf32> to vector<17x64xf32>
    %408 = arith.mulf %406, %407 : vector<17x64xf32>
    %409 = vector.broadcast %388 : vector<1x64xf32> to vector<17x64xf32>
    %410 = arith.addf %408, %409 : vector<17x64xf32>
    %c2_172 = arith.constant 2 : index
    %c0_173 = arith.constant 0 : index
    %c0_174 = arith.constant 0 : index
    %411 = vector.load %arg8[%c2_172, %c0_173, %c0_174] : memref<4x64x192xbf16, #tpu.memory_space<vmem>>, vector<1x64x192xbf16>
    %412 = vector.shape_cast %411 : vector<1x64x192xbf16> to vector<64x192xbf16>
    %c2_175 = arith.constant 2 : index
    %c0_176 = arith.constant 0 : index
    %c0_177 = arith.constant 0 : index
    %413 = vector.load %arg9[%c2_175, %c0_176, %c0_177] : memref<4x1x192xf32, #tpu.memory_space<vmem>>, vector<1x1x192xf32>
    %414 = vector.shape_cast %413 : vector<1x1x192xf32> to vector<1x192xf32>
    %c2_178 = arith.constant 2 : index
    %c0_179 = arith.constant 0 : index
    %c0_180 = arith.constant 0 : index
    %415 = vector.load %arg10[%c2_178, %c0_179, %c0_180] : memref<4x64x64xbf16, #tpu.memory_space<vmem>>, vector<1x64x64xbf16>
    %416 = vector.shape_cast %415 : vector<1x64x64xbf16> to vector<64x64xbf16>
    %c2_181 = arith.constant 2 : index
    %c0_182 = arith.constant 0 : index
    %c0_183 = arith.constant 0 : index
    %417 = vector.load %arg11[%c2_181, %c0_182, %c0_183] : memref<4x1x64xf32, #tpu.memory_space<vmem>>, vector<1x1x64xf32>
    %418 = vector.shape_cast %417 : vector<1x1x64xf32> to vector<1x64xf32>
    %419 = arith.truncf %410 : vector<17x64xf32> to vector<17x64xbf16>
    %cst_184 = arith.constant dense<0.000000e+00> : vector<17x192xf32>
    %420 = tpu.matmul %419, %412, %cst_184 {dimension_numbers = #tpu.dot_dimension_numbers<[1], [0], [0], [1], [0, 0, 1, 1], [], []>} : vector<17x64xbf16>, vector<64x192xbf16>, vector<17x192xf32> -> vector<17x192xf32>
    %421 = vector.broadcast %414 : vector<1x192xf32> to vector<17x192xf32>
    %422 = arith.addf %420, %421 : vector<17x192xf32>
    %423 = vector.extract_strided_slice %422 {offsets = [0, 0], sizes = [17, 16], strides = [1, 1]} : vector<17x192xf32> to vector<17x16xf32>
    %cst_185 = arith.constant 2.500000e-01 : f32
    %424 = vector.broadcast %cst_185 : f32 to vector<17x16xf32>
    %425 = arith.mulf %423, %424 : vector<17x16xf32>
    %426 = vector.extract_strided_slice %422 {offsets = [0, 64], sizes = [17, 16], strides = [1, 1]} : vector<17x192xf32> to vector<17x16xf32>
    %427 = vector.extract_strided_slice %422 {offsets = [0, 128], sizes = [17, 16], strides = [1, 1]} : vector<17x192xf32> to vector<17x16xf32>
    %428 = arith.truncf %425 : vector<17x16xf32> to vector<17x16xbf16>
    %429 = arith.truncf %426 : vector<17x16xf32> to vector<17x16xbf16>
    %cst_186 = arith.constant dense<0.000000e+00> : vector<17x17xf32>
    %430 = tpu.matmul %428, %429, %cst_186 {dimension_numbers = #tpu.dot_dimension_numbers<[1], [1], [0], [0], [0, 0, 1, 0], [], []>} : vector<17x16xbf16>, vector<17x16xbf16>, vector<17x17xf32> -> vector<17x17xf32>
    %cst_187 = arith.constant dense<0xFF800000> : vector<17xf32>
    %431 = vector.multi_reduction <maximumf>, %430, %cst_187 [1] : vector<17x17xf32> to vector<17xf32>
    %432 = vector.shape_cast %431 : vector<17xf32> to vector<17x1xf32>
    %433 = vector.broadcast %432 : vector<17x1xf32> to vector<17x17xf32>
    %434 = arith.subf %430, %433 : vector<17x17xf32>
    %435 = math.exp %434 : vector<17x17xf32>
    %cst_188 = arith.constant dense<0.000000e+00> : vector<17xf32>
    %436 = vector.multi_reduction <add>, %435, %cst_188 [1] : vector<17x17xf32> to vector<17xf32>
    %437 = vector.shape_cast %436 : vector<17xf32> to vector<17x1xf32>
    %438 = tpu.reciprocal %437 {approx = true} : vector<17x1xf32> -> vector<17x1xf32>
    %439 = vector.broadcast %438 : vector<17x1xf32> to vector<17x17xf32>
    %440 = arith.mulf %435, %439 : vector<17x17xf32>
    %441 = arith.truncf %440 : vector<17x17xf32> to vector<17x17xbf16>
    %442 = arith.truncf %427 : vector<17x16xf32> to vector<17x16xbf16>
    %cst_189 = arith.constant dense<0.000000e+00> : vector<17x16xf32>
    %443 = tpu.matmul %441, %442, %cst_189 {dimension_numbers = #tpu.dot_dimension_numbers<[1], [0], [0], [1], [0, 0, 1, 1], [], []>} : vector<17x17xbf16>, vector<17x16xbf16>, vector<17x16xf32> -> vector<17x16xf32>
    %444 = vector.extract_strided_slice %422 {offsets = [0, 16], sizes = [17, 16], strides = [1, 1]} : vector<17x192xf32> to vector<17x16xf32>
    %cst_190 = arith.constant 2.500000e-01 : f32
    %445 = vector.broadcast %cst_190 : f32 to vector<17x16xf32>
    %446 = arith.mulf %444, %445 : vector<17x16xf32>
    %447 = vector.extract_strided_slice %422 {offsets = [0, 80], sizes = [17, 16], strides = [1, 1]} : vector<17x192xf32> to vector<17x16xf32>
    %448 = vector.extract_strided_slice %422 {offsets = [0, 144], sizes = [17, 16], strides = [1, 1]} : vector<17x192xf32> to vector<17x16xf32>
    %449 = arith.truncf %446 : vector<17x16xf32> to vector<17x16xbf16>
    %450 = arith.truncf %447 : vector<17x16xf32> to vector<17x16xbf16>
    %cst_191 = arith.constant dense<0.000000e+00> : vector<17x17xf32>
    %451 = tpu.matmul %449, %450, %cst_191 {dimension_numbers = #tpu.dot_dimension_numbers<[1], [1], [0], [0], [0, 0, 1, 0], [], []>} : vector<17x16xbf16>, vector<17x16xbf16>, vector<17x17xf32> -> vector<17x17xf32>
    %cst_192 = arith.constant dense<0xFF800000> : vector<17xf32>
    %452 = vector.multi_reduction <maximumf>, %451, %cst_192 [1] : vector<17x17xf32> to vector<17xf32>
    %453 = vector.shape_cast %452 : vector<17xf32> to vector<17x1xf32>
    %454 = vector.broadcast %453 : vector<17x1xf32> to vector<17x17xf32>
    %455 = arith.subf %451, %454 : vector<17x17xf32>
    %456 = math.exp %455 : vector<17x17xf32>
    %cst_193 = arith.constant dense<0.000000e+00> : vector<17xf32>
    %457 = vector.multi_reduction <add>, %456, %cst_193 [1] : vector<17x17xf32> to vector<17xf32>
    %458 = vector.shape_cast %457 : vector<17xf32> to vector<17x1xf32>
    %459 = tpu.reciprocal %458 {approx = true} : vector<17x1xf32> -> vector<17x1xf32>
    %460 = vector.broadcast %459 : vector<17x1xf32> to vector<17x17xf32>
    %461 = arith.mulf %456, %460 : vector<17x17xf32>
    %462 = arith.truncf %461 : vector<17x17xf32> to vector<17x17xbf16>
    %463 = arith.truncf %448 : vector<17x16xf32> to vector<17x16xbf16>
    %cst_194 = arith.constant dense<0.000000e+00> : vector<17x16xf32>
    %464 = tpu.matmul %462, %463, %cst_194 {dimension_numbers = #tpu.dot_dimension_numbers<[1], [0], [0], [1], [0, 0, 1, 1], [], []>} : vector<17x17xbf16>, vector<17x16xbf16>, vector<17x16xf32> -> vector<17x16xf32>
    %465 = vector.extract_strided_slice %422 {offsets = [0, 32], sizes = [17, 16], strides = [1, 1]} : vector<17x192xf32> to vector<17x16xf32>
    %cst_195 = arith.constant 2.500000e-01 : f32
    %466 = vector.broadcast %cst_195 : f32 to vector<17x16xf32>
    %467 = arith.mulf %465, %466 : vector<17x16xf32>
    %468 = vector.extract_strided_slice %422 {offsets = [0, 96], sizes = [17, 16], strides = [1, 1]} : vector<17x192xf32> to vector<17x16xf32>
    %469 = vector.extract_strided_slice %422 {offsets = [0, 160], sizes = [17, 16], strides = [1, 1]} : vector<17x192xf32> to vector<17x16xf32>
    %470 = arith.truncf %467 : vector<17x16xf32> to vector<17x16xbf16>
    %471 = arith.truncf %468 : vector<17x16xf32> to vector<17x16xbf16>
    %cst_196 = arith.constant dense<0.000000e+00> : vector<17x17xf32>
    %472 = tpu.matmul %470, %471, %cst_196 {dimension_numbers = #tpu.dot_dimension_numbers<[1], [1], [0], [0], [0, 0, 1, 0], [], []>} : vector<17x16xbf16>, vector<17x16xbf16>, vector<17x17xf32> -> vector<17x17xf32>
    %cst_197 = arith.constant dense<0xFF800000> : vector<17xf32>
    %473 = vector.multi_reduction <maximumf>, %472, %cst_197 [1] : vector<17x17xf32> to vector<17xf32>
    %474 = vector.shape_cast %473 : vector<17xf32> to vector<17x1xf32>
    %475 = vector.broadcast %474 : vector<17x1xf32> to vector<17x17xf32>
    %476 = arith.subf %472, %475 : vector<17x17xf32>
    %477 = math.exp %476 : vector<17x17xf32>
    %cst_198 = arith.constant dense<0.000000e+00> : vector<17xf32>
    %478 = vector.multi_reduction <add>, %477, %cst_198 [1] : vector<17x17xf32> to vector<17xf32>
    %479 = vector.shape_cast %478 : vector<17xf32> to vector<17x1xf32>
    %480 = tpu.reciprocal %479 {approx = true} : vector<17x1xf32> -> vector<17x1xf32>
    %481 = vector.broadcast %480 : vector<17x1xf32> to vector<17x17xf32>
    %482 = arith.mulf %477, %481 : vector<17x17xf32>
    %483 = arith.truncf %482 : vector<17x17xf32> to vector<17x17xbf16>
    %484 = arith.truncf %469 : vector<17x16xf32> to vector<17x16xbf16>
    %cst_199 = arith.constant dense<0.000000e+00> : vector<17x16xf32>
    %485 = tpu.matmul %483, %484, %cst_199 {dimension_numbers = #tpu.dot_dimension_numbers<[1], [0], [0], [1], [0, 0, 1, 1], [], []>} : vector<17x17xbf16>, vector<17x16xbf16>, vector<17x16xf32> -> vector<17x16xf32>
    %486 = vector.extract_strided_slice %422 {offsets = [0, 48], sizes = [17, 16], strides = [1, 1]} : vector<17x192xf32> to vector<17x16xf32>
    %cst_200 = arith.constant 2.500000e-01 : f32
    %487 = vector.broadcast %cst_200 : f32 to vector<17x16xf32>
    %488 = arith.mulf %486, %487 : vector<17x16xf32>
    %489 = vector.extract_strided_slice %422 {offsets = [0, 112], sizes = [17, 16], strides = [1, 1]} : vector<17x192xf32> to vector<17x16xf32>
    %490 = vector.extract_strided_slice %422 {offsets = [0, 176], sizes = [17, 16], strides = [1, 1]} : vector<17x192xf32> to vector<17x16xf32>
    %491 = arith.truncf %488 : vector<17x16xf32> to vector<17x16xbf16>
    %492 = arith.truncf %489 : vector<17x16xf32> to vector<17x16xbf16>
    %cst_201 = arith.constant dense<0.000000e+00> : vector<17x17xf32>
    %493 = tpu.matmul %491, %492, %cst_201 {dimension_numbers = #tpu.dot_dimension_numbers<[1], [1], [0], [0], [0, 0, 1, 0], [], []>} : vector<17x16xbf16>, vector<17x16xbf16>, vector<17x17xf32> -> vector<17x17xf32>
    %cst_202 = arith.constant dense<0xFF800000> : vector<17xf32>
    %494 = vector.multi_reduction <maximumf>, %493, %cst_202 [1] : vector<17x17xf32> to vector<17xf32>
    %495 = vector.shape_cast %494 : vector<17xf32> to vector<17x1xf32>
    %496 = vector.broadcast %495 : vector<17x1xf32> to vector<17x17xf32>
    %497 = arith.subf %493, %496 : vector<17x17xf32>
    %498 = math.exp %497 : vector<17x17xf32>
    %cst_203 = arith.constant dense<0.000000e+00> : vector<17xf32>
    %499 = vector.multi_reduction <add>, %498, %cst_203 [1] : vector<17x17xf32> to vector<17xf32>
    %500 = vector.shape_cast %499 : vector<17xf32> to vector<17x1xf32>
    %501 = tpu.reciprocal %500 {approx = true} : vector<17x1xf32> -> vector<17x1xf32>
    %502 = vector.broadcast %501 : vector<17x1xf32> to vector<17x17xf32>
    %503 = arith.mulf %498, %502 : vector<17x17xf32>
    %504 = arith.truncf %503 : vector<17x17xf32> to vector<17x17xbf16>
    %505 = arith.truncf %490 : vector<17x16xf32> to vector<17x16xbf16>
    %cst_204 = arith.constant dense<0.000000e+00> : vector<17x16xf32>
    %506 = tpu.matmul %504, %505, %cst_204 {dimension_numbers = #tpu.dot_dimension_numbers<[1], [0], [0], [1], [0, 0, 1, 1], [], []>} : vector<17x17xbf16>, vector<17x16xbf16>, vector<17x16xf32> -> vector<17x16xf32>
    %507 = tpu.concatenate %443, %464, %485, %506 in 1 : vector<17x16xf32>, vector<17x16xf32>, vector<17x16xf32>, vector<17x16xf32> -> vector<17x64xf32>
    %508 = arith.truncf %507 : vector<17x64xf32> to vector<17x64xbf16>
    %cst_205 = arith.constant dense<0.000000e+00> : vector<17x64xf32>
    %509 = tpu.matmul %508, %416, %cst_205 {dimension_numbers = #tpu.dot_dimension_numbers<[1], [0], [0], [1], [0, 0, 1, 1], [], []>} : vector<17x64xbf16>, vector<64x64xbf16>, vector<17x64xf32> -> vector<17x64xf32>
    %510 = vector.broadcast %418 : vector<1x64xf32> to vector<17x64xf32>
    %511 = arith.addf %509, %510 : vector<17x64xf32>
    %512 = arith.addf %381, %511 : vector<17x64xf32>
    %c2_206 = arith.constant 2 : index
    %c0_207 = arith.constant 0 : index
    %c0_208 = arith.constant 0 : index
    %513 = vector.load %arg12[%c2_206, %c0_207, %c0_208] : memref<4x1x64xf32, #tpu.memory_space<vmem>>, vector<1x1x64xf32>
    %514 = vector.shape_cast %513 : vector<1x1x64xf32> to vector<1x64xf32>
    %c2_209 = arith.constant 2 : index
    %c0_210 = arith.constant 0 : index
    %c0_211 = arith.constant 0 : index
    %515 = vector.load %arg13[%c2_209, %c0_210, %c0_211] : memref<4x1x64xf32, #tpu.memory_space<vmem>>, vector<1x1x64xf32>
    %516 = vector.shape_cast %515 : vector<1x1x64xf32> to vector<1x64xf32>
    %cst_212 = arith.constant dense<0.000000e+00> : vector<17xf32>
    %517 = vector.multi_reduction <add>, %512, %cst_212 [1] : vector<17x64xf32> to vector<17xf32>
    %518 = vector.shape_cast %517 : vector<17xf32> to vector<17x1xf32>
    %cst_213 = arith.constant 6.400000e+01 : f32
    %519 = vector.broadcast %cst_213 : f32 to vector<17x1xf32>
    %520 = arith.divf %518, %519 : vector<17x1xf32>
    %521 = vector.broadcast %520 : vector<17x1xf32> to vector<17x64xf32>
    %522 = arith.subf %512, %521 : vector<17x64xf32>
    %523 = arith.mulf %522, %522 : vector<17x64xf32>
    %cst_214 = arith.constant dense<0.000000e+00> : vector<17xf32>
    %524 = vector.multi_reduction <add>, %523, %cst_214 [1] : vector<17x64xf32> to vector<17xf32>
    %525 = vector.shape_cast %524 : vector<17xf32> to vector<17x1xf32>
    %cst_215 = arith.constant 6.400000e+01 : f32
    %526 = vector.broadcast %cst_215 : f32 to vector<17x1xf32>
    %527 = arith.divf %525, %526 : vector<17x1xf32>
    %528 = vector.broadcast %520 : vector<17x1xf32> to vector<17x64xf32>
    %529 = arith.subf %512, %528 : vector<17x64xf32>
    %cst_216 = arith.constant 9.99999997E-7 : f32
    %530 = vector.broadcast %cst_216 : f32 to vector<17x1xf32>
    %531 = arith.addf %527, %530 : vector<17x1xf32>
    %532 = math.rsqrt %531 : vector<17x1xf32>
    %533 = vector.broadcast %532 : vector<17x1xf32> to vector<17x64xf32>
    %534 = arith.mulf %529, %533 : vector<17x64xf32>
    %535 = vector.broadcast %514 : vector<1x64xf32> to vector<17x64xf32>
    %536 = arith.mulf %534, %535 : vector<17x64xf32>
    %537 = vector.broadcast %516 : vector<1x64xf32> to vector<17x64xf32>
    %538 = arith.addf %536, %537 : vector<17x64xf32>
    %c2_217 = arith.constant 2 : index
    %c0_218 = arith.constant 0 : index
    %c0_219 = arith.constant 0 : index
    %539 = vector.load %arg14[%c2_217, %c0_218, %c0_219] : memref<4x64x256xbf16, #tpu.memory_space<vmem>>, vector<1x64x256xbf16>
    %540 = vector.shape_cast %539 : vector<1x64x256xbf16> to vector<64x256xbf16>
    %c2_220 = arith.constant 2 : index
    %c0_221 = arith.constant 0 : index
    %c0_222 = arith.constant 0 : index
    %541 = vector.load %arg15[%c2_220, %c0_221, %c0_222] : memref<4x1x256xf32, #tpu.memory_space<vmem>>, vector<1x1x256xf32>
    %542 = vector.shape_cast %541 : vector<1x1x256xf32> to vector<1x256xf32>
    %543 = arith.truncf %538 : vector<17x64xf32> to vector<17x64xbf16>
    %cst_223 = arith.constant dense<0.000000e+00> : vector<17x256xf32>
    %544 = tpu.matmul %543, %540, %cst_223 {dimension_numbers = #tpu.dot_dimension_numbers<[1], [0], [0], [1], [0, 0, 1, 1], [], []>} : vector<17x64xbf16>, vector<64x256xbf16>, vector<17x256xf32> -> vector<17x256xf32>
    %545 = vector.broadcast %542 : vector<1x256xf32> to vector<17x256xf32>
    %546 = arith.addf %544, %545 : vector<17x256xf32>
    %547 = arith.mulf %546, %546 : vector<17x256xf32>
    %548 = arith.mulf %546, %547 : vector<17x256xf32>
    %cst_224 = arith.constant 4.471500e-02 : f32
    %549 = vector.broadcast %cst_224 : f32 to vector<17x256xf32>
    %550 = arith.mulf %549, %548 : vector<17x256xf32>
    %551 = arith.addf %546, %550 : vector<17x256xf32>
    %cst_225 = arith.constant 0.797884583 : f32
    %552 = vector.broadcast %cst_225 : f32 to vector<17x256xf32>
    %553 = arith.mulf %552, %551 : vector<17x256xf32>
    %554 = math.tanh %553 : vector<17x256xf32>
    %cst_226 = arith.constant 1.000000e+00 : f32
    %555 = vector.broadcast %cst_226 : f32 to vector<17x256xf32>
    %556 = arith.addf %555, %554 : vector<17x256xf32>
    %cst_227 = arith.constant 5.000000e-01 : f32
    %557 = vector.broadcast %cst_227 : f32 to vector<17x256xf32>
    %558 = arith.mulf %557, %556 : vector<17x256xf32>
    %559 = arith.mulf %546, %558 : vector<17x256xf32>
    %c2_228 = arith.constant 2 : index
    %c0_229 = arith.constant 0 : index
    %c0_230 = arith.constant 0 : index
    %560 = vector.load %arg16[%c2_228, %c0_229, %c0_230] : memref<4x256x64xbf16, #tpu.memory_space<vmem>>, vector<1x256x64xbf16>
    %561 = vector.shape_cast %560 : vector<1x256x64xbf16> to vector<256x64xbf16>
    %c2_231 = arith.constant 2 : index
    %c0_232 = arith.constant 0 : index
    %c0_233 = arith.constant 0 : index
    %562 = vector.load %arg17[%c2_231, %c0_232, %c0_233] : memref<4x1x64xf32, #tpu.memory_space<vmem>>, vector<1x1x64xf32>
    %563 = vector.shape_cast %562 : vector<1x1x64xf32> to vector<1x64xf32>
    %564 = arith.truncf %559 : vector<17x256xf32> to vector<17x256xbf16>
    %cst_234 = arith.constant dense<0.000000e+00> : vector<17x64xf32>
    %565 = tpu.matmul %564, %561, %cst_234 {dimension_numbers = #tpu.dot_dimension_numbers<[1], [0], [0], [1], [0, 0, 1, 1], [], []>} : vector<17x256xbf16>, vector<256x64xbf16>, vector<17x64xf32> -> vector<17x64xf32>
    %566 = vector.broadcast %563 : vector<1x64xf32> to vector<17x64xf32>
    %567 = arith.addf %565, %566 : vector<17x64xf32>
    %568 = arith.addf %512, %567 : vector<17x64xf32>
    %c0_235 = arith.constant 0 : index
    %c0_236 = arith.constant 0 : index
    %c0_237 = arith.constant 0 : index
    %569 = vector.load %arg19[%c0_235, %c0_236, %c0_237] : memref<1x17x64xf32, #tpu.memory_space<vmem>>, vector<1x17x64xf32>
    %570 = vector.shape_cast %569 : vector<1x17x64xf32> to vector<17x64xf32>
    %571 = vector.shape_cast %568 : vector<17x64xf32> to vector<1x17x64xf32>
    tpu.vector_store %arg19[%c0_235, %c0_236, %c0_237], %571 {strides = array<i32>} : memref<1x17x64xf32, #tpu.memory_space<vmem>>, vector<1x17x64xf32>,
    %c3 = arith.constant 3 : index
    %c0_238 = arith.constant 0 : index
    %c0_239 = arith.constant 0 : index
    %572 = vector.load %arg6[%c3, %c0_238, %c0_239] : memref<4x1x64xf32, #tpu.memory_space<vmem>>, vector<1x1x64xf32>
    %573 = vector.shape_cast %572 : vector<1x1x64xf32> to vector<1x64xf32>
    %c3_240 = arith.constant 3 : index
    %c0_241 = arith.constant 0 : index
    %c0_242 = arith.constant 0 : index
    %574 = vector.load %arg7[%c3_240, %c0_241, %c0_242] : memref<4x1x64xf32, #tpu.memory_space<vmem>>, vector<1x1x64xf32>
    %575 = vector.shape_cast %574 : vector<1x1x64xf32> to vector<1x64xf32>
    %cst_243 = arith.constant dense<0.000000e+00> : vector<17xf32>
    %576 = vector.multi_reduction <add>, %568, %cst_243 [1] : vector<17x64xf32> to vector<17xf32>
    %577 = vector.shape_cast %576 : vector<17xf32> to vector<17x1xf32>
    %cst_244 = arith.constant 6.400000e+01 : f32
    %578 = vector.broadcast %cst_244 : f32 to vector<17x1xf32>
    %579 = arith.divf %577, %578 : vector<17x1xf32>
    %580 = vector.broadcast %579 : vector<17x1xf32> to vector<17x64xf32>
    %581 = arith.subf %568, %580 : vector<17x64xf32>
    %582 = arith.mulf %581, %581 : vector<17x64xf32>
    %cst_245 = arith.constant dense<0.000000e+00> : vector<17xf32>
    %583 = vector.multi_reduction <add>, %582, %cst_245 [1] : vector<17x64xf32> to vector<17xf32>
    %584 = vector.shape_cast %583 : vector<17xf32> to vector<17x1xf32>
    %cst_246 = arith.constant 6.400000e+01 : f32
    %585 = vector.broadcast %cst_246 : f32 to vector<17x1xf32>
    %586 = arith.divf %584, %585 : vector<17x1xf32>
    %587 = vector.broadcast %579 : vector<17x1xf32> to vector<17x64xf32>
    %588 = arith.subf %568, %587 : vector<17x64xf32>
    %cst_247 = arith.constant 9.99999997E-7 : f32
    %589 = vector.broadcast %cst_247 : f32 to vector<17x1xf32>
    %590 = arith.addf %586, %589 : vector<17x1xf32>
    %591 = math.rsqrt %590 : vector<17x1xf32>
    %592 = vector.broadcast %591 : vector<17x1xf32> to vector<17x64xf32>
    %593 = arith.mulf %588, %592 : vector<17x64xf32>
    %594 = vector.broadcast %573 : vector<1x64xf32> to vector<17x64xf32>
    %595 = arith.mulf %593, %594 : vector<17x64xf32>
    %596 = vector.broadcast %575 : vector<1x64xf32> to vector<17x64xf32>
    %597 = arith.addf %595, %596 : vector<17x64xf32>
    %c3_248 = arith.constant 3 : index
    %c0_249 = arith.constant 0 : index
    %c0_250 = arith.constant 0 : index
    %598 = vector.load %arg8[%c3_248, %c0_249, %c0_250] : memref<4x64x192xbf16, #tpu.memory_space<vmem>>, vector<1x64x192xbf16>
    %599 = vector.shape_cast %598 : vector<1x64x192xbf16> to vector<64x192xbf16>
    %c3_251 = arith.constant 3 : index
    %c0_252 = arith.constant 0 : index
    %c0_253 = arith.constant 0 : index
    %600 = vector.load %arg9[%c3_251, %c0_252, %c0_253] : memref<4x1x192xf32, #tpu.memory_space<vmem>>, vector<1x1x192xf32>
    %601 = vector.shape_cast %600 : vector<1x1x192xf32> to vector<1x192xf32>
    %c3_254 = arith.constant 3 : index
    %c0_255 = arith.constant 0 : index
    %c0_256 = arith.constant 0 : index
    %602 = vector.load %arg10[%c3_254, %c0_255, %c0_256] : memref<4x64x64xbf16, #tpu.memory_space<vmem>>, vector<1x64x64xbf16>
    %603 = vector.shape_cast %602 : vector<1x64x64xbf16> to vector<64x64xbf16>
    %c3_257 = arith.constant 3 : index
    %c0_258 = arith.constant 0 : index
    %c0_259 = arith.constant 0 : index
    %604 = vector.load %arg11[%c3_257, %c0_258, %c0_259] : memref<4x1x64xf32, #tpu.memory_space<vmem>>, vector<1x1x64xf32>
    %605 = vector.shape_cast %604 : vector<1x1x64xf32> to vector<1x64xf32>
    %606 = arith.truncf %597 : vector<17x64xf32> to vector<17x64xbf16>
    %cst_260 = arith.constant dense<0.000000e+00> : vector<17x192xf32>
    %607 = tpu.matmul %606, %599, %cst_260 {dimension_numbers = #tpu.dot_dimension_numbers<[1], [0], [0], [1], [0, 0, 1, 1], [], []>} : vector<17x64xbf16>, vector<64x192xbf16>, vector<17x192xf32> -> vector<17x192xf32>
    %608 = vector.broadcast %601 : vector<1x192xf32> to vector<17x192xf32>
    %609 = arith.addf %607, %608 : vector<17x192xf32>
    %610 = vector.extract_strided_slice %609 {offsets = [0, 0], sizes = [17, 16], strides = [1, 1]} : vector<17x192xf32> to vector<17x16xf32>
    %cst_261 = arith.constant 2.500000e-01 : f32
    %611 = vector.broadcast %cst_261 : f32 to vector<17x16xf32>
    %612 = arith.mulf %610, %611 : vector<17x16xf32>
    %613 = vector.extract_strided_slice %609 {offsets = [0, 64], sizes = [17, 16], strides = [1, 1]} : vector<17x192xf32> to vector<17x16xf32>
    %614 = vector.extract_strided_slice %609 {offsets = [0, 128], sizes = [17, 16], strides = [1, 1]} : vector<17x192xf32> to vector<17x16xf32>
    %615 = arith.truncf %612 : vector<17x16xf32> to vector<17x16xbf16>
    %616 = arith.truncf %613 : vector<17x16xf32> to vector<17x16xbf16>
    %cst_262 = arith.constant dense<0.000000e+00> : vector<17x17xf32>
    %617 = tpu.matmul %615, %616, %cst_262 {dimension_numbers = #tpu.dot_dimension_numbers<[1], [1], [0], [0], [0, 0, 1, 0], [], []>} : vector<17x16xbf16>, vector<17x16xbf16>, vector<17x17xf32> -> vector<17x17xf32>
    %cst_263 = arith.constant dense<0xFF800000> : vector<17xf32>
    %618 = vector.multi_reduction <maximumf>, %617, %cst_263 [1] : vector<17x17xf32> to vector<17xf32>
    %619 = vector.shape_cast %618 : vector<17xf32> to vector<17x1xf32>
    %620 = vector.broadcast %619 : vector<17x1xf32> to vector<17x17xf32>
    %621 = arith.subf %617, %620 : vector<17x17xf32>
    %622 = math.exp %621 : vector<17x17xf32>
    %cst_264 = arith.constant dense<0.000000e+00> : vector<17xf32>
    %623 = vector.multi_reduction <add>, %622, %cst_264 [1] : vector<17x17xf32> to vector<17xf32>
    %624 = vector.shape_cast %623 : vector<17xf32> to vector<17x1xf32>
    %625 = tpu.reciprocal %624 {approx = true} : vector<17x1xf32> -> vector<17x1xf32>
    %626 = vector.broadcast %625 : vector<17x1xf32> to vector<17x17xf32>
    %627 = arith.mulf %622, %626 : vector<17x17xf32>
    %628 = arith.truncf %627 : vector<17x17xf32> to vector<17x17xbf16>
    %629 = arith.truncf %614 : vector<17x16xf32> to vector<17x16xbf16>
    %cst_265 = arith.constant dense<0.000000e+00> : vector<17x16xf32>
    %630 = tpu.matmul %628, %629, %cst_265 {dimension_numbers = #tpu.dot_dimension_numbers<[1], [0], [0], [1], [0, 0, 1, 1], [], []>} : vector<17x17xbf16>, vector<17x16xbf16>, vector<17x16xf32> -> vector<17x16xf32>
    %631 = vector.extract_strided_slice %609 {offsets = [0, 16], sizes = [17, 16], strides = [1, 1]} : vector<17x192xf32> to vector<17x16xf32>
    %cst_266 = arith.constant 2.500000e-01 : f32
    %632 = vector.broadcast %cst_266 : f32 to vector<17x16xf32>
    %633 = arith.mulf %631, %632 : vector<17x16xf32>
    %634 = vector.extract_strided_slice %609 {offsets = [0, 80], sizes = [17, 16], strides = [1, 1]} : vector<17x192xf32> to vector<17x16xf32>
    %635 = vector.extract_strided_slice %609 {offsets = [0, 144], sizes = [17, 16], strides = [1, 1]} : vector<17x192xf32> to vector<17x16xf32>
    %636 = arith.truncf %633 : vector<17x16xf32> to vector<17x16xbf16>
    %637 = arith.truncf %634 : vector<17x16xf32> to vector<17x16xbf16>
    %cst_267 = arith.constant dense<0.000000e+00> : vector<17x17xf32>
    %638 = tpu.matmul %636, %637, %cst_267 {dimension_numbers = #tpu.dot_dimension_numbers<[1], [1], [0], [0], [0, 0, 1, 0], [], []>} : vector<17x16xbf16>, vector<17x16xbf16>, vector<17x17xf32> -> vector<17x17xf32>
    %cst_268 = arith.constant dense<0xFF800000> : vector<17xf32>
    %639 = vector.multi_reduction <maximumf>, %638, %cst_268 [1] : vector<17x17xf32> to vector<17xf32>
    %640 = vector.shape_cast %639 : vector<17xf32> to vector<17x1xf32>
    %641 = vector.broadcast %640 : vector<17x1xf32> to vector<17x17xf32>
    %642 = arith.subf %638, %641 : vector<17x17xf32>
    %643 = math.exp %642 : vector<17x17xf32>
    %cst_269 = arith.constant dense<0.000000e+00> : vector<17xf32>
    %644 = vector.multi_reduction <add>, %643, %cst_269 [1] : vector<17x17xf32> to vector<17xf32>
    %645 = vector.shape_cast %644 : vector<17xf32> to vector<17x1xf32>
    %646 = tpu.reciprocal %645 {approx = true} : vector<17x1xf32> -> vector<17x1xf32>
    %647 = vector.broadcast %646 : vector<17x1xf32> to vector<17x17xf32>
    %648 = arith.mulf %643, %647 : vector<17x17xf32>
    %649 = arith.truncf %648 : vector<17x17xf32> to vector<17x17xbf16>
    %650 = arith.truncf %635 : vector<17x16xf32> to vector<17x16xbf16>
    %cst_270 = arith.constant dense<0.000000e+00> : vector<17x16xf32>
    %651 = tpu.matmul %649, %650, %cst_270 {dimension_numbers = #tpu.dot_dimension_numbers<[1], [0], [0], [1], [0, 0, 1, 1], [], []>} : vector<17x17xbf16>, vector<17x16xbf16>, vector<17x16xf32> -> vector<17x16xf32>
    %652 = vector.extract_strided_slice %609 {offsets = [0, 32], sizes = [17, 16], strides = [1, 1]} : vector<17x192xf32> to vector<17x16xf32>
    %cst_271 = arith.constant 2.500000e-01 : f32
    %653 = vector.broadcast %cst_271 : f32 to vector<17x16xf32>
    %654 = arith.mulf %652, %653 : vector<17x16xf32>
    %655 = vector.extract_strided_slice %609 {offsets = [0, 96], sizes = [17, 16], strides = [1, 1]} : vector<17x192xf32> to vector<17x16xf32>
    %656 = vector.extract_strided_slice %609 {offsets = [0, 160], sizes = [17, 16], strides = [1, 1]} : vector<17x192xf32> to vector<17x16xf32>
    %657 = arith.truncf %654 : vector<17x16xf32> to vector<17x16xbf16>
    %658 = arith.truncf %655 : vector<17x16xf32> to vector<17x16xbf16>
    %cst_272 = arith.constant dense<0.000000e+00> : vector<17x17xf32>
    %659 = tpu.matmul %657, %658, %cst_272 {dimension_numbers = #tpu.dot_dimension_numbers<[1], [1], [0], [0], [0, 0, 1, 0], [], []>} : vector<17x16xbf16>, vector<17x16xbf16>, vector<17x17xf32> -> vector<17x17xf32>
    %cst_273 = arith.constant dense<0xFF800000> : vector<17xf32>
    %660 = vector.multi_reduction <maximumf>, %659, %cst_273 [1] : vector<17x17xf32> to vector<17xf32>
    %661 = vector.shape_cast %660 : vector<17xf32> to vector<17x1xf32>
    %662 = vector.broadcast %661 : vector<17x1xf32> to vector<17x17xf32>
    %663 = arith.subf %659, %662 : vector<17x17xf32>
    %664 = math.exp %663 : vector<17x17xf32>
    %cst_274 = arith.constant dense<0.000000e+00> : vector<17xf32>
    %665 = vector.multi_reduction <add>, %664, %cst_274 [1] : vector<17x17xf32> to vector<17xf32>
    %666 = vector.shape_cast %665 : vector<17xf32> to vector<17x1xf32>
    %667 = tpu.reciprocal %666 {approx = true} : vector<17x1xf32> -> vector<17x1xf32>
    %668 = vector.broadcast %667 : vector<17x1xf32> to vector<17x17xf32>
    %669 = arith.mulf %664, %668 : vector<17x17xf32>
    %670 = arith.truncf %669 : vector<17x17xf32> to vector<17x17xbf16>
    %671 = arith.truncf %656 : vector<17x16xf32> to vector<17x16xbf16>
    %cst_275 = arith.constant dense<0.000000e+00> : vector<17x16xf32>
    %672 = tpu.matmul %670, %671, %cst_275 {dimension_numbers = #tpu.dot_dimension_numbers<[1], [0], [0], [1], [0, 0, 1, 1], [], []>} : vector<17x17xbf16>, vector<17x16xbf16>, vector<17x16xf32> -> vector<17x16xf32>
    %673 = vector.extract_strided_slice %609 {offsets = [0, 48], sizes = [17, 16], strides = [1, 1]} : vector<17x192xf32> to vector<17x16xf32>
    %cst_276 = arith.constant 2.500000e-01 : f32
    %674 = vector.broadcast %cst_276 : f32 to vector<17x16xf32>
    %675 = arith.mulf %673, %674 : vector<17x16xf32>
    %676 = vector.extract_strided_slice %609 {offsets = [0, 112], sizes = [17, 16], strides = [1, 1]} : vector<17x192xf32> to vector<17x16xf32>
    %677 = vector.extract_strided_slice %609 {offsets = [0, 176], sizes = [17, 16], strides = [1, 1]} : vector<17x192xf32> to vector<17x16xf32>
    %678 = arith.truncf %675 : vector<17x16xf32> to vector<17x16xbf16>
    %679 = arith.truncf %676 : vector<17x16xf32> to vector<17x16xbf16>
    %cst_277 = arith.constant dense<0.000000e+00> : vector<17x17xf32>
    %680 = tpu.matmul %678, %679, %cst_277 {dimension_numbers = #tpu.dot_dimension_numbers<[1], [1], [0], [0], [0, 0, 1, 0], [], []>} : vector<17x16xbf16>, vector<17x16xbf16>, vector<17x17xf32> -> vector<17x17xf32>
    %cst_278 = arith.constant dense<0xFF800000> : vector<17xf32>
    %681 = vector.multi_reduction <maximumf>, %680, %cst_278 [1] : vector<17x17xf32> to vector<17xf32>
    %682 = vector.shape_cast %681 : vector<17xf32> to vector<17x1xf32>
    %683 = vector.broadcast %682 : vector<17x1xf32> to vector<17x17xf32>
    %684 = arith.subf %680, %683 : vector<17x17xf32>
    %685 = math.exp %684 : vector<17x17xf32>
    %cst_279 = arith.constant dense<0.000000e+00> : vector<17xf32>
    %686 = vector.multi_reduction <add>, %685, %cst_279 [1] : vector<17x17xf32> to vector<17xf32>
    %687 = vector.shape_cast %686 : vector<17xf32> to vector<17x1xf32>
    %688 = tpu.reciprocal %687 {approx = true} : vector<17x1xf32> -> vector<17x1xf32>
    %689 = vector.broadcast %688 : vector<17x1xf32> to vector<17x17xf32>
    %690 = arith.mulf %685, %689 : vector<17x17xf32>
    %691 = arith.truncf %690 : vector<17x17xf32> to vector<17x17xbf16>
    %692 = arith.truncf %677 : vector<17x16xf32> to vector<17x16xbf16>
    %cst_280 = arith.constant dense<0.000000e+00> : vector<17x16xf32>
    %693 = tpu.matmul %691, %692, %cst_280 {dimension_numbers = #tpu.dot_dimension_numbers<[1], [0], [0], [1], [0, 0, 1, 1], [], []>} : vector<17x17xbf16>, vector<17x16xbf16>, vector<17x16xf32> -> vector<17x16xf32>
    %694 = tpu.concatenate %630, %651, %672, %693 in 1 : vector<17x16xf32>, vector<17x16xf32>, vector<17x16xf32>, vector<17x16xf32> -> vector<17x64xf32>
    %695 = arith.truncf %694 : vector<17x64xf32> to vector<17x64xbf16>
    %cst_281 = arith.constant dense<0.000000e+00> : vector<17x64xf32>
    %696 = tpu.matmul %695, %603, %cst_281 {dimension_numbers = #tpu.dot_dimension_numbers<[1], [0], [0], [1], [0, 0, 1, 1], [], []>} : vector<17x64xbf16>, vector<64x64xbf16>, vector<17x64xf32> -> vector<17x64xf32>
    %697 = vector.broadcast %605 : vector<1x64xf32> to vector<17x64xf32>
    %698 = arith.addf %696, %697 : vector<17x64xf32>
    %699 = arith.addf %568, %698 : vector<17x64xf32>
    %c3_282 = arith.constant 3 : index
    %c0_283 = arith.constant 0 : index
    %c0_284 = arith.constant 0 : index
    %700 = vector.load %arg12[%c3_282, %c0_283, %c0_284] : memref<4x1x64xf32, #tpu.memory_space<vmem>>, vector<1x1x64xf32>
    %701 = vector.shape_cast %700 : vector<1x1x64xf32> to vector<1x64xf32>
    %c3_285 = arith.constant 3 : index
    %c0_286 = arith.constant 0 : index
    %c0_287 = arith.constant 0 : index
    %702 = vector.load %arg13[%c3_285, %c0_286, %c0_287] : memref<4x1x64xf32, #tpu.memory_space<vmem>>, vector<1x1x64xf32>
    %703 = vector.shape_cast %702 : vector<1x1x64xf32> to vector<1x64xf32>
    %cst_288 = arith.constant dense<0.000000e+00> : vector<17xf32>
    %704 = vector.multi_reduction <add>, %699, %cst_288 [1] : vector<17x64xf32> to vector<17xf32>
    %705 = vector.shape_cast %704 : vector<17xf32> to vector<17x1xf32>
    %cst_289 = arith.constant 6.400000e+01 : f32
    %706 = vector.broadcast %cst_289 : f32 to vector<17x1xf32>
    %707 = arith.divf %705, %706 : vector<17x1xf32>
    %708 = vector.broadcast %707 : vector<17x1xf32> to vector<17x64xf32>
    %709 = arith.subf %699, %708 : vector<17x64xf32>
    %710 = arith.mulf %709, %709 : vector<17x64xf32>
    %cst_290 = arith.constant dense<0.000000e+00> : vector<17xf32>
    %711 = vector.multi_reduction <add>, %710, %cst_290 [1] : vector<17x64xf32> to vector<17xf32>
    %712 = vector.shape_cast %711 : vector<17xf32> to vector<17x1xf32>
    %cst_291 = arith.constant 6.400000e+01 : f32
    %713 = vector.broadcast %cst_291 : f32 to vector<17x1xf32>
    %714 = arith.divf %712, %713 : vector<17x1xf32>
    %715 = vector.broadcast %707 : vector<17x1xf32> to vector<17x64xf32>
    %716 = arith.subf %699, %715 : vector<17x64xf32>
    %cst_292 = arith.constant 9.99999997E-7 : f32
    %717 = vector.broadcast %cst_292 : f32 to vector<17x1xf32>
    %718 = arith.addf %714, %717 : vector<17x1xf32>
    %719 = math.rsqrt %718 : vector<17x1xf32>
    %720 = vector.broadcast %719 : vector<17x1xf32> to vector<17x64xf32>
    %721 = arith.mulf %716, %720 : vector<17x64xf32>
    %722 = vector.broadcast %701 : vector<1x64xf32> to vector<17x64xf32>
    %723 = arith.mulf %721, %722 : vector<17x64xf32>
    %724 = vector.broadcast %703 : vector<1x64xf32> to vector<17x64xf32>
    %725 = arith.addf %723, %724 : vector<17x64xf32>
    %c3_293 = arith.constant 3 : index
    %c0_294 = arith.constant 0 : index
    %c0_295 = arith.constant 0 : index
    %726 = vector.load %arg14[%c3_293, %c0_294, %c0_295] : memref<4x64x256xbf16, #tpu.memory_space<vmem>>, vector<1x64x256xbf16>
    %727 = vector.shape_cast %726 : vector<1x64x256xbf16> to vector<64x256xbf16>
    %c3_296 = arith.constant 3 : index
    %c0_297 = arith.constant 0 : index
    %c0_298 = arith.constant 0 : index
    %728 = vector.load %arg15[%c3_296, %c0_297, %c0_298] : memref<4x1x256xf32, #tpu.memory_space<vmem>>, vector<1x1x256xf32>
    %729 = vector.shape_cast %728 : vector<1x1x256xf32> to vector<1x256xf32>
    %730 = arith.truncf %725 : vector<17x64xf32> to vector<17x64xbf16>
    %cst_299 = arith.constant dense<0.000000e+00> : vector<17x256xf32>
    %731 = tpu.matmul %730, %727, %cst_299 {dimension_numbers = #tpu.dot_dimension_numbers<[1], [0], [0], [1], [0, 0, 1, 1], [], []>} : vector<17x64xbf16>, vector<64x256xbf16>, vector<17x256xf32> -> vector<17x256xf32>
    %732 = vector.broadcast %729 : vector<1x256xf32> to vector<17x256xf32>
    %733 = arith.addf %731, %732 : vector<17x256xf32>
    %734 = arith.mulf %733, %733 : vector<17x256xf32>
    %735 = arith.mulf %733, %734 : vector<17x256xf32>
    %cst_300 = arith.constant 4.471500e-02 : f32
    %736 = vector.broadcast %cst_300 : f32 to vector<17x256xf32>
    %737 = arith.mulf %736, %735 : vector<17x256xf32>
    %738 = arith.addf %733, %737 : vector<17x256xf32>
    %cst_301 = arith.constant 0.797884583 : f32
    %739 = vector.broadcast %cst_301 : f32 to vector<17x256xf32>
    %740 = arith.mulf %739, %738 : vector<17x256xf32>
    %741 = math.tanh %740 : vector<17x256xf32>
    %cst_302 = arith.constant 1.000000e+00 : f32
    %742 = vector.broadcast %cst_302 : f32 to vector<17x256xf32>
    %743 = arith.addf %742, %741 : vector<17x256xf32>
    %cst_303 = arith.constant 5.000000e-01 : f32
    %744 = vector.broadcast %cst_303 : f32 to vector<17x256xf32>
    %745 = arith.mulf %744, %743 : vector<17x256xf32>
    %746 = arith.mulf %733, %745 : vector<17x256xf32>
    %c3_304 = arith.constant 3 : index
    %c0_305 = arith.constant 0 : index
    %c0_306 = arith.constant 0 : index
    %747 = vector.load %arg16[%c3_304, %c0_305, %c0_306] : memref<4x256x64xbf16, #tpu.memory_space<vmem>>, vector<1x256x64xbf16>
    %748 = vector.shape_cast %747 : vector<1x256x64xbf16> to vector<256x64xbf16>
    %c3_307 = arith.constant 3 : index
    %c0_308 = arith.constant 0 : index
    %c0_309 = arith.constant 0 : index
    %749 = vector.load %arg17[%c3_307, %c0_308, %c0_309] : memref<4x1x64xf32, #tpu.memory_space<vmem>>, vector<1x1x64xf32>
    %750 = vector.shape_cast %749 : vector<1x1x64xf32> to vector<1x64xf32>
    %751 = arith.truncf %746 : vector<17x256xf32> to vector<17x256xbf16>
    %cst_310 = arith.constant dense<0.000000e+00> : vector<17x64xf32>
    %752 = tpu.matmul %751, %748, %cst_310 {dimension_numbers = #tpu.dot_dimension_numbers<[1], [0], [0], [1], [0, 0, 1, 1], [], []>} : vector<17x256xbf16>, vector<256x64xbf16>, vector<17x64xf32> -> vector<17x64xf32>
    %753 = vector.broadcast %750 : vector<1x64xf32> to vector<17x64xf32>
    %754 = arith.addf %752, %753 : vector<17x64xf32>
    %755 = arith.addf %699, %754 : vector<17x64xf32>
    %c0_311 = arith.constant 0 : index
    %c0_312 = arith.constant 0 : index
    %c0_313 = arith.constant 0 : index
    %756 = vector.load %arg20[%c0_311, %c0_312, %c0_313] : memref<1x17x64xf32, #tpu.memory_space<vmem>>, vector<1x17x64xf32>
    %757 = vector.shape_cast %756 : vector<1x17x64xf32> to vector<17x64xf32>
    %758 = vector.shape_cast %755 : vector<17x64xf32> to vector<1x17x64xf32>
    tpu.vector_store %arg20[%c0_311, %c0_312, %c0_313], %758 {strides = array<i32>} : memref<1x17x64xf32, #tpu.memory_space<vmem>>, vector<1x17x64xf32>,
    return
  }
  func.func @transform_0(%arg0: i32) -> (i32, i32, i32) {
    %c0_i32 = arith.constant 0 : i32
    %c0_i32_0 = arith.constant 0 : i32
    %c0_i32_1 = arith.constant 0 : i32
    return %arg0, %c0_i32, %c0_i32_0 : i32, i32, i32
  }
  func.func @transform_1(%arg0: i32) -> (i32, i32) {
    %c0_i32 = arith.constant 0 : i32
    %c0_i32_0 = arith.constant 0 : i32
    %c0_i32_1 = arith.constant 0 : i32
    return %c0_i32, %c0_i32_0 : i32, i32
  }
  func.func @transform_2(%arg0: i32) -> (i32, i32) {
    %c0_i32 = arith.constant 0 : i32
    %c0_i32_0 = arith.constant 0 : i32
    %c0_i32_1 = arith.constant 0 : i32
    return %c0_i32, %c0_i32_0 : i32, i32
  }
  func.func @transform_3(%arg0: i32) -> (i32, i32, i32) {
    %c0_i32 = arith.constant 0 : i32
    %c0_i32_0 = arith.constant 0 : i32
    %c0_i32_1 = arith.constant 0 : i32
    %c0_i32_2 = arith.constant 0 : i32
    return %c0_i32, %c0_i32_0, %c0_i32_1 : i32, i32, i32
  }
  func.func @transform_4(%arg0: i32) -> (i32, i32, i32) {
    %c0_i32 = arith.constant 0 : i32
    %c0_i32_0 = arith.constant 0 : i32
    %c0_i32_1 = arith.constant 0 : i32
    %c0_i32_2 = arith.constant 0 : i32
    return %c0_i32, %c0_i32_0, %c0_i32_1 : i32, i32, i32
  }
  func.func @transform_5(%arg0: i32) -> (i32, i32, i32) {
    %c0_i32 = arith.constant 0 : i32
    %c0_i32_0 = arith.constant 0 : i32
    %c0_i32_1 = arith.constant 0 : i32
    %c0_i32_2 = arith.constant 0 : i32
    return %c0_i32, %c0_i32_0, %c0_i32_1 : i32, i32, i32
  }
  func.func @transform_6(%arg0: i32) -> (i32, i32, i32) {
    %c0_i32 = arith.constant 0 : i32
    %c0_i32_0 = arith.constant 0 : i32
    %c0_i32_1 = arith.constant 0 : i32
    %c0_i32_2 = arith.constant 0 : i32
    return %c0_i32, %c0_i32_0, %c0_i32_1 : i32, i32, i32
  }
  func.func @transform_7(%arg0: i32) -> (i32, i32, i32) {
    %c0_i32 = arith.constant 0 : i32
    %c0_i32_0 = arith.constant 0 : i32
    %c0_i32_1 = arith.constant 0 : i32
    %c0_i32_2 = arith.constant 0 : i32
    return %c0_i32, %c0_i32_0, %c0_i32_1 : i32, i32, i32
  }
  func.func @transform_8(%arg0: i32) -> (i32, i32, i32) {
    %c0_i32 = arith.constant 0 : i32
    %c0_i32_0 = arith.constant 0 : i32
    %c0_i32_1 = arith.constant 0 : i32
    %c0_i32_2 = arith.constant 0 : i32
    return %c0_i32, %c0_i32_0, %c0_i32_1 : i32, i32, i32
  }
  func.func @transform_9(%arg0: i32) -> (i32, i32, i32) {
    %c0_i32 = arith.constant 0 : i32
    %c0_i32_0 = arith.constant 0 : i32
    %c0_i32_1 = arith.constant 0 : i32
    %c0_i32_2 = arith.constant 0 : i32
    return %c0_i32, %c0_i32_0, %c0_i32_1 : i32, i32, i32
  }
  func.func @transform_10(%arg0: i32) -> (i32, i32, i32) {
    %c0_i32 = arith.constant 0 : i32
    %c0_i32_0 = arith.constant 0 : i32
    %c0_i32_1 = arith.constant 0 : i32
    %c0_i32_2 = arith.constant 0 : i32
    return %c0_i32, %c0_i32_0, %c0_i32_1 : i32, i32, i32
  }
  func.func @transform_11(%arg0: i32) -> (i32, i32, i32) {
    %c0_i32 = arith.constant 0 : i32
    %c0_i32_0 = arith.constant 0 : i32
    %c0_i32_1 = arith.constant 0 : i32
    %c0_i32_2 = arith.constant 0 : i32
    return %c0_i32, %c0_i32_0, %c0_i32_1 : i32, i32, i32
  }
  func.func @transform_12(%arg0: i32) -> (i32, i32, i32) {
    %c0_i32 = arith.constant 0 : i32
    %c0_i32_0 = arith.constant 0 : i32
    %c0_i32_1 = arith.constant 0 : i32
    %c0_i32_2 = arith.constant 0 : i32
    return %c0_i32, %c0_i32_0, %c0_i32_1 : i32, i32, i32
  }
  func.func @transform_13(%arg0: i32) -> (i32, i32, i32) {
    %c0_i32 = arith.constant 0 : i32
    %c0_i32_0 = arith.constant 0 : i32
    %c0_i32_1 = arith.constant 0 : i32
    %c0_i32_2 = arith.constant 0 : i32
    return %c0_i32, %c0_i32_0, %c0_i32_1 : i32, i32, i32
  }
  func.func @transform_14(%arg0: i32) -> (i32, i32, i32) {
    %c0_i32 = arith.constant 0 : i32
    %c0_i32_0 = arith.constant 0 : i32
    %c0_i32_1 = arith.constant 0 : i32
    %c0_i32_2 = arith.constant 0 : i32
    return %c0_i32, %c0_i32_0, %c0_i32_1 : i32, i32, i32
  }
  func.func @transform_15(%arg0: i32) -> (i32, i32, i32) {
    %c0_i32 = arith.constant 0 : i32
    %c0_i32_0 = arith.constant 0 : i32
    %c0_i32_1 = arith.constant 0 : i32
    %c0_i32_2 = arith.constant 0 : i32
    return %c0_i32, %c0_i32_0, %c0_i32_1 : i32, i32, i32
  }
  func.func @transform_16(%arg0: i32) -> (i32, i32, i32) {
    %c0_i32 = arith.constant 0 : i32
    %c0_i32_0 = arith.constant 0 : i32
    %c0_i32_1 = arith.constant 0 : i32
    %c0_i32_2 = arith.constant 0 : i32
    return %c0_i32, %c0_i32_0, %c0_i32_1 : i32, i32, i32
  }
  func.func @transform_17(%arg0: i32) -> (i32, i32, i32) {
    %c0_i32 = arith.constant 0 : i32
    %c0_i32_0 = arith.constant 0 : i32
    %c0_i32_1 = arith.constant 0 : i32
    return %arg0, %c0_i32, %c0_i32_0 : i32, i32, i32
  }
  func.func @transform_18(%arg0: i32) -> (i32, i32, i32) {
    %c0_i32 = arith.constant 0 : i32
    %c0_i32_0 = arith.constant 0 : i32
    %c0_i32_1 = arith.constant 0 : i32
    return %arg0, %c0_i32, %c0_i32_0 : i32, i32, i32
  }
  func.func @transform_19(%arg0: i32) -> (i32, i32, i32) {
    %c0_i32 = arith.constant 0 : i32
    %c0_i32_0 = arith.constant 0 : i32
    %c0_i32_1 = arith.constant 0 : i32
    return %arg0, %c0_i32, %c0_i32_0 : i32, i32, i32
  }
}

module attributes {stable_mosaic.version = 11 : i64} {
  func.func @_decoder_kernel(%arg0: i32, %arg1: memref<1x17x64xf32, #tpu.memory_space<vmem>>, %arg2: memref<1x17x64xf32, #tpu.memory_space<vmem>>, %arg3: memref<1x17x64xf32, #tpu.memory_space<vmem>>, %arg4: memref<1x1x32xf32, #tpu.memory_space<vmem>>, %arg5: memref<32x32xbf16, #tpu.memory_space<vmem>>, %arg6: memref<1x32xf32, #tpu.memory_space<vmem>>, %arg7: memref<32x32xbf16, #tpu.memory_space<vmem>>, %arg8: memref<1x32xf32, #tpu.memory_space<vmem>>, %arg9: memref<3x64x32xbf16, #tpu.memory_space<vmem>>, %arg10: memref<3x1x32xf32, #tpu.memory_space<vmem>>, %arg11: memref<3x32x96xbf16, #tpu.memory_space<vmem>>, %arg12: memref<3x1x96xf32, #tpu.memory_space<vmem>>, %arg13: memref<3x32x32xbf16, #tpu.memory_space<vmem>>, %arg14: memref<3x1x32xf32, #tpu.memory_space<vmem>>, %arg15: memref<3x1x32xf32, #tpu.memory_space<vmem>>, %arg16: memref<3x1x32xf32, #tpu.memory_space<vmem>>, %arg17: memref<3x32x64xbf16, #tpu.memory_space<vmem>>, %arg18: memref<3x1x64xf32, #tpu.memory_space<vmem>>, %arg19: memref<3x64x32xbf16, #tpu.memory_space<vmem>>, %arg20: memref<3x1x32xf32, #tpu.memory_space<vmem>>, %arg21: memref<3x1x32xf32, #tpu.memory_space<vmem>>, %arg22: memref<3x1x32xf32, #tpu.memory_space<vmem>>, %arg23: memref<32x256xbf16, #tpu.memory_space<vmem>>, %arg24: memref<1x256xf32, #tpu.memory_space<vmem>>, %arg25: memref<1x16x256xf32, #tpu.memory_space<vmem>>) attributes {dimension_semantics = [#tpu.dimension_semantics<parallel>], iteration_bounds = array<i64: 2>, scalar_prefetch = 0 : i64, scratch_operands = 0 : i64, tpu.core_type = #tpu.core_type<tc>, window_params = [{transform_indices = @transform_0, window_bounds = array<i64: 1, 17, 64>}, {transform_indices = @transform_1, window_bounds = array<i64: 1, 17, 64>}, {transform_indices = @transform_2, window_bounds = array<i64: 1, 17, 64>}, {transform_indices = @transform_3, window_bounds = array<i64: 1, 1, 32>}, {pipeline_mode = #tpu.pipeline_mode<synchronous>, transform_indices = @transform_4, window_bounds = array<i64: 32, 32>}, {pipeline_mode = #tpu.pipeline_mode<synchronous>, transform_indices = @transform_5, window_bounds = array<i64: 1, 32>}, {pipeline_mode = #tpu.pipeline_mode<synchronous>, transform_indices = @transform_6, window_bounds = array<i64: 32, 32>}, {pipeline_mode = #tpu.pipeline_mode<synchronous>, transform_indices = @transform_7, window_bounds = array<i64: 1, 32>}, {pipeline_mode = #tpu.pipeline_mode<synchronous>, transform_indices = @transform_8, window_bounds = array<i64: 3, 64, 32>}, {pipeline_mode = #tpu.pipeline_mode<synchronous>, transform_indices = @transform_9, window_bounds = array<i64: 3, 1, 32>}, {pipeline_mode = #tpu.pipeline_mode<synchronous>, transform_indices = @transform_10, window_bounds = array<i64: 3, 32, 96>}, {pipeline_mode = #tpu.pipeline_mode<synchronous>, transform_indices = @transform_11, window_bounds = array<i64: 3, 1, 96>}, {pipeline_mode = #tpu.pipeline_mode<synchronous>, transform_indices = @transform_12, window_bounds = array<i64: 3, 32, 32>}, {pipeline_mode = #tpu.pipeline_mode<synchronous>, transform_indices = @transform_13, window_bounds = array<i64: 3, 1, 32>}, {pipeline_mode = #tpu.pipeline_mode<synchronous>, transform_indices = @transform_14, window_bounds = array<i64: 3, 1, 32>}, {pipeline_mode = #tpu.pipeline_mode<synchronous>, transform_indices = @transform_15, window_bounds = array<i64: 3, 1, 32>}, {pipeline_mode = #tpu.pipeline_mode<synchronous>, transform_indices = @transform_16, window_bounds = array<i64: 3, 32, 64>}, {pipeline_mode = #tpu.pipeline_mode<synchronous>, transform_indices = @transform_17, window_bounds = array<i64: 3, 1, 64>}, {pipeline_mode = #tpu.pipeline_mode<synchronous>, transform_indices = @transform_18, window_bounds = array<i64: 3, 64, 32>}, {pipeline_mode = #tpu.pipeline_mode<synchronous>, transform_indices = @transform_19, window_bounds = array<i64: 3, 1, 32>}, {pipeline_mode = #tpu.pipeline_mode<synchronous>, transform_indices = @transform_20, window_bounds = array<i64: 3, 1, 32>}, {pipeline_mode = #tpu.pipeline_mode<synchronous>, transform_indices = @transform_21, window_bounds = array<i64: 3, 1, 32>}, {pipeline_mode = #tpu.pipeline_mode<synchronous>, transform_indices = @transform_22, window_bounds = array<i64: 32, 256>}, {pipeline_mode = #tpu.pipeline_mode<synchronous>, transform_indices = @transform_23, window_bounds = array<i64: 1, 256>}, {transform_indices = @transform_24, window_bounds = array<i64: 1, 16, 256>}]} {
    %c0 = arith.constant 0 : index
    %c0_0 = arith.constant 0 : index
    %c0_1 = arith.constant 0 : index
    %0 = vector.load %arg1[%c0, %c0_0, %c0_1] : memref<1x17x64xf32, #tpu.memory_space<vmem>>, vector<1x17x64xf32>
    %1 = vector.shape_cast %0 : vector<1x17x64xf32> to vector<17x64xf32>
    %c0_2 = arith.constant 0 : index
    %c0_3 = arith.constant 0 : index
    %c0_4 = arith.constant 0 : index
    %2 = vector.load %arg2[%c0_2, %c0_3, %c0_4] : memref<1x17x64xf32, #tpu.memory_space<vmem>>, vector<1x17x64xf32>
    %3 = vector.shape_cast %2 : vector<1x17x64xf32> to vector<17x64xf32>
    %c0_5 = arith.constant 0 : index
    %c0_6 = arith.constant 0 : index
    %c0_7 = arith.constant 0 : index
    %4 = vector.load %arg3[%c0_5, %c0_6, %c0_7] : memref<1x17x64xf32, #tpu.memory_space<vmem>>, vector<1x17x64xf32>
    %5 = vector.shape_cast %4 : vector<1x17x64xf32> to vector<17x64xf32>
    %c0_8 = arith.constant 0 : index
    %c0_9 = arith.constant 0 : index
    %c0_10 = arith.constant 0 : index
    %6 = vector.load %arg9[%c0_8, %c0_9, %c0_10] : memref<3x64x32xbf16, #tpu.memory_space<vmem>>, vector<1x64x32xbf16>
    %7 = vector.shape_cast %6 : vector<1x64x32xbf16> to vector<64x32xbf16>
    %c0_11 = arith.constant 0 : index
    %c0_12 = arith.constant 0 : index
    %c0_13 = arith.constant 0 : index
    %8 = vector.load %arg10[%c0_11, %c0_12, %c0_13] : memref<3x1x32xf32, #tpu.memory_space<vmem>>, vector<1x1x32xf32>
    %9 = vector.shape_cast %8 : vector<1x1x32xf32> to vector<1x32xf32>
    %10 = arith.truncf %1 : vector<17x64xf32> to vector<17x64xbf16>
    %cst = arith.constant dense<0.000000e+00> : vector<17x32xf32>
    %11 = tpu.matmul %10, %7, %cst {dimension_numbers = #tpu.dot_dimension_numbers<[1], [0], [0], [1], [0, 0, 1, 1], [], []>} : vector<17x64xbf16>, vector<64x32xbf16>, vector<17x32xf32> -> vector<17x32xf32>
    %12 = vector.broadcast %9 : vector<1x32xf32> to vector<17x32xf32>
    %13 = arith.addf %11, %12 : vector<17x32xf32>
    %c0_14 = arith.constant 0 : index
    %c0_15 = arith.constant 0 : index
    %c0_16 = arith.constant 0 : index
    %14 = vector.load %arg4[%c0_14, %c0_15, %c0_16] : memref<1x1x32xf32, #tpu.memory_space<vmem>>, vector<1x1x32xf32>
    %15 = vector.shape_cast %14 : vector<1x1x32xf32> to vector<1x32xf32>
    %c0_17 = arith.constant 0 : index
    %c0_18 = arith.constant 0 : index
    %16 = vector.load %arg5[%c0_17, %c0_18] : memref<32x32xbf16, #tpu.memory_space<vmem>>, vector<32x32xbf16>
    %c0_19 = arith.constant 0 : index
    %c0_20 = arith.constant 0 : index
    %17 = vector.load %arg6[%c0_19, %c0_20] : memref<1x32xf32, #tpu.memory_space<vmem>>, vector<1x32xf32>
    %18 = arith.truncf %15 : vector<1x32xf32> to vector<1x32xbf16>
    %cst_21 = arith.constant dense<0.000000e+00> : vector<1x32xf32>
    %19 = tpu.matmul %18, %16, %cst_21 {dimension_numbers = #tpu.dot_dimension_numbers<[1], [0], [0], [1], [0, 0, 1, 1], [], []>} : vector<1x32xbf16>, vector<32x32xbf16>, vector<1x32xf32> -> vector<1x32xf32>
    %20 = arith.addf %19, %17 : vector<1x32xf32>
    %21 = vector.broadcast %20 : vector<1x32xf32> to vector<17x32xf32>
    %22 = arith.mulf %21, %13 : vector<17x32xf32>
    %c0_22 = arith.constant 0 : index
    %c0_23 = arith.constant 0 : index
    %23 = vector.load %arg7[%c0_22, %c0_23] : memref<32x32xbf16, #tpu.memory_space<vmem>>, vector<32x32xbf16>
    %c0_24 = arith.constant 0 : index
    %c0_25 = arith.constant 0 : index
    %24 = vector.load %arg8[%c0_24, %c0_25] : memref<1x32xf32, #tpu.memory_space<vmem>>, vector<1x32xf32>
    %25 = arith.truncf %15 : vector<1x32xf32> to vector<1x32xbf16>
    %cst_26 = arith.constant dense<0.000000e+00> : vector<1x32xf32>
    %26 = tpu.matmul %25, %23, %cst_26 {dimension_numbers = #tpu.dot_dimension_numbers<[1], [0], [0], [1], [0, 0, 1, 1], [], []>} : vector<1x32xbf16>, vector<32x32xbf16>, vector<1x32xf32> -> vector<1x32xf32>
    %27 = arith.addf %26, %24 : vector<1x32xf32>
    %28 = vector.broadcast %27 : vector<1x32xf32> to vector<17x32xf32>
    %29 = arith.addf %22, %28 : vector<17x32xf32>
    %c0_27 = arith.constant 0 : index
    %c0_28 = arith.constant 0 : index
    %c0_29 = arith.constant 0 : index
    %30 = vector.load %arg11[%c0_27, %c0_28, %c0_29] : memref<3x32x96xbf16, #tpu.memory_space<vmem>>, vector<1x32x96xbf16>
    %31 = vector.shape_cast %30 : vector<1x32x96xbf16> to vector<32x96xbf16>
    %c0_30 = arith.constant 0 : index
    %c0_31 = arith.constant 0 : index
    %c0_32 = arith.constant 0 : index
    %32 = vector.load %arg12[%c0_30, %c0_31, %c0_32] : memref<3x1x96xf32, #tpu.memory_space<vmem>>, vector<1x1x96xf32>
    %33 = vector.shape_cast %32 : vector<1x1x96xf32> to vector<1x96xf32>
    %c0_33 = arith.constant 0 : index
    %c0_34 = arith.constant 0 : index
    %c0_35 = arith.constant 0 : index
    %34 = vector.load %arg13[%c0_33, %c0_34, %c0_35] : memref<3x32x32xbf16, #tpu.memory_space<vmem>>, vector<1x32x32xbf16>
    %35 = vector.shape_cast %34 : vector<1x32x32xbf16> to vector<32x32xbf16>
    %c0_36 = arith.constant 0 : index
    %c0_37 = arith.constant 0 : index
    %c0_38 = arith.constant 0 : index
    %36 = vector.load %arg14[%c0_36, %c0_37, %c0_38] : memref<3x1x32xf32, #tpu.memory_space<vmem>>, vector<1x1x32xf32>
    %37 = vector.shape_cast %36 : vector<1x1x32xf32> to vector<1x32xf32>
    %38 = arith.truncf %29 : vector<17x32xf32> to vector<17x32xbf16>
    %cst_39 = arith.constant dense<0.000000e+00> : vector<17x96xf32>
    %39 = tpu.matmul %38, %31, %cst_39 {dimension_numbers = #tpu.dot_dimension_numbers<[1], [0], [0], [1], [0, 0, 1, 1], [], []>} : vector<17x32xbf16>, vector<32x96xbf16>, vector<17x96xf32> -> vector<17x96xf32>
    %40 = vector.broadcast %33 : vector<1x96xf32> to vector<17x96xf32>
    %41 = arith.addf %39, %40 : vector<17x96xf32>
    %42 = vector.extract_strided_slice %41 {offsets = [0, 0], sizes = [17, 8], strides = [1, 1]} : vector<17x96xf32> to vector<17x8xf32>
    %cst_40 = arith.constant 0.353553385 : f32
    %43 = vector.broadcast %cst_40 : f32 to vector<17x8xf32>
    %44 = arith.mulf %42, %43 : vector<17x8xf32>
    %45 = vector.extract_strided_slice %41 {offsets = [0, 32], sizes = [17, 8], strides = [1, 1]} : vector<17x96xf32> to vector<17x8xf32>
    %46 = vector.extract_strided_slice %41 {offsets = [0, 64], sizes = [17, 8], strides = [1, 1]} : vector<17x96xf32> to vector<17x8xf32>
    %47 = arith.truncf %44 : vector<17x8xf32> to vector<17x8xbf16>
    %48 = arith.truncf %45 : vector<17x8xf32> to vector<17x8xbf16>
    %cst_41 = arith.constant dense<0.000000e+00> : vector<17x17xf32>
    %49 = tpu.matmul %47, %48, %cst_41 {dimension_numbers = #tpu.dot_dimension_numbers<[1], [1], [0], [0], [0, 0, 1, 0], [], []>} : vector<17x8xbf16>, vector<17x8xbf16>, vector<17x17xf32> -> vector<17x17xf32>
    %cst_42 = arith.constant dense<0xFF800000> : vector<17xf32>
    %50 = vector.multi_reduction <maximumf>, %49, %cst_42 [1] : vector<17x17xf32> to vector<17xf32>
    %51 = vector.shape_cast %50 : vector<17xf32> to vector<17x1xf32>
    %52 = vector.broadcast %51 : vector<17x1xf32> to vector<17x17xf32>
    %53 = arith.subf %49, %52 : vector<17x17xf32>
    %54 = math.exp %53 : vector<17x17xf32>
    %cst_43 = arith.constant dense<0.000000e+00> : vector<17xf32>
    %55 = vector.multi_reduction <add>, %54, %cst_43 [1] : vector<17x17xf32> to vector<17xf32>
    %56 = vector.shape_cast %55 : vector<17xf32> to vector<17x1xf32>
    %57 = tpu.reciprocal %56 {approx = true} : vector<17x1xf32> -> vector<17x1xf32>
    %58 = vector.broadcast %57 : vector<17x1xf32> to vector<17x17xf32>
    %59 = arith.mulf %54, %58 : vector<17x17xf32>
    %60 = arith.truncf %59 : vector<17x17xf32> to vector<17x17xbf16>
    %61 = arith.truncf %46 : vector<17x8xf32> to vector<17x8xbf16>
    %cst_44 = arith.constant dense<0.000000e+00> : vector<17x8xf32>
    %62 = tpu.matmul %60, %61, %cst_44 {dimension_numbers = #tpu.dot_dimension_numbers<[1], [0], [0], [1], [0, 0, 1, 1], [], []>} : vector<17x17xbf16>, vector<17x8xbf16>, vector<17x8xf32> -> vector<17x8xf32>
    %63 = vector.extract_strided_slice %41 {offsets = [0, 8], sizes = [17, 8], strides = [1, 1]} : vector<17x96xf32> to vector<17x8xf32>
    %cst_45 = arith.constant 0.353553385 : f32
    %64 = vector.broadcast %cst_45 : f32 to vector<17x8xf32>
    %65 = arith.mulf %63, %64 : vector<17x8xf32>
    %66 = vector.extract_strided_slice %41 {offsets = [0, 40], sizes = [17, 8], strides = [1, 1]} : vector<17x96xf32> to vector<17x8xf32>
    %67 = vector.extract_strided_slice %41 {offsets = [0, 72], sizes = [17, 8], strides = [1, 1]} : vector<17x96xf32> to vector<17x8xf32>
    %68 = arith.truncf %65 : vector<17x8xf32> to vector<17x8xbf16>
    %69 = arith.truncf %66 : vector<17x8xf32> to vector<17x8xbf16>
    %cst_46 = arith.constant dense<0.000000e+00> : vector<17x17xf32>
    %70 = tpu.matmul %68, %69, %cst_46 {dimension_numbers = #tpu.dot_dimension_numbers<[1], [1], [0], [0], [0, 0, 1, 0], [], []>} : vector<17x8xbf16>, vector<17x8xbf16>, vector<17x17xf32> -> vector<17x17xf32>
    %cst_47 = arith.constant dense<0xFF800000> : vector<17xf32>
    %71 = vector.multi_reduction <maximumf>, %70, %cst_47 [1] : vector<17x17xf32> to vector<17xf32>
    %72 = vector.shape_cast %71 : vector<17xf32> to vector<17x1xf32>
    %73 = vector.broadcast %72 : vector<17x1xf32> to vector<17x17xf32>
    %74 = arith.subf %70, %73 : vector<17x17xf32>
    %75 = math.exp %74 : vector<17x17xf32>
    %cst_48 = arith.constant dense<0.000000e+00> : vector<17xf32>
    %76 = vector.multi_reduction <add>, %75, %cst_48 [1] : vector<17x17xf32> to vector<17xf32>
    %77 = vector.shape_cast %76 : vector<17xf32> to vector<17x1xf32>
    %78 = tpu.reciprocal %77 {approx = true} : vector<17x1xf32> -> vector<17x1xf32>
    %79 = vector.broadcast %78 : vector<17x1xf32> to vector<17x17xf32>
    %80 = arith.mulf %75, %79 : vector<17x17xf32>
    %81 = arith.truncf %80 : vector<17x17xf32> to vector<17x17xbf16>
    %82 = arith.truncf %67 : vector<17x8xf32> to vector<17x8xbf16>
    %cst_49 = arith.constant dense<0.000000e+00> : vector<17x8xf32>
    %83 = tpu.matmul %81, %82, %cst_49 {dimension_numbers = #tpu.dot_dimension_numbers<[1], [0], [0], [1], [0, 0, 1, 1], [], []>} : vector<17x17xbf16>, vector<17x8xbf16>, vector<17x8xf32> -> vector<17x8xf32>
    %84 = vector.extract_strided_slice %41 {offsets = [0, 16], sizes = [17, 8], strides = [1, 1]} : vector<17x96xf32> to vector<17x8xf32>
    %cst_50 = arith.constant 0.353553385 : f32
    %85 = vector.broadcast %cst_50 : f32 to vector<17x8xf32>
    %86 = arith.mulf %84, %85 : vector<17x8xf32>
    %87 = vector.extract_strided_slice %41 {offsets = [0, 48], sizes = [17, 8], strides = [1, 1]} : vector<17x96xf32> to vector<17x8xf32>
    %88 = vector.extract_strided_slice %41 {offsets = [0, 80], sizes = [17, 8], strides = [1, 1]} : vector<17x96xf32> to vector<17x8xf32>
    %89 = arith.truncf %86 : vector<17x8xf32> to vector<17x8xbf16>
    %90 = arith.truncf %87 : vector<17x8xf32> to vector<17x8xbf16>
    %cst_51 = arith.constant dense<0.000000e+00> : vector<17x17xf32>
    %91 = tpu.matmul %89, %90, %cst_51 {dimension_numbers = #tpu.dot_dimension_numbers<[1], [1], [0], [0], [0, 0, 1, 0], [], []>} : vector<17x8xbf16>, vector<17x8xbf16>, vector<17x17xf32> -> vector<17x17xf32>
    %cst_52 = arith.constant dense<0xFF800000> : vector<17xf32>
    %92 = vector.multi_reduction <maximumf>, %91, %cst_52 [1] : vector<17x17xf32> to vector<17xf32>
    %93 = vector.shape_cast %92 : vector<17xf32> to vector<17x1xf32>
    %94 = vector.broadcast %93 : vector<17x1xf32> to vector<17x17xf32>
    %95 = arith.subf %91, %94 : vector<17x17xf32>
    %96 = math.exp %95 : vector<17x17xf32>
    %cst_53 = arith.constant dense<0.000000e+00> : vector<17xf32>
    %97 = vector.multi_reduction <add>, %96, %cst_53 [1] : vector<17x17xf32> to vector<17xf32>
    %98 = vector.shape_cast %97 : vector<17xf32> to vector<17x1xf32>
    %99 = tpu.reciprocal %98 {approx = true} : vector<17x1xf32> -> vector<17x1xf32>
    %100 = vector.broadcast %99 : vector<17x1xf32> to vector<17x17xf32>
    %101 = arith.mulf %96, %100 : vector<17x17xf32>
    %102 = arith.truncf %101 : vector<17x17xf32> to vector<17x17xbf16>
    %103 = arith.truncf %88 : vector<17x8xf32> to vector<17x8xbf16>
    %cst_54 = arith.constant dense<0.000000e+00> : vector<17x8xf32>
    %104 = tpu.matmul %102, %103, %cst_54 {dimension_numbers = #tpu.dot_dimension_numbers<[1], [0], [0], [1], [0, 0, 1, 1], [], []>} : vector<17x17xbf16>, vector<17x8xbf16>, vector<17x8xf32> -> vector<17x8xf32>
    %105 = vector.extract_strided_slice %41 {offsets = [0, 24], sizes = [17, 8], strides = [1, 1]} : vector<17x96xf32> to vector<17x8xf32>
    %cst_55 = arith.constant 0.353553385 : f32
    %106 = vector.broadcast %cst_55 : f32 to vector<17x8xf32>
    %107 = arith.mulf %105, %106 : vector<17x8xf32>
    %108 = vector.extract_strided_slice %41 {offsets = [0, 56], sizes = [17, 8], strides = [1, 1]} : vector<17x96xf32> to vector<17x8xf32>
    %109 = vector.extract_strided_slice %41 {offsets = [0, 88], sizes = [17, 8], strides = [1, 1]} : vector<17x96xf32> to vector<17x8xf32>
    %110 = arith.truncf %107 : vector<17x8xf32> to vector<17x8xbf16>
    %111 = arith.truncf %108 : vector<17x8xf32> to vector<17x8xbf16>
    %cst_56 = arith.constant dense<0.000000e+00> : vector<17x17xf32>
    %112 = tpu.matmul %110, %111, %cst_56 {dimension_numbers = #tpu.dot_dimension_numbers<[1], [1], [0], [0], [0, 0, 1, 0], [], []>} : vector<17x8xbf16>, vector<17x8xbf16>, vector<17x17xf32> -> vector<17x17xf32>
    %cst_57 = arith.constant dense<0xFF800000> : vector<17xf32>
    %113 = vector.multi_reduction <maximumf>, %112, %cst_57 [1] : vector<17x17xf32> to vector<17xf32>
    %114 = vector.shape_cast %113 : vector<17xf32> to vector<17x1xf32>
    %115 = vector.broadcast %114 : vector<17x1xf32> to vector<17x17xf32>
    %116 = arith.subf %112, %115 : vector<17x17xf32>
    %117 = math.exp %116 : vector<17x17xf32>
    %cst_58 = arith.constant dense<0.000000e+00> : vector<17xf32>
    %118 = vector.multi_reduction <add>, %117, %cst_58 [1] : vector<17x17xf32> to vector<17xf32>
    %119 = vector.shape_cast %118 : vector<17xf32> to vector<17x1xf32>
    %120 = tpu.reciprocal %119 {approx = true} : vector<17x1xf32> -> vector<17x1xf32>
    %121 = vector.broadcast %120 : vector<17x1xf32> to vector<17x17xf32>
    %122 = arith.mulf %117, %121 : vector<17x17xf32>
    %123 = arith.truncf %122 : vector<17x17xf32> to vector<17x17xbf16>
    %124 = arith.truncf %109 : vector<17x8xf32> to vector<17x8xbf16>
    %cst_59 = arith.constant dense<0.000000e+00> : vector<17x8xf32>
    %125 = tpu.matmul %123, %124, %cst_59 {dimension_numbers = #tpu.dot_dimension_numbers<[1], [0], [0], [1], [0, 0, 1, 1], [], []>} : vector<17x17xbf16>, vector<17x8xbf16>, vector<17x8xf32> -> vector<17x8xf32>
    %126 = tpu.concatenate %62, %83, %104, %125 in 1 : vector<17x8xf32>, vector<17x8xf32>, vector<17x8xf32>, vector<17x8xf32> -> vector<17x32xf32>
    %127 = arith.truncf %126 : vector<17x32xf32> to vector<17x32xbf16>
    %cst_60 = arith.constant dense<0.000000e+00> : vector<17x32xf32>
    %128 = tpu.matmul %127, %35, %cst_60 {dimension_numbers = #tpu.dot_dimension_numbers<[1], [0], [0], [1], [0, 0, 1, 1], [], []>} : vector<17x32xbf16>, vector<32x32xbf16>, vector<17x32xf32> -> vector<17x32xf32>
    %129 = vector.broadcast %37 : vector<1x32xf32> to vector<17x32xf32>
    %130 = arith.addf %128, %129 : vector<17x32xf32>
    %131 = arith.addf %29, %130 : vector<17x32xf32>
    %c0_61 = arith.constant 0 : index
    %c0_62 = arith.constant 0 : index
    %c0_63 = arith.constant 0 : index
    %132 = vector.load %arg15[%c0_61, %c0_62, %c0_63] : memref<3x1x32xf32, #tpu.memory_space<vmem>>, vector<1x1x32xf32>
    %133 = vector.shape_cast %132 : vector<1x1x32xf32> to vector<1x32xf32>
    %c0_64 = arith.constant 0 : index
    %c0_65 = arith.constant 0 : index
    %c0_66 = arith.constant 0 : index
    %134 = vector.load %arg16[%c0_64, %c0_65, %c0_66] : memref<3x1x32xf32, #tpu.memory_space<vmem>>, vector<1x1x32xf32>
    %135 = vector.shape_cast %134 : vector<1x1x32xf32> to vector<1x32xf32>
    %cst_67 = arith.constant dense<0.000000e+00> : vector<17xf32>
    %136 = vector.multi_reduction <add>, %131, %cst_67 [1] : vector<17x32xf32> to vector<17xf32>
    %137 = vector.shape_cast %136 : vector<17xf32> to vector<17x1xf32>
    %cst_68 = arith.constant 3.200000e+01 : f32
    %138 = vector.broadcast %cst_68 : f32 to vector<17x1xf32>
    %139 = arith.divf %137, %138 : vector<17x1xf32>
    %140 = vector.broadcast %139 : vector<17x1xf32> to vector<17x32xf32>
    %141 = arith.subf %131, %140 : vector<17x32xf32>
    %142 = arith.mulf %141, %141 : vector<17x32xf32>
    %cst_69 = arith.constant dense<0.000000e+00> : vector<17xf32>
    %143 = vector.multi_reduction <add>, %142, %cst_69 [1] : vector<17x32xf32> to vector<17xf32>
    %144 = vector.shape_cast %143 : vector<17xf32> to vector<17x1xf32>
    %cst_70 = arith.constant 3.200000e+01 : f32
    %145 = vector.broadcast %cst_70 : f32 to vector<17x1xf32>
    %146 = arith.divf %144, %145 : vector<17x1xf32>
    %147 = vector.broadcast %139 : vector<17x1xf32> to vector<17x32xf32>
    %148 = arith.subf %131, %147 : vector<17x32xf32>
    %cst_71 = arith.constant 9.99999974E-6 : f32
    %149 = vector.broadcast %cst_71 : f32 to vector<17x1xf32>
    %150 = arith.addf %146, %149 : vector<17x1xf32>
    %151 = math.rsqrt %150 : vector<17x1xf32>
    %152 = vector.broadcast %151 : vector<17x1xf32> to vector<17x32xf32>
    %153 = arith.mulf %148, %152 : vector<17x32xf32>
    %154 = vector.broadcast %133 : vector<1x32xf32> to vector<17x32xf32>
    %155 = arith.mulf %153, %154 : vector<17x32xf32>
    %156 = vector.broadcast %135 : vector<1x32xf32> to vector<17x32xf32>
    %157 = arith.addf %155, %156 : vector<17x32xf32>
    %c0_72 = arith.constant 0 : index
    %c0_73 = arith.constant 0 : index
    %c0_74 = arith.constant 0 : index
    %158 = vector.load %arg17[%c0_72, %c0_73, %c0_74] : memref<3x32x64xbf16, #tpu.memory_space<vmem>>, vector<1x32x64xbf16>
    %159 = vector.shape_cast %158 : vector<1x32x64xbf16> to vector<32x64xbf16>
    %c0_75 = arith.constant 0 : index
    %c0_76 = arith.constant 0 : index
    %c0_77 = arith.constant 0 : index
    %160 = vector.load %arg18[%c0_75, %c0_76, %c0_77] : memref<3x1x64xf32, #tpu.memory_space<vmem>>, vector<1x1x64xf32>
    %161 = vector.shape_cast %160 : vector<1x1x64xf32> to vector<1x64xf32>
    %162 = arith.truncf %157 : vector<17x32xf32> to vector<17x32xbf16>
    %cst_78 = arith.constant dense<0.000000e+00> : vector<17x64xf32>
    %163 = tpu.matmul %162, %159, %cst_78 {dimension_numbers = #tpu.dot_dimension_numbers<[1], [0], [0], [1], [0, 0, 1, 1], [], []>} : vector<17x32xbf16>, vector<32x64xbf16>, vector<17x64xf32> -> vector<17x64xf32>
    %164 = vector.broadcast %161 : vector<1x64xf32> to vector<17x64xf32>
    %165 = arith.addf %163, %164 : vector<17x64xf32>
    %cst_79 = arith.constant 0.000000e+00 : f32
    %166 = vector.broadcast %cst_79 : f32 to vector<17x64xf32>
    %167 = arith.maximumf %165, %166 : vector<17x64xf32>
    %c0_80 = arith.constant 0 : index
    %c0_81 = arith.constant 0 : index
    %c0_82 = arith.constant 0 : index
    %168 = vector.load %arg19[%c0_80, %c0_81, %c0_82] : memref<3x64x32xbf16, #tpu.memory_space<vmem>>, vector<1x64x32xbf16>
    %169 = vector.shape_cast %168 : vector<1x64x32xbf16> to vector<64x32xbf16>
    %c0_83 = arith.constant 0 : index
    %c0_84 = arith.constant 0 : index
    %c0_85 = arith.constant 0 : index
    %170 = vector.load %arg20[%c0_83, %c0_84, %c0_85] : memref<3x1x32xf32, #tpu.memory_space<vmem>>, vector<1x1x32xf32>
    %171 = vector.shape_cast %170 : vector<1x1x32xf32> to vector<1x32xf32>
    %172 = arith.truncf %167 : vector<17x64xf32> to vector<17x64xbf16>
    %cst_86 = arith.constant dense<0.000000e+00> : vector<17x32xf32>
    %173 = tpu.matmul %172, %169, %cst_86 {dimension_numbers = #tpu.dot_dimension_numbers<[1], [0], [0], [1], [0, 0, 1, 1], [], []>} : vector<17x64xbf16>, vector<64x32xbf16>, vector<17x32xf32> -> vector<17x32xf32>
    %174 = vector.broadcast %171 : vector<1x32xf32> to vector<17x32xf32>
    %175 = arith.addf %173, %174 : vector<17x32xf32>
    %176 = arith.addf %157, %175 : vector<17x32xf32>
    %c0_87 = arith.constant 0 : index
    %c0_88 = arith.constant 0 : index
    %c0_89 = arith.constant 0 : index
    %177 = vector.load %arg21[%c0_87, %c0_88, %c0_89] : memref<3x1x32xf32, #tpu.memory_space<vmem>>, vector<1x1x32xf32>
    %178 = vector.shape_cast %177 : vector<1x1x32xf32> to vector<1x32xf32>
    %c0_90 = arith.constant 0 : index
    %c0_91 = arith.constant 0 : index
    %c0_92 = arith.constant 0 : index
    %179 = vector.load %arg22[%c0_90, %c0_91, %c0_92] : memref<3x1x32xf32, #tpu.memory_space<vmem>>, vector<1x1x32xf32>
    %180 = vector.shape_cast %179 : vector<1x1x32xf32> to vector<1x32xf32>
    %cst_93 = arith.constant dense<0.000000e+00> : vector<17xf32>
    %181 = vector.multi_reduction <add>, %176, %cst_93 [1] : vector<17x32xf32> to vector<17xf32>
    %182 = vector.shape_cast %181 : vector<17xf32> to vector<17x1xf32>
    %cst_94 = arith.constant 3.200000e+01 : f32
    %183 = vector.broadcast %cst_94 : f32 to vector<17x1xf32>
    %184 = arith.divf %182, %183 : vector<17x1xf32>
    %185 = vector.broadcast %184 : vector<17x1xf32> to vector<17x32xf32>
    %186 = arith.subf %176, %185 : vector<17x32xf32>
    %187 = arith.mulf %186, %186 : vector<17x32xf32>
    %cst_95 = arith.constant dense<0.000000e+00> : vector<17xf32>
    %188 = vector.multi_reduction <add>, %187, %cst_95 [1] : vector<17x32xf32> to vector<17xf32>
    %189 = vector.shape_cast %188 : vector<17xf32> to vector<17x1xf32>
    %cst_96 = arith.constant 3.200000e+01 : f32
    %190 = vector.broadcast %cst_96 : f32 to vector<17x1xf32>
    %191 = arith.divf %189, %190 : vector<17x1xf32>
    %192 = vector.broadcast %184 : vector<17x1xf32> to vector<17x32xf32>
    %193 = arith.subf %176, %192 : vector<17x32xf32>
    %cst_97 = arith.constant 9.99999974E-6 : f32
    %194 = vector.broadcast %cst_97 : f32 to vector<17x1xf32>
    %195 = arith.addf %191, %194 : vector<17x1xf32>
    %196 = math.rsqrt %195 : vector<17x1xf32>
    %197 = vector.broadcast %196 : vector<17x1xf32> to vector<17x32xf32>
    %198 = arith.mulf %193, %197 : vector<17x32xf32>
    %199 = vector.broadcast %178 : vector<1x32xf32> to vector<17x32xf32>
    %200 = arith.mulf %198, %199 : vector<17x32xf32>
    %201 = vector.broadcast %180 : vector<1x32xf32> to vector<17x32xf32>
    %202 = arith.addf %200, %201 : vector<17x32xf32>
    %c1 = arith.constant 1 : index
    %c0_98 = arith.constant 0 : index
    %c0_99 = arith.constant 0 : index
    %203 = vector.load %arg9[%c1, %c0_98, %c0_99] : memref<3x64x32xbf16, #tpu.memory_space<vmem>>, vector<1x64x32xbf16>
    %204 = vector.shape_cast %203 : vector<1x64x32xbf16> to vector<64x32xbf16>
    %c1_100 = arith.constant 1 : index
    %c0_101 = arith.constant 0 : index
    %c0_102 = arith.constant 0 : index
    %205 = vector.load %arg10[%c1_100, %c0_101, %c0_102] : memref<3x1x32xf32, #tpu.memory_space<vmem>>, vector<1x1x32xf32>
    %206 = vector.shape_cast %205 : vector<1x1x32xf32> to vector<1x32xf32>
    %207 = arith.truncf %3 : vector<17x64xf32> to vector<17x64xbf16>
    %cst_103 = arith.constant dense<0.000000e+00> : vector<17x32xf32>
    %208 = tpu.matmul %207, %204, %cst_103 {dimension_numbers = #tpu.dot_dimension_numbers<[1], [0], [0], [1], [0, 0, 1, 1], [], []>} : vector<17x64xbf16>, vector<64x32xbf16>, vector<17x32xf32> -> vector<17x32xf32>
    %209 = vector.broadcast %206 : vector<1x32xf32> to vector<17x32xf32>
    %210 = arith.addf %208, %209 : vector<17x32xf32>
    %211 = arith.addf %210, %202 : vector<17x32xf32>
    %c1_104 = arith.constant 1 : index
    %c0_105 = arith.constant 0 : index
    %c0_106 = arith.constant 0 : index
    %212 = vector.load %arg11[%c1_104, %c0_105, %c0_106] : memref<3x32x96xbf16, #tpu.memory_space<vmem>>, vector<1x32x96xbf16>
    %213 = vector.shape_cast %212 : vector<1x32x96xbf16> to vector<32x96xbf16>
    %c1_107 = arith.constant 1 : index
    %c0_108 = arith.constant 0 : index
    %c0_109 = arith.constant 0 : index
    %214 = vector.load %arg12[%c1_107, %c0_108, %c0_109] : memref<3x1x96xf32, #tpu.memory_space<vmem>>, vector<1x1x96xf32>
    %215 = vector.shape_cast %214 : vector<1x1x96xf32> to vector<1x96xf32>
    %c1_110 = arith.constant 1 : index
    %c0_111 = arith.constant 0 : index
    %c0_112 = arith.constant 0 : index
    %216 = vector.load %arg13[%c1_110, %c0_111, %c0_112] : memref<3x32x32xbf16, #tpu.memory_space<vmem>>, vector<1x32x32xbf16>
    %217 = vector.shape_cast %216 : vector<1x32x32xbf16> to vector<32x32xbf16>
    %c1_113 = arith.constant 1 : index
    %c0_114 = arith.constant 0 : index
    %c0_115 = arith.constant 0 : index
    %218 = vector.load %arg14[%c1_113, %c0_114, %c0_115] : memref<3x1x32xf32, #tpu.memory_space<vmem>>, vector<1x1x32xf32>
    %219 = vector.shape_cast %218 : vector<1x1x32xf32> to vector<1x32xf32>
    %220 = arith.truncf %211 : vector<17x32xf32> to vector<17x32xbf16>
    %cst_116 = arith.constant dense<0.000000e+00> : vector<17x96xf32>
    %221 = tpu.matmul %220, %213, %cst_116 {dimension_numbers = #tpu.dot_dimension_numbers<[1], [0], [0], [1], [0, 0, 1, 1], [], []>} : vector<17x32xbf16>, vector<32x96xbf16>, vector<17x96xf32> -> vector<17x96xf32>
    %222 = vector.broadcast %215 : vector<1x96xf32> to vector<17x96xf32>
    %223 = arith.addf %221, %222 : vector<17x96xf32>
    %224 = vector.extract_strided_slice %223 {offsets = [0, 0], sizes = [17, 8], strides = [1, 1]} : vector<17x96xf32> to vector<17x8xf32>
    %cst_117 = arith.constant 0.353553385 : f32
    %225 = vector.broadcast %cst_117 : f32 to vector<17x8xf32>
    %226 = arith.mulf %224, %225 : vector<17x8xf32>
    %227 = vector.extract_strided_slice %223 {offsets = [0, 32], sizes = [17, 8], strides = [1, 1]} : vector<17x96xf32> to vector<17x8xf32>
    %228 = vector.extract_strided_slice %223 {offsets = [0, 64], sizes = [17, 8], strides = [1, 1]} : vector<17x96xf32> to vector<17x8xf32>
    %229 = arith.truncf %226 : vector<17x8xf32> to vector<17x8xbf16>
    %230 = arith.truncf %227 : vector<17x8xf32> to vector<17x8xbf16>
    %cst_118 = arith.constant dense<0.000000e+00> : vector<17x17xf32>
    %231 = tpu.matmul %229, %230, %cst_118 {dimension_numbers = #tpu.dot_dimension_numbers<[1], [1], [0], [0], [0, 0, 1, 0], [], []>} : vector<17x8xbf16>, vector<17x8xbf16>, vector<17x17xf32> -> vector<17x17xf32>
    %cst_119 = arith.constant dense<0xFF800000> : vector<17xf32>
    %232 = vector.multi_reduction <maximumf>, %231, %cst_119 [1] : vector<17x17xf32> to vector<17xf32>
    %233 = vector.shape_cast %232 : vector<17xf32> to vector<17x1xf32>
    %234 = vector.broadcast %233 : vector<17x1xf32> to vector<17x17xf32>
    %235 = arith.subf %231, %234 : vector<17x17xf32>
    %236 = math.exp %235 : vector<17x17xf32>
    %cst_120 = arith.constant dense<0.000000e+00> : vector<17xf32>
    %237 = vector.multi_reduction <add>, %236, %cst_120 [1] : vector<17x17xf32> to vector<17xf32>
    %238 = vector.shape_cast %237 : vector<17xf32> to vector<17x1xf32>
    %239 = tpu.reciprocal %238 {approx = true} : vector<17x1xf32> -> vector<17x1xf32>
    %240 = vector.broadcast %239 : vector<17x1xf32> to vector<17x17xf32>
    %241 = arith.mulf %236, %240 : vector<17x17xf32>
    %242 = arith.truncf %241 : vector<17x17xf32> to vector<17x17xbf16>
    %243 = arith.truncf %228 : vector<17x8xf32> to vector<17x8xbf16>
    %cst_121 = arith.constant dense<0.000000e+00> : vector<17x8xf32>
    %244 = tpu.matmul %242, %243, %cst_121 {dimension_numbers = #tpu.dot_dimension_numbers<[1], [0], [0], [1], [0, 0, 1, 1], [], []>} : vector<17x17xbf16>, vector<17x8xbf16>, vector<17x8xf32> -> vector<17x8xf32>
    %245 = vector.extract_strided_slice %223 {offsets = [0, 8], sizes = [17, 8], strides = [1, 1]} : vector<17x96xf32> to vector<17x8xf32>
    %cst_122 = arith.constant 0.353553385 : f32
    %246 = vector.broadcast %cst_122 : f32 to vector<17x8xf32>
    %247 = arith.mulf %245, %246 : vector<17x8xf32>
    %248 = vector.extract_strided_slice %223 {offsets = [0, 40], sizes = [17, 8], strides = [1, 1]} : vector<17x96xf32> to vector<17x8xf32>
    %249 = vector.extract_strided_slice %223 {offsets = [0, 72], sizes = [17, 8], strides = [1, 1]} : vector<17x96xf32> to vector<17x8xf32>
    %250 = arith.truncf %247 : vector<17x8xf32> to vector<17x8xbf16>
    %251 = arith.truncf %248 : vector<17x8xf32> to vector<17x8xbf16>
    %cst_123 = arith.constant dense<0.000000e+00> : vector<17x17xf32>
    %252 = tpu.matmul %250, %251, %cst_123 {dimension_numbers = #tpu.dot_dimension_numbers<[1], [1], [0], [0], [0, 0, 1, 0], [], []>} : vector<17x8xbf16>, vector<17x8xbf16>, vector<17x17xf32> -> vector<17x17xf32>
    %cst_124 = arith.constant dense<0xFF800000> : vector<17xf32>
    %253 = vector.multi_reduction <maximumf>, %252, %cst_124 [1] : vector<17x17xf32> to vector<17xf32>
    %254 = vector.shape_cast %253 : vector<17xf32> to vector<17x1xf32>
    %255 = vector.broadcast %254 : vector<17x1xf32> to vector<17x17xf32>
    %256 = arith.subf %252, %255 : vector<17x17xf32>
    %257 = math.exp %256 : vector<17x17xf32>
    %cst_125 = arith.constant dense<0.000000e+00> : vector<17xf32>
    %258 = vector.multi_reduction <add>, %257, %cst_125 [1] : vector<17x17xf32> to vector<17xf32>
    %259 = vector.shape_cast %258 : vector<17xf32> to vector<17x1xf32>
    %260 = tpu.reciprocal %259 {approx = true} : vector<17x1xf32> -> vector<17x1xf32>
    %261 = vector.broadcast %260 : vector<17x1xf32> to vector<17x17xf32>
    %262 = arith.mulf %257, %261 : vector<17x17xf32>
    %263 = arith.truncf %262 : vector<17x17xf32> to vector<17x17xbf16>
    %264 = arith.truncf %249 : vector<17x8xf32> to vector<17x8xbf16>
    %cst_126 = arith.constant dense<0.000000e+00> : vector<17x8xf32>
    %265 = tpu.matmul %263, %264, %cst_126 {dimension_numbers = #tpu.dot_dimension_numbers<[1], [0], [0], [1], [0, 0, 1, 1], [], []>} : vector<17x17xbf16>, vector<17x8xbf16>, vector<17x8xf32> -> vector<17x8xf32>
    %266 = vector.extract_strided_slice %223 {offsets = [0, 16], sizes = [17, 8], strides = [1, 1]} : vector<17x96xf32> to vector<17x8xf32>
    %cst_127 = arith.constant 0.353553385 : f32
    %267 = vector.broadcast %cst_127 : f32 to vector<17x8xf32>
    %268 = arith.mulf %266, %267 : vector<17x8xf32>
    %269 = vector.extract_strided_slice %223 {offsets = [0, 48], sizes = [17, 8], strides = [1, 1]} : vector<17x96xf32> to vector<17x8xf32>
    %270 = vector.extract_strided_slice %223 {offsets = [0, 80], sizes = [17, 8], strides = [1, 1]} : vector<17x96xf32> to vector<17x8xf32>
    %271 = arith.truncf %268 : vector<17x8xf32> to vector<17x8xbf16>
    %272 = arith.truncf %269 : vector<17x8xf32> to vector<17x8xbf16>
    %cst_128 = arith.constant dense<0.000000e+00> : vector<17x17xf32>
    %273 = tpu.matmul %271, %272, %cst_128 {dimension_numbers = #tpu.dot_dimension_numbers<[1], [1], [0], [0], [0, 0, 1, 0], [], []>} : vector<17x8xbf16>, vector<17x8xbf16>, vector<17x17xf32> -> vector<17x17xf32>
    %cst_129 = arith.constant dense<0xFF800000> : vector<17xf32>
    %274 = vector.multi_reduction <maximumf>, %273, %cst_129 [1] : vector<17x17xf32> to vector<17xf32>
    %275 = vector.shape_cast %274 : vector<17xf32> to vector<17x1xf32>
    %276 = vector.broadcast %275 : vector<17x1xf32> to vector<17x17xf32>
    %277 = arith.subf %273, %276 : vector<17x17xf32>
    %278 = math.exp %277 : vector<17x17xf32>
    %cst_130 = arith.constant dense<0.000000e+00> : vector<17xf32>
    %279 = vector.multi_reduction <add>, %278, %cst_130 [1] : vector<17x17xf32> to vector<17xf32>
    %280 = vector.shape_cast %279 : vector<17xf32> to vector<17x1xf32>
    %281 = tpu.reciprocal %280 {approx = true} : vector<17x1xf32> -> vector<17x1xf32>
    %282 = vector.broadcast %281 : vector<17x1xf32> to vector<17x17xf32>
    %283 = arith.mulf %278, %282 : vector<17x17xf32>
    %284 = arith.truncf %283 : vector<17x17xf32> to vector<17x17xbf16>
    %285 = arith.truncf %270 : vector<17x8xf32> to vector<17x8xbf16>
    %cst_131 = arith.constant dense<0.000000e+00> : vector<17x8xf32>
    %286 = tpu.matmul %284, %285, %cst_131 {dimension_numbers = #tpu.dot_dimension_numbers<[1], [0], [0], [1], [0, 0, 1, 1], [], []>} : vector<17x17xbf16>, vector<17x8xbf16>, vector<17x8xf32> -> vector<17x8xf32>
    %287 = vector.extract_strided_slice %223 {offsets = [0, 24], sizes = [17, 8], strides = [1, 1]} : vector<17x96xf32> to vector<17x8xf32>
    %cst_132 = arith.constant 0.353553385 : f32
    %288 = vector.broadcast %cst_132 : f32 to vector<17x8xf32>
    %289 = arith.mulf %287, %288 : vector<17x8xf32>
    %290 = vector.extract_strided_slice %223 {offsets = [0, 56], sizes = [17, 8], strides = [1, 1]} : vector<17x96xf32> to vector<17x8xf32>
    %291 = vector.extract_strided_slice %223 {offsets = [0, 88], sizes = [17, 8], strides = [1, 1]} : vector<17x96xf32> to vector<17x8xf32>
    %292 = arith.truncf %289 : vector<17x8xf32> to vector<17x8xbf16>
    %293 = arith.truncf %290 : vector<17x8xf32> to vector<17x8xbf16>
    %cst_133 = arith.constant dense<0.000000e+00> : vector<17x17xf32>
    %294 = tpu.matmul %292, %293, %cst_133 {dimension_numbers = #tpu.dot_dimension_numbers<[1], [1], [0], [0], [0, 0, 1, 0], [], []>} : vector<17x8xbf16>, vector<17x8xbf16>, vector<17x17xf32> -> vector<17x17xf32>
    %cst_134 = arith.constant dense<0xFF800000> : vector<17xf32>
    %295 = vector.multi_reduction <maximumf>, %294, %cst_134 [1] : vector<17x17xf32> to vector<17xf32>
    %296 = vector.shape_cast %295 : vector<17xf32> to vector<17x1xf32>
    %297 = vector.broadcast %296 : vector<17x1xf32> to vector<17x17xf32>
    %298 = arith.subf %294, %297 : vector<17x17xf32>
    %299 = math.exp %298 : vector<17x17xf32>
    %cst_135 = arith.constant dense<0.000000e+00> : vector<17xf32>
    %300 = vector.multi_reduction <add>, %299, %cst_135 [1] : vector<17x17xf32> to vector<17xf32>
    %301 = vector.shape_cast %300 : vector<17xf32> to vector<17x1xf32>
    %302 = tpu.reciprocal %301 {approx = true} : vector<17x1xf32> -> vector<17x1xf32>
    %303 = vector.broadcast %302 : vector<17x1xf32> to vector<17x17xf32>
    %304 = arith.mulf %299, %303 : vector<17x17xf32>
    %305 = arith.truncf %304 : vector<17x17xf32> to vector<17x17xbf16>
    %306 = arith.truncf %291 : vector<17x8xf32> to vector<17x8xbf16>
    %cst_136 = arith.constant dense<0.000000e+00> : vector<17x8xf32>
    %307 = tpu.matmul %305, %306, %cst_136 {dimension_numbers = #tpu.dot_dimension_numbers<[1], [0], [0], [1], [0, 0, 1, 1], [], []>} : vector<17x17xbf16>, vector<17x8xbf16>, vector<17x8xf32> -> vector<17x8xf32>
    %308 = tpu.concatenate %244, %265, %286, %307 in 1 : vector<17x8xf32>, vector<17x8xf32>, vector<17x8xf32>, vector<17x8xf32> -> vector<17x32xf32>
    %309 = arith.truncf %308 : vector<17x32xf32> to vector<17x32xbf16>
    %cst_137 = arith.constant dense<0.000000e+00> : vector<17x32xf32>
    %310 = tpu.matmul %309, %217, %cst_137 {dimension_numbers = #tpu.dot_dimension_numbers<[1], [0], [0], [1], [0, 0, 1, 1], [], []>} : vector<17x32xbf16>, vector<32x32xbf16>, vector<17x32xf32> -> vector<17x32xf32>
    %311 = vector.broadcast %219 : vector<1x32xf32> to vector<17x32xf32>
    %312 = arith.addf %310, %311 : vector<17x32xf32>
    %313 = arith.addf %211, %312 : vector<17x32xf32>
    %c1_138 = arith.constant 1 : index
    %c0_139 = arith.constant 0 : index
    %c0_140 = arith.constant 0 : index
    %314 = vector.load %arg15[%c1_138, %c0_139, %c0_140] : memref<3x1x32xf32, #tpu.memory_space<vmem>>, vector<1x1x32xf32>
    %315 = vector.shape_cast %314 : vector<1x1x32xf32> to vector<1x32xf32>
    %c1_141 = arith.constant 1 : index
    %c0_142 = arith.constant 0 : index
    %c0_143 = arith.constant 0 : index
    %316 = vector.load %arg16[%c1_141, %c0_142, %c0_143] : memref<3x1x32xf32, #tpu.memory_space<vmem>>, vector<1x1x32xf32>
    %317 = vector.shape_cast %316 : vector<1x1x32xf32> to vector<1x32xf32>
    %cst_144 = arith.constant dense<0.000000e+00> : vector<17xf32>
    %318 = vector.multi_reduction <add>, %313, %cst_144 [1] : vector<17x32xf32> to vector<17xf32>
    %319 = vector.shape_cast %318 : vector<17xf32> to vector<17x1xf32>
    %cst_145 = arith.constant 3.200000e+01 : f32
    %320 = vector.broadcast %cst_145 : f32 to vector<17x1xf32>
    %321 = arith.divf %319, %320 : vector<17x1xf32>
    %322 = vector.broadcast %321 : vector<17x1xf32> to vector<17x32xf32>
    %323 = arith.subf %313, %322 : vector<17x32xf32>
    %324 = arith.mulf %323, %323 : vector<17x32xf32>
    %cst_146 = arith.constant dense<0.000000e+00> : vector<17xf32>
    %325 = vector.multi_reduction <add>, %324, %cst_146 [1] : vector<17x32xf32> to vector<17xf32>
    %326 = vector.shape_cast %325 : vector<17xf32> to vector<17x1xf32>
    %cst_147 = arith.constant 3.200000e+01 : f32
    %327 = vector.broadcast %cst_147 : f32 to vector<17x1xf32>
    %328 = arith.divf %326, %327 : vector<17x1xf32>
    %329 = vector.broadcast %321 : vector<17x1xf32> to vector<17x32xf32>
    %330 = arith.subf %313, %329 : vector<17x32xf32>
    %cst_148 = arith.constant 9.99999974E-6 : f32
    %331 = vector.broadcast %cst_148 : f32 to vector<17x1xf32>
    %332 = arith.addf %328, %331 : vector<17x1xf32>
    %333 = math.rsqrt %332 : vector<17x1xf32>
    %334 = vector.broadcast %333 : vector<17x1xf32> to vector<17x32xf32>
    %335 = arith.mulf %330, %334 : vector<17x32xf32>
    %336 = vector.broadcast %315 : vector<1x32xf32> to vector<17x32xf32>
    %337 = arith.mulf %335, %336 : vector<17x32xf32>
    %338 = vector.broadcast %317 : vector<1x32xf32> to vector<17x32xf32>
    %339 = arith.addf %337, %338 : vector<17x32xf32>
    %c1_149 = arith.constant 1 : index
    %c0_150 = arith.constant 0 : index
    %c0_151 = arith.constant 0 : index
    %340 = vector.load %arg17[%c1_149, %c0_150, %c0_151] : memref<3x32x64xbf16, #tpu.memory_space<vmem>>, vector<1x32x64xbf16>
    %341 = vector.shape_cast %340 : vector<1x32x64xbf16> to vector<32x64xbf16>
    %c1_152 = arith.constant 1 : index
    %c0_153 = arith.constant 0 : index
    %c0_154 = arith.constant 0 : index
    %342 = vector.load %arg18[%c1_152, %c0_153, %c0_154] : memref<3x1x64xf32, #tpu.memory_space<vmem>>, vector<1x1x64xf32>
    %343 = vector.shape_cast %342 : vector<1x1x64xf32> to vector<1x64xf32>
    %344 = arith.truncf %339 : vector<17x32xf32> to vector<17x32xbf16>
    %cst_155 = arith.constant dense<0.000000e+00> : vector<17x64xf32>
    %345 = tpu.matmul %344, %341, %cst_155 {dimension_numbers = #tpu.dot_dimension_numbers<[1], [0], [0], [1], [0, 0, 1, 1], [], []>} : vector<17x32xbf16>, vector<32x64xbf16>, vector<17x64xf32> -> vector<17x64xf32>
    %346 = vector.broadcast %343 : vector<1x64xf32> to vector<17x64xf32>
    %347 = arith.addf %345, %346 : vector<17x64xf32>
    %cst_156 = arith.constant 0.000000e+00 : f32
    %348 = vector.broadcast %cst_156 : f32 to vector<17x64xf32>
    %349 = arith.maximumf %347, %348 : vector<17x64xf32>
    %c1_157 = arith.constant 1 : index
    %c0_158 = arith.constant 0 : index
    %c0_159 = arith.constant 0 : index
    %350 = vector.load %arg19[%c1_157, %c0_158, %c0_159] : memref<3x64x32xbf16, #tpu.memory_space<vmem>>, vector<1x64x32xbf16>
    %351 = vector.shape_cast %350 : vector<1x64x32xbf16> to vector<64x32xbf16>
    %c1_160 = arith.constant 1 : index
    %c0_161 = arith.constant 0 : index
    %c0_162 = arith.constant 0 : index
    %352 = vector.load %arg20[%c1_160, %c0_161, %c0_162] : memref<3x1x32xf32, #tpu.memory_space<vmem>>, vector<1x1x32xf32>
    %353 = vector.shape_cast %352 : vector<1x1x32xf32> to vector<1x32xf32>
    %354 = arith.truncf %349 : vector<17x64xf32> to vector<17x64xbf16>
    %cst_163 = arith.constant dense<0.000000e+00> : vector<17x32xf32>
    %355 = tpu.matmul %354, %351, %cst_163 {dimension_numbers = #tpu.dot_dimension_numbers<[1], [0], [0], [1], [0, 0, 1, 1], [], []>} : vector<17x64xbf16>, vector<64x32xbf16>, vector<17x32xf32> -> vector<17x32xf32>
    %356 = vector.broadcast %353 : vector<1x32xf32> to vector<17x32xf32>
    %357 = arith.addf %355, %356 : vector<17x32xf32>
    %358 = arith.addf %339, %357 : vector<17x32xf32>
    %c1_164 = arith.constant 1 : index
    %c0_165 = arith.constant 0 : index
    %c0_166 = arith.constant 0 : index
    %359 = vector.load %arg21[%c1_164, %c0_165, %c0_166] : memref<3x1x32xf32, #tpu.memory_space<vmem>>, vector<1x1x32xf32>
    %360 = vector.shape_cast %359 : vector<1x1x32xf32> to vector<1x32xf32>
    %c1_167 = arith.constant 1 : index
    %c0_168 = arith.constant 0 : index
    %c0_169 = arith.constant 0 : index
    %361 = vector.load %arg22[%c1_167, %c0_168, %c0_169] : memref<3x1x32xf32, #tpu.memory_space<vmem>>, vector<1x1x32xf32>
    %362 = vector.shape_cast %361 : vector<1x1x32xf32> to vector<1x32xf32>
    %cst_170 = arith.constant dense<0.000000e+00> : vector<17xf32>
    %363 = vector.multi_reduction <add>, %358, %cst_170 [1] : vector<17x32xf32> to vector<17xf32>
    %364 = vector.shape_cast %363 : vector<17xf32> to vector<17x1xf32>
    %cst_171 = arith.constant 3.200000e+01 : f32
    %365 = vector.broadcast %cst_171 : f32 to vector<17x1xf32>
    %366 = arith.divf %364, %365 : vector<17x1xf32>
    %367 = vector.broadcast %366 : vector<17x1xf32> to vector<17x32xf32>
    %368 = arith.subf %358, %367 : vector<17x32xf32>
    %369 = arith.mulf %368, %368 : vector<17x32xf32>
    %cst_172 = arith.constant dense<0.000000e+00> : vector<17xf32>
    %370 = vector.multi_reduction <add>, %369, %cst_172 [1] : vector<17x32xf32> to vector<17xf32>
    %371 = vector.shape_cast %370 : vector<17xf32> to vector<17x1xf32>
    %cst_173 = arith.constant 3.200000e+01 : f32
    %372 = vector.broadcast %cst_173 : f32 to vector<17x1xf32>
    %373 = arith.divf %371, %372 : vector<17x1xf32>
    %374 = vector.broadcast %366 : vector<17x1xf32> to vector<17x32xf32>
    %375 = arith.subf %358, %374 : vector<17x32xf32>
    %cst_174 = arith.constant 9.99999974E-6 : f32
    %376 = vector.broadcast %cst_174 : f32 to vector<17x1xf32>
    %377 = arith.addf %373, %376 : vector<17x1xf32>
    %378 = math.rsqrt %377 : vector<17x1xf32>
    %379 = vector.broadcast %378 : vector<17x1xf32> to vector<17x32xf32>
    %380 = arith.mulf %375, %379 : vector<17x32xf32>
    %381 = vector.broadcast %360 : vector<1x32xf32> to vector<17x32xf32>
    %382 = arith.mulf %380, %381 : vector<17x32xf32>
    %383 = vector.broadcast %362 : vector<1x32xf32> to vector<17x32xf32>
    %384 = arith.addf %382, %383 : vector<17x32xf32>
    %c2 = arith.constant 2 : index
    %c0_175 = arith.constant 0 : index
    %c0_176 = arith.constant 0 : index
    %385 = vector.load %arg9[%c2, %c0_175, %c0_176] : memref<3x64x32xbf16, #tpu.memory_space<vmem>>, vector<1x64x32xbf16>
    %386 = vector.shape_cast %385 : vector<1x64x32xbf16> to vector<64x32xbf16>
    %c2_177 = arith.constant 2 : index
    %c0_178 = arith.constant 0 : index
    %c0_179 = arith.constant 0 : index
    %387 = vector.load %arg10[%c2_177, %c0_178, %c0_179] : memref<3x1x32xf32, #tpu.memory_space<vmem>>, vector<1x1x32xf32>
    %388 = vector.shape_cast %387 : vector<1x1x32xf32> to vector<1x32xf32>
    %389 = arith.truncf %5 : vector<17x64xf32> to vector<17x64xbf16>
    %cst_180 = arith.constant dense<0.000000e+00> : vector<17x32xf32>
    %390 = tpu.matmul %389, %386, %cst_180 {dimension_numbers = #tpu.dot_dimension_numbers<[1], [0], [0], [1], [0, 0, 1, 1], [], []>} : vector<17x64xbf16>, vector<64x32xbf16>, vector<17x32xf32> -> vector<17x32xf32>
    %391 = vector.broadcast %388 : vector<1x32xf32> to vector<17x32xf32>
    %392 = arith.addf %390, %391 : vector<17x32xf32>
    %393 = arith.addf %392, %384 : vector<17x32xf32>
    %c2_181 = arith.constant 2 : index
    %c0_182 = arith.constant 0 : index
    %c0_183 = arith.constant 0 : index
    %394 = vector.load %arg11[%c2_181, %c0_182, %c0_183] : memref<3x32x96xbf16, #tpu.memory_space<vmem>>, vector<1x32x96xbf16>
    %395 = vector.shape_cast %394 : vector<1x32x96xbf16> to vector<32x96xbf16>
    %c2_184 = arith.constant 2 : index
    %c0_185 = arith.constant 0 : index
    %c0_186 = arith.constant 0 : index
    %396 = vector.load %arg12[%c2_184, %c0_185, %c0_186] : memref<3x1x96xf32, #tpu.memory_space<vmem>>, vector<1x1x96xf32>
    %397 = vector.shape_cast %396 : vector<1x1x96xf32> to vector<1x96xf32>
    %c2_187 = arith.constant 2 : index
    %c0_188 = arith.constant 0 : index
    %c0_189 = arith.constant 0 : index
    %398 = vector.load %arg13[%c2_187, %c0_188, %c0_189] : memref<3x32x32xbf16, #tpu.memory_space<vmem>>, vector<1x32x32xbf16>
    %399 = vector.shape_cast %398 : vector<1x32x32xbf16> to vector<32x32xbf16>
    %c2_190 = arith.constant 2 : index
    %c0_191 = arith.constant 0 : index
    %c0_192 = arith.constant 0 : index
    %400 = vector.load %arg14[%c2_190, %c0_191, %c0_192] : memref<3x1x32xf32, #tpu.memory_space<vmem>>, vector<1x1x32xf32>
    %401 = vector.shape_cast %400 : vector<1x1x32xf32> to vector<1x32xf32>
    %402 = arith.truncf %393 : vector<17x32xf32> to vector<17x32xbf16>
    %cst_193 = arith.constant dense<0.000000e+00> : vector<17x96xf32>
    %403 = tpu.matmul %402, %395, %cst_193 {dimension_numbers = #tpu.dot_dimension_numbers<[1], [0], [0], [1], [0, 0, 1, 1], [], []>} : vector<17x32xbf16>, vector<32x96xbf16>, vector<17x96xf32> -> vector<17x96xf32>
    %404 = vector.broadcast %397 : vector<1x96xf32> to vector<17x96xf32>
    %405 = arith.addf %403, %404 : vector<17x96xf32>
    %406 = vector.extract_strided_slice %405 {offsets = [0, 0], sizes = [17, 8], strides = [1, 1]} : vector<17x96xf32> to vector<17x8xf32>
    %cst_194 = arith.constant 0.353553385 : f32
    %407 = vector.broadcast %cst_194 : f32 to vector<17x8xf32>
    %408 = arith.mulf %406, %407 : vector<17x8xf32>
    %409 = vector.extract_strided_slice %405 {offsets = [0, 32], sizes = [17, 8], strides = [1, 1]} : vector<17x96xf32> to vector<17x8xf32>
    %410 = vector.extract_strided_slice %405 {offsets = [0, 64], sizes = [17, 8], strides = [1, 1]} : vector<17x96xf32> to vector<17x8xf32>
    %411 = arith.truncf %408 : vector<17x8xf32> to vector<17x8xbf16>
    %412 = arith.truncf %409 : vector<17x8xf32> to vector<17x8xbf16>
    %cst_195 = arith.constant dense<0.000000e+00> : vector<17x17xf32>
    %413 = tpu.matmul %411, %412, %cst_195 {dimension_numbers = #tpu.dot_dimension_numbers<[1], [1], [0], [0], [0, 0, 1, 0], [], []>} : vector<17x8xbf16>, vector<17x8xbf16>, vector<17x17xf32> -> vector<17x17xf32>
    %cst_196 = arith.constant dense<0xFF800000> : vector<17xf32>
    %414 = vector.multi_reduction <maximumf>, %413, %cst_196 [1] : vector<17x17xf32> to vector<17xf32>
    %415 = vector.shape_cast %414 : vector<17xf32> to vector<17x1xf32>
    %416 = vector.broadcast %415 : vector<17x1xf32> to vector<17x17xf32>
    %417 = arith.subf %413, %416 : vector<17x17xf32>
    %418 = math.exp %417 : vector<17x17xf32>
    %cst_197 = arith.constant dense<0.000000e+00> : vector<17xf32>
    %419 = vector.multi_reduction <add>, %418, %cst_197 [1] : vector<17x17xf32> to vector<17xf32>
    %420 = vector.shape_cast %419 : vector<17xf32> to vector<17x1xf32>
    %421 = tpu.reciprocal %420 {approx = true} : vector<17x1xf32> -> vector<17x1xf32>
    %422 = vector.broadcast %421 : vector<17x1xf32> to vector<17x17xf32>
    %423 = arith.mulf %418, %422 : vector<17x17xf32>
    %424 = arith.truncf %423 : vector<17x17xf32> to vector<17x17xbf16>
    %425 = arith.truncf %410 : vector<17x8xf32> to vector<17x8xbf16>
    %cst_198 = arith.constant dense<0.000000e+00> : vector<17x8xf32>
    %426 = tpu.matmul %424, %425, %cst_198 {dimension_numbers = #tpu.dot_dimension_numbers<[1], [0], [0], [1], [0, 0, 1, 1], [], []>} : vector<17x17xbf16>, vector<17x8xbf16>, vector<17x8xf32> -> vector<17x8xf32>
    %427 = vector.extract_strided_slice %405 {offsets = [0, 8], sizes = [17, 8], strides = [1, 1]} : vector<17x96xf32> to vector<17x8xf32>
    %cst_199 = arith.constant 0.353553385 : f32
    %428 = vector.broadcast %cst_199 : f32 to vector<17x8xf32>
    %429 = arith.mulf %427, %428 : vector<17x8xf32>
    %430 = vector.extract_strided_slice %405 {offsets = [0, 40], sizes = [17, 8], strides = [1, 1]} : vector<17x96xf32> to vector<17x8xf32>
    %431 = vector.extract_strided_slice %405 {offsets = [0, 72], sizes = [17, 8], strides = [1, 1]} : vector<17x96xf32> to vector<17x8xf32>
    %432 = arith.truncf %429 : vector<17x8xf32> to vector<17x8xbf16>
    %433 = arith.truncf %430 : vector<17x8xf32> to vector<17x8xbf16>
    %cst_200 = arith.constant dense<0.000000e+00> : vector<17x17xf32>
    %434 = tpu.matmul %432, %433, %cst_200 {dimension_numbers = #tpu.dot_dimension_numbers<[1], [1], [0], [0], [0, 0, 1, 0], [], []>} : vector<17x8xbf16>, vector<17x8xbf16>, vector<17x17xf32> -> vector<17x17xf32>
    %cst_201 = arith.constant dense<0xFF800000> : vector<17xf32>
    %435 = vector.multi_reduction <maximumf>, %434, %cst_201 [1] : vector<17x17xf32> to vector<17xf32>
    %436 = vector.shape_cast %435 : vector<17xf32> to vector<17x1xf32>
    %437 = vector.broadcast %436 : vector<17x1xf32> to vector<17x17xf32>
    %438 = arith.subf %434, %437 : vector<17x17xf32>
    %439 = math.exp %438 : vector<17x17xf32>
    %cst_202 = arith.constant dense<0.000000e+00> : vector<17xf32>
    %440 = vector.multi_reduction <add>, %439, %cst_202 [1] : vector<17x17xf32> to vector<17xf32>
    %441 = vector.shape_cast %440 : vector<17xf32> to vector<17x1xf32>
    %442 = tpu.reciprocal %441 {approx = true} : vector<17x1xf32> -> vector<17x1xf32>
    %443 = vector.broadcast %442 : vector<17x1xf32> to vector<17x17xf32>
    %444 = arith.mulf %439, %443 : vector<17x17xf32>
    %445 = arith.truncf %444 : vector<17x17xf32> to vector<17x17xbf16>
    %446 = arith.truncf %431 : vector<17x8xf32> to vector<17x8xbf16>
    %cst_203 = arith.constant dense<0.000000e+00> : vector<17x8xf32>
    %447 = tpu.matmul %445, %446, %cst_203 {dimension_numbers = #tpu.dot_dimension_numbers<[1], [0], [0], [1], [0, 0, 1, 1], [], []>} : vector<17x17xbf16>, vector<17x8xbf16>, vector<17x8xf32> -> vector<17x8xf32>
    %448 = vector.extract_strided_slice %405 {offsets = [0, 16], sizes = [17, 8], strides = [1, 1]} : vector<17x96xf32> to vector<17x8xf32>
    %cst_204 = arith.constant 0.353553385 : f32
    %449 = vector.broadcast %cst_204 : f32 to vector<17x8xf32>
    %450 = arith.mulf %448, %449 : vector<17x8xf32>
    %451 = vector.extract_strided_slice %405 {offsets = [0, 48], sizes = [17, 8], strides = [1, 1]} : vector<17x96xf32> to vector<17x8xf32>
    %452 = vector.extract_strided_slice %405 {offsets = [0, 80], sizes = [17, 8], strides = [1, 1]} : vector<17x96xf32> to vector<17x8xf32>
    %453 = arith.truncf %450 : vector<17x8xf32> to vector<17x8xbf16>
    %454 = arith.truncf %451 : vector<17x8xf32> to vector<17x8xbf16>
    %cst_205 = arith.constant dense<0.000000e+00> : vector<17x17xf32>
    %455 = tpu.matmul %453, %454, %cst_205 {dimension_numbers = #tpu.dot_dimension_numbers<[1], [1], [0], [0], [0, 0, 1, 0], [], []>} : vector<17x8xbf16>, vector<17x8xbf16>, vector<17x17xf32> -> vector<17x17xf32>
    %cst_206 = arith.constant dense<0xFF800000> : vector<17xf32>
    %456 = vector.multi_reduction <maximumf>, %455, %cst_206 [1] : vector<17x17xf32> to vector<17xf32>
    %457 = vector.shape_cast %456 : vector<17xf32> to vector<17x1xf32>
    %458 = vector.broadcast %457 : vector<17x1xf32> to vector<17x17xf32>
    %459 = arith.subf %455, %458 : vector<17x17xf32>
    %460 = math.exp %459 : vector<17x17xf32>
    %cst_207 = arith.constant dense<0.000000e+00> : vector<17xf32>
    %461 = vector.multi_reduction <add>, %460, %cst_207 [1] : vector<17x17xf32> to vector<17xf32>
    %462 = vector.shape_cast %461 : vector<17xf32> to vector<17x1xf32>
    %463 = tpu.reciprocal %462 {approx = true} : vector<17x1xf32> -> vector<17x1xf32>
    %464 = vector.broadcast %463 : vector<17x1xf32> to vector<17x17xf32>
    %465 = arith.mulf %460, %464 : vector<17x17xf32>
    %466 = arith.truncf %465 : vector<17x17xf32> to vector<17x17xbf16>
    %467 = arith.truncf %452 : vector<17x8xf32> to vector<17x8xbf16>
    %cst_208 = arith.constant dense<0.000000e+00> : vector<17x8xf32>
    %468 = tpu.matmul %466, %467, %cst_208 {dimension_numbers = #tpu.dot_dimension_numbers<[1], [0], [0], [1], [0, 0, 1, 1], [], []>} : vector<17x17xbf16>, vector<17x8xbf16>, vector<17x8xf32> -> vector<17x8xf32>
    %469 = vector.extract_strided_slice %405 {offsets = [0, 24], sizes = [17, 8], strides = [1, 1]} : vector<17x96xf32> to vector<17x8xf32>
    %cst_209 = arith.constant 0.353553385 : f32
    %470 = vector.broadcast %cst_209 : f32 to vector<17x8xf32>
    %471 = arith.mulf %469, %470 : vector<17x8xf32>
    %472 = vector.extract_strided_slice %405 {offsets = [0, 56], sizes = [17, 8], strides = [1, 1]} : vector<17x96xf32> to vector<17x8xf32>
    %473 = vector.extract_strided_slice %405 {offsets = [0, 88], sizes = [17, 8], strides = [1, 1]} : vector<17x96xf32> to vector<17x8xf32>
    %474 = arith.truncf %471 : vector<17x8xf32> to vector<17x8xbf16>
    %475 = arith.truncf %472 : vector<17x8xf32> to vector<17x8xbf16>
    %cst_210 = arith.constant dense<0.000000e+00> : vector<17x17xf32>
    %476 = tpu.matmul %474, %475, %cst_210 {dimension_numbers = #tpu.dot_dimension_numbers<[1], [1], [0], [0], [0, 0, 1, 0], [], []>} : vector<17x8xbf16>, vector<17x8xbf16>, vector<17x17xf32> -> vector<17x17xf32>
    %cst_211 = arith.constant dense<0xFF800000> : vector<17xf32>
    %477 = vector.multi_reduction <maximumf>, %476, %cst_211 [1] : vector<17x17xf32> to vector<17xf32>
    %478 = vector.shape_cast %477 : vector<17xf32> to vector<17x1xf32>
    %479 = vector.broadcast %478 : vector<17x1xf32> to vector<17x17xf32>
    %480 = arith.subf %476, %479 : vector<17x17xf32>
    %481 = math.exp %480 : vector<17x17xf32>
    %cst_212 = arith.constant dense<0.000000e+00> : vector<17xf32>
    %482 = vector.multi_reduction <add>, %481, %cst_212 [1] : vector<17x17xf32> to vector<17xf32>
    %483 = vector.shape_cast %482 : vector<17xf32> to vector<17x1xf32>
    %484 = tpu.reciprocal %483 {approx = true} : vector<17x1xf32> -> vector<17x1xf32>
    %485 = vector.broadcast %484 : vector<17x1xf32> to vector<17x17xf32>
    %486 = arith.mulf %481, %485 : vector<17x17xf32>
    %487 = arith.truncf %486 : vector<17x17xf32> to vector<17x17xbf16>
    %488 = arith.truncf %473 : vector<17x8xf32> to vector<17x8xbf16>
    %cst_213 = arith.constant dense<0.000000e+00> : vector<17x8xf32>
    %489 = tpu.matmul %487, %488, %cst_213 {dimension_numbers = #tpu.dot_dimension_numbers<[1], [0], [0], [1], [0, 0, 1, 1], [], []>} : vector<17x17xbf16>, vector<17x8xbf16>, vector<17x8xf32> -> vector<17x8xf32>
    %490 = tpu.concatenate %426, %447, %468, %489 in 1 : vector<17x8xf32>, vector<17x8xf32>, vector<17x8xf32>, vector<17x8xf32> -> vector<17x32xf32>
    %491 = arith.truncf %490 : vector<17x32xf32> to vector<17x32xbf16>
    %cst_214 = arith.constant dense<0.000000e+00> : vector<17x32xf32>
    %492 = tpu.matmul %491, %399, %cst_214 {dimension_numbers = #tpu.dot_dimension_numbers<[1], [0], [0], [1], [0, 0, 1, 1], [], []>} : vector<17x32xbf16>, vector<32x32xbf16>, vector<17x32xf32> -> vector<17x32xf32>
    %493 = vector.broadcast %401 : vector<1x32xf32> to vector<17x32xf32>
    %494 = arith.addf %492, %493 : vector<17x32xf32>
    %495 = arith.addf %393, %494 : vector<17x32xf32>
    %c2_215 = arith.constant 2 : index
    %c0_216 = arith.constant 0 : index
    %c0_217 = arith.constant 0 : index
    %496 = vector.load %arg15[%c2_215, %c0_216, %c0_217] : memref<3x1x32xf32, #tpu.memory_space<vmem>>, vector<1x1x32xf32>
    %497 = vector.shape_cast %496 : vector<1x1x32xf32> to vector<1x32xf32>
    %c2_218 = arith.constant 2 : index
    %c0_219 = arith.constant 0 : index
    %c0_220 = arith.constant 0 : index
    %498 = vector.load %arg16[%c2_218, %c0_219, %c0_220] : memref<3x1x32xf32, #tpu.memory_space<vmem>>, vector<1x1x32xf32>
    %499 = vector.shape_cast %498 : vector<1x1x32xf32> to vector<1x32xf32>
    %cst_221 = arith.constant dense<0.000000e+00> : vector<17xf32>
    %500 = vector.multi_reduction <add>, %495, %cst_221 [1] : vector<17x32xf32> to vector<17xf32>
    %501 = vector.shape_cast %500 : vector<17xf32> to vector<17x1xf32>
    %cst_222 = arith.constant 3.200000e+01 : f32
    %502 = vector.broadcast %cst_222 : f32 to vector<17x1xf32>
    %503 = arith.divf %501, %502 : vector<17x1xf32>
    %504 = vector.broadcast %503 : vector<17x1xf32> to vector<17x32xf32>
    %505 = arith.subf %495, %504 : vector<17x32xf32>
    %506 = arith.mulf %505, %505 : vector<17x32xf32>
    %cst_223 = arith.constant dense<0.000000e+00> : vector<17xf32>
    %507 = vector.multi_reduction <add>, %506, %cst_223 [1] : vector<17x32xf32> to vector<17xf32>
    %508 = vector.shape_cast %507 : vector<17xf32> to vector<17x1xf32>
    %cst_224 = arith.constant 3.200000e+01 : f32
    %509 = vector.broadcast %cst_224 : f32 to vector<17x1xf32>
    %510 = arith.divf %508, %509 : vector<17x1xf32>
    %511 = vector.broadcast %503 : vector<17x1xf32> to vector<17x32xf32>
    %512 = arith.subf %495, %511 : vector<17x32xf32>
    %cst_225 = arith.constant 9.99999974E-6 : f32
    %513 = vector.broadcast %cst_225 : f32 to vector<17x1xf32>
    %514 = arith.addf %510, %513 : vector<17x1xf32>
    %515 = math.rsqrt %514 : vector<17x1xf32>
    %516 = vector.broadcast %515 : vector<17x1xf32> to vector<17x32xf32>
    %517 = arith.mulf %512, %516 : vector<17x32xf32>
    %518 = vector.broadcast %497 : vector<1x32xf32> to vector<17x32xf32>
    %519 = arith.mulf %517, %518 : vector<17x32xf32>
    %520 = vector.broadcast %499 : vector<1x32xf32> to vector<17x32xf32>
    %521 = arith.addf %519, %520 : vector<17x32xf32>
    %c2_226 = arith.constant 2 : index
    %c0_227 = arith.constant 0 : index
    %c0_228 = arith.constant 0 : index
    %522 = vector.load %arg17[%c2_226, %c0_227, %c0_228] : memref<3x32x64xbf16, #tpu.memory_space<vmem>>, vector<1x32x64xbf16>
    %523 = vector.shape_cast %522 : vector<1x32x64xbf16> to vector<32x64xbf16>
    %c2_229 = arith.constant 2 : index
    %c0_230 = arith.constant 0 : index
    %c0_231 = arith.constant 0 : index
    %524 = vector.load %arg18[%c2_229, %c0_230, %c0_231] : memref<3x1x64xf32, #tpu.memory_space<vmem>>, vector<1x1x64xf32>
    %525 = vector.shape_cast %524 : vector<1x1x64xf32> to vector<1x64xf32>
    %526 = arith.truncf %521 : vector<17x32xf32> to vector<17x32xbf16>
    %cst_232 = arith.constant dense<0.000000e+00> : vector<17x64xf32>
    %527 = tpu.matmul %526, %523, %cst_232 {dimension_numbers = #tpu.dot_dimension_numbers<[1], [0], [0], [1], [0, 0, 1, 1], [], []>} : vector<17x32xbf16>, vector<32x64xbf16>, vector<17x64xf32> -> vector<17x64xf32>
    %528 = vector.broadcast %525 : vector<1x64xf32> to vector<17x64xf32>
    %529 = arith.addf %527, %528 : vector<17x64xf32>
    %cst_233 = arith.constant 0.000000e+00 : f32
    %530 = vector.broadcast %cst_233 : f32 to vector<17x64xf32>
    %531 = arith.maximumf %529, %530 : vector<17x64xf32>
    %c2_234 = arith.constant 2 : index
    %c0_235 = arith.constant 0 : index
    %c0_236 = arith.constant 0 : index
    %532 = vector.load %arg19[%c2_234, %c0_235, %c0_236] : memref<3x64x32xbf16, #tpu.memory_space<vmem>>, vector<1x64x32xbf16>
    %533 = vector.shape_cast %532 : vector<1x64x32xbf16> to vector<64x32xbf16>
    %c2_237 = arith.constant 2 : index
    %c0_238 = arith.constant 0 : index
    %c0_239 = arith.constant 0 : index
    %534 = vector.load %arg20[%c2_237, %c0_238, %c0_239] : memref<3x1x32xf32, #tpu.memory_space<vmem>>, vector<1x1x32xf32>
    %535 = vector.shape_cast %534 : vector<1x1x32xf32> to vector<1x32xf32>
    %536 = arith.truncf %531 : vector<17x64xf32> to vector<17x64xbf16>
    %cst_240 = arith.constant dense<0.000000e+00> : vector<17x32xf32>
    %537 = tpu.matmul %536, %533, %cst_240 {dimension_numbers = #tpu.dot_dimension_numbers<[1], [0], [0], [1], [0, 0, 1, 1], [], []>} : vector<17x64xbf16>, vector<64x32xbf16>, vector<17x32xf32> -> vector<17x32xf32>
    %538 = vector.broadcast %535 : vector<1x32xf32> to vector<17x32xf32>
    %539 = arith.addf %537, %538 : vector<17x32xf32>
    %540 = arith.addf %521, %539 : vector<17x32xf32>
    %c2_241 = arith.constant 2 : index
    %c0_242 = arith.constant 0 : index
    %c0_243 = arith.constant 0 : index
    %541 = vector.load %arg21[%c2_241, %c0_242, %c0_243] : memref<3x1x32xf32, #tpu.memory_space<vmem>>, vector<1x1x32xf32>
    %542 = vector.shape_cast %541 : vector<1x1x32xf32> to vector<1x32xf32>
    %c2_244 = arith.constant 2 : index
    %c0_245 = arith.constant 0 : index
    %c0_246 = arith.constant 0 : index
    %543 = vector.load %arg22[%c2_244, %c0_245, %c0_246] : memref<3x1x32xf32, #tpu.memory_space<vmem>>, vector<1x1x32xf32>
    %544 = vector.shape_cast %543 : vector<1x1x32xf32> to vector<1x32xf32>
    %cst_247 = arith.constant dense<0.000000e+00> : vector<17xf32>
    %545 = vector.multi_reduction <add>, %540, %cst_247 [1] : vector<17x32xf32> to vector<17xf32>
    %546 = vector.shape_cast %545 : vector<17xf32> to vector<17x1xf32>
    %cst_248 = arith.constant 3.200000e+01 : f32
    %547 = vector.broadcast %cst_248 : f32 to vector<17x1xf32>
    %548 = arith.divf %546, %547 : vector<17x1xf32>
    %549 = vector.broadcast %548 : vector<17x1xf32> to vector<17x32xf32>
    %550 = arith.subf %540, %549 : vector<17x32xf32>
    %551 = arith.mulf %550, %550 : vector<17x32xf32>
    %cst_249 = arith.constant dense<0.000000e+00> : vector<17xf32>
    %552 = vector.multi_reduction <add>, %551, %cst_249 [1] : vector<17x32xf32> to vector<17xf32>
    %553 = vector.shape_cast %552 : vector<17xf32> to vector<17x1xf32>
    %cst_250 = arith.constant 3.200000e+01 : f32
    %554 = vector.broadcast %cst_250 : f32 to vector<17x1xf32>
    %555 = arith.divf %553, %554 : vector<17x1xf32>
    %556 = vector.broadcast %548 : vector<17x1xf32> to vector<17x32xf32>
    %557 = arith.subf %540, %556 : vector<17x32xf32>
    %cst_251 = arith.constant 9.99999974E-6 : f32
    %558 = vector.broadcast %cst_251 : f32 to vector<17x1xf32>
    %559 = arith.addf %555, %558 : vector<17x1xf32>
    %560 = math.rsqrt %559 : vector<17x1xf32>
    %561 = vector.broadcast %560 : vector<17x1xf32> to vector<17x32xf32>
    %562 = arith.mulf %557, %561 : vector<17x32xf32>
    %563 = vector.broadcast %542 : vector<1x32xf32> to vector<17x32xf32>
    %564 = arith.mulf %562, %563 : vector<17x32xf32>
    %565 = vector.broadcast %544 : vector<1x32xf32> to vector<17x32xf32>
    %566 = arith.addf %564, %565 : vector<17x32xf32>
    %567 = vector.extract_strided_slice %566 {offsets = [1, 0], sizes = [16, 32], strides = [1, 1]} : vector<17x32xf32> to vector<16x32xf32>
    %c0_252 = arith.constant 0 : index
    %c0_253 = arith.constant 0 : index
    %568 = vector.load %arg23[%c0_252, %c0_253] : memref<32x256xbf16, #tpu.memory_space<vmem>>, vector<32x256xbf16>
    %c0_254 = arith.constant 0 : index
    %c0_255 = arith.constant 0 : index
    %569 = vector.load %arg24[%c0_254, %c0_255] : memref<1x256xf32, #tpu.memory_space<vmem>>, vector<1x256xf32>
    %570 = arith.truncf %567 : vector<16x32xf32> to vector<16x32xbf16>
    %cst_256 = arith.constant dense<0.000000e+00> : vector<16x256xf32>
    %571 = tpu.matmul %570, %568, %cst_256 {dimension_numbers = #tpu.dot_dimension_numbers<[1], [0], [0], [1], [0, 0, 1, 1], [], []>} : vector<16x32xbf16>, vector<32x256xbf16>, vector<16x256xf32> -> vector<16x256xf32>
    %572 = vector.broadcast %569 : vector<1x256xf32> to vector<16x256xf32>
    %573 = arith.addf %571, %572 : vector<16x256xf32>
    %c0_257 = arith.constant 0 : index
    %c0_258 = arith.constant 0 : index
    %c0_259 = arith.constant 0 : index
    %574 = vector.load %arg25[%c0_257, %c0_258, %c0_259] : memref<1x16x256xf32, #tpu.memory_space<vmem>>, vector<1x16x256xf32>
    %575 = vector.shape_cast %574 : vector<1x16x256xf32> to vector<16x256xf32>
    %576 = vector.shape_cast %573 : vector<16x256xf32> to vector<1x16x256xf32>
    tpu.vector_store %arg25[%c0_257, %c0_258, %c0_259], %576 {strides = array<i32>} : memref<1x16x256xf32, #tpu.memory_space<vmem>>, vector<1x16x256xf32>,
    return
  }
  func.func @transform_0(%arg0: i32) -> (i32, i32, i32) {
    %c0_i32 = arith.constant 0 : i32
    %c0_i32_0 = arith.constant 0 : i32
    %c0_i32_1 = arith.constant 0 : i32
    return %arg0, %c0_i32, %c0_i32_0 : i32, i32, i32
  }
  func.func @transform_1(%arg0: i32) -> (i32, i32, i32) {
    %c0_i32 = arith.constant 0 : i32
    %c0_i32_0 = arith.constant 0 : i32
    %c0_i32_1 = arith.constant 0 : i32
    return %arg0, %c0_i32, %c0_i32_0 : i32, i32, i32
  }
  func.func @transform_2(%arg0: i32) -> (i32, i32, i32) {
    %c0_i32 = arith.constant 0 : i32
    %c0_i32_0 = arith.constant 0 : i32
    %c0_i32_1 = arith.constant 0 : i32
    return %arg0, %c0_i32, %c0_i32_0 : i32, i32, i32
  }
  func.func @transform_3(%arg0: i32) -> (i32, i32, i32) {
    %c0_i32 = arith.constant 0 : i32
    %c0_i32_0 = arith.constant 0 : i32
    %c0_i32_1 = arith.constant 0 : i32
    return %arg0, %c0_i32, %c0_i32_0 : i32, i32, i32
  }
  func.func @transform_4(%arg0: i32) -> (i32, i32) {
    %c0_i32 = arith.constant 0 : i32
    %c0_i32_0 = arith.constant 0 : i32
    %c0_i32_1 = arith.constant 0 : i32
    return %c0_i32, %c0_i32_0 : i32, i32
  }
  func.func @transform_5(%arg0: i32) -> (i32, i32) {
    %c0_i32 = arith.constant 0 : i32
    %c0_i32_0 = arith.constant 0 : i32
    %c0_i32_1 = arith.constant 0 : i32
    return %c0_i32, %c0_i32_0 : i32, i32
  }
  func.func @transform_6(%arg0: i32) -> (i32, i32) {
    %c0_i32 = arith.constant 0 : i32
    %c0_i32_0 = arith.constant 0 : i32
    %c0_i32_1 = arith.constant 0 : i32
    return %c0_i32, %c0_i32_0 : i32, i32
  }
  func.func @transform_7(%arg0: i32) -> (i32, i32) {
    %c0_i32 = arith.constant 0 : i32
    %c0_i32_0 = arith.constant 0 : i32
    %c0_i32_1 = arith.constant 0 : i32
    return %c0_i32, %c0_i32_0 : i32, i32
  }
  func.func @transform_8(%arg0: i32) -> (i32, i32, i32) {
    %c0_i32 = arith.constant 0 : i32
    %c0_i32_0 = arith.constant 0 : i32
    %c0_i32_1 = arith.constant 0 : i32
    %c0_i32_2 = arith.constant 0 : i32
    return %c0_i32, %c0_i32_0, %c0_i32_1 : i32, i32, i32
  }
  func.func @transform_9(%arg0: i32) -> (i32, i32, i32) {
    %c0_i32 = arith.constant 0 : i32
    %c0_i32_0 = arith.constant 0 : i32
    %c0_i32_1 = arith.constant 0 : i32
    %c0_i32_2 = arith.constant 0 : i32
    return %c0_i32, %c0_i32_0, %c0_i32_1 : i32, i32, i32
  }
  func.func @transform_10(%arg0: i32) -> (i32, i32, i32) {
    %c0_i32 = arith.constant 0 : i32
    %c0_i32_0 = arith.constant 0 : i32
    %c0_i32_1 = arith.constant 0 : i32
    %c0_i32_2 = arith.constant 0 : i32
    return %c0_i32, %c0_i32_0, %c0_i32_1 : i32, i32, i32
  }
  func.func @transform_11(%arg0: i32) -> (i32, i32, i32) {
    %c0_i32 = arith.constant 0 : i32
    %c0_i32_0 = arith.constant 0 : i32
    %c0_i32_1 = arith.constant 0 : i32
    %c0_i32_2 = arith.constant 0 : i32
    return %c0_i32, %c0_i32_0, %c0_i32_1 : i32, i32, i32
  }
  func.func @transform_12(%arg0: i32) -> (i32, i32, i32) {
    %c0_i32 = arith.constant 0 : i32
    %c0_i32_0 = arith.constant 0 : i32
    %c0_i32_1 = arith.constant 0 : i32
    %c0_i32_2 = arith.constant 0 : i32
    return %c0_i32, %c0_i32_0, %c0_i32_1 : i32, i32, i32
  }
  func.func @transform_13(%arg0: i32) -> (i32, i32, i32) {
    %c0_i32 = arith.constant 0 : i32
    %c0_i32_0 = arith.constant 0 : i32
    %c0_i32_1 = arith.constant 0 : i32
    %c0_i32_2 = arith.constant 0 : i32
    return %c0_i32, %c0_i32_0, %c0_i32_1 : i32, i32, i32
  }
  func.func @transform_14(%arg0: i32) -> (i32, i32, i32) {
    %c0_i32 = arith.constant 0 : i32
    %c0_i32_0 = arith.constant 0 : i32
    %c0_i32_1 = arith.constant 0 : i32
    %c0_i32_2 = arith.constant 0 : i32
    return %c0_i32, %c0_i32_0, %c0_i32_1 : i32, i32, i32
  }
  func.func @transform_15(%arg0: i32) -> (i32, i32, i32) {
    %c0_i32 = arith.constant 0 : i32
    %c0_i32_0 = arith.constant 0 : i32
    %c0_i32_1 = arith.constant 0 : i32
    %c0_i32_2 = arith.constant 0 : i32
    return %c0_i32, %c0_i32_0, %c0_i32_1 : i32, i32, i32
  }
  func.func @transform_16(%arg0: i32) -> (i32, i32, i32) {
    %c0_i32 = arith.constant 0 : i32
    %c0_i32_0 = arith.constant 0 : i32
    %c0_i32_1 = arith.constant 0 : i32
    %c0_i32_2 = arith.constant 0 : i32
    return %c0_i32, %c0_i32_0, %c0_i32_1 : i32, i32, i32
  }
  func.func @transform_17(%arg0: i32) -> (i32, i32, i32) {
    %c0_i32 = arith.constant 0 : i32
    %c0_i32_0 = arith.constant 0 : i32
    %c0_i32_1 = arith.constant 0 : i32
    %c0_i32_2 = arith.constant 0 : i32
    return %c0_i32, %c0_i32_0, %c0_i32_1 : i32, i32, i32
  }
  func.func @transform_18(%arg0: i32) -> (i32, i32, i32) {
    %c0_i32 = arith.constant 0 : i32
    %c0_i32_0 = arith.constant 0 : i32
    %c0_i32_1 = arith.constant 0 : i32
    %c0_i32_2 = arith.constant 0 : i32
    return %c0_i32, %c0_i32_0, %c0_i32_1 : i32, i32, i32
  }
  func.func @transform_19(%arg0: i32) -> (i32, i32, i32) {
    %c0_i32 = arith.constant 0 : i32
    %c0_i32_0 = arith.constant 0 : i32
    %c0_i32_1 = arith.constant 0 : i32
    %c0_i32_2 = arith.constant 0 : i32
    return %c0_i32, %c0_i32_0, %c0_i32_1 : i32, i32, i32
  }
  func.func @transform_20(%arg0: i32) -> (i32, i32, i32) {
    %c0_i32 = arith.constant 0 : i32
    %c0_i32_0 = arith.constant 0 : i32
    %c0_i32_1 = arith.constant 0 : i32
    %c0_i32_2 = arith.constant 0 : i32
    return %c0_i32, %c0_i32_0, %c0_i32_1 : i32, i32, i32
  }
  func.func @transform_21(%arg0: i32) -> (i32, i32, i32) {
    %c0_i32 = arith.constant 0 : i32
    %c0_i32_0 = arith.constant 0 : i32
    %c0_i32_1 = arith.constant 0 : i32
    %c0_i32_2 = arith.constant 0 : i32
    return %c0_i32, %c0_i32_0, %c0_i32_1 : i32, i32, i32
  }
  func.func @transform_22(%arg0: i32) -> (i32, i32) {
    %c0_i32 = arith.constant 0 : i32
    %c0_i32_0 = arith.constant 0 : i32
    %c0_i32_1 = arith.constant 0 : i32
    return %c0_i32, %c0_i32_0 : i32, i32
  }
  func.func @transform_23(%arg0: i32) -> (i32, i32) {
    %c0_i32 = arith.constant 0 : i32
    %c0_i32_0 = arith.constant 0 : i32
    %c0_i32_1 = arith.constant 0 : i32
    return %c0_i32, %c0_i32_0 : i32, i32
  }
  func.func @transform_24(%arg0: i32) -> (i32, i32, i32) {
    %c0_i32 = arith.constant 0 : i32
    %c0_i32_0 = arith.constant 0 : i32
    %c0_i32_1 = arith.constant 0 : i32
    return %arg0, %c0_i32, %c0_i32_0 : i32, i32, i32
  }
}

</mosaic_0001>

<bundles_post_ra>
// kernel: forward.3
= control target key start
LH: loop header
LB: loop body
LE: loop exit
PB: predicated region body
PF: predicated region fallthrough
CT: control target
= control target key end

     0   :  { %s7065_s0 = inlined_call_operand.vmem [shape: f32[2,17,64], index: 0, kind: input, shape index: {}]   ;;  %s7066_s1 = inlined_call_operand.vmem [shape: f32[2,17,64], index: 1, kind: input, shape index: {}]   ;;  %s7067_s2 = inlined_call_operand.vmem [shape: f32[2,17,64], index: 2, kind: input, shape index: {}]   ;;  %s7068_s3 = inlined_call_operand.vmem [shape: f32[2,1,32], index: 3, kind: input, shape index: {}]   ;;  %s7069_s4 = inlined_call_operand.vmem [shape: bf16[32,32], index: 4, kind: input, shape index: {}]   ;;  %s7070_s5 = inlined_call_operand.vmem [shape: f32[1,32], index: 5, kind: input, shape index: {}]   ;;  %s7071_s6 = inlined_call_operand.vmem [shape: bf16[32,32], index: 6, kind: input, shape index: {}]   ;;  %s7072_s7 = inlined_call_operand.vmem [shape: f32[1,32], index: 7, kind: input, shape index: {}]   ;;  %s7073_s8 = inlined_call_operand.vmem [shape: bf16[3,64,32], index: 8, kind: input, shape index: {}]   ;;  %s7074_s9 = inlined_call_operand.vmem [shape: f32[3,1,32], index: 9, kind: input, shape index: {}]   ;;  %s7075_s10 = inlined_call_operand.vmem [shape: bf16[3,32,96], index: 10, kind: input, shape index: {}]   ;;  %s7076_s11 = inlined_call_operand.vmem [shape: f32[3,1,96], index: 11, kind: input, shape index: {}]   ;;  %s7077_s12 = inlined_call_operand.vmem [shape: bf16[3,32,32], index: 12, kind: input, shape index: {}]   ;;  %s7078_s13 = inlined_call_operand.vmem [shape: f32[3,1,32], index: 13, kind: input, shape index: {}]   ;;  %s7079_s14 = inlined_call_operand.vmem [shape: f32[3,1,32], index: 14, kind: input, shape index: {}]   ;;  %s7080_s15 = inlined_call_operand.vmem [shape: f32[3,1,32], index: 15, kind: input, shape index: {}]   ;;  %s7081_s16 = inlined_call_operand.vmem [shape: bf16[3,32,64], index: 16, kind: input, shape index: {}]   ;;  %s7082_s17 = inlined_call_operand.vmem [shape: f32[3,1,64], index: 17, kind: input, shape index: {}]   ;;  %s7083_s18 = inlined_call_operand.vmem [shape: bf16[3,64,32], index: 18, kind: input, shape index: {}]   ;;  %s7084_s19 = inlined_call_operand.vmem [shape: f32[3,1,32], index: 19, kind: input, shape index: {}]   ;;  %s7085_s20 = inlined_call_operand.vmem [shape: f32[3,1,32], index: 20, kind: input, shape index: {}]   ;;  %s7086_s21 = inlined_call_operand.vmem [shape: f32[3,1,32], index: 21, kind: input, shape index: {}]   ;;  %s7087_s22 = inlined_call_operand.vmem [shape: bf16[32,256], index: 22, kind: input, shape index: {}]   ;;  %s7088_s23 = inlined_call_operand.vmem [shape: f32[1,256], index: 23, kind: input, shape index: {}]   ;;  %s7089_s24 = inlined_call_operand.vmem [shape: f32[2,16,256], index: 24, kind: output, shape index: {}]  }
   0x1   :  { %7131 = sst [smem:[#allocation4_spill]] %s7065_s0 }
   0x2   :  { %7132 = sst [smem:[#allocation5_spill]] %s7066_s1 }
   0x3   :  { %7133 = sst [smem:[#allocation6_spill]] %s7067_s2 }
   0x4   :  { %7134 = sst [smem:[#allocation7_spill]] %s7068_s3 }
   0x5   :  { %7135 = sst [smem:[#allocation8_spill]] %s7069_s4 }
   0x6   :  { %7136 = sst [smem:[#allocation9_spill]] %s7070_s5  ;;  %s6216_s5 = smov 0  }
   0x7   :  { %7137 = sst [smem:[#allocation10_spill]] %s7071_s6 }
   0x8   :  { %7138 = sst [smem:[#allocation11_spill]] %s7072_s7 }
   0x9   :  { %7139 = sst [smem:[#allocation12_spill]] %s7073_s8 }
   0xa   :  { %7140 = sst [smem:[#allocation13_spill]] %s7077_s12 }
   0xb   :  { %7141 = sst [smem:[#allocation14_spill]] %s7078_s13 }
   0xc   :  { %7142 = sst [smem:[#allocation15_spill]] %s7080_s15 }
   0xd   :  { %7143 = sst [smem:[#allocation16_spill]] %s7082_s17 }
   0xe   :  { %7144 = sst [smem:[#allocation17_spill]] %s7087_s22 }
   0xf   :  { %7145 = sst [smem:[#allocation18_spill]] %s7088_s23 }
  0x10   :  { %7146 = sst [smem:[#allocation19_spill]] %s7089_s24 }
  0x11 LB: > { %7147 = sst [smem:[#allocation2_spill]] %s6072_s5  ;;  %s4968_s26 = sadd.s32 4294967295, %s6072_s5   ;;  %s6072_s5 = sphi %s6216_s5, %s34_s5  }
  0x12   : > { %p4972_p0 = scmp.ge.s32.totalorder %s6072_s5, 1  ;;  %p690_p1 = scmp.lt.s32.totalorder %s6072_s5, 3 }
  0x14   : > { %p691_p2 = pnand %p4972_p0, %p690_p1 }
  0x16   : > { %694 = sbr.rel (%p691_p2) target bundleno = 13048 (0x32f8), region = 116 }
  0x1d   : > { %s7148_s6 = sld [smem:[#allocation12_spill]]  ;;  %v6074_v1 = vmov 0.0   ;;  %s7149_s0 = sld [smem:[#allocation8_spill]]  ;;  %vm6075_vm0 = vmmov 0   ;;  %vm917_vm1 = vcmask 261120   ;;  %vm843_vm2 = vcmask 523264  }
  0x1e   : > { %5399 = vmatprep.subr.bf16.mxu1 %v6074_v1  ;;  %5403 = vmatprep.mubr.msk.bf16.mxu1 %vm6075_vm0, %v6074_v1  ;;  %p769_p3 = scmp.lt.s32.totalorder %s4968_s26, 1  ;;  %s7151_s28 = sld [smem:[#allocation7_spill]]  ;;  %v5842_v16 = vld [vmem:[%s7075_s10] sm:$0xff]   ;;  %v5843_v17 = vld [vmem:[%s7075_s10 + $0x8] sm:$0xff]   ;;  %v961_v18 = vlaneseq  ;;  %vm1129_vm3 = vcmask 64512   ;;  %vm1197_vm4 = vcmask 131072  }
  0x1f   : > { %s7152_s30 = sld [smem:[#allocation10_spill]]  ;;  %s7153_s27 = sld [smem:[#allocation4_spill]]  ;;  %v4978_v27 = vld [vmem:[%s7074_s9] ss:$0 sm:$0xff]  ;;  %vm1190_vm5 = vcmask 138240   ;;  %vm1238_vm6 = vcmask 1040384  }
  0x20   : > { %s7190_s26 = smov (!%p769_p3, %s4968_s26), 1  ;;  %v6273_v20 = vshrl.u32 %v961_v18, 7  ;;  %s7154_s1 = sld [smem:[#allocation9_spill]]  ;;  %v4991_v51 = vld [vmem:[%s7076_s11] ss:$0 sm:$0xff]  ;;  %vm1828_vm7 = vcmask 130048  }
  0x21   : > { %7150 = sst [smem:[#allocation3_spill]] %s7190_s26  ;;  %s6250_s3 = smul.u32 24, %s7190_s26  ;;  %vm1832_vm8 = vcmask 195584   ;;  %vm1921_vm9 = vcmask 253952   ;;  %vm4797_vm10 = vsmask.f32 7424 }
  0x22   : > { %v6279_v26 = vsub.s32 0, %v6273_v20  ;;  %s7120_s8 = smov 96   ;;  %s7116_s4 = smov 88  }
  0x23   : > { %v5834_v0 = vld [vmem:[%s7148_s6] sm:$0xff]   ;;  %v5836_v3 = vld [vmem:[%s7148_s6 + $0x8] sm:$0xff]   ;;  %v5838_v5 = vld [vmem:[%s7148_s6 + $0x10] sm:$0xff]   ;;  %s7108_s29 = smov 80   ;;  %s7096_s7 = smov 72  }
  0x24   : > { %v5835_v2 = vld [vmem:[%s7149_s0] sm:$0xff]   ;;  %5387 = vmatprep.subr.bf16.mxu0 %v5834_v0  ;;  %v5837_v4 = vld [vmem:[%s7149_s0 + $0x8] sm:$0xff]   ;;  %s786_s2 = scalar_lea.vmem %s7151_s28, %s7190_s26  ;;  %v5840_v9 = vld [vmem:[%s7148_s6 + $0x18] sm:$0xff]   ;;  %s7106_s0 = smov 112  }
  0x25   : > { %5388 = vmatpush3.bf16.msra.mxu0 %v5834_v0  ;;  %5400 = vmatpush3.bf16.msra.mxu1 %v5835_v2  ;;  %v5839_v6 = vld [vmem:[%s7152_s30] sm:$0xff]   ;;  %s773_s28 = scalar_lea.vmem %s7153_s27, %s6250_s3  ;;  %v5841_v10 = vld [vmem:[%s7152_s30 + $0x8] sm:$0xff]   ;;  %s7114_s27 = smov 120  }
  0x26   : > { %5389 = vmatprep.subr.bf16.mxu0 %v5836_v3  ;;  %5401 = vmatprep.subr.bf16.mxu1 %v6074_v1  ;;  %v898_v7 = vld [vmem:[%s786_s2] sm:$0x1]  ;;  %v794_v12 = vld [vmem:[%s773_s28 + $0x8] sm:$0xff]  ;;  %v795_v13 = vld [vmem:[%s773_s28 + $0x10] sm:$0x1]  ;;  %s7155_s2 = sld [smem:[#allocation11_spill]] }
  0x27   : > { %v904_v8 = vpack.c.bf16 %v898_v7, %v898_v7  ;;  %v793_v11 = vld [vmem:[%s773_s28] sm:$0xff]  ;;  %v812_v15 = vpack.c.bf16 %v795_v13, %v795_v13  ;;  %s7112_s28 = smov 56   ;;  %s7094_s25 = smov 104  }
  0x28   : > { %v811_v14 = vpack.c.bf16 %v794_v12, %v793_v11  ;;  %v903_v22 = vld [vmem:[%s7154_s1] sm:$0x1]  ;;  %s7118_s1 = smov 64   ;;  %s7156_s12 = sld [smem:[#allocation13_spill]] }
  0x29   : > { %5390 = vmatpush3.bf16.msra.mxu0 %v5836_v3  ;;  %5402 = vmatpush3.bf16.msra.mxu1 %v5837_v4  ;;  %s7157_s13 = sld [smem:[#allocation14_spill]]  ;;  %s7158_s15 = sld [smem:[#allocation15_spill]] }
  0x2a   : > { %5391 = vmatprep.subr.bf16.mxu0 %v5838_v5  ;;  %5407 = vmatprep.subr.bf16.mxu1 %v6074_v1  ;;  %s7159_s17 = sld [smem:[#allocation16_spill]]  ;;  %s7171_s30 = smov 40  }
  0x2b   : > { %5395 = vmatprep.mubr.msk.bf16.mxu0 %vm843_vm2, %v811_v14  ;;  %s7172_s5 = smov 8   ;;  %s7173_s24 = smov 16  }
  0x2c   : > { %5404 = vmatmul.mubr.msk.bf16.vlgmr.msra.gmra.mrb[0].mxu1 %vm917_vm1, %v904_v8  ;;  %v972_v28 = vld [vmem:[%s7155_s2] sm:$0x1]  ;;  %s7098_s2 = smov 48   ;;  %s7181_s26 = sld [smem:[#allocation14_spill]] }
  0x2d   : > { %5392 = vmatpush3.bf16.msra.mxu0 %v5838_v5  ;;  %5408 = vmatpush3.bf16.msra.mxu1 %v5839_v6  ;;  %s7187_s22 = sld [smem:[#allocation19_spill]] }
  0x2e   : > { %5393 = vmatprep.subr.bf16.mxu0 %v5840_v9  ;;  %5409 = vmatprep.subr.bf16.mxu1 %v6074_v1 }
  0x2f   : > { %5411 = vmatprep.mubr.msk.bf16.mxu1 %vm6075_vm0, %v6074_v1 }
  0x31   : > { %5394 = vmatpush3.bf16.msra.mxu0 %v5840_v9  ;;  %5410 = vmatpush3.bf16.msra.mxu1 %v5841_v10 }
  0x32   : > { %5415 = vmatprep.subr.bf16.mxu0 %v5842_v16 }
  0x34   : > { %5396 = vmatmul.mubr.msk.bf16.vlgmr.msra.gmra.mrb[0].mxu0 %vm843_vm2, %v812_v15  ;;  %5412 = vmatmul.mubr.msk.bf16.vlgmr.msra.gmra.mrb[4].mxu1 %vm917_vm1, %v904_v8 }
  0x35   : > { %5416 = vmatpush3.bf16.msra.mxu0 %v5842_v16 }
  0x36   : > { %5417 = vmatprep.subr.bf16.mxu0 %v5843_v17 }
  0x39   : > { %5418 = vmatpush3.bf16.msra.mxu0 %v5843_v17 }
  0xff   : > { %v955_v19 = vpop.f32.mrb[0].mxu1 }
 0x100   : > { %v5405_v21 = vpop.f32.mrb[1].mxu1  ;;  %v956_v25 = vadd.f32 %v955_v19, %v903_v22 }
 0x101   : > { %v958_v23 = vpop.f32.mrb[2].mxu1 }
 0x102   : > { %v5406_v24 = vpop.f32.mrb[3].mxu1  ;;  %v964_v31 = vrot.slane %v956_v25, %v6279_v26 }
 0x107   : > { %v5397_v29 = vpop.f32.mrb[0].mxu0  ;;  %v1019_v30 = vpop.f32.mrb[4].mxu1 }
 0x108   : > { %v893_v32 = vadd.f32 %v5397_v29, %v4978_v27  ;;  %v1020_v33 = vadd.f32 %v1019_v30, %v972_v28  ;;  %v884_v34 = vpop.f32.mrb[1].mxu0  ;;  %v5413_v35 = vpop.f32.mrb[5].mxu1 }
 0x109   : > { %v885_v36 = vadd.f32 %v4978_v27, %v884_v34  ;;  %v5398_v37 = vpop.f32.mrb[2].mxu0  ;;  %v1022_v38 = vpop.f32.mrb[6].mxu1  ;;  %v6080_v34 = vmov 0  }
 0x10a   : > { %v967_v39 = vmul.f32 %v964_v31, %v893_v32  ;;  %v1028_v40 = vrot.slane %v1020_v33, %v6279_v26  ;;  %v887_v41 = vpop.f32.mrb[3].mxu0  ;;  %v5414_v42 = vpop.f32.mrb[7].mxu1  ;;  %v6343_v35 = vsel %vm1238_vm6, 65535, %v6080_v34 }
 0x10b   : > { %v965_v43 = vmul.f32 %v964_v31, %v885_v36  ;;  %v888_v44 = vadd.f32 %v4978_v27, %v887_v41 }
 0x10c   : > { %v6289_v45 = vadd.f32 %v1028_v40, %v967_v39 }
 0x10d   : > { %v6291_v46 = vadd.f32 %v1028_v40, %v965_v43  ;;  %v966_v47 = vmul.f32 %v964_v31, %v888_v44 }
 0x10e   : > { %v1043_v50 = vpack.c.bf16 %v6289_v45, %v6289_v45 }
 0x10f   : > { %v6293_v48 = vadd.f32 %v1028_v40, %v966_v47 }
 0x111   : > { %v1042_v49 = vpack.c.bf16 %v6293_v48, %v6291_v46 }
 0x113   : > { %5419 = vmatprep.mubr.msk.bf16.mxu0 %vm917_vm1, %v1042_v49 }
 0x114   : > { %5420 = vmatmul.mubr.msk.bf16.vlgmr.msra.gmra.mrb[4].mxu0 %vm917_vm1, %v1043_v50 }
 0x1e7   : > { %v5421_v52 = vpop.f32.mrb[4].mxu0 }
 0x1e8   : > { %v1102_v53 = vpop.f32.mrb[5].mxu0  ;;  %v1111_v58 = vadd.f32 %v5421_v52, %v4991_v51 }
 0x1e9   : > { %v1103_v54 = vadd.f32 %v4991_v51, %v1102_v53  ;;  %v5422_v55 = vpop.f32.mrb[6].mxu0 }
 0x1ea   : > { %v1105_v56 = vpop.f32.mrb[7].mxu0  ;;  %v6310_v63 = vpack.c.bf16 %v1111_v58, %v1111_v58  ;;  %v1118_v4 = vmul.f32 0.35355338, %v1111_v58 }
 0x1eb   : > { %v1106_v57 = vadd.f32 %v4991_v51, %v1105_v56  ;;  %v1116_v59 = vmul.f32 0.35355338, %v1103_v54 }
 0x1ec   : > { %v6320_v5 = vpack.c.bf16 %v1118_v4, %v1118_v4 }
 0x1ed   : > { %v1117_v60 = vmul.f32 0.35355338, %v1106_v57  ;;  %v6304_v61 = vpack.c.bf16 %v1106_v57, %v1103_v54 }
 0x1ef   : > { %v6306_v62 = vpack.c.bf16 %v1117_v60, %v1116_v59  ;;  %1125 = vrot.lane.b32.xlu0 %v6304_v61, %s7120_s8 }
 0x1f1   : > { %5427 = vmatprep.mubr.msk.bf16.mxu1 %vm1129_vm3, %v6306_v62 }
 0x1f3   : > { %1127 = vrot.lane.b32.xlu0 %v6310_v63, %s7120_s8  ;;  %s7169_s8 = smov 72  }
 0x261   : > { %v1126_v0 = vpop.permute.xlu0 %1125 }
 0x262   : > { %5739 = vmatprep.subr.msk.bf16.mxu1 %vm1129_vm3, %v1126_v0  ;;  %v1137_v1 = vsel %vm1129_vm3, %v1126_v0, 0 }
 0x263   : > { %5424 = vmatpush3.bf16.xpose.msra.mxu1 %v1137_v1 }
 0x265   : > { %v1128_v2 = vpop.permute.xlu0 %1127 }
 0x266   : > { %5740 = vmatprep.subr.msk.bf16.mxu1 %vm1129_vm3, %v1128_v2  ;;  %v1140_v3 = vsel %vm1129_vm3, %v1128_v2, 0 }
 0x26b   : > { %5426 = vmatpush3.bf16.xpose.msra.mxu1 %v1140_v3 }
 0x272   : > { %5428 = vmatmul.mubr.msk.bf16.vlgmr.msra.gmra.mrb[8].mxu1 %vm1129_vm3, %v6320_v5 }
 0x345   : > { %v5429_v6 = vpop.f32.mrb[8].mxu1 }
 0x346   : > { %v1176_v7 = vpop.f32.mrb[9].mxu1  ;;  %v1198_v8 = vsel %vm1197_vm4, %v5429_v6, -inf }
 0x347   : > { %1199 = vmax.xlane.f32.xlu0 %v1198_v8  ;;  %v5430_v9 = vpop.f32.mrb[10].mxu1  ;;  %v1191_v10 = vsel %vm1190_vm5, %v1176_v7, -inf }
 0x348   : > { %1192 = vmax.xlane.f32.xlu1 %v1191_v10  ;;  %v1179_v11 = vpop.f32.mrb[11].mxu1 }
 0x349   : > { %v1194_v12 = vsel %vm1190_vm5, %v1179_v11, -inf }
 0x34c   : > { %1195 = vmax.xlane.f32.xlu1 %v1194_v12 }
 0x35d   : > { %1298 = vrot.lane.b32.xlu0 %v6304_v61, %s7116_s4  ;;  %1227 = vrot.lane.b32.xlu1 %v6304_v61, %s7118_s1 }
 0x3d4   : > { %v1200_v13 = vpop.xlane.xlu0 %1199 }
 0x3d5   : > { %v1203_v14 = vsub.f32 %v5429_v6, %v1200_v13  ;;  %v1193_v15 = vpop.xlane.xlu1 %1192 }
 0x3d6   : > { %v1201_v16 = vsub.f32 %v1176_v7, %v1193_v15 }
 0x3d7   : > { %v1208_v17 = vmul.f32 1.442695, %v1203_v14 }
 0x3d8   : > { %v1204_v18 = vmul.f32 1.442695, %v1201_v16  ;;  %v1299_v39 = vpop.permute.xlu0 %1298 }
 0x3d9   : > { %5886 = vpow2.f32 %v1208_v17  ;;  %v1196_v19 = vpop.xlane.xlu1 %1195  ;;  %v1309_v52 = vsel %vm1129_vm3, %v1299_v39, 0 }
 0x3da   : > { %v1202_v21 = vsub.f32 %v1179_v11, %v1196_v19  ;;  %5888 = vpow2.f32 %v1204_v18 }
 0x3dc   : > { %v1206_v22 = vmul.f32 1.442695, %v1202_v21 }
 0x3dd   : > { %v1228_v23 = vpop.permute.xlu1 %1227 }
 0x3de   : > { %5431 = vmatprep.subr.bf16.mxu0 %v1228_v23  ;;  %5890 = vpow2.f32 %v1206_v22 }
 0x3df   : > { %5432 = vmatpush3.bf16.msra.mxu0 %v1228_v23 }
 0x3e3   : > { %v5887_v24 = vpop.eup %5886 }
 0x3e4   : > { %v1216_v25 = vsel %vm1197_vm4, %v5887_v24, 0.0  ;;  %v5889_v27 = vpop.eup %5888 }
 0x3e5   : > { %1217 = vadd.xlane.f32.xlu1 %v1216_v25  ;;  %v1210_v28 = vsel %vm1190_vm5, %v5889_v27, 0.0 }
 0x3e8   : > { %v5891_v29 = vpop.eup %5890 }
 0x3e9   : > { %1211 = vadd.xlane.f32.xlu1 %v1210_v28  ;;  %v1213_v30 = vsel %vm1190_vm5, %v5891_v29, 0.0 }
 0x3ed   : > { %1214 = vadd.xlane.f32.xlu1 %v1213_v30 }
 0x3fe   : > { %1229 = vrot.lane.b32.xlu1 %v6310_v63, %s7118_s1  ;;  %s7170_s1 = smov 104  }
 0x402   : > { %1300 = vrot.lane.b32.xlu1 %v6310_v63, %s7116_s4 }
 0x406   : > { %1294 = vrot.lane.b32.xlu1 %v6306_v62, %s7114_s27 }
 0x40a   : > { %1296 = vrot.lane.b32.xlu1 %v6320_v5, %s7114_s27  ;;  %s7165_s27 = smov 56  }
 0x472   : > { %v1218_v31 = vpop.xlane.xlu1 %1217 }
 0x473   : > { %5892 = vrcp.f32 %v1218_v31 }
 0x476   : > { %v1212_v32 = vpop.xlane.xlu1 %1211 }
 0x477   : > { %5894 = vrcp.f32 %v1212_v32 }
 0x47a   : > { %v1215_v33 = vpop.xlane.xlu1 %1214 }
 0x47b   : > { %5896 = vrcp.f32 %v1215_v33 }
 0x47d   : > { %v5893_v38 = vpop.eup %5892 }
 0x47e   : > { %v1230_v36 = vpop.permute.xlu1 %1229  ;;  %v1224_v43 = vmul.f32 %v5893_v38, %v5887_v24 }
 0x47f   : > { %v1242_v37 = vand.u32 %v6343_v35, %v1230_v36 }
 0x480   : > { %v1226_v50 = vpack.c.bf16 %v1224_v43, %v1224_v43 }
 0x481   : > { %5433 = vmatprep.subr.bf16.mxu0 %v1242_v37  ;;  %v5895_v40 = vpop.eup %5894 }
 0x482   : > { %5434 = vmatpush3.bf16.msra.mxu0 %v1242_v37  ;;  %v1301_v42 = vpop.permute.xlu1 %1300  ;;  %v1222_v44 = vmul.f32 %v5895_v40, %v5889_v27 }
 0x483   : > { %5741 = vmatprep.subr.msk.bf16.mxu0 %vm1129_vm3, %v1299_v39  ;;  %v1312_v53 = vsel %vm1129_vm3, %v1301_v42, 0 }
 0x485   : > { %v5897_v41 = vpop.eup %5896 }
 0x486   : > { %v1223_v47 = vmul.f32 %v5897_v41, %v5891_v29  ;;  %v1295_v51 = vpop.permute.xlu1 %1294 }
 0x488   : > { %v1225_v49 = vpack.c.bf16 %v1223_v47, %v1222_v44 }
 0x48a   : > { %5435 = vmatprep.mubr.msk.bf16.mxu0 %vm1190_vm5, %v1225_v49  ;;  %v1297_v54 = vpop.permute.xlu1 %1296 }
 0x48b   : > { %5436 = vmatmul.mubr.msk.bf16.vlgmr.msra.gmra.mrb[8].mxu0 %vm1190_vm5, %v1226_v50 }
 0x48c   : > { %5440 = vmatpush3.bf16.xpose.msra.mxu0 %v1309_v52  ;;  %5443 = vmatprep.mubr.msk.bf16.mxu0 %vm1129_vm3, %v1295_v51 }
 0x48d   : > { %5742 = vmatprep.subr.msk.bf16.mxu0 %vm1129_vm3, %v1301_v42 }
 0x494   : > { %5442 = vmatpush3.bf16.xpose.msra.mxu0 %v1312_v53 }
 0x49b   : > { %5444 = vmatmul.mubr.msk.bf16.vlgmr.msra.gmra.mrb[12].mxu0 %vm1129_vm3, %v1297_v54 }
 0x55e   : > { %v6354_v55 = vpop.f32.mrb[8].mxu0 }
 0x55f   : > { %v6356_v56 = vpop.f32.mrb[9].mxu0 }
 0x560   : > { %v5438_v57 = vpop.f32.mrb[10].mxu0 }
 0x561   : > { %v6358_v58 = vpop.f32.mrb[11].mxu0 }
 0x56e   : > { %v5445_v59 = vpop.f32.mrb[12].mxu0 }
 0x56f   : > { %v1348_v60 = vpop.f32.mrb[13].mxu0  ;;  %v1368_v4 = vsel %vm1197_vm4, %v5445_v59, -inf }
 0x570   : > { %v5446_v0 = vpop.f32.mrb[14].mxu0  ;;  %v1362_v1 = vsel %vm1190_vm5, %v1348_v60, -inf }
 0x571   : > { %1363 = vmax.xlane.f32.xlu1 %v1362_v1  ;;  %v1351_v2 = vpop.f32.mrb[15].mxu0 }
 0x572   : > { %v1365_v3 = vsel %vm1190_vm5, %v1351_v2, -inf }
 0x573   : > { %1366 = vmax.xlane.f32.xlu0 %v1365_v3 }
 0x575   : > { %1369 = vmax.xlane.f32.xlu1 %v1368_v4 }
 0x586   : > { %1397 = vrot.lane.b32.xlu1 %v6304_v61, %s7112_s28 }
 0x5fe   : > { %v1364_v6 = vpop.xlane.xlu1 %1363 }
 0x5ff   : > { %v1371_v8 = vsub.f32 %v1348_v60, %v1364_v6 }
 0x600   : > { %v1367_v7 = vpop.xlane.xlu0 %1366 }
 0x601   : > { %v1372_v9 = vsub.f32 %v1351_v2, %v1367_v7  ;;  %v1374_v13 = vmul.f32 1.442695, %v1371_v8 }
 0x602   : > { %v1370_v10 = vpop.xlane.xlu1 %1369 }
 0x603   : > { %v1376_v11 = vmul.f32 1.442695, %v1372_v9  ;;  %v1373_v12 = vsub.f32 %v5445_v59, %v1370_v10 }
 0x605   : > { %5898 = vpow2.f32 %v1376_v11  ;;  %v1378_v14 = vmul.f32 1.442695, %v1373_v12 }
 0x606   : > { %v1398_v15 = vpop.permute.xlu1 %1397 }
 0x607   : > { %5900 = vpow2.f32 %v1378_v14  ;;  %5447 = vmatprep.subr.bf16.mxu1 %v1398_v15 }
 0x608   : > { %5448 = vmatpush3.bf16.msra.mxu1 %v1398_v15  ;;  %5902 = vpow2.f32 %v1374_v13 }
 0x60f   : > { %v5899_v16 = vpop.eup %5898 }
 0x610   : > { %v1383_v17 = vsel %vm1190_vm5, %v5899_v16, 0.0 }
 0x611   : > { %v5901_v18 = vpop.eup %5900  ;;  %1384 = vadd.xlane.f32.xlu1 %v1383_v17 }
 0x612   : > { %v1386_v19 = vsel %vm1197_vm4, %v5901_v18, 0.0  ;;  %v5903_v21 = vpop.eup %5902 }
 0x613   : > { %1387 = vadd.xlane.f32.xlu0 %v1386_v19  ;;  %v1380_v22 = vsel %vm1190_vm5, %v5903_v21, 0.0 }
 0x617   : > { %1381 = vadd.xlane.f32.xlu0 %v1380_v22 }
 0x622   : > { %1463 = vrot.lane.b32.xlu1 %v6304_v61, %s7108_s29 }
 0x626   : > { %1465 = vrot.lane.b32.xlu1 %v6310_v63, %s7108_s29  ;;  %s7110_s29 = smov 24  }
 0x62a   : > { %1461 = vrot.lane.b32.xlu1 %v6320_v5, %s7106_s0 }
 0x62d   : > { %1399 = vrot.lane.b32.xlu0 %v6310_v63, %s7112_s28  ;;  %s7160_s28 = sld [smem:[#allocation5_spill]] }
 0x631   : > { %1459 = vrot.lane.b32.xlu0 %v6306_v62, %s7106_s0  ;;  %s7161_s0 = smov 96  }
 0x633   : > { %s778_s4 = scalar_lea.vmem %s7160_s28, %s6250_s3  ;;  %s7163_s28 = smov 88  }
 0x69e   : > { %v1385_v23 = vpop.xlane.xlu1 %1384 }
 0x6a0   : > { %v1388_v24 = vpop.xlane.xlu0 %1387 }
 0x6a1   : > { %5904 = vrcp.f32 %v1388_v24 }
 0x6a2   : > { %5906 = vrcp.f32 %v1385_v23  ;;  %v1464_v30 = vpop.permute.xlu1 %1463 }
 0x6a3   : > { %v1474_v41 = vsel %vm1129_vm3, %v1464_v30, 0 }
 0x6a4   : > { %v1382_v25 = vpop.xlane.xlu0 %1381 }
 0x6a5   : > { %5908 = vrcp.f32 %v1382_v25 }
 0x6a6   : > { %v1466_v42 = vpop.permute.xlu1 %1465 }
 0x6a7   : > { %v1477_v43 = vsel %vm1129_vm3, %v1466_v42, 0 }
 0x6a8   : > { %v1400_v27 = vpop.permute.xlu0 %1399 }
 0x6a9   : > { %v1409_v28 = vand.u32 %v1400_v27, %v6343_v35 }
 0x6aa   : > { %v1462_v44 = vpop.permute.xlu1 %1461 }
 0x6ab   : > { %5449 = vmatprep.subr.bf16.mxu1 %v1409_v28  ;;  %v5905_v29 = vpop.eup %5904 }
 0x6ac   : > { %5450 = vmatpush3.bf16.msra.mxu1 %v1409_v28  ;;  %v5907_v31 = vpop.eup %5906  ;;  %v1394_v33 = vmul.f32 %v5905_v29, %v5901_v18  ;;  %v1460_v40 = vpop.permute.xlu0 %1459 }
 0x6ad   : > { %5743 = vmatprep.subr.msk.bf16.mxu1 %vm1129_vm3, %v1464_v30  ;;  %v1393_v37 = vmul.f32 %v5907_v31, %v5899_v16 }
 0x6ae   : > { %v1396_v39 = vpack.c.bf16 %v1394_v33, %v1394_v33 }
 0x6af   : > { %v5909_v32 = vpop.eup %5908 }
 0x6b0   : > { %v1392_v36 = vmul.f32 %v5909_v32, %v5903_v21 }
 0x6b2   : > { %v1395_v38 = vpack.c.bf16 %v1393_v37, %v1392_v36 }
 0x6b4   : > { %5451 = vmatprep.mubr.msk.bf16.mxu1 %vm1190_vm5, %v1395_v38 }
 0x6b5   : > { %5452 = vmatmul.mubr.msk.bf16.vlgmr.msra.gmra.mrb[12].mxu1 %vm1190_vm5, %v1396_v39 }
 0x6b6   : > { %5456 = vmatpush3.bf16.xpose.msra.mxu1 %v1474_v41  ;;  %5459 = vmatprep.mubr.msk.bf16.mxu1 %vm1129_vm3, %v1460_v40 }
 0x6b7   : > { %5744 = vmatprep.subr.msk.bf16.mxu1 %vm1129_vm3, %v1466_v42 }
 0x6be   : > { %5458 = vmatpush3.bf16.xpose.msra.mxu1 %v1477_v43 }
 0x6c5   : > { %5460 = vmatmul.mubr.msk.bf16.vlgmr.msra.gmra.mrb[16].mxu1 %vm1129_vm3, %v1462_v44 }
 0x788   : > { %v6387_v47 = vpop.f32.mrb[12].mxu1 }
 0x789   : > { %v6389_v49 = vpop.f32.mrb[13].mxu1 }
 0x78a   : > { %v5454_v50 = vpop.f32.mrb[14].mxu1 }
 0x78b   : > { %v6391_v51 = vpop.f32.mrb[15].mxu1 }
 0x78c   : > { %v5789_v52 = vpack.i.bf16 %v6391_v51, %v6389_v49 }
 0x798   : > { %v5461_v53 = vpop.f32.mrb[16].mxu1 }
 0x799   : > { %v1513_v54 = vpop.f32.mrb[17].mxu1  ;;  %v1533_v1 = vsel %vm1197_vm4, %v5461_v53, -inf }
 0x79a   : > { %v5462_v57 = vpop.f32.mrb[18].mxu1  ;;  %v1527_v59 = vsel %vm1190_vm5, %v1513_v54, -inf }
 0x79b   : > { %1528 = vmax.xlane.f32.xlu0 %v1527_v59  ;;  %v1516_v60 = vpop.f32.mrb[19].mxu1 }
 0x79c   : > { %v1530_v0 = vsel %vm1190_vm5, %v1516_v60, -inf }
 0x79d   : > { %1531 = vmax.xlane.f32.xlu1 %v1530_v0 }
 0x79f   : > { %1534 = vmax.xlane.f32.xlu0 %v1533_v1 }
 0x7ae   : > { %1562 = vrot.lane.b32.xlu1 %v6304_v61, %s7098_s2 }
 0x828   : > { %v1529_v2 = vpop.xlane.xlu0 %1528 }
 0x829   : > { %v1536_v4 = vsub.f32 %v1513_v54, %v1529_v2 }
 0x82a   : > { %v1532_v3 = vpop.xlane.xlu1 %1531 }
 0x82b   : > { %v1537_v6 = vsub.f32 %v1516_v60, %v1532_v3  ;;  %v1539_v11 = vmul.f32 1.442695, %v1536_v4 }
 0x82c   : > { %v1535_v7 = vpop.xlane.xlu0 %1534 }
 0x82d   : > { %v1541_v8 = vmul.f32 1.442695, %v1537_v6  ;;  %v1538_v9 = vsub.f32 %v5461_v53, %v1535_v7 }
 0x82e   : > { %v1563_v10 = vpop.permute.xlu1 %1562 }
 0x82f   : > { %5910 = vpow2.f32 %v1541_v8  ;;  %v1543_v12 = vmul.f32 1.442695, %v1538_v9  ;;  %5463 = vmatprep.subr.bf16.mxu0 %v1563_v10 }
 0x830   : > { %5464 = vmatpush3.bf16.msra.mxu0 %v1563_v10 }
 0x831   : > { %5912 = vpow2.f32 %v1543_v12 }
 0x832   : > { %5914 = vpow2.f32 %v1539_v11 }
 0x839   : > { %v5911_v13 = vpop.eup %5910 }
 0x83a   : > { %v1548_v14 = vsel %vm1190_vm5, %v5911_v13, 0.0 }
 0x83b   : > { %v5913_v15 = vpop.eup %5912  ;;  %1549 = vadd.xlane.f32.xlu1 %v1548_v14 }
 0x83c   : > { %v1551_v16 = vsel %vm1197_vm4, %v5913_v15, 0.0  ;;  %v5915_v17 = vpop.eup %5914 }
 0x83d   : > { %1552 = vadd.xlane.f32.xlu0 %v1551_v16  ;;  %v1545_v18 = vsel %vm1190_vm5, %v5915_v17, 0.0 }
 0x841   : > { %1546 = vadd.xlane.f32.xlu0 %v1545_v18 }
 0x84c   : > { %1628 = vrot.lane.b32.xlu1 %v6304_v61, %s7096_s7 }
 0x850   : > { %1630 = vrot.lane.b32.xlu1 %v6310_v63, %s7096_s7  ;;  %s7102_s7 = smov 8  }
 0x854   : > { %1626 = vrot.lane.b32.xlu1 %v6320_v5, %s7094_s25 }
 0x857   : > { %1564 = vrot.lane.b32.xlu0 %v6310_v63, %s7098_s2  ;;  %s7100_s2 = smov 16  }
 0x85b   : > { %1624 = vrot.lane.b32.xlu0 %v6306_v62, %s7094_s25  ;;  %s7104_s25 = smov 40  }
 0x8c8   : > { %v1550_v19 = vpop.xlane.xlu1 %1549 }
 0x8ca   : > { %v1553_v21 = vpop.xlane.xlu0 %1552 }
 0x8cb   : > { %5916 = vrcp.f32 %v1553_v21 }
 0x8cc   : > { %5918 = vrcp.f32 %v1550_v19  ;;  %v1629_v27 = vpop.permute.xlu1 %1628 }
 0x8cd   : > { %v1639_v36 = vsel %vm1129_vm3, %v1629_v27, 0 }
 0x8ce   : > { %v1547_v22 = vpop.xlane.xlu0 %1546 }
 0x8cf   : > { %5920 = vrcp.f32 %v1547_v22 }
 0x8d0   : > { %v1631_v37 = vpop.permute.xlu1 %1630 }
 0x8d1   : > { %v1642_v38 = vsel %vm1129_vm3, %v1631_v37, 0 }
 0x8d2   : > { %v1565_v23 = vpop.permute.xlu0 %1564 }
 0x8d3   : > { %v1574_v24 = vand.u32 %v1565_v23, %v6343_v35 }
 0x8d4   : > { %v1627_v39 = vpop.permute.xlu1 %1626 }
 0x8d5   : > { %5465 = vmatprep.subr.bf16.mxu0 %v1574_v24  ;;  %v5917_v25 = vpop.eup %5916 }
 0x8d6   : > { %5466 = vmatpush3.bf16.msra.mxu0 %v1574_v24  ;;  %v5919_v5 = vpop.eup %5918  ;;  %v1559_v29 = vmul.f32 %v5917_v25, %v5913_v15  ;;  %v1625_v33 = vpop.permute.xlu0 %1624 }
 0x8d7   : > { %5745 = vmatprep.subr.msk.bf16.mxu0 %vm1129_vm3, %v1629_v27  ;;  %v1558_v62 = vmul.f32 %v5919_v5, %v5911_v13  ;;  %v5844_v27 = vld [vmem:[%s7156_s12] sm:$0xff]   ;;  %v5845_v5 = vld [vmem:[%s7156_s12 + $0x8] sm:$0xff]  }
 0x8d8   : > { %v1561_v32 = vpack.c.bf16 %v1559_v29, %v1559_v29 }
 0x8d9   : > { %v5921_v28 = vpop.eup %5920 }
 0x8da   : > { %v1557_v30 = vmul.f32 %v5921_v28, %v5915_v17 }
 0x8dc   : > { %v1560_v31 = vpack.c.bf16 %v1558_v62, %v1557_v30 }
 0x8de   : > { %5467 = vmatprep.mubr.msk.bf16.mxu0 %vm1190_vm5, %v1560_v31 }
 0x8df   : > { %5468 = vmatmul.mubr.msk.bf16.vlgmr.msra.gmra.mrb[16].mxu0 %vm1190_vm5, %v1561_v32 }
 0x8e0   : > { %5472 = vmatpush3.bf16.xpose.msra.mxu0 %v1639_v36  ;;  %5475 = vmatprep.mubr.msk.bf16.mxu0 %vm1129_vm3, %v1625_v33 }
 0x8e1   : > { %5746 = vmatprep.subr.msk.bf16.mxu0 %vm1129_vm3, %v1631_v37 }
 0x8e8   : > { %5474 = vmatpush3.bf16.xpose.msra.mxu0 %v1642_v38 }
 0x8ef   : > { %5476 = vmatmul.mubr.msk.bf16.vlgmr.msra.gmra.mrb[20].mxu0 %vm1129_vm3, %v1627_v39 }
 0x9b2   : > { %v5469_v40 = vpop.f32.mrb[16].mxu0 }
 0x9b3   : > { %v1610_v41 = vpop.f32.mrb[17].mxu0 }
 0x9b4   : > { %v5470_v42 = vpop.f32.mrb[18].mxu0 }
 0x9b5   : > { %v1613_v43 = vpop.f32.mrb[19].mxu0 }
 0x9b6   : > { %v5794_v44 = vpack.i.bf16 %v1613_v43, %v1610_v41 }
 0x9c2   : > { %v5477_v50 = vpop.f32.mrb[20].mxu0 }
 0x9c3   : > { %v1678_v53 = vpop.f32.mrb[21].mxu0  ;;  %v1698_v0 = vsel %vm1197_vm4, %v5477_v50, -inf }
 0x9c4   : > { %v5478_v54 = vpop.f32.mrb[22].mxu0  ;;  %v1692_v57 = vsel %vm1190_vm5, %v1678_v53, -inf }
 0x9c5   : > { %1693 = vmax.xlane.f32.xlu0 %v1692_v57  ;;  %v1681_v59 = vpop.f32.mrb[23].mxu0 }
 0x9c6   : > { %v1695_v60 = vsel %vm1190_vm5, %v1681_v59, -inf }
 0x9c7   : > { %1696 = vmax.xlane.f32.xlu1 %v1695_v60 }
 0x9c9   : > { %1699 = vmax.xlane.f32.xlu0 %v1698_v0 }
 0xa52   : > { %v1694_v1 = vpop.xlane.xlu0 %1693 }
 0xa53   : > { %v1701_v3 = vsub.f32 %v1678_v53, %v1694_v1 }
 0xa54   : > { %v1697_v2 = vpop.xlane.xlu1 %1696 }
 0xa55   : > { %v1702_v4 = vsub.f32 %v1681_v59, %v1697_v2  ;;  %v1704_v9 = vmul.f32 1.442695, %v1701_v3 }
 0xa56   : > { %v1700_v6 = vpop.xlane.xlu0 %1699 }
 0xa57   : > { %v1706_v7 = vmul.f32 1.442695, %v1702_v4  ;;  %v1703_v8 = vsub.f32 %v5477_v50, %v1700_v6 }
 0xa59   : > { %5922 = vpow2.f32 %v1706_v7  ;;  %v1708_v10 = vmul.f32 1.442695, %v1703_v8 }
 0xa5b   : > { %5924 = vpow2.f32 %v1708_v10 }
 0xa5c   : > { %5926 = vpow2.f32 %v1704_v9 }
 0xa63   : > { %v5923_v11 = vpop.eup %5922 }
 0xa64   : > { %v1713_v12 = vsel %vm1190_vm5, %v5923_v11, 0.0 }
 0xa65   : > { %v5925_v13 = vpop.eup %5924  ;;  %1714 = vadd.xlane.f32.xlu1 %v1713_v12 }
 0xa66   : > { %v1716_v14 = vsel %vm1197_vm4, %v5925_v13, 0.0  ;;  %v5927_v15 = vpop.eup %5926 }
 0xa67   : > { %1717 = vadd.xlane.f32.xlu0 %v1716_v14  ;;  %v1710_v16 = vsel %vm1190_vm5, %v5927_v15, 0.0 }
 0xa6b   : > { %1711 = vadd.xlane.f32.xlu0 %v1710_v16 }
 0xa76   : > { %1727 = vrot.lane.b32.xlu1 %v6304_v61, %s7104_s25 }
 0xa7a   : > { %5790 = vrot.lane.b32.xlu1 %v5789_v52, %s7102_s7 }
 0xa7e   : > { %1796 = vrot.lane.b32.xlu1 %v6387_v47, %s7102_s7  ;;  %s7167_s7 = smov 112  }
 0xa81   : > { %1729 = vrot.lane.b32.xlu0 %v6310_v63, %s7104_s25  ;;  %s7168_s25 = smov 48  }
 0xa82   : > { %1808 = vrot.lane.b32.xlu1 %v5469_v40, %s7100_s2 }
 0xa85   : > { %5795 = vrot.lane.b32.xlu0 %v5794_v44, %s7100_s2  ;;  %s7162_s2 = smov 64  }
 0xaf2   : > { %v1715_v17 = vpop.xlane.xlu1 %1714 }
 0xaf4   : > { %v1718_v18 = vpop.xlane.xlu0 %1717 }
 0xaf5   : > { %5928 = vrcp.f32 %v1718_v18 }
 0xaf6   : > { %v1728_v61 = vpop.permute.xlu1 %1727  ;;  %5930 = vrcp.f32 %v1715_v17 }
 0xaf7   : > { %5479 = vmatprep.subr.bf16.mxu1 %v1728_v61 }
 0xaf8   : > { %v1712_v19 = vpop.xlane.xlu0 %1711  ;;  %5480 = vmatpush3.bf16.msra.mxu1 %v1728_v61 }
 0xaf9   : > { %5932 = vrcp.f32 %v1712_v19 }
 0xafa   : > { %v5791_v32 = vpop.permute.xlu1 %5790 }
 0xafb   : > { %v5793_v38 = vunpack.i.h.bf16 %v5791_v32  ;;  %v5792_v39 = vunpack.i.l.bf16 %v5791_v32 }
 0xafc   : > { %v1730_v49 = vpop.permute.xlu0 %1729 }
 0xafd   : > { %v1739_v47 = vand.u32 %v1730_v49, %v6343_v35  ;;  %v1826_v43 = vsel %vm1129_vm3, %v6358_v58, %v5793_v38  ;;  %v1825_v53 = vsel %vm1129_vm3, %v6356_v56, %v5792_v39  ;;  %v5012_v56 = vld [vmem:[%s7157_s13] ss:$0 sm:$0xff] }
 0xafe   : > { %v1797_v33 = vpop.permute.xlu1 %1796 }
 0xaff   : > { %5481 = vmatprep.subr.bf16.mxu1 %v1739_v47  ;;  %v5929_v51 = vpop.eup %5928  ;;  %v1827_v44 = vsel %vm1129_vm3, %v6354_v55, %v1797_v33 }
 0xb00   : > { %5482 = vmatpush3.bf16.msra.mxu1 %v1739_v47  ;;  %v5931_v63 = vpop.eup %5930  ;;  %v1724_v21 = vmul.f32 %v5929_v51, %v5925_v13  ;;  %v5796_v36 = vpop.permute.xlu0 %5795 }
 0xb01   : > { %v1723_v23 = vmul.f32 %v5931_v63, %v5923_v11  ;;  %5487 = vmatprep.subr.bf16.mxu1 %v5844_v27  ;;  %v5798_v40 = vunpack.i.h.bf16 %v5796_v36  ;;  %v5797_v41 = vunpack.i.l.bf16 %v5796_v36 }
 0xb02   : > { %v1726_v25 = vpack.c.bf16 %v1724_v21, %v1724_v21  ;;  %v1809_v37 = vpop.permute.xlu1 %1808 }
 0xb03   : > { %v5933_v52 = vpop.eup %5932  ;;  %v1831_v54 = vsel %vm1828_vm7, %v1827_v44, %v1809_v37  ;;  %v1829_v60 = vsel %vm1828_vm7, %v1825_v53, %v5797_v41  ;;  %v1830_v0 = vsel %vm1828_vm7, %v1826_v43, %v5798_v40  ;;  %v5017_v40 = vld [vmem:[%s7079_s14] ss:$0 sm:$0xff] }
 0xb04   : > { %v1722_v22 = vmul.f32 %v5933_v52, %v5927_v15  ;;  %v5018_v53 = vld [vmem:[%s7158_s15] ss:$0 sm:$0xff] }
 0xb06   : > { %v1725_v24 = vpack.c.bf16 %v1723_v23, %v1722_v22 }
 0xb08   : > { %5483 = vmatprep.mubr.msk.bf16.mxu1 %vm1190_vm5, %v1725_v24 }
 0xb09   : > { %5484 = vmatmul.mubr.msk.bf16.vlgmr.msra.gmra.mrb[20].mxu1 %vm1190_vm5, %v1726_v25  ;;  %v5846_v25 = vld [vmem:[%s7081_s16] sm:$0xff]  }
 0xb0a   : > { %5488 = vmatpush3.bf16.msra.mxu1 %v5844_v27  ;;  %5495 = vmatprep.subr.bf16.mxu0 %v5846_v25  ;;  %v5847_v27 = vld [vmem:[%s7081_s16 + $0x8] sm:$0xff]  }
 0xb0b   : > { %5489 = vmatprep.subr.bf16.mxu1 %v5845_v5  ;;  %5496 = vmatpush3.bf16.msra.mxu0 %v5846_v25 }
 0xb0c   : > { %5497 = vmatprep.subr.bf16.mxu0 %v5847_v27 }
 0xb0e   : > { %5490 = vmatpush3.bf16.msra.mxu1 %v5845_v5  ;;  %v5848_v5 = vld [vmem:[%s7083_s18] sm:$0xff]  }
 0xb0f   : > { %5498 = vmatpush3.bf16.msra.mxu0 %v5847_v27  ;;  %5503 = vmatprep.subr.bf16.mxu1 %v5848_v5 }
 0xbdc   : > { %v5485_v28 = vpop.f32.mrb[20].mxu1 }
 0xbdd   : > { %1820 = vrot.lane.b32.xlu1 %v5485_v28, %s7110_s29  ;;  %v1775_v29 = vpop.f32.mrb[21].mxu1  ;;  %v5849_v28 = vld [vmem:[%s7083_s18 + $0x8] sm:$0xff]  }
 0xbde   : > { %v5486_v30 = vpop.f32.mrb[22].mxu1 }
 0xbdf   : > { %v1778_v62 = vpop.f32.mrb[23].mxu1 }
 0xbe0   : > { %v5799_v31 = vpack.i.bf16 %v1778_v62, %v1775_v29 }
 0xbe2   : > { %5800 = vrot.lane.b32.xlu0 %v5799_v31, %s7110_s29  ;;  %s7166_s29 = smov 80  }
 0xc4f   : > { %v1821_v42 = vpop.permute.xlu1 %1820 }
 0xc50   : > { %v1835_v1 = vsel %vm1832_vm8, %v1831_v54, %v1821_v42 }
 0xc51   : > { %v1837_v55 = vpack.c.bf16 %v1835_v1, %v1835_v1 }
 0xc54   : > { %v5801_v50 = vpop.permute.xlu0 %5800 }
 0xc55   : > { %v5803_v57 = vunpack.i.h.bf16 %v5801_v50  ;;  %v5802_v59 = vunpack.i.l.bf16 %v5801_v50 }
 0xc57   : > { %v1833_v2 = vsel %vm1832_vm8, %v1829_v60, %v5802_v59  ;;  %v1834_v58 = vsel %vm1832_vm8, %v1830_v0, %v5803_v57 }
 0xc58   : > { %v1836_v3 = vpack.c.bf16 %v1834_v58, %v1833_v2 }
 0xc5a   : > { %5491 = vmatprep.mubr.msk.bf16.mxu1 %vm917_vm1, %v1836_v3  ;;  %v5850_v3 = vld [vmem:[%s7083_s18 + $0x10] sm:$0xff]  }
 0xc5b   : > { %5492 = vmatmul.mubr.msk.bf16.vlgmr.msra.gmra.mrb[24].mxu1 %vm917_vm1, %v1837_v55  ;;  %v5851_v55 = vld [vmem:[%s7083_s18 + $0x18] sm:$0xff]  }
 0xc5c   : > { %5504 = vmatpush3.bf16.msra.mxu1 %v5848_v5 }
 0xc5d   : > { %5505 = vmatprep.subr.bf16.mxu1 %v5849_v28 }
 0xc60   : > { %5506 = vmatpush3.bf16.msra.mxu1 %v5849_v28 }
 0xc61   : > { %5507 = vmatprep.subr.bf16.mxu1 %v5850_v3 }
 0xc64   : > { %5508 = vmatpush3.bf16.msra.mxu1 %v5850_v3 }
 0xc65   : > { %5509 = vmatprep.subr.bf16.mxu1 %v5851_v55 }
 0xc68   : > { %5510 = vmatpush3.bf16.msra.mxu1 %v5851_v55 }
 0xd2e   : > { %v5493_v4 = vpop.f32.mrb[24].mxu1 }
 0xd2f   : > { %v1896_v6 = vpop.f32.mrb[25].mxu1  ;;  %v1905_v7 = vadd.f32 %v5493_v4, %v5012_v56 }
 0xd30   : > { %v1897_v8 = vadd.f32 %v5012_v56, %v1896_v6  ;;  %v5494_v9 = vpop.f32.mrb[26].mxu1 }
 0xd31   : > { %v1899_v10 = vpop.f32.mrb[27].mxu1  ;;  %v1912_v15 = vadd.f32 %v1905_v7, %v6289_v45 }
 0xd32   : > { %v1900_v11 = vadd.f32 %v5012_v56, %v1899_v10  ;;  %v1910_v12 = vadd.f32 %v1897_v8, %v6291_v46  ;;  %v5019_v56 = vld [vmem:[%s7159_s17] ss:$0 sm:$0xff] }
 0xd33   : > { %v1922_v17 = vsel %vm1921_vm9, %v1912_v15, 0.0 }
 0xd34   : > { %v1915_v13 = vsel %vm917_vm1, %v1910_v12, 0.0  ;;  %v1911_v14 = vadd.f32 %v1900_v11, %v6293_v48 }
 0xd35   : > { %1916 = vadd.xlane.f32.xlu0 %v1915_v13 }
 0xd36   : > { %v1918_v16 = vsel %vm917_vm1, %v1911_v14, 0.0 }
 0xd37   : > { %1919 = vadd.xlane.f32.xlu1 %v1918_v16 }
 0xd39   : > { %1923 = vadd.xlane.f32.xlu0 %v1922_v17  ;;  %v5852_v17 = vld [vmem:[%s7148_s6 + $0x20] sm:$0xff]  }
 0xd3a   : > { %5515 = vmatprep.subr.bf16.mxu0 %v5852_v17 }
 0xdc2   : > { %v1917_v18 = vpop.xlane.xlu0 %1916 }
 0xdc3   : > { %v1926_v61 = vmul.f32 0.03125, %v1917_v18  ;;  %v5853_v18 = vld [vmem:[%s7148_s6 + $0x28] sm:$0xff]  }
 0xdc4   : > { %v1920_v19 = vpop.xlane.xlu1 %1919 }
 0xdc5   : > { %v1929_v49 = vsub.f32 %v1910_v12, %v1926_v61  ;;  %v1927_v47 = vmul.f32 0.03125, %v1920_v19  ;;  %v796_v61 = vld [vmem:[%s778_s4] sm:$0xff]  ;;  %v797_v19 = vld [vmem:[%s778_s4 + $0x8] sm:$0xff] }
 0xdc6   : > { %v1924_v46 = vpop.xlane.xlu0 %1923 }
 0xdc7   : > { %v1930_v51 = vsub.f32 %v1911_v14, %v1927_v47  ;;  %v1928_v63 = vmul.f32 0.03125, %v1924_v46  ;;  %v1932_v52 = vmul.f32 %v1929_v49, %v1929_v49  ;;  %v5854_v47 = vld [vmem:[%s7148_s6 + $0x30] sm:$0xff]   ;;  %v5855_v46 = vld [vmem:[%s7148_s6 + $0x38] sm:$0xff]  }
 0xdc9   : > { %v1931_v48 = vsub.f32 %v1912_v15, %v1928_v63  ;;  %v1935_v45 = vsel %vm917_vm1, %v1932_v52, 0.0  ;;  %v1933_v21 = vmul.f32 %v1930_v51, %v1930_v51  ;;  %v5024_v52 = vld [vmem:[%s7084_s19] ss:$0 sm:$0xff] }
 0xdca   : > { %1936 = vadd.xlane.f32.xlu0 %v1935_v45 }
 0xdcb   : > { %v1938_v22 = vsel %vm917_vm1, %v1933_v21, 0.0  ;;  %v1934_v23 = vmul.f32 %v1931_v48, %v1931_v48 }
 0xdcc   : > { %1939 = vadd.xlane.f32.xlu1 %v1938_v22 }
 0xdcd   : > { %v1941_v24 = vsel %vm1921_vm9, %v1934_v23, 0.0 }
 0xdce   : > { %1942 = vadd.xlane.f32.xlu0 %v1941_v24 }
 0xe57   : > { %v1937_v29 = vpop.xlane.xlu0 %1936 }
 0xe58   : > { %v1944_v30 = vmul.f32 0.03125, %v1937_v29 }
 0xe59   : > { %v1940_v62 = vpop.xlane.xlu1 %1939 }
 0xe5a   : > { %v1947_v31 = vadd.f32 1e-05, %v1944_v30  ;;  %v1945_v32 = vmul.f32 0.03125, %v1940_v62 }
 0xe5b   : > { %v1943_v33 = vpop.xlane.xlu0 %1942 }
 0xe5c   : > { %5934 = vrsqrt.f32 %v1947_v31  ;;  %v1948_v36 = vadd.f32 1e-05, %v1945_v32  ;;  %v1946_v37 = vmul.f32 0.03125, %v1943_v33 }
 0xe5e   : > { %5936 = vrsqrt.f32 %v1948_v36  ;;  %v1949_v38 = vadd.f32 1e-05, %v1946_v37 }
 0xe60   : > { %5938 = vrsqrt.f32 %v1949_v38 }
 0xe66   : > { %v5935_v39 = vpop.eup %5934 }
 0xe67   : > { %v1953_v41 = vmul.f32 %v5935_v39, %v1929_v49  ;;  %v2224_v49 = vpack.c.bf16 %v797_v19, %v796_v61 }
 0xe68   : > { %v5937_v42 = vpop.eup %5936 }
 0xe69   : > { %v1954_v43 = vmul.f32 %v5937_v42, %v1930_v51  ;;  %v1962_v44 = vmul.f32 %v5017_v40, %v1953_v41  ;;  %v798_v51 = vld [vmem:[%s778_s4 + $0x10] sm:$0x1]  ;;  %s7164_s4 = smov 120  }
 0xe6a   : > { %v5939_v50 = vpop.eup %5938  ;;  %v2225_v63 = vpack.c.bf16 %v798_v51, %v798_v51 }
 0xe6b   : > { %v1955_v54 = vmul.f32 %v5939_v50, %v1931_v48  ;;  %v1963_v57 = vmul.f32 %v5017_v40, %v1954_v43  ;;  %v1971_v59 = vadd.f32 %v5018_v53, %v1962_v44 }
 0xe6d   : > { %v1972_v60 = vadd.f32 %v5018_v53, %v1963_v57  ;;  %v1964_v0 = vmul.f32 %v5017_v40, %v1955_v54 }
 0xe6f   : > { %v1979_v1 = vpack.c.bf16 %v1972_v60, %v1971_v59  ;;  %v1973_v2 = vadd.f32 %v5018_v53, %v1964_v0 }
 0xe71   : > { %5499 = vmatprep.mubr.msk.bf16.mxu0 %vm917_vm1, %v1979_v1  ;;  %v1980_v58 = vpack.c.bf16 %v1973_v2, %v1973_v2  ;;  %v5856_v1 = vld [vmem:[%s7075_s10 + $0x10] sm:$0xff]  }
 0xe72   : > { %5527 = vmatprep.subr.bf16.mxu1 %v5856_v1 }
 0xe73   : > { %5500 = vmatmul.mubr.msk.bf16.vlgmr.msra.gmra.mrb[24].mxu0 %vm917_vm1, %v1980_v58 }
 0xe74   : > { %5516 = vmatpush3.bf16.msra.mxu0 %v5852_v17  ;;  %5523 = vmatprep.mubr.msk.bf16.mxu0 %vm843_vm2, %v2224_v49 }
 0xe75   : > { %5517 = vmatprep.subr.bf16.mxu0 %v5853_v18 }
 0xe78   : > { %5518 = vmatpush3.bf16.msra.mxu0 %v5853_v18 }
 0xe79   : > { %5519 = vmatprep.subr.bf16.mxu0 %v5854_v47 }
 0xe7c   : > { %5520 = vmatpush3.bf16.msra.mxu0 %v5854_v47 }
 0xe7d   : > { %5521 = vmatprep.subr.bf16.mxu0 %v5855_v46 }
 0xe80   : > { %5522 = vmatpush3.bf16.msra.mxu0 %v5855_v46 }
 0xe83   : > { %5524 = vmatmul.mubr.msk.bf16.vlgmr.msra.gmra.mrb[28].mxu0 %vm843_vm2, %v2225_v63 }
 0xf46   : > { %v5501_v4 = vpop.f32.mrb[24].mxu0 }
 0xf47   : > { %v2048_v6 = vadd.f32 %v5501_v4, %v5019_v56  ;;  %v2039_v7 = vpop.f32.mrb[25].mxu0 }
 0xf48   : > { %v2040_v8 = vadd.f32 %v5019_v56, %v2039_v7  ;;  %v5502_v9 = vpop.f32.mrb[26].mxu0 }
 0xf49   : > { %v2042_v10 = vpop.f32.mrb[27].mxu0  ;;  %v2055_v12 = vmax.f32 %v2048_v6, 0.0 }
 0xf4a   : > { %v2043_v11 = vadd.f32 %v5019_v56, %v2042_v10  ;;  %v2053_v13 = vmax.f32 %v2040_v8, 0.0 }
 0xf4b   : > { %v2066_v16 = vpack.c.bf16 %v2055_v12, %v2055_v12 }
 0xf4c   : > { %v2054_v14 = vmax.f32 %v2043_v11, 0.0  ;;  %v5031_v11 = vld [vmem:[%s7085_s20] ss:$0 sm:$0xff] }
 0xf4e   : > { %v2065_v15 = vpack.c.bf16 %v2054_v14, %v2053_v13  ;;  %v5032_v14 = vld [vmem:[%s7086_s21] ss:$0 sm:$0xff] }
 0xf50   : > { %5511 = vmatprep.mubr.msk.bf16.mxu1 %vm843_vm2, %v2065_v15  ;;  %v5042_v15 = vld [vmem:[%s7074_s9 + $0x1] ss:$0 sm:$0xff] }
 0xf51   : > { %5512 = vmatmul.mubr.msk.bf16.vlgmr.msra.gmra.mrb[28].mxu1 %vm843_vm2, %v2066_v16 }
 0xf52   : > { %5528 = vmatpush3.bf16.msra.mxu1 %v5856_v1 }
 0xf56   : > { %v5525_v57 = vpop.f32.mrb[28].mxu0 }
0x1024   : > { %v5513_v48 = vpop.f32.mrb[28].mxu1 }
0x1025   : > { %v2137_v45 = vpop.f32.mrb[29].mxu1  ;;  %v2146_v21 = vadd.f32 %v5513_v48, %v5024_v52  ;;  %v2305_v48 = vadd.f32 %v5525_v57, %v5042_v15 }
0x1026   : > { %v2138_v22 = vadd.f32 %v5024_v52, %v2137_v45  ;;  %v5514_v23 = vpop.f32.mrb[30].mxu1 }
0x1027   : > { %v2140_v24 = vpop.f32.mrb[31].mxu1  ;;  %v2153_v29 = vadd.f32 %v2146_v21, %v1973_v2  ;;  %v5857_v2 = vld [vmem:[%s7075_s10 + $0x18] sm:$0xff]  }
0x1028   : > { %v2141_v25 = vadd.f32 %v5024_v52, %v2140_v24  ;;  %v2151_v27 = vadd.f32 %v2138_v22, %v1971_v59  ;;  %v2296_v59 = vpop.f32.mrb[29].mxu0  ;;  %5529 = vmatprep.subr.bf16.mxu1 %v5857_v2 }
0x1029   : > { %v2162_v62 = vsel %vm1921_vm9, %v2153_v29, 0.0  ;;  %5530 = vmatpush3.bf16.msra.mxu1 %v5857_v2  ;;  %v2297_v49 = vadd.f32 %v5042_v15, %v2296_v59 }
0x102a   : > { %v2156_v5 = vsel %vm917_vm1, %v2151_v27, 0.0  ;;  %v2152_v28 = vadd.f32 %v2141_v25, %v1972_v60  ;;  %v5526_v60 = vpop.f32.mrb[30].mxu0  ;;  %v5059_v25 = vld [vmem:[%s7076_s11 + $0x1] ss:$0 sm:$0xff] }
0x102b   : > { %2157 = vadd.xlane.f32.xlu1 %v2156_v5  ;;  %v2299_v0 = vpop.f32.mrb[31].mxu0 }
0x102c   : > { %v2159_v30 = vsel %vm917_vm1, %v2152_v28, 0.0  ;;  %v2300_v63 = vadd.f32 %v5042_v15, %v2299_v0 }
0x102d   : > { %2160 = vadd.xlane.f32.xlu0 %v2159_v30 }
0x102f   : > { %2163 = vadd.xlane.f32.xlu1 %v2162_v62 }
0x10b8   : > { %v2158_v31 = vpop.xlane.xlu1 %2157 }
0x10b9   : > { %v2165_v32 = vmul.f32 0.03125, %v2158_v31 }
0x10ba   : > { %v2161_v33 = vpop.xlane.xlu0 %2160 }
0x10bb   : > { %v2168_v36 = vsub.f32 %v2151_v27, %v2165_v32  ;;  %v2166_v37 = vmul.f32 0.03125, %v2161_v33 }
0x10bc   : > { %v2164_v38 = vpop.xlane.xlu1 %2163 }
0x10bd   : > { %v2169_v39 = vsub.f32 %v2152_v28, %v2166_v37  ;;  %v2167_v40 = vmul.f32 0.03125, %v2164_v38  ;;  %v2171_v41 = vmul.f32 %v2168_v36, %v2168_v36 }
0x10bf   : > { %v2170_v42 = vsub.f32 %v2153_v29, %v2167_v40  ;;  %v2174_v43 = vsel %vm917_vm1, %v2171_v41, 0.0  ;;  %v2172_v44 = vmul.f32 %v2169_v39, %v2169_v39 }
0x10c0   : > { %2175 = vadd.xlane.f32.xlu0 %v2174_v43 }
0x10c1   : > { %v2177_v50 = vsel %vm917_vm1, %v2172_v44, 0.0  ;;  %v2173_v53 = vmul.f32 %v2170_v42, %v2170_v42 }
0x10c2   : > { %2178 = vadd.xlane.f32.xlu1 %v2177_v50 }
0x10c3   : > { %v2180_v54 = vsel %vm1921_vm9, %v2173_v53, 0.0 }
0x10c4   : > { %2181 = vadd.xlane.f32.xlu0 %v2180_v54 }
0x114d   : > { %v2176_v58 = vpop.xlane.xlu0 %2175 }
0x114e   : > { %v2183_v3 = vmul.f32 0.03125, %v2176_v58 }
0x114f   : > { %v2179_v55 = vpop.xlane.xlu1 %2178 }
0x1150   : > { %v2186_v56 = vadd.f32 1e-05, %v2183_v3  ;;  %v2184_v4 = vmul.f32 0.03125, %v2179_v55 }
0x1151   : > { %v2182_v6 = vpop.xlane.xlu0 %2181 }
0x1152   : > { %5940 = vrsqrt.f32 %v2186_v56  ;;  %v2187_v7 = vadd.f32 1e-05, %v2184_v4  ;;  %v2185_v8 = vmul.f32 0.03125, %v2182_v6 }
0x1154   : > { %5942 = vrsqrt.f32 %v2187_v7  ;;  %v2188_v9 = vadd.f32 1e-05, %v2185_v8 }
0x1156   : > { %5944 = vrsqrt.f32 %v2188_v9 }
0x115c   : > { %v5941_v10 = vpop.eup %5940 }
0x115d   : > { %v2192_v12 = vmul.f32 %v5941_v10, %v2168_v36 }
0x115e   : > { %v5943_v13 = vpop.eup %5942 }
0x115f   : > { %v2201_v16 = vmul.f32 %v5031_v11, %v2192_v12  ;;  %v2193_v17 = vmul.f32 %v5943_v13, %v2169_v39 }
0x1160   : > { %v5945_v18 = vpop.eup %5944 }
0x1161   : > { %v2194_v61 = vmul.f32 %v5945_v18, %v2170_v42  ;;  %v2210_v19 = vadd.f32 %v5032_v14, %v2201_v16  ;;  %v2202_v47 = vmul.f32 %v5031_v11, %v2193_v17 }
0x1163   : > { %v2203_v46 = vmul.f32 %v5031_v11, %v2194_v61  ;;  %v2211_v51 = vadd.f32 %v5032_v14, %v2202_v47  ;;  %v6550_v45 = vadd.f32 %v2297_v49, %v2210_v19 }
0x1165   : > { %v2212_v52 = vadd.f32 %v5032_v14, %v2203_v46  ;;  %v6552_v21 = vadd.f32 %v2300_v63, %v2211_v51 }
0x1167   : > { %v6554_v22 = vadd.f32 %v2305_v48, %v2212_v52  ;;  %v2327_v23 = vpack.c.bf16 %v6552_v21, %v6550_v45 }
0x1169   : > { %v2328_v24 = vpack.c.bf16 %v6554_v22, %v6554_v22  ;;  %5531 = vmatprep.mubr.msk.bf16.mxu1 %vm917_vm1, %v2327_v23 }
0x116b   : > { %5532 = vmatmul.mubr.msk.bf16.vlgmr.msra.gmra.mrb[32].mxu1 %vm917_vm1, %v2328_v24 }
0x123e   : > { %v5533_v27 = vpop.f32.mrb[32].mxu1 }
0x123f   : > { %v2396_v5 = vadd.f32 %v5533_v27, %v5059_v25  ;;  %v2387_v28 = vpop.f32.mrb[33].mxu1 }
0x1240   : > { %v2388_v29 = vadd.f32 %v5059_v25, %v2387_v28  ;;  %v5534_v30 = vpop.f32.mrb[34].mxu1 }
0x1241   : > { %v6565_v62 = vpack.c.bf16 %v2396_v5, %v2396_v5  ;;  %v2390_v31 = vpop.f32.mrb[35].mxu1  ;;  %v2403_v43 = vmul.f32 0.35355338, %v2396_v5 }
0x1242   : > { %v2391_v32 = vadd.f32 %v5059_v25, %v2390_v31  ;;  %v2401_v33 = vmul.f32 0.35355338, %v2388_v29 }
0x1243   : > { %2412 = vrot.lane.b32.xlu0 %v6565_v62, %s7161_s0  ;;  %v6581_v44 = vpack.c.bf16 %v2403_v43, %v2403_v43 }
0x1244   : > { %v2402_v36 = vmul.f32 0.35355338, %v2391_v32  ;;  %v6569_v37 = vpack.c.bf16 %v2391_v32, %v2388_v29 }
0x1246   : > { %v6571_v38 = vpack.c.bf16 %v2402_v36, %v2401_v33  ;;  %2410 = vrot.lane.b32.xlu1 %v6569_v37, %s7161_s0 }
0x1248   : > { %5539 = vmatprep.mubr.msk.bf16.mxu0 %vm1129_vm3, %v6571_v38 }
0x12b5   : > { %v2413_v41 = vpop.permute.xlu0 %2412 }
0x12b6   : > { %v2424_v42 = vsel %vm1129_vm3, %v2413_v41, 0 }
0x12b8   : > { %v2411_v39 = vpop.permute.xlu1 %2410 }
0x12b9   : > { %5747 = vmatprep.subr.msk.bf16.mxu0 %vm1129_vm3, %v2411_v39  ;;  %v2421_v40 = vsel %vm1129_vm3, %v2411_v39, 0 }
0x12ba   : > { %5536 = vmatpush3.bf16.xpose.msra.mxu0 %v2421_v40 }
0x12bb   : > { %5748 = vmatprep.subr.msk.bf16.mxu0 %vm1129_vm3, %v2413_v41 }
0x12c2   : > { %5538 = vmatpush3.bf16.xpose.msra.mxu0 %v2424_v42 }
0x12c9   : > { %5540 = vmatmul.mubr.msk.bf16.vlgmr.msra.gmra.mrb[32].mxu0 %vm1129_vm3, %v6581_v44 }
0x139c   : > { %v5541_v50 = vpop.f32.mrb[32].mxu0 }
0x139d   : > { %v2460_v53 = vpop.f32.mrb[33].mxu0  ;;  %v2480_v0 = vsel %vm1197_vm4, %v5541_v50, -inf }
0x139e   : > { %v5542_v54 = vpop.f32.mrb[34].mxu0  ;;  %v2474_v57 = vsel %vm1190_vm5, %v2460_v53, -inf }
0x139f   : > { %2475 = vmax.xlane.f32.xlu1 %v2474_v57  ;;  %v2463_v59 = vpop.f32.mrb[35].mxu0 }
0x13a0   : > { %v2477_v60 = vsel %vm1190_vm5, %v2463_v59, -inf }
0x13a1   : > { %2478 = vmax.xlane.f32.xlu0 %v2477_v60 }
0x13a3   : > { %2481 = vmax.xlane.f32.xlu1 %v2480_v0 }
0x13b4   : > { %2509 = vrot.lane.b32.xlu1 %v6569_v37, %s7162_s2 }
0x142c   : > { %v2476_v1 = vpop.xlane.xlu1 %2475 }
0x142d   : > { %v2483_v58 = vsub.f32 %v2460_v53, %v2476_v1 }
0x142e   : > { %v2479_v2 = vpop.xlane.xlu0 %2478 }
0x142f   : > { %v2484_v3 = vsub.f32 %v2463_v59, %v2479_v2  ;;  %v2486_v6 = vmul.f32 1.442695, %v2483_v58 }
0x1430   : > { %v2482_v55 = vpop.xlane.xlu1 %2481 }
0x1431   : > { %v2488_v56 = vmul.f32 1.442695, %v2484_v3  ;;  %v2485_v4 = vsub.f32 %v5541_v50, %v2482_v55 }
0x1433   : > { %5946 = vpow2.f32 %v2488_v56  ;;  %v2490_v7 = vmul.f32 1.442695, %v2485_v4 }
0x1434   : > { %v2510_v8 = vpop.permute.xlu1 %2509 }
0x1435   : > { %5948 = vpow2.f32 %v2490_v7  ;;  %5543 = vmatprep.subr.bf16.mxu1 %v2510_v8 }
0x1436   : > { %5544 = vmatpush3.bf16.msra.mxu1 %v2510_v8  ;;  %5950 = vpow2.f32 %v2486_v6 }
0x143d   : > { %v5947_v9 = vpop.eup %5946 }
0x143e   : > { %v2495_v10 = vsel %vm1190_vm5, %v5947_v9, 0.0 }
0x143f   : > { %v5949_v11 = vpop.eup %5948  ;;  %2496 = vadd.xlane.f32.xlu1 %v2495_v10 }
0x1440   : > { %v2498_v12 = vsel %vm1197_vm4, %v5949_v11, 0.0  ;;  %v5951_v13 = vpop.eup %5950 }
0x1441   : > { %2499 = vadd.xlane.f32.xlu0 %v2498_v12  ;;  %v2492_v14 = vsel %vm1190_vm5, %v5951_v13, 0.0 }
0x1445   : > { %2493 = vadd.xlane.f32.xlu0 %v2492_v14 }
0x1450   : > { %2577 = vrot.lane.b32.xlu1 %v6569_v37, %s7163_s28 }
0x1454   : > { %2579 = vrot.lane.b32.xlu1 %v6565_v62, %s7163_s28 }
0x1458   : > { %2575 = vrot.lane.b32.xlu1 %v6581_v44, %s7164_s4 }
0x145b   : > { %2511 = vrot.lane.b32.xlu0 %v6565_v62, %s7162_s2 }
0x145f   : > { %2573 = vrot.lane.b32.xlu0 %v6571_v38, %s7164_s4 }
0x14cc   : > { %v2497_v15 = vpop.xlane.xlu1 %2496 }
0x14ce   : > { %v2500_v16 = vpop.xlane.xlu0 %2499 }
0x14cf   : > { %5952 = vrcp.f32 %v2500_v16 }
0x14d0   : > { %5954 = vrcp.f32 %v2497_v15  ;;  %v2578_v49 = vpop.permute.xlu1 %2577 }
0x14d1   : > { %v2588_v25 = vsel %vm1129_vm3, %v2578_v49, 0 }
0x14d2   : > { %v2494_v17 = vpop.xlane.xlu0 %2493 }
0x14d3   : > { %5956 = vrcp.f32 %v2494_v17 }
0x14d4   : > { %v2580_v27 = vpop.permute.xlu1 %2579 }
0x14d5   : > { %v2591_v5 = vsel %vm1129_vm3, %v2580_v27, 0 }
0x14d6   : > { %v2512_v18 = vpop.permute.xlu0 %2511 }
0x14d7   : > { %v2521_v61 = vand.u32 %v2512_v18, %v6343_v35 }
0x14d8   : > { %v2576_v28 = vpop.permute.xlu1 %2575 }
0x14d9   : > { %5545 = vmatprep.subr.bf16.mxu1 %v2521_v61  ;;  %v5953_v19 = vpop.eup %5952 }
0x14da   : > { %5546 = vmatpush3.bf16.msra.mxu1 %v2521_v61  ;;  %v5955_v47 = vpop.eup %5954  ;;  %v2506_v51 = vmul.f32 %v5953_v19, %v5949_v11  ;;  %v2574_v24 = vpop.permute.xlu0 %2573 }
0x14db   : > { %5749 = vmatprep.subr.msk.bf16.mxu1 %vm1129_vm3, %v2578_v49  ;;  %v2505_v52 = vmul.f32 %v5955_v47, %v5947_v9 }
0x14dc   : > { %v2508_v23 = vpack.c.bf16 %v2506_v51, %v2506_v51 }
0x14dd   : > { %v5957_v46 = vpop.eup %5956 }
0x14de   : > { %v2504_v63 = vmul.f32 %v5957_v46, %v5951_v13 }
0x14e0   : > { %v2507_v48 = vpack.c.bf16 %v2505_v52, %v2504_v63 }
0x14e2   : > { %5547 = vmatprep.mubr.msk.bf16.mxu1 %vm1190_vm5, %v2507_v48 }
0x14e3   : > { %5548 = vmatmul.mubr.msk.bf16.vlgmr.msra.gmra.mrb[36].mxu1 %vm1190_vm5, %v2508_v23 }
0x14e4   : > { %5552 = vmatpush3.bf16.xpose.msra.mxu1 %v2588_v25  ;;  %5555 = vmatprep.mubr.msk.bf16.mxu1 %vm1129_vm3, %v2574_v24 }
0x14e5   : > { %5750 = vmatprep.subr.msk.bf16.mxu1 %vm1129_vm3, %v2580_v27 }
0x14ec   : > { %5554 = vmatpush3.bf16.xpose.msra.mxu1 %v2591_v5 }
0x14f3   : > { %5556 = vmatmul.mubr.msk.bf16.vlgmr.msra.gmra.mrb[40].mxu1 %vm1129_vm3, %v2576_v28 }
0x15b6   : > { %v6612_v29 = vpop.f32.mrb[36].mxu1 }
0x15b7   : > { %v6614_v30 = vpop.f32.mrb[37].mxu1 }
0x15b8   : > { %v5550_v31 = vpop.f32.mrb[38].mxu1 }
0x15b9   : > { %v6616_v32 = vpop.f32.mrb[39].mxu1 }
0x15c6   : > { %v5557_v33 = vpop.f32.mrb[40].mxu1 }
0x15c7   : > { %v2627_v36 = vpop.f32.mrb[41].mxu1  ;;  %v2647_v43 = vsel %vm1197_vm4, %v5557_v33, -inf }
0x15c8   : > { %v5558_v39 = vpop.f32.mrb[42].mxu1  ;;  %v2641_v40 = vsel %vm1190_vm5, %v2627_v36, -inf }
0x15c9   : > { %2642 = vmax.xlane.f32.xlu0 %v2641_v40  ;;  %v2630_v41 = vpop.f32.mrb[43].mxu1 }
0x15ca   : > { %v2644_v42 = vsel %vm1190_vm5, %v2630_v41, -inf }
0x15cb   : > { %2645 = vmax.xlane.f32.xlu1 %v2644_v42 }
0x15cd   : > { %2648 = vmax.xlane.f32.xlu0 %v2647_v43 }
0x15dc   : > { %2676 = vrot.lane.b32.xlu1 %v6569_v37, %s7165_s27 }
0x1656   : > { %v2643_v50 = vpop.xlane.xlu0 %2642 }
0x1657   : > { %v2650_v54 = vsub.f32 %v2627_v36, %v2643_v50 }
0x1658   : > { %v2646_v53 = vpop.xlane.xlu1 %2645 }
0x1659   : > { %v2651_v57 = vsub.f32 %v2630_v41, %v2646_v53  ;;  %v2653_v2 = vmul.f32 1.442695, %v2650_v54 }
0x165a   : > { %v2649_v59 = vpop.xlane.xlu0 %2648 }
0x165b   : > { %v2655_v60 = vmul.f32 1.442695, %v2651_v57  ;;  %v2652_v0 = vsub.f32 %v5557_v33, %v2649_v59 }
0x165c   : > { %v2677_v1 = vpop.permute.xlu1 %2676 }
0x165d   : > { %5958 = vpow2.f32 %v2655_v60  ;;  %v2657_v58 = vmul.f32 1.442695, %v2652_v0  ;;  %5559 = vmatprep.subr.bf16.mxu0 %v2677_v1 }
0x165e   : > { %5560 = vmatpush3.bf16.msra.mxu0 %v2677_v1 }
0x165f   : > { %5960 = vpow2.f32 %v2657_v58 }
0x1660   : > { %5962 = vpow2.f32 %v2653_v2 }
0x1667   : > { %v5959_v3 = vpop.eup %5958 }
0x1668   : > { %v2662_v55 = vsel %vm1190_vm5, %v5959_v3, 0.0 }
0x1669   : > { %v5961_v56 = vpop.eup %5960  ;;  %2663 = vadd.xlane.f32.xlu1 %v2662_v55 }
0x166a   : > { %v2665_v4 = vsel %vm1197_vm4, %v5961_v56, 0.0  ;;  %v5963_v6 = vpop.eup %5962 }
0x166b   : > { %2666 = vadd.xlane.f32.xlu0 %v2665_v4  ;;  %v2659_v7 = vsel %vm1190_vm5, %v5963_v6, 0.0 }
0x166f   : > { %2660 = vadd.xlane.f32.xlu0 %v2659_v7 }
0x167a   : > { %2742 = vrot.lane.b32.xlu1 %v6569_v37, %s7166_s29 }
0x167e   : > { %2744 = vrot.lane.b32.xlu1 %v6565_v62, %s7166_s29 }
0x1682   : > { %2740 = vrot.lane.b32.xlu1 %v6581_v44, %s7167_s7 }
0x1685   : > { %2678 = vrot.lane.b32.xlu0 %v6565_v62, %s7165_s27 }
0x1689   : > { %2738 = vrot.lane.b32.xlu0 %v6571_v38, %s7167_s7 }
0x16f6   : > { %v2664_v8 = vpop.xlane.xlu1 %2663 }
0x16f8   : > { %v2667_v9 = vpop.xlane.xlu0 %2666 }
0x16f9   : > { %5964 = vrcp.f32 %v2667_v9 }
0x16fa   : > { %5966 = vrcp.f32 %v2664_v8  ;;  %v2743_v14 = vpop.permute.xlu1 %2742 }
0x16fb   : > { %v2753_v46 = vsel %vm1129_vm3, %v2743_v14, 0 }
0x16fc   : > { %v2661_v10 = vpop.xlane.xlu0 %2660 }
0x16fd   : > { %5968 = vrcp.f32 %v2661_v10 }
0x16fe   : > { %v2745_v51 = vpop.permute.xlu1 %2744 }
0x16ff   : > { %v2756_v63 = vsel %vm1129_vm3, %v2745_v51, 0 }
0x1700   : > { %v2679_v11 = vpop.permute.xlu0 %2678 }
0x1701   : > { %v2688_v12 = vand.u32 %v2679_v11, %v6343_v35 }
0x1702   : > { %v2741_v52 = vpop.permute.xlu1 %2740 }
0x1703   : > { %5561 = vmatprep.subr.bf16.mxu0 %v2688_v12  ;;  %v5965_v13 = vpop.eup %5964 }
0x1704   : > { %5562 = vmatpush3.bf16.msra.mxu0 %v2688_v12  ;;  %v5967_v15 = vpop.eup %5966  ;;  %v2673_v17 = vmul.f32 %v5965_v13, %v5961_v56  ;;  %v2739_v47 = vpop.permute.xlu0 %2738 }
0x1705   : > { %5751 = vmatprep.subr.msk.bf16.mxu0 %vm1129_vm3, %v2743_v14  ;;  %v2672_v61 = vmul.f32 %v5967_v15, %v5959_v3 }
0x1706   : > { %v2675_v49 = vpack.c.bf16 %v2673_v17, %v2673_v17 }
0x1707   : > { %v5969_v16 = vpop.eup %5968 }
0x1708   : > { %v2671_v18 = vmul.f32 %v5969_v16, %v5963_v6 }
0x170a   : > { %v2674_v19 = vpack.c.bf16 %v2672_v61, %v2671_v18 }
0x170c   : > { %5563 = vmatprep.mubr.msk.bf16.mxu0 %vm1190_vm5, %v2674_v19 }
0x170d   : > { %5564 = vmatmul.mubr.msk.bf16.vlgmr.msra.gmra.mrb[36].mxu0 %vm1190_vm5, %v2675_v49 }
0x170e   : > { %5568 = vmatpush3.bf16.xpose.msra.mxu0 %v2753_v46  ;;  %5571 = vmatprep.mubr.msk.bf16.mxu0 %vm1129_vm3, %v2739_v47 }
0x170f   : > { %5752 = vmatprep.subr.msk.bf16.mxu0 %vm1129_vm3, %v2745_v51 }
0x1716   : > { %5570 = vmatpush3.bf16.xpose.msra.mxu0 %v2756_v63 }
0x171d   : > { %5572 = vmatmul.mubr.msk.bf16.vlgmr.msra.gmra.mrb[40].mxu0 %vm1129_vm3, %v2741_v52 }
0x17e0   : > { %v6645_v48 = vpop.f32.mrb[36].mxu0 }
0x17e1   : > { %v6647_v23 = vpop.f32.mrb[37].mxu0 }
0x17e2   : > { %v5566_v24 = vpop.f32.mrb[38].mxu0 }
0x17e3   : > { %v6649_v25 = vpop.f32.mrb[39].mxu0 }
0x17e4   : > { %v5804_v27 = vpack.i.bf16 %v6649_v25, %v6647_v23 }
0x17f0   : > { %v5573_v5 = vpop.f32.mrb[40].mxu0 }
0x17f1   : > { %v2792_v28 = vpop.f32.mrb[41].mxu0  ;;  %v2812_v40 = vsel %vm1197_vm4, %v5573_v5, -inf }
0x17f2   : > { %v5574_v31 = vpop.f32.mrb[42].mxu0  ;;  %v2806_v33 = vsel %vm1190_vm5, %v2792_v28, -inf }
0x17f3   : > { %2807 = vmax.xlane.f32.xlu0 %v2806_v33  ;;  %v2795_v36 = vpop.f32.mrb[43].mxu0 }
0x17f4   : > { %v2809_v39 = vsel %vm1190_vm5, %v2795_v36, -inf }
0x17f5   : > { %2810 = vmax.xlane.f32.xlu1 %v2809_v39 }
0x17f7   : > { %2813 = vmax.xlane.f32.xlu0 %v2812_v40 }
0x1806   : > { %2841 = vrot.lane.b32.xlu1 %v6569_v37, %s7168_s25 }
0x1880   : > { %v2808_v41 = vpop.xlane.xlu0 %2807 }
0x1881   : > { %v2815_v43 = vsub.f32 %v2792_v28, %v2808_v41 }
0x1882   : > { %v2811_v42 = vpop.xlane.xlu1 %2810 }
0x1883   : > { %v2816_v50 = vsub.f32 %v2795_v36, %v2811_v42  ;;  %v2818_v60 = vmul.f32 1.442695, %v2815_v43 }
0x1884   : > { %v2814_v53 = vpop.xlane.xlu0 %2813 }
0x1885   : > { %v2820_v54 = vmul.f32 1.442695, %v2816_v50  ;;  %v2817_v57 = vsub.f32 %v5573_v5, %v2814_v53 }
0x1886   : > { %v2842_v59 = vpop.permute.xlu1 %2841 }
0x1887   : > { %5970 = vpow2.f32 %v2820_v54  ;;  %v2822_v0 = vmul.f32 1.442695, %v2817_v57  ;;  %5575 = vmatprep.subr.bf16.mxu1 %v2842_v59 }
0x1888   : > { %5576 = vmatpush3.bf16.msra.mxu1 %v2842_v59 }
0x1889   : > { %5972 = vpow2.f32 %v2822_v0 }
0x188a   : > { %5974 = vpow2.f32 %v2818_v60 }
0x1891   : > { %v5971_v1 = vpop.eup %5970 }
0x1892   : > { %v2827_v2 = vsel %vm1190_vm5, %v5971_v1, 0.0 }
0x1893   : > { %v5973_v58 = vpop.eup %5972  ;;  %2828 = vadd.xlane.f32.xlu1 %v2827_v2 }
0x1894   : > { %v2830_v3 = vsel %vm1197_vm4, %v5973_v58, 0.0  ;;  %v5975_v55 = vpop.eup %5974 }
0x1895   : > { %2831 = vadd.xlane.f32.xlu0 %v2830_v3  ;;  %v2824_v56 = vsel %vm1190_vm5, %v5975_v55, 0.0 }
0x1899   : > { %2825 = vadd.xlane.f32.xlu0 %v2824_v56 }
0x18a4   : > { %2907 = vrot.lane.b32.xlu1 %v6569_v37, %s7169_s8 }
0x18a8   : > { %2909 = vrot.lane.b32.xlu1 %v6565_v62, %s7169_s8 }
0x18ac   : > { %2905 = vrot.lane.b32.xlu1 %v6581_v44, %s7170_s1 }
0x18af   : > { %2843 = vrot.lane.b32.xlu0 %v6565_v62, %s7168_s25 }
0x18b3   : > { %2903 = vrot.lane.b32.xlu0 %v6571_v38, %s7170_s1 }
0x1920   : > { %v2829_v4 = vpop.xlane.xlu1 %2828 }
0x1922   : > { %v2832_v6 = vpop.xlane.xlu0 %2831 }
0x1923   : > { %5976 = vrcp.f32 %v2832_v6 }
0x1924   : > { %5978 = vrcp.f32 %v2829_v4  ;;  %v2908_v11 = vpop.permute.xlu1 %2907 }
0x1925   : > { %v2918_v17 = vsel %vm1129_vm3, %v2908_v11, 0 }
0x1926   : > { %v2826_v7 = vpop.xlane.xlu0 %2825 }
0x1927   : > { %5980 = vrcp.f32 %v2826_v7 }
0x1928   : > { %v2910_v61 = vpop.permute.xlu1 %2909 }
0x1929   : > { %v2921_v19 = vsel %vm1129_vm3, %v2910_v61, 0 }
0x192a   : > { %v2844_v8 = vpop.permute.xlu0 %2843 }
0x192b   : > { %v2853_v9 = vand.u32 %v2844_v8, %v6343_v35 }
0x192c   : > { %v2906_v49 = vpop.permute.xlu1 %2905 }
0x192d   : > { %5577 = vmatprep.subr.bf16.mxu1 %v2853_v9  ;;  %v5977_v10 = vpop.eup %5976 }
0x192e   : > { %5578 = vmatpush3.bf16.msra.mxu1 %v2853_v9  ;;  %v5979_v44 = vpop.eup %5978  ;;  %v2838_v13 = vmul.f32 %v5977_v10, %v5973_v58  ;;  %v2904_v18 = vpop.permute.xlu0 %2903 }
0x192f   : > { %5753 = vmatprep.subr.msk.bf16.mxu1 %vm1129_vm3, %v2908_v11  ;;  %v2837_v38 = vmul.f32 %v5979_v44, %v5971_v1  ;;  %v5858_v11 = vld [vmem:[%s7156_s12 + $0x10] sm:$0xff]   ;;  %v5859_v44 = vld [vmem:[%s7156_s12 + $0x18] sm:$0xff]  }
0x1930   : > { %v2840_v16 = vpack.c.bf16 %v2838_v13, %v2838_v13 }
0x1931   : > { %v5981_v12 = vpop.eup %5980 }
0x1932   : > { %v2836_v14 = vmul.f32 %v5981_v12, %v5975_v55 }
0x1934   : > { %v2839_v15 = vpack.c.bf16 %v2837_v38, %v2836_v14 }
0x1936   : > { %5579 = vmatprep.mubr.msk.bf16.mxu1 %vm1190_vm5, %v2839_v15 }
0x1937   : > { %5580 = vmatmul.mubr.msk.bf16.vlgmr.msra.gmra.mrb[44].mxu1 %vm1190_vm5, %v2840_v16 }
0x1938   : > { %5584 = vmatpush3.bf16.xpose.msra.mxu1 %v2918_v17  ;;  %5587 = vmatprep.mubr.msk.bf16.mxu1 %vm1129_vm3, %v2904_v18 }
0x1939   : > { %5754 = vmatprep.subr.msk.bf16.mxu1 %vm1129_vm3, %v2910_v61 }
0x1940   : > { %5586 = vmatpush3.bf16.xpose.msra.mxu1 %v2921_v19 }
0x1947   : > { %5588 = vmatmul.mubr.msk.bf16.vlgmr.msra.gmra.mrb[48].mxu1 %vm1129_vm3, %v2906_v49 }
0x1a0a   : > { %v5581_v47 = vpop.f32.mrb[44].mxu1 }
0x1a0b   : > { %v2889_v46 = vpop.f32.mrb[45].mxu1 }
0x1a0c   : > { %v5582_v51 = vpop.f32.mrb[46].mxu1 }
0x1a0d   : > { %v2892_v63 = vpop.f32.mrb[47].mxu1 }
0x1a0e   : > { %v5809_v52 = vpack.i.bf16 %v2892_v63, %v2889_v46 }
0x1a1a   : > { %v5589_v24 = vpop.f32.mrb[48].mxu1 }
0x1a1b   : > { %v2957_v5 = vpop.f32.mrb[49].mxu1  ;;  %v2977_v39 = vsel %vm1197_vm4, %v5589_v24, -inf }
0x1a1c   : > { %v5590_v28 = vpop.f32.mrb[50].mxu1  ;;  %v2971_v31 = vsel %vm1190_vm5, %v2957_v5, -inf }
0x1a1d   : > { %2972 = vmax.xlane.f32.xlu0 %v2971_v31  ;;  %v2960_v33 = vpop.f32.mrb[51].mxu1 }
0x1a1e   : > { %v2974_v36 = vsel %vm1190_vm5, %v2960_v33, -inf }
0x1a1f   : > { %2975 = vmax.xlane.f32.xlu1 %v2974_v36 }
0x1a21   : > { %2978 = vmax.xlane.f32.xlu0 %v2977_v39 }
0x1aaa   : > { %v2973_v40 = vpop.xlane.xlu0 %2972 }
0x1aab   : > { %v2980_v42 = vsub.f32 %v2957_v5, %v2973_v40 }
0x1aac   : > { %v2976_v41 = vpop.xlane.xlu1 %2975 }
0x1aad   : > { %v2981_v43 = vsub.f32 %v2960_v33, %v2976_v41  ;;  %v2983_v57 = vmul.f32 1.442695, %v2980_v42 }
0x1aae   : > { %v2979_v50 = vpop.xlane.xlu0 %2978 }
0x1aaf   : > { %v2985_v53 = vmul.f32 1.442695, %v2981_v43  ;;  %v2982_v54 = vsub.f32 %v5589_v24, %v2979_v50 }
0x1ab1   : > { %5982 = vpow2.f32 %v2985_v53  ;;  %v2987_v59 = vmul.f32 1.442695, %v2982_v54 }
0x1ab3   : > { %5984 = vpow2.f32 %v2987_v59 }
0x1ab4   : > { %5986 = vpow2.f32 %v2983_v57 }
0x1abb   : > { %v5983_v60 = vpop.eup %5982 }
0x1abc   : > { %v2992_v0 = vsel %vm1190_vm5, %v5983_v60, 0.0 }
0x1abd   : > { %v5985_v1 = vpop.eup %5984  ;;  %2993 = vadd.xlane.f32.xlu1 %v2992_v0 }
0x1abe   : > { %v2995_v2 = vsel %vm1197_vm4, %v5985_v1, 0.0  ;;  %v5987_v58 = vpop.eup %5986 }
0x1abf   : > { %2996 = vadd.xlane.f32.xlu0 %v2995_v2  ;;  %v2989_v3 = vsel %vm1190_vm5, %v5987_v58, 0.0 }
0x1ac3   : > { %2990 = vadd.xlane.f32.xlu0 %v2989_v3 }
0x1ace   : > { %3006 = vrot.lane.b32.xlu1 %v6569_v37, %s7171_s30 }
0x1ad2   : > { %5805 = vrot.lane.b32.xlu1 %v5804_v27, %s7172_s5 }
0x1ad6   : > { %3075 = vrot.lane.b32.xlu1 %v6645_v48, %s7172_s5  ;;  %s7174_s5 = smov 24  }
0x1ad9   : > { %3008 = vrot.lane.b32.xlu0 %v6565_v62, %s7171_s30 }
0x1ada   : > { %3087 = vrot.lane.b32.xlu1 %v5581_v47, %s7173_s24 }
0x1add   : > { %5810 = vrot.lane.b32.xlu0 %v5809_v52, %s7173_s24 }
0x1b4a   : > { %v2994_v55 = vpop.xlane.xlu1 %2993 }
0x1b4c   : > { %v2997_v56 = vpop.xlane.xlu0 %2996 }
0x1b4d   : > { %5988 = vrcp.f32 %v2997_v56 }
0x1b4e   : > { %v3007_v4 = vpop.permute.xlu1 %3006  ;;  %5990 = vrcp.f32 %v2994_v55 }
0x1b4f   : > { %5591 = vmatprep.subr.bf16.mxu0 %v3007_v4 }
0x1b50   : > { %v2991_v37 = vpop.xlane.xlu0 %2990  ;;  %5592 = vmatpush3.bf16.msra.mxu0 %v3007_v4 }
0x1b51   : > { %5992 = vrcp.f32 %v2991_v37 }
0x1b52   : > { %v5806_v16 = vpop.permute.xlu1 %5805 }
0x1b53   : > { %v5808_v19 = vunpack.i.h.bf16 %v5806_v16  ;;  %v5807_v49 = vunpack.i.l.bf16 %v5806_v16 }
0x1b54   : > { %v3009_v23 = vpop.permute.xlu0 %3008 }
0x1b55   : > { %v3018_v25 = vand.u32 %v3009_v23, %v6343_v35  ;;  %v3105_v63 = vsel %vm1129_vm3, %v6616_v32, %v5808_v19  ;;  %v3104_v5 = vsel %vm1129_vm3, %v6614_v30, %v5807_v49  ;;  %v5080_v30 = vld [vmem:[%s7157_s13 + $0x1] ss:$0 sm:$0xff]  ;;  %s7175_s13 = sld [smem:[#allocation6_spill]] }
0x1b56   : > { %v3076_v17 = vpop.permute.xlu1 %3075 }
0x1b57   : > { %5593 = vmatprep.subr.bf16.mxu0 %v3018_v25  ;;  %v5989_v48 = vpop.eup %5988  ;;  %v3106_v52 = vsel %vm1129_vm3, %v6612_v29, %v3076_v17 }
0x1b58   : > { %5594 = vmatpush3.bf16.msra.mxu0 %v3018_v25  ;;  %v5991_v62 = vpop.eup %5990  ;;  %v3003_v6 = vmul.f32 %v5989_v48, %v5985_v1  ;;  %v5811_v18 = vpop.permute.xlu0 %5810 }
0x1b59   : > { %v3002_v8 = vmul.f32 %v5991_v62, %v5983_v60  ;;  %5599 = vmatprep.subr.bf16.mxu0 %v5858_v11  ;;  %v5813_v47 = vunpack.i.h.bf16 %v5811_v18  ;;  %v5812_v46 = vunpack.i.l.bf16 %v5811_v18 }
0x1b5a   : > { %v3005_v10 = vpack.c.bf16 %v3003_v6, %v3003_v6  ;;  %v3088_v61 = vpop.permute.xlu1 %3087 }
0x1b5b   : > { %v5993_v27 = vpop.eup %5992  ;;  %v3109_v28 = vsel %vm1828_vm7, %v3106_v52, %v3088_v61  ;;  %v3107_v36 = vsel %vm1828_vm7, %v3104_v5, %v5812_v46  ;;  %v3108_v39 = vsel %vm1828_vm7, %v3105_v63, %v5813_v47  ;;  %v5087_v47 = vld [vmem:[%s7079_s14 + $0x1] ss:$0 sm:$0xff]  ;;  %s783_s12 = scalar_lea.vmem %s7175_s13, %s6250_s3 }
0x1b5c   : > { %v3001_v7 = vmul.f32 %v5993_v27, %v5987_v58  ;;  %v5088_v5 = vld [vmem:[%s7158_s15 + $0x1] ss:$0 sm:$0xff] }
0x1b5e   : > { %v3004_v9 = vpack.c.bf16 %v3002_v8, %v3001_v7 }
0x1b60   : > { %5595 = vmatprep.mubr.msk.bf16.mxu0 %vm1190_vm5, %v3004_v9 }
0x1b61   : > { %5596 = vmatmul.mubr.msk.bf16.vlgmr.msra.gmra.mrb[44].mxu0 %vm1190_vm5, %v3005_v10  ;;  %v5860_v10 = vld [vmem:[%s7081_s16 + $0x10] sm:$0xff]  }
0x1b62   : > { %5600 = vmatpush3.bf16.msra.mxu0 %v5858_v11  ;;  %5607 = vmatprep.subr.bf16.mxu1 %v5860_v10  ;;  %v5861_v11 = vld [vmem:[%s7081_s16 + $0x18] sm:$0xff]  }
0x1b63   : > { %5601 = vmatprep.subr.bf16.mxu0 %v5859_v44  ;;  %5608 = vmatpush3.bf16.msra.mxu1 %v5860_v10 }
0x1b64   : > { %5609 = vmatprep.subr.bf16.mxu1 %v5861_v11 }
0x1b66   : > { %5602 = vmatpush3.bf16.msra.mxu0 %v5859_v44  ;;  %v5862_v44 = vld [vmem:[%s7083_s18 + $0x20] sm:$0xff]  }
0x1b67   : > { %5610 = vmatpush3.bf16.msra.mxu1 %v5861_v11  ;;  %5615 = vmatprep.subr.bf16.mxu0 %v5862_v44 }
0x1c34   : > { %v5597_v12 = vpop.f32.mrb[44].mxu0 }
0x1c35   : > { %3099 = vrot.lane.b32.xlu1 %v5597_v12, %s7174_s5  ;;  %v3054_v13 = vpop.f32.mrb[45].mxu0  ;;  %v5863_v12 = vld [vmem:[%s7083_s18 + $0x28] sm:$0xff]  }
0x1c36   : > { %v5598_v14 = vpop.f32.mrb[46].mxu0 }
0x1c37   : > { %v3057_v38 = vpop.f32.mrb[47].mxu0 }
0x1c38   : > { %v5814_v15 = vpack.i.bf16 %v3057_v38, %v3054_v13 }
0x1c3a   : > { %5815 = vrot.lane.b32.xlu0 %v5814_v15, %s7174_s5 }
0x1ca7   : > { %v3100_v51 = vpop.permute.xlu1 %3099 }
0x1ca8   : > { %v3112_v40 = vsel %vm1832_vm8, %v3109_v28, %v3100_v51 }
0x1ca9   : > { %v3114_v29 = vpack.c.bf16 %v3112_v40, %v3112_v40 }
0x1cac   : > { %v5816_v24 = vpop.permute.xlu0 %5815 }
0x1cad   : > { %v5818_v31 = vunpack.i.h.bf16 %v5816_v24  ;;  %v5817_v33 = vunpack.i.l.bf16 %v5816_v24 }
0x1caf   : > { %v3110_v41 = vsel %vm1832_vm8, %v3107_v36, %v5817_v33  ;;  %v3111_v32 = vsel %vm1832_vm8, %v3108_v39, %v5818_v31 }
0x1cb0   : > { %v3113_v42 = vpack.c.bf16 %v3111_v32, %v3110_v41 }
0x1cb2   : > { %5603 = vmatprep.mubr.msk.bf16.mxu0 %vm917_vm1, %v3113_v42  ;;  %v5864_v42 = vld [vmem:[%s7083_s18 + $0x30] sm:$0xff]  }
0x1cb3   : > { %5604 = vmatmul.mubr.msk.bf16.vlgmr.msra.gmra.mrb[48].mxu0 %vm917_vm1, %v3114_v29  ;;  %v5865_v29 = vld [vmem:[%s7083_s18 + $0x38] sm:$0xff]  }
0x1cb4   : > { %5616 = vmatpush3.bf16.msra.mxu0 %v5862_v44 }
0x1cb5   : > { %5617 = vmatprep.subr.bf16.mxu0 %v5863_v12 }
0x1cb8   : > { %5618 = vmatpush3.bf16.msra.mxu0 %v5863_v12 }
0x1cb9   : > { %5619 = vmatprep.subr.bf16.mxu0 %v5864_v42 }
0x1cbc   : > { %5620 = vmatpush3.bf16.msra.mxu0 %v5864_v42 }
0x1cbd   : > { %5621 = vmatprep.subr.bf16.mxu0 %v5865_v29 }
0x1cc0   : > { %5622 = vmatpush3.bf16.msra.mxu0 %v5865_v29 }
0x1d86   : > { %v5605_v43 = vpop.f32.mrb[48].mxu0 }
0x1d87   : > { %v3173_v50 = vpop.f32.mrb[49].mxu0  ;;  %v3182_v53 = vadd.f32 %v5605_v43, %v5080_v30 }
0x1d88   : > { %v3174_v54 = vadd.f32 %v5080_v30, %v3173_v50  ;;  %v5606_v57 = vpop.f32.mrb[50].mxu0 }
0x1d89   : > { %v3176_v59 = vpop.f32.mrb[51].mxu0  ;;  %v3189_v1 = vadd.f32 %v3182_v53, %v6554_v22 }
0x1d8a   : > { %v3187_v60 = vadd.f32 %v3174_v54, %v6550_v45  ;;  %v3177_v0 = vadd.f32 %v5080_v30, %v3176_v59  ;;  %v5094_v30 = vld [vmem:[%s7159_s17 + $0x1] ss:$0 sm:$0xff]  ;;  %s7183_s17 = sld [smem:[#allocation16_spill]] }
0x1d8b   : > { %v3200_v55 = vsel %vm1921_vm9, %v3189_v1, 0.0 }
0x1d8c   : > { %v3188_v2 = vadd.f32 %v3177_v0, %v6552_v21  ;;  %v3194_v58 = vsel %vm917_vm1, %v3187_v60, 0.0 }
0x1d8d   : > { %3195 = vadd.xlane.f32.xlu0 %v3194_v58 }
0x1d8e   : > { %v3197_v3 = vsel %vm917_vm1, %v3188_v2, 0.0 }
0x1d8f   : > { %3198 = vadd.xlane.f32.xlu1 %v3197_v3 }
0x1d91   : > { %3201 = vadd.xlane.f32.xlu0 %v3200_v55  ;;  %v5866_v55 = vld [vmem:[%s7148_s6 + $0x40] sm:$0xff]  }
0x1d92   : > { %5627 = vmatprep.subr.bf16.mxu1 %v5866_v55 }
0x1e1a   : > { %v3196_v56 = vpop.xlane.xlu0 %3195 }
0x1e1b   : > { %v3203_v4 = vmul.f32 0.03125, %v3196_v56  ;;  %v5867_v56 = vld [vmem:[%s7148_s6 + $0x48] sm:$0xff]  }
0x1e1c   : > { %v3199_v37 = vpop.xlane.xlu1 %3198 }
0x1e1d   : > { %v3206_v23 = vsub.f32 %v3187_v60, %v3203_v4  ;;  %v3204_v25 = vmul.f32 0.03125, %v3199_v37  ;;  %v799_v4 = vld [vmem:[%s783_s12] sm:$0xff]  ;;  %v800_v37 = vld [vmem:[%s783_s12 + $0x8] sm:$0xff] }
0x1e1e   : > { %v3202_v45 = vpop.xlane.xlu0 %3201 }
0x1e1f   : > { %v3207_v48 = vsub.f32 %v3188_v2, %v3204_v25  ;;  %v3205_v62 = vmul.f32 0.03125, %v3202_v45  ;;  %v3209_v22 = vmul.f32 %v3206_v23, %v3206_v23  ;;  %v5868_v25 = vld [vmem:[%s7148_s6 + $0x50] sm:$0xff]   ;;  %v5869_v45 = vld [vmem:[%s7148_s6 + $0x58] sm:$0xff]  }
0x1e21   : > { %v3208_v27 = vsub.f32 %v3189_v1, %v3205_v62  ;;  %v3212_v21 = vsel %vm917_vm1, %v3209_v22, 0.0  ;;  %v3210_v6 = vmul.f32 %v3207_v48, %v3207_v48  ;;  %v5108_v22 = vld [vmem:[%s7084_s19 + $0x1] ss:$0 sm:$0xff] }
0x1e22   : > { %3213 = vadd.xlane.f32.xlu0 %v3212_v21 }
0x1e23   : > { %v3215_v7 = vsel %vm917_vm1, %v3210_v6, 0.0  ;;  %v3211_v8 = vmul.f32 %v3208_v27, %v3208_v27 }
0x1e24   : > { %3216 = vadd.xlane.f32.xlu1 %v3215_v7 }
0x1e25   : > { %v3218_v9 = vsel %vm1921_vm9, %v3211_v8, 0.0 }
0x1e26   : > { %3219 = vadd.xlane.f32.xlu0 %v3218_v9 }
0x1eaf   : > { %v3214_v13 = vpop.xlane.xlu0 %3213 }
0x1eb0   : > { %v3221_v14 = vmul.f32 0.03125, %v3214_v13 }
0x1eb1   : > { %v3217_v38 = vpop.xlane.xlu1 %3216 }
0x1eb2   : > { %v3224_v15 = vadd.f32 1e-05, %v3221_v14  ;;  %v3222_v16 = vmul.f32 0.03125, %v3217_v38 }
0x1eb3   : > { %v3220_v17 = vpop.xlane.xlu0 %3219 }
0x1eb4   : > { %5994 = vrsqrt.f32 %v3224_v15  ;;  %v3225_v18 = vadd.f32 1e-05, %v3222_v16  ;;  %v3223_v61 = vmul.f32 0.03125, %v3220_v17 }
0x1eb6   : > { %5996 = vrsqrt.f32 %v3225_v18  ;;  %v3226_v19 = vadd.f32 1e-05, %v3223_v61 }
0x1eb8   : > { %5998 = vrsqrt.f32 %v3226_v19 }
0x1ebe   : > { %v5995_v49 = vpop.eup %5994 }
0x1ebf   : > { %v3230_v46 = vmul.f32 %v5995_v49, %v3206_v23  ;;  %v3507_v23 = vpack.c.bf16 %v800_v37, %v799_v4 }
0x1ec0   : > { %v5997_v51 = vpop.eup %5996 }
0x1ec1   : > { %v3231_v63 = vmul.f32 %v5997_v51, %v3207_v48  ;;  %v3239_v52 = vmul.f32 %v5087_v47, %v3230_v46  ;;  %v801_v48 = vld [vmem:[%s783_s12 + $0x10] sm:$0x1]  ;;  %s7184_s12 = sld [smem:[#allocation17_spill]] }
0x1ec2   : > { %v5999_v24 = vpop.eup %5998  ;;  %v3508_v62 = vpack.c.bf16 %v801_v48, %v801_v48 }
0x1ec3   : > { %v3232_v28 = vmul.f32 %v5999_v24, %v3208_v27  ;;  %v3240_v31 = vmul.f32 %v5087_v47, %v3231_v63  ;;  %v3248_v33 = vadd.f32 %v5088_v5, %v3239_v52 }
0x1ec5   : > { %v3249_v36 = vadd.f32 %v5088_v5, %v3240_v31  ;;  %v3241_v39 = vmul.f32 %v5087_v47, %v3232_v28 }
0x1ec7   : > { %v3258_v40 = vpack.c.bf16 %v3249_v36, %v3248_v33  ;;  %v3250_v41 = vadd.f32 %v5088_v5, %v3241_v39 }
0x1ec9   : > { %5611 = vmatprep.mubr.msk.bf16.mxu1 %vm917_vm1, %v3258_v40  ;;  %v3259_v32 = vpack.c.bf16 %v3250_v41, %v3250_v41  ;;  %v5870_v40 = vld [vmem:[%s7075_s10 + $0x20] sm:$0xff]  }
0x1eca   : > { %5639 = vmatprep.subr.bf16.mxu0 %v5870_v40 }
0x1ecb   : > { %5612 = vmatmul.mubr.msk.bf16.vlgmr.msra.gmra.mrb[52].mxu1 %vm917_vm1, %v3259_v32 }
0x1ecc   : > { %5628 = vmatpush3.bf16.msra.mxu1 %v5866_v55  ;;  %5635 = vmatprep.mubr.msk.bf16.mxu1 %vm843_vm2, %v3507_v23 }
0x1ecd   : > { %5629 = vmatprep.subr.bf16.mxu1 %v5867_v56 }
0x1ed0   : > { %5630 = vmatpush3.bf16.msra.mxu1 %v5867_v56 }
0x1ed1   : > { %5631 = vmatprep.subr.bf16.mxu1 %v5868_v25 }
0x1ed4   : > { %5632 = vmatpush3.bf16.msra.mxu1 %v5868_v25 }
0x1ed5   : > { %5633 = vmatprep.subr.bf16.mxu1 %v5869_v45 }
0x1ed8   : > { %5634 = vmatpush3.bf16.msra.mxu1 %v5869_v45 }
0x1edb   : > { %5636 = vmatmul.mubr.msk.bf16.vlgmr.msra.gmra.mrb[56].mxu1 %vm843_vm2, %v3508_v62 }
0x1f9e   : > { %v5613_v43 = vpop.f32.mrb[52].mxu1 }
0x1f9f   : > { %v3327_v50 = vadd.f32 %v5613_v43, %v5094_v30  ;;  %v3318_v53 = vpop.f32.mrb[53].mxu1 }
0x1fa0   : > { %v3319_v54 = vadd.f32 %v5094_v30, %v3318_v53  ;;  %v5614_v57 = vpop.f32.mrb[54].mxu1 }
0x1fa1   : > { %v3321_v59 = vpop.f32.mrb[55].mxu1  ;;  %v3334_v0 = vmax.f32 %v3327_v50, 0.0 }
0x1fa2   : > { %v3322_v60 = vadd.f32 %v5094_v30, %v3321_v59  ;;  %v3332_v1 = vmax.f32 %v3319_v54, 0.0 }
0x1fa3   : > { %v3347_v3 = vpack.c.bf16 %v3334_v0, %v3334_v0 }
0x1fa4   : > { %v3333_v2 = vmax.f32 %v3322_v60, 0.0  ;;  %v5117_v60 = vld [vmem:[%s7085_s20 + $0x1] ss:$0 sm:$0xff] }
0x1fa6   : > { %v3346_v58 = vpack.c.bf16 %v3333_v2, %v3332_v1  ;;  %v5118_v2 = vld [vmem:[%s7086_s21 + $0x1] ss:$0 sm:$0xff] }
0x1fa8   : > { %5623 = vmatprep.mubr.msk.bf16.mxu0 %vm843_vm2, %v3346_v58  ;;  %v5128_v58 = vld [vmem:[%s7074_s9 + $0x2] ss:$0 sm:$0xff] }
0x1fa9   : > { %5624 = vmatmul.mubr.msk.bf16.vlgmr.msra.gmra.mrb[52].mxu0 %vm843_vm2, %v3347_v3 }
0x1faa   : > { %5640 = vmatpush3.bf16.msra.mxu0 %v5870_v40 }
0x1fae   : > { %v5637_v31 = vpop.f32.mrb[56].mxu1 }
0x207c   : > { %v5625_v27 = vpop.f32.mrb[52].mxu0 }
0x207d   : > { %v3418_v21 = vpop.f32.mrb[53].mxu0  ;;  %v3427_v6 = vadd.f32 %v5625_v27, %v5108_v22  ;;  %v3588_v27 = vadd.f32 %v5637_v31, %v5128_v58 }
0x207e   : > { %v3419_v7 = vadd.f32 %v5108_v22, %v3418_v21  ;;  %v5626_v8 = vpop.f32.mrb[54].mxu0 }
0x207f   : > { %v3421_v9 = vpop.f32.mrb[55].mxu0  ;;  %v3434_v44 = vadd.f32 %v3427_v6, %v3250_v41  ;;  %v5871_v41 = vld [vmem:[%s7075_s10 + $0x28] sm:$0xff]  }
0x2080   : > { %v3432_v10 = vadd.f32 %v3419_v7, %v3248_v33  ;;  %v3422_v11 = vadd.f32 %v5108_v22, %v3421_v9  ;;  %v3579_v33 = vpop.f32.mrb[57].mxu1  ;;  %5641 = vmatprep.subr.bf16.mxu0 %v5871_v41 }
0x2081   : > { %v3445_v38 = vsel %vm1921_vm9, %v3434_v44, 0.0  ;;  %5642 = vmatpush3.bf16.msra.mxu0 %v5871_v41  ;;  %v3580_v23 = vadd.f32 %v5128_v58, %v3579_v33 }
0x2082   : > { %v3433_v12 = vadd.f32 %v3422_v11, %v3249_v36  ;;  %v3439_v13 = vsel %vm917_vm1, %v3432_v10, 0.0  ;;  %v5638_v36 = vpop.f32.mrb[58].mxu1 }
0x2083   : > { %3440 = vadd.xlane.f32.xlu1 %v3439_v13  ;;  %v3582_v39 = vpop.f32.mrb[59].mxu1 }
0x2084   : > { %v3442_v14 = vsel %vm917_vm1, %v3433_v12, 0.0  ;;  %v3583_v62 = vadd.f32 %v5128_v58, %v3582_v39 }
0x2085   : > { %3443 = vadd.xlane.f32.xlu0 %v3442_v14 }
0x2087   : > { %3446 = vadd.xlane.f32.xlu1 %v3445_v38 }
0x2110   : > { %v3441_v15 = vpop.xlane.xlu1 %3440 }
0x2111   : > { %v3448_v16 = vmul.f32 0.03125, %v3441_v15 }
0x2112   : > { %v3444_v17 = vpop.xlane.xlu0 %3443 }
0x2113   : > { %v3451_v18 = vsub.f32 %v3432_v10, %v3448_v16  ;;  %v3449_v61 = vmul.f32 0.03125, %v3444_v17  ;;  %v5145_v10 = vld [vmem:[%s7076_s11 + $0x2] ss:$0 sm:$0xff] }
0x2114   : > { %v3447_v19 = vpop.xlane.xlu1 %3446 }
0x2115   : > { %v3452_v49 = vsub.f32 %v3433_v12, %v3449_v61  ;;  %v3450_v47 = vmul.f32 0.03125, %v3447_v19  ;;  %v3454_v46 = vmul.f32 %v3451_v18, %v3451_v18 }
0x2117   : > { %v3453_v51 = vsub.f32 %v3434_v44, %v3450_v47  ;;  %v3457_v63 = vsel %vm917_vm1, %v3454_v46, 0.0  ;;  %v3455_v52 = vmul.f32 %v3452_v49, %v3452_v49 }
0x2118   : > { %3458 = vadd.xlane.f32.xlu0 %v3457_v63 }
0x2119   : > { %v3460_v24 = vsel %vm917_vm1, %v3455_v52, 0.0  ;;  %v3456_v5 = vmul.f32 %v3453_v51, %v3453_v51 }
0x211a   : > { %3461 = vadd.xlane.f32.xlu1 %v3460_v24 }
0x211b   : > { %v3463_v28 = vsel %vm1921_vm9, %v3456_v5, 0.0 }
0x211c   : > { %3464 = vadd.xlane.f32.xlu0 %v3463_v28 }
0x21a5   : > { %v3459_v32 = vpop.xlane.xlu0 %3458 }
0x21a6   : > { %v3466_v42 = vmul.f32 0.03125, %v3459_v32 }
0x21a7   : > { %v3462_v29 = vpop.xlane.xlu1 %3461 }
0x21a8   : > { %v3469_v30 = vadd.f32 1e-05, %v3466_v42  ;;  %v3467_v43 = vmul.f32 0.03125, %v3462_v29 }
0x21a9   : > { %v3465_v50 = vpop.xlane.xlu0 %3464 }
0x21aa   : > { %6000 = vrsqrt.f32 %v3469_v30  ;;  %v3470_v53 = vadd.f32 1e-05, %v3467_v43  ;;  %v3468_v54 = vmul.f32 0.03125, %v3465_v50 }
0x21ac   : > { %6002 = vrsqrt.f32 %v3470_v53  ;;  %v3471_v57 = vadd.f32 1e-05, %v3468_v54 }
0x21ae   : > { %6004 = vrsqrt.f32 %v3471_v57 }
0x21b4   : > { %v6001_v59 = vpop.eup %6000 }
0x21b5   : > { %v3475_v0 = vmul.f32 %v6001_v59, %v3451_v18 }
0x21b6   : > { %v6003_v1 = vpop.eup %6002 }
0x21b7   : > { %v3484_v3 = vmul.f32 %v5117_v60, %v3475_v0  ;;  %v3476_v55 = vmul.f32 %v6003_v1, %v3452_v49 }
0x21b8   : > { %v6005_v56 = vpop.eup %6004 }
0x21b9   : > { %v3477_v4 = vmul.f32 %v6005_v56, %v3453_v51  ;;  %v3493_v37 = vadd.f32 %v5118_v2, %v3484_v3  ;;  %v3485_v25 = vmul.f32 %v5117_v60, %v3476_v55 }
0x21bb   : > { %v3486_v45 = vmul.f32 %v5117_v60, %v3477_v4  ;;  %v3494_v48 = vadd.f32 %v5118_v2, %v3485_v25  ;;  %v6808_v21 = vadd.f32 %v3580_v23, %v3493_v37 }
0x21bd   : > { %v3495_v22 = vadd.f32 %v5118_v2, %v3486_v45  ;;  %v6810_v6 = vadd.f32 %v3583_v62, %v3494_v48 }
0x21bf   : > { %v6812_v7 = vadd.f32 %v3588_v27, %v3495_v22  ;;  %v3610_v8 = vpack.c.bf16 %v6810_v6, %v6808_v21 }
0x21c1   : > { %v3611_v9 = vpack.c.bf16 %v6812_v7, %v6812_v7  ;;  %5643 = vmatprep.mubr.msk.bf16.mxu0 %vm917_vm1, %v3610_v8 }
0x21c3   : > { %5644 = vmatmul.mubr.msk.bf16.vlgmr.msra.gmra.mrb[56].mxu0 %vm917_vm1, %v3611_v9 }
0x2296   : > { %v5645_v11 = vpop.f32.mrb[56].mxu0 }
0x2297   : > { %v3679_v44 = vadd.f32 %v5645_v11, %v5145_v10  ;;  %v3670_v12 = vpop.f32.mrb[57].mxu0 }
0x2298   : > { %v3671_v13 = vadd.f32 %v5145_v10, %v3670_v12  ;;  %v5646_v14 = vpop.f32.mrb[58].mxu0 }
0x2299   : > { %v6823_v38 = vpack.c.bf16 %v3679_v44, %v3679_v44  ;;  %v3673_v15 = vpop.f32.mrb[59].mxu0  ;;  %v3686_v63 = vmul.f32 0.35355338, %v3679_v44 }
0x229a   : > { %v3674_v16 = vadd.f32 %v5145_v10, %v3673_v15  ;;  %v3684_v17 = vmul.f32 0.35355338, %v3671_v13 }
0x229b   : > { %3695 = vrot.lane.b32.xlu0 %v6823_v38, %s7161_s0  ;;  %v6839_v52 = vpack.c.bf16 %v3686_v63, %v3686_v63 }
0x229c   : > { %v3685_v18 = vmul.f32 0.35355338, %v3674_v16  ;;  %v6827_v61 = vpack.c.bf16 %v3674_v16, %v3671_v13 }
0x229e   : > { %v6829_v19 = vpack.c.bf16 %v3685_v18, %v3684_v17  ;;  %3693 = vrot.lane.b32.xlu1 %v6827_v61, %s7161_s0  ;;  %s7176_s0 = smov 40  }
0x22a0   : > { %5651 = vmatprep.mubr.msk.bf16.mxu1 %vm1129_vm3, %v6829_v19 }
0x230d   : > { %v3696_v46 = vpop.permute.xlu0 %3695 }
0x230e   : > { %v3707_v51 = vsel %vm1129_vm3, %v3696_v46, 0 }
0x2310   : > { %v3694_v49 = vpop.permute.xlu1 %3693 }
0x2311   : > { %v3704_v47 = vsel %vm1129_vm3, %v3694_v49, 0  ;;  %5755 = vmatprep.subr.msk.bf16.mxu1 %vm1129_vm3, %v3694_v49 }
0x2312   : > { %5648 = vmatpush3.bf16.xpose.msra.mxu1 %v3704_v47 }
0x2313   : > { %5756 = vmatprep.subr.msk.bf16.mxu1 %vm1129_vm3, %v3696_v46 }
0x231a   : > { %5650 = vmatpush3.bf16.xpose.msra.mxu1 %v3707_v51 }
0x2321   : > { %5652 = vmatmul.mubr.msk.bf16.vlgmr.msra.gmra.mrb[60].mxu1 %vm1129_vm3, %v6839_v52 }
0x23f4   : > { %v5653_v24 = vpop.f32.mrb[60].mxu1 }
0x23f5   : > { %v3743_v5 = vpop.f32.mrb[61].mxu1  ;;  %v3763_v39 = vsel %vm1197_vm4, %v5653_v24, -inf }
0x23f6   : > { %v5654_v28 = vpop.f32.mrb[62].mxu1  ;;  %v3757_v31 = vsel %vm1190_vm5, %v3743_v5, -inf }
0x23f7   : > { %3758 = vmax.xlane.f32.xlu1 %v3757_v31  ;;  %v3746_v33 = vpop.f32.mrb[63].mxu1 }
0x23f8   : > { %v3760_v36 = vsel %vm1190_vm5, %v3746_v33, -inf }
0x23f9   : > { %3761 = vmax.xlane.f32.xlu0 %v3760_v36 }
0x23fb   : > { %3764 = vmax.xlane.f32.xlu1 %v3763_v39 }
0x240c   : > { %3792 = vrot.lane.b32.xlu1 %v6827_v61, %s7162_s2 }
0x2484   : > { %v3759_v40 = vpop.xlane.xlu1 %3758 }
0x2485   : > { %v3766_v32 = vsub.f32 %v3743_v5, %v3759_v40 }
0x2486   : > { %v3762_v41 = vpop.xlane.xlu0 %3761 }
0x2487   : > { %v3767_v42 = vsub.f32 %v3746_v33, %v3762_v41  ;;  %v3769_v50 = vmul.f32 1.442695, %v3766_v32 }
0x2488   : > { %v3765_v29 = vpop.xlane.xlu1 %3764 }
0x2489   : > { %v3771_v30 = vmul.f32 1.442695, %v3767_v42  ;;  %v3768_v43 = vsub.f32 %v5653_v24, %v3765_v29 }
0x248b   : > { %6006 = vpow2.f32 %v3771_v30  ;;  %v3773_v53 = vmul.f32 1.442695, %v3768_v43 }
0x248c   : > { %v3793_v54 = vpop.permute.xlu1 %3792 }
0x248d   : > { %6008 = vpow2.f32 %v3773_v53  ;;  %5655 = vmatprep.subr.bf16.mxu0 %v3793_v54 }
0x248e   : > { %5656 = vmatpush3.bf16.msra.mxu0 %v3793_v54  ;;  %6010 = vpow2.f32 %v3769_v50 }
0x2495   : > { %v6007_v57 = vpop.eup %6006 }
0x2496   : > { %v3778_v59 = vsel %vm1190_vm5, %v6007_v57, 0.0 }
0x2497   : > { %v6009_v60 = vpop.eup %6008  ;;  %3779 = vadd.xlane.f32.xlu1 %v3778_v59 }
0x2498   : > { %v3781_v0 = vsel %vm1197_vm4, %v6009_v60, 0.0  ;;  %v6011_v1 = vpop.eup %6010 }
0x2499   : > { %3782 = vadd.xlane.f32.xlu0 %v3781_v0  ;;  %v3775_v2 = vsel %vm1190_vm5, %v6011_v1, 0.0 }
0x249d   : > { %3776 = vadd.xlane.f32.xlu0 %v3775_v2 }
0x24a8   : > { %3860 = vrot.lane.b32.xlu1 %v6827_v61, %s7163_s28 }
0x24ac   : > { %3862 = vrot.lane.b32.xlu1 %v6823_v38, %s7163_s28  ;;  %s7178_s28 = smov 16  }
0x24b0   : > { %3858 = vrot.lane.b32.xlu1 %v6839_v52, %s7164_s4 }
0x24b3   : > { %3794 = vrot.lane.b32.xlu0 %v6823_v38, %s7162_s2  ;;  %s7177_s2 = smov 8  }
0x24b7   : > { %3856 = vrot.lane.b32.xlu0 %v6829_v19, %s7164_s4  ;;  %s7182_s4 = sld [smem:[#allocation15_spill]] }
0x2524   : > { %v3780_v58 = vpop.xlane.xlu1 %3779 }
0x2526   : > { %v3783_v3 = vpop.xlane.xlu0 %3782 }
0x2527   : > { %6012 = vrcp.f32 %v3783_v3 }
0x2528   : > { %6014 = vrcp.f32 %v3780_v58  ;;  %v3861_v23 = vpop.permute.xlu1 %3860 }
0x2529   : > { %v3871_v9 = vsel %vm1129_vm3, %v3861_v23, 0 }
0x252a   : > { %v3777_v55 = vpop.xlane.xlu0 %3776 }
0x252b   : > { %6016 = vrcp.f32 %v3777_v55 }
0x252c   : > { %v3863_v11 = vpop.permute.xlu1 %3862 }
0x252d   : > { %v3874_v44 = vsel %vm1129_vm3, %v3863_v11, 0 }
0x252e   : > { %v3795_v56 = vpop.permute.xlu0 %3794 }
0x252f   : > { %v3804_v4 = vand.u32 %v3795_v56, %v6343_v35 }
0x2530   : > { %v3859_v12 = vpop.permute.xlu1 %3858 }
0x2531   : > { %5657 = vmatprep.subr.bf16.mxu0 %v3804_v4  ;;  %v6013_v37 = vpop.eup %6012 }
0x2532   : > { %5658 = vmatpush3.bf16.msra.mxu0 %v3804_v4  ;;  %v6015_v25 = vpop.eup %6014  ;;  %v3789_v48 = vmul.f32 %v6013_v37, %v6009_v60  ;;  %v3857_v10 = vpop.permute.xlu0 %3856 }
0x2533   : > { %5757 = vmatprep.subr.msk.bf16.mxu0 %vm1129_vm3, %v3861_v23  ;;  %v3788_v22 = vmul.f32 %v6015_v25, %v6007_v57 }
0x2534   : > { %v3791_v8 = vpack.c.bf16 %v3789_v48, %v3789_v48 }
0x2535   : > { %v6017_v45 = vpop.eup %6016 }
0x2536   : > { %v3787_v62 = vmul.f32 %v6017_v45, %v6011_v1 }
0x2538   : > { %v3790_v27 = vpack.c.bf16 %v3788_v22, %v3787_v62 }
0x253a   : > { %5659 = vmatprep.mubr.msk.bf16.mxu0 %vm1190_vm5, %v3790_v27 }
0x253b   : > { %5660 = vmatmul.mubr.msk.bf16.vlgmr.msra.gmra.mrb[60].mxu0 %vm1190_vm5, %v3791_v8 }
0x253c   : > { %5664 = vmatpush3.bf16.xpose.msra.mxu0 %v3871_v9  ;;  %5667 = vmatprep.mubr.msk.bf16.mxu0 %vm1129_vm3, %v3857_v10 }
0x253d   : > { %5758 = vmatprep.subr.msk.bf16.mxu0 %vm1129_vm3, %v3863_v11 }
0x2544   : > { %5666 = vmatpush3.bf16.xpose.msra.mxu0 %v3874_v44 }
0x254b   : > { %5668 = vmatmul.mubr.msk.bf16.vlgmr.msra.gmra.mrb[64].mxu0 %vm1129_vm3, %v3859_v12 }
0x260e   : > { %v6870_v13 = vpop.f32.mrb[60].mxu0 }
0x260f   : > { %v6872_v14 = vpop.f32.mrb[61].mxu0 }
0x2610   : > { %v5662_v15 = vpop.f32.mrb[62].mxu0 }
0x2611   : > { %v6874_v16 = vpop.f32.mrb[63].mxu0 }
0x261e   : > { %v5669_v17 = vpop.f32.mrb[64].mxu0 }
0x261f   : > { %v3910_v18 = vpop.f32.mrb[65].mxu0  ;;  %v3930_v63 = vsel %vm1197_vm4, %v5669_v17, -inf }
0x2620   : > { %v5670_v49 = vpop.f32.mrb[66].mxu0  ;;  %v3924_v47 = vsel %vm1190_vm5, %v3910_v18, -inf }
0x2621   : > { %3925 = vmax.xlane.f32.xlu0 %v3924_v47  ;;  %v3913_v46 = vpop.f32.mrb[67].mxu0 }
0x2622   : > { %v3927_v51 = vsel %vm1190_vm5, %v3913_v46, -inf }
0x2623   : > { %3928 = vmax.xlane.f32.xlu1 %v3927_v51 }
0x2625   : > { %3931 = vmax.xlane.f32.xlu0 %v3930_v63 }
0x2634   : > { %3959 = vrot.lane.b32.xlu1 %v6827_v61, %s7165_s27 }
0x26ae   : > { %v3926_v24 = vpop.xlane.xlu0 %3925 }
0x26af   : > { %v3933_v28 = vsub.f32 %v3910_v18, %v3926_v24 }
0x26b0   : > { %v3929_v5 = vpop.xlane.xlu1 %3928 }
0x26b1   : > { %v3934_v31 = vsub.f32 %v3913_v46, %v3929_v5  ;;  %v3936_v41 = vmul.f32 1.442695, %v3933_v28 }
0x26b2   : > { %v3932_v33 = vpop.xlane.xlu0 %3931 }
0x26b3   : > { %v3938_v36 = vmul.f32 1.442695, %v3934_v31  ;;  %v3935_v39 = vsub.f32 %v5669_v17, %v3932_v33 }
0x26b4   : > { %v3960_v40 = vpop.permute.xlu1 %3959 }
0x26b5   : > { %6018 = vpow2.f32 %v3938_v36  ;;  %v3940_v32 = vmul.f32 1.442695, %v3935_v39  ;;  %5671 = vmatprep.subr.bf16.mxu1 %v3960_v40 }
0x26b6   : > { %5672 = vmatpush3.bf16.msra.mxu1 %v3960_v40 }
0x26b7   : > { %6020 = vpow2.f32 %v3940_v32 }
0x26b8   : > { %6022 = vpow2.f32 %v3936_v41 }
0x26bf   : > { %v6019_v42 = vpop.eup %6018 }
0x26c0   : > { %v3945_v29 = vsel %vm1190_vm5, %v6019_v42, 0.0 }
0x26c1   : > { %v6021_v30 = vpop.eup %6020  ;;  %3946 = vadd.xlane.f32.xlu1 %v3945_v29 }
0x26c2   : > { %v3948_v43 = vsel %vm1197_vm4, %v6021_v30, 0.0  ;;  %v6023_v50 = vpop.eup %6022 }
0x26c3   : > { %3949 = vadd.xlane.f32.xlu0 %v3948_v43  ;;  %v3942_v53 = vsel %vm1190_vm5, %v6023_v50, 0.0 }
0x26c7   : > { %3943 = vadd.xlane.f32.xlu0 %v3942_v53 }
0x26d2   : > { %4025 = vrot.lane.b32.xlu1 %v6827_v61, %s7166_s29 }
0x26d6   : > { %4027 = vrot.lane.b32.xlu1 %v6823_v38, %s7166_s29  ;;  %s7179_s29 = sld [smem:[#allocation13_spill]] }
0x26da   : > { %4023 = vrot.lane.b32.xlu1 %v6839_v52, %s7167_s7 }
0x26dd   : > { %3961 = vrot.lane.b32.xlu0 %v6823_v38, %s7165_s27 }
0x26e1   : > { %4021 = vrot.lane.b32.xlu0 %v6829_v19, %s7167_s7 }
0x274e   : > { %v3947_v54 = vpop.xlane.xlu1 %3946 }
0x2750   : > { %v3950_v57 = vpop.xlane.xlu0 %3949 }
0x2751   : > { %6024 = vrcp.f32 %v3950_v57 }
0x2752   : > { %6026 = vrcp.f32 %v3947_v54  ;;  %v4026_v2 = vpop.permute.xlu1 %4025 }
0x2753   : > { %v4036_v25 = vsel %vm1129_vm3, %v4026_v2, 0 }
0x2754   : > { %v3944_v59 = vpop.xlane.xlu0 %3943 }
0x2755   : > { %6028 = vrcp.f32 %v3944_v59 }
0x2756   : > { %v4028_v48 = vpop.permute.xlu1 %4027 }
0x2757   : > { %v4039_v62 = vsel %vm1129_vm3, %v4028_v48, 0 }
0x2758   : > { %v3962_v60 = vpop.permute.xlu0 %3961 }
0x2759   : > { %v3971_v0 = vand.u32 %v3962_v60, %v6343_v35 }
0x275a   : > { %v4024_v22 = vpop.permute.xlu1 %4023 }
0x275b   : > { %5673 = vmatprep.subr.bf16.mxu1 %v3971_v0  ;;  %v6025_v1 = vpop.eup %6024 }
0x275c   : > { %5674 = vmatpush3.bf16.msra.mxu1 %v3971_v0  ;;  %v6027_v58 = vpop.eup %6026  ;;  %v3956_v55 = vmul.f32 %v6025_v1, %v6021_v30  ;;  %v4022_v45 = vpop.permute.xlu0 %4021 }
0x275d   : > { %5759 = vmatprep.subr.msk.bf16.mxu1 %vm1129_vm3, %v4026_v2  ;;  %v3955_v4 = vmul.f32 %v6027_v58, %v6019_v42 }
0x275e   : > { %v3958_v23 = vpack.c.bf16 %v3956_v55, %v3956_v55 }
0x275f   : > { %v6029_v3 = vpop.eup %6028 }
0x2760   : > { %v3954_v56 = vmul.f32 %v6029_v3, %v6023_v50 }
0x2762   : > { %v3957_v37 = vpack.c.bf16 %v3955_v4, %v3954_v56 }
0x2764   : > { %5675 = vmatprep.mubr.msk.bf16.mxu1 %vm1190_vm5, %v3957_v37 }
0x2765   : > { %5676 = vmatmul.mubr.msk.bf16.vlgmr.msra.gmra.mrb[64].mxu1 %vm1190_vm5, %v3958_v23 }
0x2766   : > { %5680 = vmatpush3.bf16.xpose.msra.mxu1 %v4036_v25  ;;  %5683 = vmatprep.mubr.msk.bf16.mxu1 %vm1129_vm3, %v4022_v45 }
0x2767   : > { %5760 = vmatprep.subr.msk.bf16.mxu1 %vm1129_vm3, %v4028_v48 }
0x276e   : > { %5682 = vmatpush3.bf16.xpose.msra.mxu1 %v4039_v62 }
0x2775   : > { %5684 = vmatmul.mubr.msk.bf16.vlgmr.msra.gmra.mrb[68].mxu1 %vm1129_vm3, %v4024_v22 }
0x2838   : > { %v6903_v27 = vpop.f32.mrb[64].mxu1 }
0x2839   : > { %v6905_v8 = vpop.f32.mrb[65].mxu1 }
0x283a   : > { %v5678_v9 = vpop.f32.mrb[66].mxu1 }
0x283b   : > { %v6907_v10 = vpop.f32.mrb[67].mxu1 }
0x283c   : > { %v5819_v11 = vpack.i.bf16 %v6907_v10, %v6905_v8 }
0x2848   : > { %v5685_v44 = vpop.f32.mrb[68].mxu1 }
0x2849   : > { %v4075_v12 = vpop.f32.mrb[69].mxu1  ;;  %v4095_v47 = vsel %vm1197_vm4, %v5685_v44, -inf }
0x284a   : > { %v5686_v15 = vpop.f32.mrb[70].mxu1  ;;  %v4089_v17 = vsel %vm1190_vm5, %v4075_v12, -inf }
0x284b   : > { %4090 = vmax.xlane.f32.xlu0 %v4089_v17  ;;  %v4078_v18 = vpop.f32.mrb[71].mxu1 }
0x284c   : > { %v4092_v49 = vsel %vm1190_vm5, %v4078_v18, -inf }
0x284d   : > { %4093 = vmax.xlane.f32.xlu1 %v4092_v49 }
0x284f   : > { %4096 = vmax.xlane.f32.xlu0 %v4095_v47 }
0x285e   : > { %4124 = vrot.lane.b32.xlu1 %v6827_v61, %s7168_s25 }
0x28d8   : > { %v4091_v46 = vpop.xlane.xlu0 %4090 }
0x28d9   : > { %v4098_v63 = vsub.f32 %v4075_v12, %v4091_v46 }
0x28da   : > { %v4094_v51 = vpop.xlane.xlu1 %4093 }
0x28db   : > { %v4099_v24 = vsub.f32 %v4078_v18, %v4094_v51  ;;  %v4101_v36 = vmul.f32 1.442695, %v4098_v63 }
0x28dc   : > { %v4097_v5 = vpop.xlane.xlu0 %4096 }
0x28dd   : > { %v4103_v28 = vmul.f32 1.442695, %v4099_v24  ;;  %v4100_v31 = vsub.f32 %v5685_v44, %v4097_v5 }
0x28de   : > { %v4125_v33 = vpop.permute.xlu1 %4124 }
0x28df   : > { %6030 = vpow2.f32 %v4103_v28  ;;  %v4105_v39 = vmul.f32 1.442695, %v4100_v31  ;;  %5687 = vmatprep.subr.bf16.mxu0 %v4125_v33 }
0x28e0   : > { %5688 = vmatpush3.bf16.msra.mxu0 %v4125_v33 }
0x28e1   : > { %6032 = vpow2.f32 %v4105_v39 }
0x28e2   : > { %6034 = vpow2.f32 %v4101_v36 }
0x28e9   : > { %v6031_v40 = vpop.eup %6030 }
0x28ea   : > { %v4110_v41 = vsel %vm1190_vm5, %v6031_v40, 0.0 }
0x28eb   : > { %v6033_v32 = vpop.eup %6032  ;;  %4111 = vadd.xlane.f32.xlu1 %v4110_v41 }
0x28ec   : > { %v4113_v42 = vsel %vm1197_vm4, %v6033_v32, 0.0  ;;  %v6035_v29 = vpop.eup %6034 }
0x28ed   : > { %4114 = vadd.xlane.f32.xlu0 %v4113_v42  ;;  %v4107_v30 = vsel %vm1190_vm5, %v6035_v29, 0.0 }
0x28f1   : > { %4108 = vadd.xlane.f32.xlu0 %v4107_v30 }
0x28fc   : > { %4190 = vrot.lane.b32.xlu1 %v6827_v61, %s7169_s8 }
0x2900   : > { %4192 = vrot.lane.b32.xlu1 %v6823_v38, %s7169_s8  ;;  %s7180_s8 = smov 24  }
0x2904   : > { %4188 = vrot.lane.b32.xlu1 %v6839_v52, %s7170_s1 }
0x2907   : > { %4126 = vrot.lane.b32.xlu0 %v6823_v38, %s7168_s25 }
0x290b   : > { %4186 = vrot.lane.b32.xlu0 %v6829_v19, %s7170_s1 }
0x2978   : > { %v4112_v43 = vpop.xlane.xlu1 %4111 }
0x297a   : > { %v4115_v50 = vpop.xlane.xlu0 %4114 }
0x297b   : > { %6036 = vrcp.f32 %v4115_v50 }
0x297c   : > { %6038 = vrcp.f32 %v4112_v43  ;;  %v4191_v60 = vpop.permute.xlu1 %4190 }
0x297d   : > { %v4201_v55 = vsel %vm1129_vm3, %v4191_v60, 0 }
0x297e   : > { %v4109_v53 = vpop.xlane.xlu0 %4108 }
0x297f   : > { %6040 = vrcp.f32 %v4109_v53 }
0x2980   : > { %v4193_v4 = vpop.permute.xlu1 %4192 }
0x2981   : > { %v4204_v37 = vsel %vm1129_vm3, %v4193_v4, 0 }
0x2982   : > { %v4127_v54 = vpop.permute.xlu0 %4126 }
0x2983   : > { %v4136_v57 = vand.u32 %v4127_v54, %v6343_v35 }
0x2984   : > { %v4189_v23 = vpop.permute.xlu1 %4188 }
0x2985   : > { %5689 = vmatprep.subr.bf16.mxu0 %v4136_v57  ;;  %v6037_v59 = vpop.eup %6036 }
0x2986   : > { %5690 = vmatpush3.bf16.msra.mxu0 %v4136_v57  ;;  %v6039_v52 = vpop.eup %6038  ;;  %v4121_v1 = vmul.f32 %v6037_v59, %v6033_v32  ;;  %v4187_v56 = vpop.permute.xlu0 %4186 }
0x2987   : > { %5761 = vmatprep.subr.msk.bf16.mxu0 %vm1129_vm3, %v4191_v60  ;;  %v4120_v19 = vmul.f32 %v6039_v52, %v6031_v40  ;;  %v5872_v60 = vld [vmem:[%s7179_s29 + $0x20] sm:$0xff]  }
0x2988   : > { %v4123_v3 = vpack.c.bf16 %v4121_v1, %v4121_v1 }
0x2989   : > { %v6041_v0 = vpop.eup %6040 }
0x298a   : > { %v4119_v2 = vmul.f32 %v6041_v0, %v6035_v29 }
0x298c   : > { %v4122_v58 = vpack.c.bf16 %v4120_v19, %v4119_v2 }
0x298e   : > { %5691 = vmatprep.mubr.msk.bf16.mxu0 %vm1190_vm5, %v4122_v58 }
0x298f   : > { %5692 = vmatmul.mubr.msk.bf16.vlgmr.msra.gmra.mrb[68].mxu0 %vm1190_vm5, %v4123_v3 }
0x2990   : > { %5696 = vmatpush3.bf16.xpose.msra.mxu0 %v4201_v55  ;;  %5699 = vmatprep.mubr.msk.bf16.mxu0 %vm1129_vm3, %v4187_v56 }
0x2991   : > { %5762 = vmatprep.subr.msk.bf16.mxu0 %vm1129_vm3, %v4193_v4 }
0x2998   : > { %5698 = vmatpush3.bf16.xpose.msra.mxu0 %v4204_v37 }
0x299f   : > { %5700 = vmatmul.mubr.msk.bf16.vlgmr.msra.gmra.mrb[72].mxu0 %vm1129_vm3, %v4189_v23 }
0x2a62   : > { %v5693_v25 = vpop.f32.mrb[68].mxu0 }
0x2a63   : > { %v4172_v45 = vpop.f32.mrb[69].mxu0 }
0x2a64   : > { %v5694_v48 = vpop.f32.mrb[70].mxu0 }
0x2a65   : > { %v4175_v62 = vpop.f32.mrb[71].mxu0 }
0x2a66   : > { %v5824_v22 = vpack.i.bf16 %v4175_v62, %v4172_v45 }
0x2a72   : > { %v5701_v9 = vpop.f32.mrb[72].mxu0 }
0x2a73   : > { %v4240_v44 = vpop.f32.mrb[73].mxu0  ;;  %v4260_v49 = vsel %vm1197_vm4, %v5701_v9, -inf }
0x2a74   : > { %v5702_v12 = vpop.f32.mrb[74].mxu0  ;;  %v4254_v15 = vsel %vm1190_vm5, %v4240_v44, -inf }
0x2a75   : > { %4255 = vmax.xlane.f32.xlu0 %v4254_v15  ;;  %v4243_v17 = vpop.f32.mrb[75].mxu0 }
0x2a76   : > { %v4257_v18 = vsel %vm1190_vm5, %v4243_v17, -inf }
0x2a77   : > { %4258 = vmax.xlane.f32.xlu1 %v4257_v18 }
0x2a79   : > { %4261 = vmax.xlane.f32.xlu0 %v4260_v49 }
0x2b02   : > { %v4256_v47 = vpop.xlane.xlu0 %4255 }
0x2b03   : > { %v4263_v51 = vsub.f32 %v4240_v44, %v4256_v47 }
0x2b04   : > { %v4259_v46 = vpop.xlane.xlu1 %4258 }
0x2b05   : > { %v4264_v63 = vsub.f32 %v4243_v17, %v4259_v46  ;;  %v4266_v31 = vmul.f32 1.442695, %v4263_v51 }
0x2b06   : > { %v4262_v24 = vpop.xlane.xlu0 %4261 }
0x2b07   : > { %v4268_v5 = vmul.f32 1.442695, %v4264_v63  ;;  %v4265_v28 = vsub.f32 %v5701_v9, %v4262_v24 }
0x2b09   : > { %6042 = vpow2.f32 %v4268_v5  ;;  %v4270_v33 = vmul.f32 1.442695, %v4265_v28 }
0x2b0b   : > { %6044 = vpow2.f32 %v4270_v33 }
0x2b0c   : > { %6046 = vpow2.f32 %v4266_v31 }
0x2b13   : > { %v6043_v36 = vpop.eup %6042 }
0x2b14   : > { %v4275_v39 = vsel %vm1190_vm5, %v6043_v36, 0.0 }
0x2b15   : > { %v6045_v40 = vpop.eup %6044  ;;  %4276 = vadd.xlane.f32.xlu1 %v4275_v39 }
0x2b16   : > { %v4278_v41 = vsel %vm1197_vm4, %v6045_v40, 0.0  ;;  %v6047_v32 = vpop.eup %6046 }
0x2b17   : > { %4279 = vadd.xlane.f32.xlu0 %v4278_v41  ;;  %v4272_v42 = vsel %vm1190_vm5, %v6047_v32, 0.0 }
0x2b1b   : > { %4273 = vadd.xlane.f32.xlu0 %v4272_v42 }
0x2b26   : > { %4289 = vrot.lane.b32.xlu1 %v6827_v61, %s7176_s0 }
0x2b2a   : > { %5820 = vrot.lane.b32.xlu1 %v5819_v11, %s7177_s2 }
0x2b2e   : > { %4358 = vrot.lane.b32.xlu1 %v6903_v27, %s7177_s2 }
0x2b31   : > { %4291 = vrot.lane.b32.xlu0 %v6823_v38, %s7176_s0 }
0x2b32   : > { %4370 = vrot.lane.b32.xlu1 %v5693_v25, %s7178_s28 }
0x2b35   : > { %5825 = vrot.lane.b32.xlu0 %v5824_v22, %s7178_s28 }
0x2ba2   : > { %v4277_v29 = vpop.xlane.xlu1 %4276 }
0x2ba4   : > { %v4280_v30 = vpop.xlane.xlu0 %4279 }
0x2ba5   : > { %6048 = vrcp.f32 %v4280_v30 }
0x2ba6   : > { %v4290_v43 = vpop.permute.xlu1 %4289  ;;  %6050 = vrcp.f32 %v4277_v29 }
0x2ba7   : > { %5703 = vmatprep.subr.bf16.mxu1 %v4290_v43 }
0x2ba8   : > { %v4274_v61 = vpop.xlane.xlu0 %4273  ;;  %5704 = vmatpush3.bf16.msra.mxu1 %v4290_v43 }
0x2ba9   : > { %6052 = vrcp.f32 %v4274_v61 }
0x2baa   : > { %v5821_v58 = vpop.permute.xlu1 %5820 }
0x2bab   : > { %v5823_v4 = vunpack.i.h.bf16 %v5821_v58  ;;  %v5822_v37 = vunpack.i.l.bf16 %v5821_v58 }
0x2bac   : > { %v4292_v8 = vpop.permute.xlu0 %4291 }
0x2bad   : > { %v4301_v10 = vand.u32 %v4292_v8, %v6343_v35  ;;  %v5873_v35 = vld [vmem:[%s7179_s29 + $0x28] sm:$0xff]   ;;  %v4388_v48 = vsel %vm1129_vm3, %v6874_v16, %v5823_v4  ;;  %v4387_v9 = vsel %vm1129_vm3, %v6872_v14, %v5822_v37  ;;  %v5166_v14 = vld [vmem:[%s7181_s26 + $0x2] ss:$0 sm:$0xff]  ;;  %s7185_s29 = sld [smem:[#allocation3_spill]] }
0x2bae   : > { %v4359_v3 = vpop.permute.xlu1 %4358  ;;  %v5173_v37 = vld [vmem:[%s7079_s14 + $0x2] ss:$0 sm:$0xff] }
0x2baf   : > { %5705 = vmatprep.subr.bf16.mxu1 %v4301_v10  ;;  %v6049_v27 = vpop.eup %6048  ;;  %v4389_v62 = vsel %vm1129_vm3, %v6870_v13, %v4359_v3 }
0x2bb0   : > { %5706 = vmatpush3.bf16.msra.mxu1 %v4301_v10  ;;  %v6051_v38 = vpop.eup %6050  ;;  %v4286_v50 = vmul.f32 %v6049_v27, %v6045_v40  ;;  %v5826_v55 = vpop.permute.xlu0 %5825 }
0x2bb1   : > { %v4285_v54 = vmul.f32 %v6051_v38, %v6043_v36  ;;  %5711 = vmatprep.subr.bf16.mxu1 %v5872_v60  ;;  %v5828_v23 = vunpack.i.h.bf16 %v5826_v55  ;;  %v5827_v25 = vunpack.i.l.bf16 %v5826_v55 }
0x2bb2   : > { %v4288_v59 = vpack.c.bf16 %v4286_v50, %v4286_v50  ;;  %v4371_v56 = vpop.permute.xlu1 %4370 }
0x2bb3   : > { %v6053_v11 = vpop.eup %6052  ;;  %v4392_v44 = vsel %vm1828_vm7, %v4389_v62, %v4371_v56  ;;  %v4390_v17 = vsel %vm1828_vm7, %v4387_v9, %v5827_v25  ;;  %v4391_v18 = vsel %vm1828_vm7, %v4388_v48, %v5828_v23  ;;  %s5212_s1 = sshll.u32 %s7185_s29, 5 }
0x2bb4   : > { %v4284_v53 = vmul.f32 %v6053_v11, %v6047_v32  ;;  %s791_s23 = scalar_lea.vmem %s7187_s22, %s5212_s1 }
0x2bb6   : > { %v4287_v57 = vpack.c.bf16 %v4285_v54, %v4284_v53 }
0x2bb8   : > { %5707 = vmatprep.mubr.msk.bf16.mxu1 %vm1190_vm5, %v4287_v57  ;;  %v5874_v57 = vld [vmem:[%s7081_s16 + $0x20] sm:$0xff]  }
0x2bb9   : > { %5708 = vmatmul.mubr.msk.bf16.vlgmr.msra.gmra.mrb[72].mxu1 %vm1190_vm5, %v4288_v59  ;;  %5719 = vmatprep.subr.bf16.mxu0 %v5874_v57  ;;  %v5875_v59 = vld [vmem:[%s7081_s16 + $0x28] sm:$0xff]  }
0x2bba   : > { %5712 = vmatpush3.bf16.msra.mxu1 %v5872_v60  ;;  %5720 = vmatpush3.bf16.msra.mxu0 %v5874_v57  ;;  %v5876_v60 = vld [vmem:[%s7083_s18 + $0x40] sm:$0xff]  }
0x2bbb   : > { %5713 = vmatprep.subr.bf16.mxu1 %v5873_v35  ;;  %5721 = vmatprep.subr.bf16.mxu0 %v5875_v59 }
0x2bbe   : > { %5714 = vmatpush3.bf16.msra.mxu1 %v5873_v35  ;;  %5722 = vmatpush3.bf16.msra.mxu0 %v5875_v59  ;;  %v5877_v35 = vld [vmem:[%s7083_s18 + $0x48] sm:$0xff]  }
0x2bbf   : > { %5727 = vmatprep.subr.bf16.mxu1 %v5876_v60 }
0x2c8c   : > { %v5709_v52 = vpop.f32.mrb[72].mxu1 }
0x2c8d   : > { %4382 = vrot.lane.b32.xlu1 %v5709_v52, %s7180_s8  ;;  %v4337_v0 = vpop.f32.mrb[73].mxu1 }
0x2c8e   : > { %v5710_v1 = vpop.f32.mrb[74].mxu1 }
0x2c8f   : > { %v4340_v2 = vpop.f32.mrb[75].mxu1 }
0x2c90   : > { %v5829_v19 = vpack.i.bf16 %v4340_v2, %v4337_v0 }
0x2c92   : > { %5830 = vrot.lane.b32.xlu0 %v5829_v19, %s7180_s8  ;;  %s7186_s8 = sld [smem:[#allocation18_spill]] }
0x2cff   : > { %v4383_v45 = vpop.permute.xlu1 %4382 }
0x2d00   : > { %v4395_v49 = vsel %vm1832_vm8, %v4392_v44, %v4383_v45 }
0x2d01   : > { %v4397_v13 = vpack.c.bf16 %v4395_v49, %v4395_v49 }
0x2d04   : > { %v5831_v22 = vpop.permute.xlu0 %5830 }
0x2d05   : > { %v5833_v12 = vunpack.i.h.bf16 %v5831_v22  ;;  %v5832_v15 = vunpack.i.l.bf16 %v5831_v22  ;;  %v5174_v22 = vld [vmem:[%s7182_s4 + $0x2] ss:$0 sm:$0xff] }
0x2d07   : > { %v4393_v47 = vsel %vm1832_vm8, %v4390_v17, %v5832_v15  ;;  %v4394_v16 = vsel %vm1832_vm8, %v4391_v18, %v5833_v12 }
0x2d08   : > { %v4396_v46 = vpack.c.bf16 %v4394_v16, %v4393_v47  ;;  %v5878_v16 = vld [vmem:[%s7083_s18 + $0x50] sm:$0xff]  }
0x2d0a   : > { %5715 = vmatprep.mubr.msk.bf16.mxu1 %vm917_vm1, %v4396_v46  ;;  %v5879_v46 = vld [vmem:[%s7083_s18 + $0x58] sm:$0xff]  }
0x2d0b   : > { %5716 = vmatmul.mubr.msk.bf16.vlgmr.msra.gmra.mrb[76].mxu1 %vm917_vm1, %v4397_v13  ;;  %v5180_v13 = vld [vmem:[%s7183_s17 + $0x2] ss:$0 sm:$0xff] }
0x2d0c   : > { %5728 = vmatpush3.bf16.msra.mxu1 %v5876_v60 }
0x2d0d   : > { %5729 = vmatprep.subr.bf16.mxu1 %v5877_v35 }
0x2d10   : > { %5730 = vmatpush3.bf16.msra.mxu1 %v5877_v35 }
0x2d11   : > { %5731 = vmatprep.subr.bf16.mxu1 %v5878_v16 }
0x2d14   : > { %5732 = vmatpush3.bf16.msra.mxu1 %v5878_v16 }
0x2d15   : > { %5733 = vmatprep.subr.bf16.mxu1 %v5879_v46 }
0x2d18   : > { %5734 = vmatpush3.bf16.msra.mxu1 %v5879_v46 }
0x2dde   : > { %v5717_v51 = vpop.f32.mrb[76].mxu1 }
0x2ddf   : > { %v4456_v63 = vpop.f32.mrb[77].mxu1  ;;  %v4465_v24 = vadd.f32 %v5717_v51, %v5166_v14 }
0x2de0   : > { %v4457_v5 = vadd.f32 %v5166_v14, %v4456_v63  ;;  %v5718_v28 = vpop.f32.mrb[78].mxu1 }
0x2de1   : > { %v4459_v31 = vpop.f32.mrb[79].mxu1  ;;  %v4472_v39 = vadd.f32 %v4465_v24, %v6812_v7 }
0x2de2   : > { %v4470_v33 = vadd.f32 %v4457_v5, %v6808_v21  ;;  %v4460_v36 = vadd.f32 %v5166_v14, %v4459_v31 }
0x2de3   : > { %v4483_v42 = vsel %vm1921_vm9, %v4472_v39, 0.0 }
0x2de4   : > { %v4471_v40 = vadd.f32 %v4460_v36, %v6810_v6  ;;  %v4477_v41 = vsel %vm917_vm1, %v4470_v33, 0.0 }
0x2de5   : > { %4478 = vadd.xlane.f32.xlu0 %v4477_v41  ;;  %v5194_v41 = vld [vmem:[%s7084_s19 + $0x2] ss:$0 sm:$0xff] }
0x2de6   : > { %v4480_v32 = vsel %vm917_vm1, %v4471_v40, 0.0 }
0x2de7   : > { %4481 = vadd.xlane.f32.xlu1 %v4480_v32 }
0x2de9   : > { %4484 = vadd.xlane.f32.xlu0 %v4483_v42 }
0x2e72   : > { %v4479_v29 = vpop.xlane.xlu0 %4478 }
0x2e73   : > { %v4486_v30 = vmul.f32 0.03125, %v4479_v29 }
0x2e74   : > { %v4482_v43 = vpop.xlane.xlu1 %4481 }
0x2e75   : > { %v4489_v61 = vsub.f32 %v4470_v33, %v4486_v30  ;;  %v4487_v8 = vmul.f32 0.03125, %v4482_v43 }
0x2e76   : > { %v4485_v21 = vpop.xlane.xlu0 %4484 }
0x2e77   : > { %v4490_v10 = vsub.f32 %v4471_v40, %v4487_v8  ;;  %v4488_v27 = vmul.f32 0.03125, %v4485_v21  ;;  %v4492_v7 = vmul.f32 %v4489_v61, %v4489_v61 }
0x2e79   : > { %v4491_v38 = vsub.f32 %v4472_v39, %v4488_v27  ;;  %v4495_v6 = vsel %vm917_vm1, %v4492_v7, 0.0  ;;  %v4493_v11 = vmul.f32 %v4490_v10, %v4490_v10 }
0x2e7a   : > { %4496 = vadd.xlane.f32.xlu0 %v4495_v6 }
0x2e7b   : > { %v4498_v50 = vsel %vm917_vm1, %v4493_v11, 0.0  ;;  %v4494_v53 = vmul.f32 %v4491_v38, %v4491_v38 }
0x2e7c   : > { %4499 = vadd.xlane.f32.xlu1 %v4498_v50 }
0x2e7d   : > { %v4501_v54 = vsel %vm1921_vm9, %v4494_v53, 0.0 }
0x2e7e   : > { %4502 = vadd.xlane.f32.xlu0 %v4501_v54 }
0x2f07   : > { %v4497_v52 = vpop.xlane.xlu0 %4496 }
0x2f08   : > { %v4504_v0 = vmul.f32 0.03125, %v4497_v52 }
0x2f09   : > { %v4500_v1 = vpop.xlane.xlu1 %4499 }
0x2f0a   : > { %v4507_v2 = vadd.f32 1e-05, %v4504_v0  ;;  %v4505_v19 = vmul.f32 0.03125, %v4500_v1 }
0x2f0b   : > { %v4503_v58 = vpop.xlane.xlu0 %4502 }
0x2f0c   : > { %6054 = vrsqrt.f32 %v4507_v2  ;;  %v4508_v3 = vadd.f32 1e-05, %v4505_v19  ;;  %v4506_v55 = vmul.f32 0.03125, %v4503_v58 }
0x2f0e   : > { %6056 = vrsqrt.f32 %v4508_v3  ;;  %v4509_v56 = vadd.f32 1e-05, %v4506_v55  ;;  %v5880_v55 = vld [vmem:[%s7184_s12] ss:$8 sps:$4 sm:$0xff]  }
0x2f10   : > { %6058 = vrsqrt.f32 %v4509_v56  ;;  %v5882_v56 = vld [vmem:[%s7184_s12 + $0x4] ss:$8 sps:$4 sm:$0xff]  }
0x2f11   : > { %4833 = vmatprep.subr.bf16.mxu0 %v5882_v56 }
0x2f16   : > { %v6055_v4 = vpop.eup %6054 }
0x2f17   : > { %v4513_v23 = vmul.f32 %v6055_v4, %v4489_v61  ;;  %v5885_v4 = vld [vmem:[%s7184_s12 + $0x14] ss:$8 sps:$4 sm:$0xff]  }
0x2f18   : > { %v6057_v25 = vpop.eup %6056 }
0x2f19   : > { %v4514_v45 = vmul.f32 %v6057_v25, %v4490_v10  ;;  %v4522_v48 = vmul.f32 %v5173_v37, %v4513_v23 }
0x2f1a   : > { %v6059_v62 = vpop.eup %6058 }
0x2f1b   : > { %v4515_v9 = vmul.f32 %v6059_v62, %v4491_v38  ;;  %v4523_v44 = vmul.f32 %v5173_v37, %v4514_v45  ;;  %v4531_v12 = vadd.f32 %v5174_v22, %v4522_v48 }
0x2f1d   : > { %v4532_v15 = vadd.f32 %v5174_v22, %v4523_v44  ;;  %v4524_v17 = vmul.f32 %v5173_v37, %v4515_v9  ;;  %v5883_v37 = vld [vmem:[%s7184_s12 + $0x10] ss:$8 sps:$4 sm:$0xff]  }
0x2f1f   : > { %v4541_v18 = vpack.c.bf16 %v4532_v15, %v4531_v12  ;;  %v4533_v49 = vadd.f32 %v5174_v22, %v4524_v17  ;;  %v5203_v17 = vld [vmem:[%s7085_s20 + $0x2] ss:$0 sm:$0xff] }
0x2f21   : > { %5723 = vmatprep.mubr.msk.bf16.mxu0 %vm917_vm1, %v4541_v18  ;;  %v4542_v47 = vpack.c.bf16 %v4533_v49, %v4533_v49 }
0x2f23   : > { %5724 = vmatmul.mubr.msk.bf16.vlgmr.msra.gmra.mrb[76].mxu0 %vm917_vm1, %v4542_v47 }
0x2f24   : > { %4865 = vmatprep.mubr.bf16.mxu0 %v6080_v34  ;;  %4834 = vmatpush1.bf16.msra.mxu0 %v5880_v55 }
0x2f25   : > { %4835 = vmatprep.subr.bf16.mxu0 %v5885_v4 }
0x2f28   : > { %4836 = vmatpush1.bf16.msra.mxu0 %v5883_v37 }
0x2ff6   : > { %v5725_v14 = vpop.f32.mrb[76].mxu0 }
0x2ff7   : > { %v4610_v51 = vadd.f32 %v5725_v14, %v5180_v13  ;;  %v4601_v63 = vpop.f32.mrb[77].mxu0 }
0x2ff8   : > { %v4602_v34 = vadd.f32 %v5180_v13, %v4601_v63  ;;  %v5726_v24 = vpop.f32.mrb[78].mxu0 }
0x2ff9   : > { %v4604_v5 = vpop.f32.mrb[79].mxu0  ;;  %v4617_v31 = vmax.f32 %v4610_v51, 0.0 }
0x2ffa   : > { %v4605_v28 = vadd.f32 %v5180_v13, %v4604_v5  ;;  %v4615_v33 = vmax.f32 %v4602_v34, 0.0  ;;  %v5204_v13 = vld [vmem:[%s7086_s21 + $0x2] ss:$0 sm:$0xff] }
0x2ffb   : > { %v4630_v40 = vpack.c.bf16 %v4617_v31, %v4617_v31 }
0x2ffc   : > { %v4616_v36 = vmax.f32 %v4605_v28, 0.0 }
0x2ffe   : > { %v4629_v39 = vpack.c.bf16 %v4616_v36, %v4615_v33 }
0x3000   : > { %5735 = vmatprep.mubr.msk.bf16.mxu1 %vm843_vm2, %v4629_v39 }
0x3001   : > { %5736 = vmatmul.mubr.msk.bf16.vlgmr.msra.gmra.mrb[80].mxu1 %vm843_vm2, %v4630_v40 }
0x30d4   : > { %v5737_v32 = vpop.f32.mrb[80].mxu1 }
0x30d5   : > { %v4701_v42 = vpop.f32.mrb[81].mxu1  ;;  %v4710_v29 = vadd.f32 %v5737_v32, %v5194_v41 }
0x30d6   : > { %v4702_v30 = vadd.f32 %v5194_v41, %v4701_v42  ;;  %v5738_v43 = vpop.f32.mrb[82].mxu1 }
0x30d7   : > { %v4704_v61 = vpop.f32.mrb[83].mxu1  ;;  %v4717_v10 = vadd.f32 %v4710_v29, %v4533_v49  ;;  %v4783_v29 = vld [vmem:[%s7186_s8] sm:$0x3] }
0x30d8   : > { %v4715_v8 = vadd.f32 %v4702_v30, %v4531_v12  ;;  %v4705_v21 = vadd.f32 %v5194_v41, %v4704_v61  ;;  %v4793_v30 = vsub.s32 1, %v6273_v20  ;;  %v4790_v43 = vrot.slane %v4783_v29, %v6279_v26 }
0x30d9   : > { %v4728_v6 = vsel %vm1921_vm9, %v4717_v10, 0.0 }
0x30da   : > { %v4716_v27 = vadd.f32 %v4705_v21, %v4532_v15  ;;  %v4722_v7 = vsel %vm917_vm1, %v4715_v8, 0.0  ;;  %v4794_v61 = vrot.slane %v4783_v29, %v4793_v30 }
0x30db   : > { %4723 = vadd.xlane.f32.xlu1 %v4722_v7 }
0x30dc   : > { %v4725_v38 = vsel %vm917_vm1, %v4716_v27, 0.0 }
0x30dd   : > { %4726 = vadd.xlane.f32.xlu0 %v4725_v38 }
0x30df   : > { %4729 = vadd.xlane.f32.xlu1 %v4728_v6 }
0x3168   : > { %v4724_v11 = vpop.xlane.xlu1 %4723 }
0x3169   : > { %v4731_v50 = vmul.f32 0.03125, %v4724_v11 }
0x316a   : > { %v4727_v53 = vpop.xlane.xlu0 %4726 }
0x316b   : > { %v4734_v54 = vsub.f32 %v4715_v8, %v4731_v50  ;;  %v4732_v57 = vmul.f32 0.03125, %v4727_v53 }
0x316c   : > { %v4730_v59 = vpop.xlane.xlu1 %4729 }
0x316d   : > { %v4735_v60 = vsub.f32 %v4716_v27, %v4732_v57  ;;  %v4733_v35 = vmul.f32 0.03125, %v4730_v59  ;;  %v4737_v52 = vmul.f32 %v4734_v54, %v4734_v54 }
0x316f   : > { %v4736_v0 = vsub.f32 %v4717_v10, %v4733_v35  ;;  %v4740_v1 = vsel %vm917_vm1, %v4737_v52, 0.0  ;;  %v4738_v2 = vmul.f32 %v4735_v60, %v4735_v60 }
0x3170   : > { %4741 = vadd.xlane.f32.xlu0 %v4740_v1 }
0x3171   : > { %v4743_v19 = vsel %vm917_vm1, %v4738_v2, 0.0  ;;  %v4739_v58 = vmul.f32 %v4736_v0, %v4736_v0 }
0x3172   : > { %4744 = vadd.xlane.f32.xlu1 %v4743_v19 }
0x3173   : > { %v4746_v3 = vsel %vm1921_vm9, %v4739_v58, 0.0 }
0x3174   : > { %4747 = vadd.xlane.f32.xlu0 %v4746_v3 }
0x31fd   : > { %v4742_v23 = vpop.xlane.xlu0 %4741 }
0x31fe   : > { %v4749_v25 = vmul.f32 0.03125, %v4742_v23 }
0x31ff   : > { %v4745_v45 = vpop.xlane.xlu1 %4744 }
0x3200   : > { %v4752_v48 = vadd.f32 1e-05, %v4749_v25  ;;  %v4750_v62 = vmul.f32 0.03125, %v4745_v45 }
0x3201   : > { %v4748_v22 = vpop.xlane.xlu0 %4747 }
0x3202   : > { %6060 = vrsqrt.f32 %v4752_v48  ;;  %v4753_v9 = vadd.f32 1e-05, %v4750_v62  ;;  %v4751_v44 = vmul.f32 0.03125, %v4748_v22 }
0x3204   : > { %6062 = vrsqrt.f32 %v4753_v9  ;;  %v4754_v12 = vadd.f32 1e-05, %v4751_v44 }
0x3206   : > { %6064 = vrsqrt.f32 %v4754_v12 }
0x320c   : > { %v6061_v15 = vpop.eup %6060 }
0x320d   : > { %v4758_v18 = vmul.f32 %v6061_v15, %v4734_v54 }
0x320e   : > { %v6063_v49 = vpop.eup %6062 }
0x320f   : > { %v4767_v47 = vmul.f32 %v5203_v17, %v4758_v18  ;;  %v4759_v16 = vmul.f32 %v6063_v49, %v4735_v60 }
0x3210   : > { %v6065_v46 = vpop.eup %6064 }
0x3211   : > { %v4768_v14 = vmul.f32 %v5203_v17, %v4759_v16  ;;  %v4760_v51 = vmul.f32 %v6065_v46, %v4736_v0  ;;  %v4776_v34 = vadd.f32 %v5204_v13, %v4767_v47 }
0x3213   : > { %v4769_v63 = vmul.f32 %v5203_v17, %v4760_v51  ;;  %v4777_v24 = vadd.f32 %v5204_v13, %v4768_v14 }
0x3215   : > { %v4778_v5 = vadd.f32 %v5204_v13, %v4769_v63  ;;  %v4784_v28 = vpack.c.bf16 %v4777_v24, %v4776_v34 }
0x3217   : > { %v4785_v31 = vpack.c.bf16 %v4778_v5, %v4778_v5  ;;  %v4801_v33 = vshll.u32 %v4784_v28, 16  ;;  %v4799_v36 = vshrl.u32 %v4784_v28, 16 }
0x3219   : > { %v4803_v39 = vrot.slane %v4801_v33, 1  ;;  %v4806_v40 = vshll.u32 %v4785_v31, 16 }
0x321b   : > { %v4804_v41 = vor.u32 %v4803_v39, %v4799_v36  ;;  %v4808_v32 = vrot.slane %v4806_v40, 1 }
0x321d   : > { %v4809_v42 = vsel %vm4797_vm10, %v4804_v41, %v4808_v32 }
0x321e   : > { %5209 = vmatmul.mubr.msk.bf16.vlgmr.msra.gmra.mrb[80].mxu0 %vm917_vm1, %v4809_v42 }
0x32f1   : > { %v4867_v8 = vpop.f32.mrb[80].mxu0 }
0x32f2   : > { %v4868_v21 = vadd.f32 %v4867_v8, %v4790_v43  ;;  %v4869_v10 = vpop.f32.mrb[81].mxu0 }
0x32f3   : > { %v4870_v27 = vadd.f32 %v4869_v10, %v4794_v61  ;;  %v4871_v7 = vpop.f32.mrb[82].mxu0 }
0x32f4   : > { %4876 = vst [vmem:[%s791_s23] sm:$0xff] %v4868_v21  ;;  %v4872_v38 = vadd.f32 %v4871_v7, %v4790_v43  ;;  %v4873_v6 = vpop.f32.mrb[83].mxu0 }
0x32f5   : > { %4877 = vst [vmem:[%s791_s23 + $0x8] sm:$0xff] %v4870_v27  ;;  %v4874_v11 = vadd.f32 %v4873_v6, %v4794_v61 }
0x32f6   : > { %4878 = vst [vmem:[%s791_s23 + $0x10] sm:$0xff] %v4872_v38 }
0x32f7   : > { %4879 = vst [vmem:[%s791_s23 + $0x18] sm:$0xff] %v4874_v11 }
0x32f8 PF: > { %s7188_s13 = sld [smem:[#allocation2_spill]] }
0x32fe   : > { %s34_s5 = sadd.s32 1, %s7188_s13  }
0x32ff   : > { %p31_p4 = scmp.ge.s32.totalorder %s34_s5, 4  }
0x3301   :  { %33 = sbr.rel (!%p31_p4) target bundleno = 17 (0x11), region = 183 }

// kernel: forward.2
= control target key start
LH: loop header
LB: loop body
LE: loop exit
PB: predicated region body
PF: predicated region fallthrough
CT: control target
= control target key end

     0   :  { %s9914_s0 = inlined_call_operand.vmem [shape: f32[2,16,192], index: 0, kind: input, shape index: {}]   ;;  %s9915_s1 = inlined_call_operand.vmem [shape: bf16[192,64], index: 1, kind: input, shape index: {}]   ;;  %s9916_s2 = inlined_call_operand.vmem [shape: f32[1,64], index: 2, kind: input, shape index: {}]   ;;  %s9917_s3 = inlined_call_operand.vmem [shape: f32[1,16,64], index: 3, kind: input, shape index: {}]   ;;  %s9918_s4 = inlined_call_operand.vmem [shape: f32[1,1,64], index: 4, kind: input, shape index: {}]   ;;  %s9919_s5 = inlined_call_operand.vmem [shape: f32[4,1,64], index: 5, kind: input, shape index: {}]   ;;  %s9920_s6 = inlined_call_operand.vmem [shape: f32[4,1,64], index: 6, kind: input, shape index: {}]   ;;  %s9921_s7 = inlined_call_operand.vmem [shape: bf16[4,64,192], index: 7, kind: input, shape index: {}]   ;;  %s9922_s8 = inlined_call_operand.vmem [shape: f32[4,1,192], index: 8, kind: input, shape index: {}]   ;;  %s9923_s9 = inlined_call_operand.vmem [shape: bf16[4,64,64], index: 9, kind: input, shape index: {}]   ;;  %s9924_s10 = inlined_call_operand.vmem [shape: f32[4,1,64], index: 10, kind: input, shape index: {}]   ;;  %s9925_s11 = inlined_call_operand.vmem [shape: f32[4,1,64], index: 11, kind: input, shape index: {}]   ;;  %s9926_s12 = inlined_call_operand.vmem [shape: f32[4,1,64], index: 12, kind: input, shape index: {}]   ;;  %s9927_s13 = inlined_call_operand.vmem [shape: bf16[4,64,256], index: 13, kind: input, shape index: {}]   ;;  %s9928_s14 = inlined_call_operand.vmem [shape: f32[4,1,256], index: 14, kind: input, shape index: {}]   ;;  %s9929_s15 = inlined_call_operand.vmem [shape: bf16[4,256,64], index: 15, kind: input, shape index: {}]   ;;  %s9930_s16 = inlined_call_operand.vmem [shape: f32[4,1,64], index: 16, kind: input, shape index: {}]   ;;  %s9931_s17 = inlined_call_operand.vmem [shape: f32[2,17,64], index: 17, kind: output, shape index: {0}]   ;;  %s9932_s18 = inlined_call_operand.vmem [shape: f32[2,17,64], index: 18, kind: output, shape index: {1}]   ;;  %s9933_s19 = inlined_call_operand.vmem [shape: f32[2,17,64], index: 19, kind: output, shape index: {2}]  }
   0x1   :  { %9953 = sst [smem:[#allocation3_spill]] %s9914_s0  ;;  %s8353_s0 = smov 0  }
   0x2   :  { %9954 = sst [smem:[#allocation4_spill]] %s9915_s1 }
   0x3   :  { %9955 = sst [smem:[#allocation5_spill]] %s9916_s2 }
   0x4   :  { %9956 = sst [smem:[#allocation6_spill]] %s9917_s3 }
   0x5   :  { %9957 = sst [smem:[#allocation7_spill]] %s9918_s4 }
   0x6   :  { %9958 = sst [smem:[#allocation8_spill]] %s9932_s18 }
   0x7   :  { %9959 = sst [smem:[#allocation9_spill]] %s9933_s19 }
   0x8 LB: > { %9960 = sst [smem:[#allocation2_spill]] %s8243_s0  ;;  %s6609_s30 = sadd.s32 4294967295, %s8243_s0   ;;  %s8243_s0 = sphi %s8353_s0, %s30_s0  }
   0x9   : > { %p6613_p0 = scmp.ge.s32.totalorder %s8243_s0, 1  ;;  %p542_p1 = scmp.lt.s32.totalorder %s8243_s0, 3 }
   0xb   : > { %p543_p2 = pnand %p6613_p0, %p542_p1 }
   0xc   : > { %s9961_s1 = sld [smem:[#allocation4_spill]] (!%p543_p2)  ;;  %v8245_v1 = vmov (!%p543_p2), 0   ;;  %p608_p3 = scmp.lt.s32.totalorder (!%p543_p2), %s6609_s30, 1  ;;  %vm738_vm0 = vcmask (!%p543_p2), 523264   ;;  %vm790_vm1 = vcmask (!%p543_p2), 1040384   ;;  %vm806_vm2 = vcmask (!%p543_p2), 516096  }
   0xd   : > { %546 = sbr.rel (%p543_p2) target bundleno = 13455 (0x348f), region = 88  ;;  %742 = vmatprep.subr.bf16.mxu0 (!%p543_p2), %v8245_v1  ;;  %968 = vmatprep.mubr.bf16.mxu1 (!%p543_p2), %v8245_v1  ;;  %s9962_s27 = sld [smem:[#allocation3_spill]] (!%p543_p2)  ;;  %v7773_v53 = vld [vmem:[%s9921_s7 + $0x4] ss:$8 sps:$4 sm:$0xff] (!%p543_p2)   ;;  %v7775_v54 = vld [vmem:[%s9921_s7] ss:$8 sps:$4 sm:$0xff] (!%p543_p2)  }
   0xe   : > { %s9963_s26 = sld [smem:[#allocation5_spill]] (!%p543_p2)  ;;  %s9964_s20 = sld [smem:[#allocation6_spill]] (!%p543_p2)  ;;  %v7776_v55 = vld [vmem:[%s9921_s7 + $0x14] ss:$8 sps:$4 sm:$0xff] (!%p543_p2)   ;;  %936 = vmatprep.subr.bf16.mxu1 (!%p543_p2), %v7773_v53  ;;  %v7778_v56 = vld [vmem:[%s9921_s7 + $0x10] ss:$8 sps:$4 sm:$0xff] (!%p543_p2)  }
   0xf   : > { %s9965_s4 = sld [smem:[#allocation7_spill]] (!%p543_p2)  ;;  %937 = vmatpush1.bf16.msra.mxu1 (!%p543_p2), %v7775_v54  ;;  %v7779_v57 = vld [vmem:[%s9921_s7 + $0x24] ss:$8 sps:$4 sm:$0xff] (!%p543_p2)   ;;  %v7781_v58 = vld [vmem:[%s9921_s7 + $0x20] ss:$8 sps:$4 sm:$0xff] (!%p543_p2)   ;;  %vm1000_vm3 = vcmask (!%p543_p2), 130048  }
  0x10   : > { %938 = vmatprep.subr.bf16.mxu1 (!%p543_p2), %v7776_v55  ;;  %v7782_v59 = vld [vmem:[%s9921_s7 + $0x34] ss:$8 sps:$4 sm:$0xff] (!%p543_p2)   ;;  %v7784_v60 = vld [vmem:[%s9921_s7 + $0x30] ss:$8 sps:$4 sm:$0xff] (!%p543_p2)   ;;  %s9946_s23 = smov (!%p543_p2), 64   ;;  %vm1061_vm4 = vcmask (!%p543_p2), 138240  }
  0x11   : > { %vm1068_vm5 = vcmask (!%p543_p2), 131072   ;;  %s9948_s24 = smov (!%p543_p2), 48   ;;  %s9942_s3 = smov (!%p543_p2), 32   ;;  %vm1697_vm6 = vcmask (!%p543_p2), 261120   ;;  %vm1701_vm7 = vcmask (!%p543_p2), 392192  }
  0x12   : > { %v7761_v0 = vld [vmem:[%s9961_s1] sm:$0xff] (!%p543_p2)   ;;  %v7762_v2 = vld [vmem:[%s9961_s1 + $0x8] sm:$0xff] (!%p543_p2)   ;;  %v7763_v3 = vld [vmem:[%s9961_s1 + $0x10] sm:$0xff] (!%p543_p2)   ;;  %s9936_s29 = smov (!%p543_p2), 80   ;;  %s9968_s22 = smov (!%p543_p2), 96  }
  0x13   : > { %743 = vmatpush1.bf16.msra.mxu0 (!%p543_p2), %v7761_v0  ;;  %v7764_v4 = vld [vmem:[%s9961_s1 + $0x18] sm:$0xff] (!%p543_p2)   ;;  %v7765_v7 = vld [vmem:[%s9961_s1 + $0x20] sm:$0xff] (!%p543_p2)   ;;  %v7766_v9 = vld [vmem:[%s9961_s1 + $0x28] sm:$0xff] (!%p543_p2)   ;;  %939 = vmatpush1.bf16.msra.mxu1 (!%p543_p2), %v7778_v56  ;;  %s9969_s2 = smov (!%p543_p2), 32   ;;  %s9970_s21 = smov (!%p543_p2), 16  }
  0x14   : > { %744 = vmatprep.subr.bf16.mxu0 %v8245_v1  ;;  %s9977_s30 = smov (!%p608_p3, %s6609_s30), 1  ;;  %v7767_v10 = vld [vmem:[%s9961_s1 + $0x30] sm:$0xff]   ;;  %v7768_v11 = vld [vmem:[%s9961_s1 + $0x38] sm:$0xff]   ;;  %v7769_v12 = vld [vmem:[%s9961_s1 + $0x40] sm:$0xff]   ;;  %940 = vmatprep.subr.bf16.mxu1 %v7779_v57 }
  0x15   : > { %s7083_s25 = sshll.u32 %s9977_s30, 5  ;;  %v7770_v13 = vld [vmem:[%s9961_s1 + $0x48] sm:$0xff]   ;;  %v7771_v14 = vld [vmem:[%s9961_s1 + $0x50] sm:$0xff]   ;;  %v7772_v15 = vld [vmem:[%s9961_s1 + $0x58] sm:$0xff]  }
  0x16   : > { %s8380_s28 = scalar_lea.vmem %s9962_s27, %s7083_s25  ;;  %v6619_v19 = vld [vmem:[%s9963_s26] ss:$0 sm:$0xff]  ;;  %v784_v25 = vld [vmem:[%s9964_s20 + $0x8] sm:$0xff]  ;;  %s9944_s25 = smov 112  }
  0x17   : > { %745 = vmatpush1.bf16.msra.mxu0 %v7762_v2  ;;  %v630_v5 = vld [vmem:[%s8380_s28 + $0x8] sm:$0xff]  ;;  %v632_v6 = vld [vmem:[%s8380_s28 + $0x18] sm:$0xff]  ;;  %v629_v16 = vld [vmem:[%s8380_s28] sm:$0xff]  ;;  %941 = vmatpush1.bf16.msra.mxu1 %v7781_v58  ;;  %s9938_s26 = smov 96   ;;  %s9940_s27 = smov 16  }
  0x18   : > { %746 = vmatprep.subr.bf16.mxu0 %v8245_v1  ;;  %v659_v8 = vpack.c.bf16 %v632_v6, %v630_v5  ;;  %v631_v17 = vld [vmem:[%s8380_s28 + $0x10] sm:$0xff]  ;;  %v783_v21 = vld [vmem:[%s9964_s20] sm:$0xff]  ;;  %942 = vmatprep.subr.bf16.mxu1 %v7782_v59  ;;  %v8521_v59 = vsel %vm790_vm1, 65535, %v8245_v1  ;;  %s9971_s28 = smov 80  }
  0x19   : > { %v658_v18 = vpack.c.bf16 %v631_v17, %v629_v16  ;;  %v787_v29 = vld [vmem:[%s9965_s4] sm:$0x1] }
  0x1a   : > { %6632 = vmatprep.mubr.msk.bf16.mxu0 %vm738_vm0, %v659_v8 }
  0x1b   : > { %747 = vmatpush1.bf16.msra.mxu0 %v7763_v3  ;;  %943 = vmatpush1.bf16.msra.mxu1 %v7784_v60 }
  0x1c   : > { %748 = vmatprep.subr.bf16.mxu0 %v8245_v1 }
  0x1f   : > { %749 = vmatpush1.bf16.msra.mxu0 %v7764_v4 }
  0x20   : > { %750 = vmatprep.subr.bf16.mxu0 %v8245_v1 }
  0x23   : > { %751 = vmatpush1.bf16.msra.mxu0 %v7765_v7 }
  0x24   : > { %752 = vmatprep.subr.bf16.mxu0 %v8245_v1 }
  0x27   : > { %753 = vmatpush1.bf16.msra.mxu0 %v7766_v9  ;;  %v6633_v9 = vld [vmem:[%s9919_s5] ss:$0 sm:$0xff] }
  0x28   : > { %754 = vmatprep.subr.bf16.mxu0 %v8245_v1 }
  0x2b   : > { %755 = vmatpush1.bf16.msra.mxu0 %v7767_v10 }
  0x2c   : > { %756 = vmatprep.subr.bf16.mxu0 %v8245_v1 }
  0x2f   : > { %757 = vmatpush1.bf16.msra.mxu0 %v7768_v11 }
  0x30   : > { %758 = vmatprep.subr.bf16.mxu0 %v8245_v1 }
  0x33   : > { %759 = vmatpush1.bf16.msra.mxu0 %v7769_v12 }
  0x34   : > { %760 = vmatprep.subr.bf16.mxu0 %v8245_v1 }
  0x37   : > { %761 = vmatpush1.bf16.msra.mxu0 %v7770_v13 }
  0x38   : > { %762 = vmatprep.subr.bf16.mxu0 %v8245_v1 }
  0x3b   : > { %763 = vmatpush1.bf16.msra.mxu0 %v7771_v14  ;;  %v6634_v14 = vld [vmem:[%s9920_s6] ss:$0 sm:$0xff] }
  0x3c   : > { %764 = vmatprep.subr.bf16.mxu0 %v8245_v1 }
  0x3f   : > { %765 = vmatpush1.bf16.msra.mxu0 %v7772_v15 }
  0x42   : > { %775 = vmatmul.mubr.bf16.vlgmr.msra.gmra.mrb[0].mxu0 %v658_v18 }
 0x115   : > { %v776_v20 = vpop.f32.mrb[0].mxu0 }
 0x116   : > { %v777_v22 = vadd.f32 %v6619_v19, %v776_v20  ;;  %v778_v23 = vpop.f32.mrb[1].mxu0 }
 0x117   : > { %v779_v24 = vpop.f32.mrb[2].mxu0  ;;  %v880_v23 = vlaneseq }
 0x118   : > { %v785_v26 = vadd.f32 %v783_v21, %v777_v22  ;;  %v780_v27 = vadd.f32 %v6619_v19, %v779_v24  ;;  %v781_v28 = vpop.f32.mrb[3].mxu0 }
 0x119   : > { %v881_v24 = vshrl.u32 %v880_v23, 7 }
 0x11a   : > { %v791_v30 = vrot.slane %v785_v26, 7  ;;  %v786_v31 = vadd.f32 %v784_v25, %v780_v27  ;;  %v867_v26 = vld [vmem:[%s9922_s8] sm:$0x3] }
 0x11b   : > { %v8489_v25 = vsub.s32 0, %v881_v24  ;;  %v8494_v27 = vsub.s32 1, %v881_v24 }
 0x11c   : > { %v8435_v32 = vrot.slane %v786_v31, 7  ;;  %v8438_v33 = vsel %vm790_vm1, %v787_v29, %v791_v30 }
 0x11d   : > { %v800_v34 = vsel %vm738_vm0, %v8438_v33, 0.0  ;;  %v883_v28 = vrot.slane %v867_v26, %v8489_v25 }
 0x11e   : > { %801 = vadd.xlane.f32.xlu0 %v800_v34  ;;  %v807_v35 = vsel %vm806_vm2, %v8435_v32, 0.0  ;;  %v8446_v36 = vsel %vm790_vm1, %v791_v30, %v8435_v32  ;;  %v887_v30 = vrot.slane %v867_v26, %v8494_v27 }
 0x11f   : > { %808 = vadd.xlane.f32.xlu1 %v807_v35  ;;  %v803_v37 = vsel %vm738_vm0, %v8446_v36, 0.0 }
 0x122   : > { %804 = vadd.xlane.f32.xlu0 %v803_v37 }
 0x1ab   : > { %v802_v38 = vpop.xlane.xlu0 %801 }
 0x1ac   : > { %v811_v39 = vmul.f32 0.015625, %v802_v38  ;;  %v809_v40 = vpop.xlane.xlu1 %808 }
 0x1ad   : > { %v813_v41 = vmul.f32 0.015625, %v809_v40 }
 0x1ae   : > { %v814_v42 = vsub.f32 %v8438_v33, %v811_v39 }
 0x1af   : > { %v816_v43 = vsub.f32 %v8435_v32, %v813_v41  ;;  %v805_v44 = vpop.xlane.xlu0 %804 }
 0x1b0   : > { %v812_v45 = vmul.f32 0.015625, %v805_v44  ;;  %v817_v46 = vmul.f32 %v814_v42, %v814_v42 }
 0x1b1   : > { %v819_v49 = vmul.f32 %v816_v43, %v816_v43 }
 0x1b2   : > { %v815_v47 = vsub.f32 %v8446_v36, %v812_v45  ;;  %v820_v48 = vsel %vm738_vm0, %v817_v46, 0.0 }
 0x1b3   : > { %821 = vadd.xlane.f32.xlu1 %v820_v48  ;;  %v826_v51 = vsel %vm806_vm2, %v819_v49, 0.0 }
 0x1b4   : > { %v818_v50 = vmul.f32 %v815_v47, %v815_v47 }
 0x1b6   : > { %v823_v52 = vsel %vm738_vm0, %v818_v50, 0.0 }
 0x1b7   : > { %827 = vadd.xlane.f32.xlu1 %v826_v51  ;;  %824 = vadd.xlane.f32.xlu0 %v823_v52 }
 0x240   : > { %v822_v61 = vpop.xlane.xlu1 %821 }
 0x241   : > { %v829_v62 = vmul.f32 0.015625, %v822_v61 }
 0x243   : > { %v832_v63 = vadd.f32 1e-06, %v829_v62 }
 0x244   : > { %v828_v0 = vpop.xlane.xlu1 %827  ;;  %v825_v2 = vpop.xlane.xlu0 %824 }
 0x245   : > { %7949 = vrsqrt.f32 %v832_v63  ;;  %v831_v3 = vmul.f32 0.015625, %v828_v0  ;;  %v830_v4 = vmul.f32 0.015625, %v825_v2 }
 0x247   : > { %v834_v5 = vadd.f32 1e-06, %v831_v3  ;;  %v833_v6 = vadd.f32 1e-06, %v830_v4 }
 0x249   : > { %7951 = vrsqrt.f32 %v834_v5 }
 0x24a   : > { %7953 = vrsqrt.f32 %v833_v6 }
 0x24f   : > { %v7950_v7 = vpop.eup %7949 }
 0x250   : > { %v838_v8 = vmul.f32 %v7950_v7, %v814_v42 }
 0x252   : > { %v847_v13 = vmul.f32 %v6633_v9, %v838_v8 }
 0x253   : > { %v7952_v10 = vpop.eup %7951 }
 0x254   : > { %v7954_v11 = vpop.eup %7953  ;;  %v840_v16 = vmul.f32 %v7952_v10, %v816_v43  ;;  %v856_v17 = vadd.f32 %v6634_v14, %v847_v13 }
 0x255   : > { %v839_v12 = vmul.f32 %v7954_v11, %v815_v47 }
 0x256   : > { %v849_v20 = vmul.f32 %v6633_v9, %v840_v16 }
 0x257   : > { %v848_v15 = vmul.f32 %v6633_v9, %v839_v12 }
 0x258   : > { %v858_v21 = vadd.f32 %v6634_v14, %v849_v20 }
 0x259   : > { %v857_v18 = vadd.f32 %v6634_v14, %v848_v15 }
 0x25a   : > { %v878_v22 = vpack.c.bf16 %v858_v21, %v858_v21 }
 0x25b   : > { %v877_v19 = vpack.c.bf16 %v857_v18, %v856_v17 }
 0x25d   : > { %6643 = vmatmul.mubr.msk.bf16.vlgmr.msra.gmra.mrb[0].mxu1 %vm738_vm0, %v877_v19 }
 0x25e   : > { %978 = vmatprep.mubr.bf16.mxu1 %v8245_v1 }
 0x265   : > { %6644 = vmatmul.mubr.msk.bf16.gmra.mrb[4].mxu1 %vm738_vm0, %v878_v22 }
 0x330   : > { %v970_v29 = vpop.f32.mrb[0].mxu1 }
 0x331   : > { %v971_v31 = vadd.f32 %v970_v29, %v883_v28  ;;  %v972_v34 = vpop.f32.mrb[1].mxu1 }
 0x332   : > { %v974_v35 = vpop.f32.mrb[2].mxu1  ;;  %v973_v39 = vadd.f32 %v972_v34, %v887_v30 }
 0x333   : > { %v975_v37 = vadd.f32 %v974_v35, %v883_v28  ;;  %v976_v38 = vpop.f32.mrb[3].mxu1  ;;  %v987_v41 = vmul.f32 0.25, %v971_v31 }
 0x334   : > { %v977_v40 = vadd.f32 %v976_v38, %v887_v30 }
 0x335   : > { %v988_v42 = vmul.f32 0.25, %v975_v37  ;;  %v8498_v43 = vpack.c.bf16 %v975_v37, %v971_v31 }
 0x336   : > { %v8500_v44 = vpack.c.bf16 %v977_v40, %v973_v39 }
 0x337   : > { %v8502_v45 = vpack.c.bf16 %v988_v42, %v987_v41  ;;  %996 = vrot.lane.b32.xlu0 %v8498_v43, %s9946_s23 }
 0x338   : > { %v980_v46 = vpop.f32.mrb[4].mxu1 }
 0x339   : > { %v981_v47 = vadd.f32 %v980_v46, %v883_v28  ;;  %v982_v48 = vpop.f32.mrb[5].mxu1  ;;  %7352 = vmatprep.mubr.msk.bf16.mxu1 %vm1000_vm3, %v8502_v45 }
 0x33a   : > { %v984_v49 = vpop.f32.mrb[6].mxu1  ;;  %v983_v55 = vadd.f32 %v982_v48, %v887_v30 }
 0x33b   : > { %v8508_v50 = vpack.c.bf16 %v981_v47, %v981_v47  ;;  %v985_v51 = vpop.f32.mrb[7].mxu1  ;;  %v989_v57 = vmul.f32 0.25, %v981_v47 }
 0x33c   : > { %v8517_v58 = vpack.c.bf16 %v983_v55, %v983_v55 }
 0x33d   : > { %998 = vrot.lane.b32.xlu1 %v8508_v50, %s9946_s23  ;;  %v8523_v60 = vpack.c.bf16 %v989_v57, %v989_v57 }
 0x33e   : > { %v1109_v61 = vand.u32 %v8521_v59, %v8517_v58 }
 0x3a9   : > { %v997_v52 = vpop.permute.xlu0 %996 }
 0x3aa   : > { %7652 = vmatprep.subr.msk.bf16.mxu1 %vm1000_vm3, %v997_v52  ;;  %v1008_v53 = vsel %vm1000_vm3, %v997_v52, 0 }
 0x3ab   : > { %7349 = vmatpush3.bf16.xpose.msra.mxu1 %v1008_v53 }
 0x3af   : > { %v999_v54 = vpop.permute.xlu1 %998 }
 0x3b0   : > { %7653 = vmatprep.subr.msk.bf16.mxu1 %vm1000_vm3, %v999_v54  ;;  %v1011_v56 = vsel %vm1000_vm3, %v999_v54, 0 }
 0x3b3   : > { %7351 = vmatpush3.bf16.xpose.msra.mxu1 %v1011_v56 }
 0x3b4   : > { %7356 = vmatprep.subr.bf16.mxu1 %v8500_v44 }
 0x3ba   : > { %7353 = vmatmul.mubr.msk.bf16.vlgmr.msra.gmra.mrb[8].mxu1 %vm1000_vm3, %v8523_v60 }
 0x3bb   : > { %7357 = vmatpush3.bf16.msra.mxu1 %v8500_v44 }
 0x3bc   : > { %7358 = vmatprep.subr.bf16.mxu1 %v1109_v61 }
 0x3bf   : > { %7359 = vmatpush3.bf16.msra.mxu1 %v1109_v61 }
 0x48d   : > { %v7354_v62 = vpop.f32.mrb[8].mxu1 }
 0x48e   : > { %v1047_v63 = vpop.f32.mrb[9].mxu1  ;;  %v1069_v5 = vsel %vm1068_vm5, %v7354_v62, -inf }
 0x48f   : > { %v7355_v0 = vpop.f32.mrb[10].mxu1  ;;  %v1062_v2 = vsel %vm1061_vm4, %v1047_v63, -inf }
 0x490   : > { %1063 = vmax.xlane.f32.xlu1 %v1062_v2  ;;  %v1050_v3 = vpop.f32.mrb[11].mxu1 }
 0x491   : > { %v1065_v4 = vsel %vm1061_vm4, %v1050_v3, -inf }
 0x492   : > { %1066 = vmax.xlane.f32.xlu0 %v1065_v4 }
 0x496   : > { %1070 = vmax.xlane.f32.xlu0 %v1069_v5 }
 0x51d   : > { %v1064_v6 = vpop.xlane.xlu1 %1063 }
 0x51e   : > { %v1072_v7 = vsub.f32 %v1047_v63, %v1064_v6 }
 0x51f   : > { %v1067_v8 = vpop.xlane.xlu0 %1066 }
 0x520   : > { %v1075_v9 = vmul.f32 1.442695, %v1072_v7  ;;  %v1073_v10 = vsub.f32 %v1050_v3, %v1067_v8 }
 0x522   : > { %7955 = vpow2.f32 %v1075_v9  ;;  %v1077_v11 = vmul.f32 1.442695, %v1073_v10 }
 0x523   : > { %v1071_v12 = vpop.xlane.xlu0 %1070 }
 0x524   : > { %7957 = vpow2.f32 %v1077_v11  ;;  %v1074_v13 = vsub.f32 %v7354_v62, %v1071_v12 }
 0x526   : > { %v1079_v14 = vmul.f32 1.442695, %v1074_v13 }
 0x528   : > { %7959 = vpow2.f32 %v1079_v14 }
 0x52c   : > { %v7956_v15 = vpop.eup %7955 }
 0x52d   : > { %v1081_v16 = vsel %vm1061_vm4, %v7956_v15, 0.0 }
 0x52e   : > { %v7958_v17 = vpop.eup %7957  ;;  %1082 = vadd.xlane.f32.xlu1 %v1081_v16 }
 0x52f   : > { %v1084_v18 = vsel %vm1061_vm4, %v7958_v17, 0.0 }
 0x530   : > { %1085 = vadd.xlane.f32.xlu0 %v1084_v18 }
 0x532   : > { %v7960_v19 = vpop.eup %7959 }
 0x533   : > { %v1087_v20 = vsel %vm1068_vm5, %v7960_v19, 0.0 }
 0x534   : > { %1088 = vadd.xlane.f32.xlu1 %v1087_v20 }
 0x545   : > { %1167 = vrot.lane.b32.xlu1 %v8508_v50, %s9948_s24 }
 0x546   : > { %1165 = vrot.lane.b32.xlu0 %v8498_v43, %s9948_s24 }
 0x549   : > { %1161 = vrot.lane.b32.xlu1 %v8502_v45, %s9944_s25 }
 0x54a   : > { %1163 = vrot.lane.b32.xlu0 %v8523_v60, %s9944_s25 }
 0x54d   : > { %1332 = vrot.lane.b32.xlu1 %v8498_v43, %s9942_s3 }
 0x54e   : > { %1328 = vrot.lane.b32.xlu0 %v8502_v45, %s9938_s26 }
 0x551   : > { %1334 = vrot.lane.b32.xlu1 %v8508_v50, %s9942_s3 }
 0x555   : > { %1330 = vrot.lane.b32.xlu1 %v8523_v60, %s9938_s26 }
 0x5bb   : > { %v1083_v21 = vpop.xlane.xlu1 %1082 }
 0x5bc   : > { %7961 = vrcp.f32 %v1083_v21 }
 0x5bd   : > { %v1086_v22 = vpop.xlane.xlu0 %1085 }
 0x5be   : > { %7963 = vrcp.f32 %v1086_v22 }
 0x5c1   : > { %v1089_v23 = vpop.xlane.xlu1 %1088  ;;  %v1166_v24 = vpop.permute.xlu0 %1165 }
 0x5c2   : > { %7965 = vrcp.f32 %v1089_v23  ;;  %7654 = vmatprep.subr.msk.bf16.mxu1 %vm1000_vm3, %v1166_v24  ;;  %v1176_v40 = vsel %vm1000_vm3, %v1166_v24, 0 }
 0x5c5   : > { %v1168_v31 = vpop.permute.xlu1 %1167  ;;  %v1164_v46 = vpop.permute.xlu0 %1163 }
 0x5c6   : > { %v7962_v26 = vpop.eup %7961  ;;  %v1179_v41 = vsel %vm1000_vm3, %v1168_v31, 0 }
 0x5c7   : > { %v1093_v29 = vmul.f32 %v7962_v26, %v7956_v15 }
 0x5c8   : > { %v7964_v28 = vpop.eup %7963 }
 0x5c9   : > { %v1094_v30 = vmul.f32 %v7964_v28, %v7958_v17  ;;  %v1162_v39 = vpop.permute.xlu1 %1161  ;;  %v1329_v47 = vpop.permute.xlu0 %1328 }
 0x5cb   : > { %v1096_v34 = vpack.c.bf16 %v1094_v30, %v1093_v29 }
 0x5cc   : > { %v7966_v35 = vpop.eup %7965 }
 0x5cd   : > { %7360 = vmatprep.mubr.msk.bf16.mxu1 %vm1061_vm4, %v1096_v34  ;;  %v1095_v37 = vmul.f32 %v7966_v35, %v7960_v19  ;;  %v1333_v42 = vpop.permute.xlu1 %1332 }
 0x5ce   : > { %v1343_v48 = vsel %vm1000_vm3, %v1333_v42, 0 }
 0x5cf   : > { %v1097_v38 = vpack.c.bf16 %v1095_v37, %v1095_v37 }
 0x5d1   : > { %7361 = vmatmul.mubr.msk.bf16.vlgmr.msra.gmra.mrb[12].mxu1 %vm1061_vm4, %v1097_v38  ;;  %v1335_v49 = vpop.permute.xlu1 %1334 }
 0x5d2   : > { %7365 = vmatpush3.bf16.xpose.msra.mxu1 %v1176_v40  ;;  %7368 = vmatprep.mubr.msk.bf16.mxu1 %vm1000_vm3, %v1162_v39  ;;  %v1346_v51 = vsel %vm1000_vm3, %v1335_v49, 0 }
 0x5d3   : > { %7655 = vmatprep.subr.msk.bf16.mxu1 %vm1000_vm3, %v1168_v31 }
 0x5d5   : > { %v1331_v52 = vpop.permute.xlu1 %1330 }
 0x5da   : > { %7367 = vmatpush3.bf16.xpose.msra.mxu1 %v1179_v41 }
 0x5db   : > { %7656 = vmatprep.subr.msk.bf16.mxu1 %vm1000_vm3, %v1333_v42 }
 0x5e1   : > { %7369 = vmatmul.mubr.msk.bf16.vlgmr.msra.gmra.mrb[16].mxu1 %vm1000_vm3, %v1164_v46 }
 0x5e2   : > { %7381 = vmatpush3.bf16.xpose.msra.mxu1 %v1343_v48  ;;  %7384 = vmatprep.mubr.msk.bf16.mxu1 %vm1000_vm3, %v1329_v47 }
 0x5e3   : > { %7657 = vmatprep.subr.msk.bf16.mxu1 %vm1000_vm3, %v1335_v49 }
 0x5ea   : > { %7383 = vmatpush3.bf16.xpose.msra.mxu1 %v1346_v51 }
 0x5f1   : > { %7385 = vmatmul.mubr.msk.bf16.vlgmr.msra.gmra.mrb[20].mxu1 %vm1000_vm3, %v1331_v52 }
 0x6a4   : > { %v8566_v53 = vpop.f32.mrb[12].mxu1 }
 0x6a5   : > { %v8568_v54 = vpop.f32.mrb[13].mxu1 }
 0x6a6   : > { %v7363_v55 = vpop.f32.mrb[14].mxu1 }
 0x6a7   : > { %v8570_v56 = vpop.f32.mrb[15].mxu1 }
 0x6b4   : > { %v8572_v57 = vpop.f32.mrb[16].mxu1 }
 0x6b5   : > { %v8574_v61 = vpop.f32.mrb[17].mxu1 }
 0x6b6   : > { %v7371_v62 = vpop.f32.mrb[18].mxu1  ;;  %v1229_v23 = vsel %vm1061_vm4, %v8574_v61, -inf }
 0x6b7   : > { %v8576_v63 = vpop.f32.mrb[19].mxu1 }
 0x6b8   : > { %v1232_v24 = vsel %vm1061_vm4, %v8576_v63, -inf }
 0x6c4   : > { %v7386_v0 = vpop.f32.mrb[20].mxu1 }
 0x6c5   : > { %v1382_v2 = vpop.f32.mrb[21].mxu1  ;;  %v1402_v7 = vsel %vm1068_vm5, %v7386_v0, -inf }
 0x6c6   : > { %v7387_v3 = vpop.f32.mrb[22].mxu1  ;;  %v1396_v4 = vsel %vm1061_vm4, %v1382_v2, -inf }
 0x6c7   : > { %1397 = vmax.xlane.f32.xlu0 %v1396_v4  ;;  %v1385_v5 = vpop.f32.mrb[23].mxu1 }
 0x6c8   : > { %v1399_v6 = vsel %vm1061_vm4, %v1385_v5, -inf }
 0x6c9   : > { %1400 = vmax.xlane.f32.xlu1 %v1399_v6 }
 0x6cb   : > { %1403 = vmax.xlane.f32.xlu0 %v1402_v7 }
 0x754   : > { %v1398_v8 = vpop.xlane.xlu0 %1397 }
 0x755   : > { %v1405_v9 = vsub.f32 %v1382_v2, %v1398_v8 }
 0x756   : > { %v1401_v10 = vpop.xlane.xlu1 %1400 }
 0x757   : > { %v1408_v11 = vmul.f32 1.442695, %v1405_v9  ;;  %v1406_v12 = vsub.f32 %v1385_v5, %v1401_v10 }
 0x758   : > { %v1404_v13 = vpop.xlane.xlu0 %1403 }
 0x759   : > { %7967 = vpow2.f32 %v1408_v11  ;;  %v1410_v14 = vmul.f32 1.442695, %v1406_v12  ;;  %v1407_v15 = vsub.f32 %v7386_v0, %v1404_v13 }
 0x75b   : > { %7969 = vpow2.f32 %v1410_v14  ;;  %v1412_v16 = vmul.f32 1.442695, %v1407_v15 }
 0x75d   : > { %7971 = vpow2.f32 %v1412_v16 }
 0x763   : > { %v7968_v17 = vpop.eup %7967 }
 0x764   : > { %v1414_v18 = vsel %vm1061_vm4, %v7968_v17, 0.0 }
 0x765   : > { %v7970_v19 = vpop.eup %7969  ;;  %1415 = vadd.xlane.f32.xlu0 %v1414_v18 }
 0x766   : > { %v1417_v22 = vsel %vm1061_vm4, %v7970_v19, 0.0 }
 0x767   : > { %v7972_v20 = vpop.eup %7971 }
 0x768   : > { %v1420_v21 = vsel %vm1068_vm5, %v7972_v20, 0.0 }
 0x769   : > { %1421 = vadd.xlane.f32.xlu1 %v1420_v21  ;;  %1418 = vadd.xlane.f32.xlu0 %v1417_v22 }
 0x77a   : > { %1433 = vrot.lane.b32.xlu1 %v8517_v58, %s9938_s26 }
 0x77e   : > { %1497 = vrot.lane.b32.xlu1 %v8498_v43, %s9940_s27  ;;  %v1235_v43 = vsel %vm1068_vm5, %v8572_v57, -inf }
 0x77f   : > { %1431 = vrot.lane.b32.xlu0 %v8500_v44, %s9938_s26  ;;  %s9972_s26 = smov 48  }
 0x782   : > { %1499 = vrot.lane.b32.xlu1 %v8508_v50, %s9940_s27 }
 0x783   : > { %1493 = vrot.lane.b32.xlu0 %v8502_v45, %s9936_s29 }
 0x786   : > { %1495 = vrot.lane.b32.xlu1 %v8523_v60, %s9936_s29 }
 0x7a2   : > { %1230 = vmax.xlane.f32.xlu0 %v1229_v23 }
 0x7a6   : > { %1236 = vmax.xlane.f32.xlu0 %v1235_v43 }
 0x7aa   : > { %1233 = vmax.xlane.f32.xlu1 %v1232_v24 }
 0x7f2   : > { %v1416_v50 = vpop.xlane.xlu0 %1415 }
 0x7f3   : > { %7973 = vrcp.f32 %v1416_v50 }
 0x7f6   : > { %v1419_v26 = vpop.xlane.xlu0 %1418  ;;  %v1422_v28 = vpop.xlane.xlu1 %1421 }
 0x7f7   : > { %7975 = vrcp.f32 %v1419_v26 }
 0x7f8   : > { %7977 = vrcp.f32 %v1422_v28 }
 0x7fa   : > { %v1432_v45 = vpop.permute.xlu0 %1431  ;;  %v1434_v60 = vpop.permute.xlu1 %1433 }
 0x7fb   : > { %v1443_v29 = vand.u32 %v1434_v60, %v8521_v59  ;;  %7388 = vmatprep.subr.bf16.mxu1 %v1432_v45 }
 0x7fc   : > { %7389 = vmatpush3.bf16.msra.mxu1 %v1432_v45 }
 0x7fd   : > { %7390 = vmatprep.subr.bf16.mxu1 %v1443_v29  ;;  %v7974_v30 = vpop.eup %7973 }
 0x7fe   : > { %v1498_v31 = vpop.permute.xlu1 %1497  ;;  %v1426_v37 = vmul.f32 %v7974_v30, %v7968_v17  ;;  %v1494_v42 = vpop.permute.xlu0 %1493 }
 0x7ff   : > { %v1508_v46 = vsel %vm1000_vm3, %v1498_v31, 0 }
 0x800   : > { %7391 = vmatpush3.bf16.msra.mxu1 %v1443_v29 }
 0x801   : > { %v7976_v34 = vpop.eup %7975  ;;  %7658 = vmatprep.subr.msk.bf16.mxu1 %vm1000_vm3, %v1498_v31 }
 0x802   : > { %v7978_v35 = vpop.eup %7977  ;;  %v1427_v38 = vmul.f32 %v7976_v34, %v7970_v19  ;;  %v1500_v47 = vpop.permute.xlu1 %1499 }
 0x803   : > { %v1428_v39 = vmul.f32 %v7978_v35, %v7972_v20  ;;  %v1511_v48 = vsel %vm1000_vm3, %v1500_v47, 0 }
 0x804   : > { %v1429_v40 = vpack.c.bf16 %v1427_v38, %v1426_v37 }
 0x805   : > { %v1430_v41 = vpack.c.bf16 %v1428_v39, %v1428_v39 }
 0x806   : > { %7392 = vmatprep.mubr.msk.bf16.mxu1 %vm1061_vm4, %v1429_v40  ;;  %v1496_v49 = vpop.permute.xlu1 %1495 }
 0x807   : > { %7393 = vmatmul.mubr.msk.bf16.vlgmr.msra.gmra.mrb[24].mxu1 %vm1061_vm4, %v1430_v41 }
 0x808   : > { %7400 = vmatprep.mubr.msk.bf16.mxu1 %vm1000_vm3, %v1494_v42 }
 0x809   : > { %7397 = vmatpush3.bf16.xpose.msra.mxu1 %v1508_v46 }
 0x80a   : > { %7659 = vmatprep.subr.msk.bf16.mxu1 %vm1000_vm3, %v1500_v47 }
 0x811   : > { %7399 = vmatpush3.bf16.xpose.msra.mxu1 %v1511_v48 }
 0x818   : > { %7401 = vmatmul.mubr.msk.bf16.vlgmr.msra.gmra.mrb[28].mxu1 %vm1000_vm3, %v1496_v49 }
 0x819   : > { %1953 = vmatprep.mubr.bf16.mxu1 %v8245_v1 }
 0x82f   : > { %v1231_v55 = vpop.xlane.xlu0 %1230 }
 0x830   : > { %v1238_v6 = vsub.f32 %v8574_v61, %v1231_v55 }
 0x832   : > { %v1241_v8 = vmul.f32 1.442695, %v1238_v6 }
 0x833   : > { %v1237_v7 = vpop.xlane.xlu0 %1236 }
 0x834   : > { %v1240_v9 = vsub.f32 %v8572_v57, %v1237_v7 }
 0x836   : > { %v1245_v10 = vmul.f32 1.442695, %v1240_v9 }
 0x837   : > { %v1234_v51 = vpop.xlane.xlu1 %1233 }
 0x838   : > { %v1239_v62 = vsub.f32 %v8576_v63, %v1234_v51 }
 0x83a   : > { %v1243_v5 = vmul.f32 1.442695, %v1239_v62 }
 0x83c   : > { %7979 = vpow2.f32 %v1243_v5 }
 0x83d   : > { %7981 = vpow2.f32 %v1241_v8 }
 0x83e   : > { %7983 = vpow2.f32 %v1245_v10 }
 0x846   : > { %v7980_v13 = vpop.eup %7979 }
 0x847   : > { %v1250_v61 = vsel %vm1061_vm4, %v7980_v13, 0.0  ;;  %v7982_v57 = vpop.eup %7981 }
 0x848   : > { %v1247_v18 = vsel %vm1061_vm4, %v7982_v57, 0.0  ;;  %v7984_v19 = vpop.eup %7983 }
 0x849   : > { %v1253_v20 = vsel %vm1068_vm5, %v7984_v19, 0.0 }
 0x8da   : > { %v8612_v52 = vpop.f32.mrb[24].mxu1 }
 0x8db   : > { %v8615_v0 = vpop.f32.mrb[25].mxu1 }
 0x8dc   : > { %v7395_v2 = vpop.f32.mrb[26].mxu1 }
 0x8dd   : > { %v8617_v3 = vpop.f32.mrb[27].mxu1 }
 0x8de   : > { %v7706_v4 = vpack.i.bf16 %v8617_v3, %v8615_v0 }
 0x8eb   : > { %v7402_v11 = vpop.f32.mrb[28].mxu1 }
 0x8ec   : > { %v1547_v63 = vpop.f32.mrb[29].mxu1  ;;  %v1567_v12 = vsel %vm1068_vm5, %v7402_v11, -inf }
 0x8ed   : > { %1568 = vmax.xlane.f32.xlu1 %v1567_v12  ;;  %v7403_v14 = vpop.f32.mrb[30].mxu1  ;;  %v1561_v15 = vsel %vm1061_vm4, %v1547_v63, -inf }
 0x8ee   : > { %1562 = vmax.xlane.f32.xlu0 %v1561_v15  ;;  %v1550_v16 = vpop.f32.mrb[31].mxu1 }
 0x8ef   : > { %v1564_v17 = vsel %vm1061_vm4, %v1550_v16, -inf }
 0x8f1   : > { %1251 = vadd.xlane.f32.xlu1 %v1250_v61  ;;  %v7786_v61 = vld [vmem:[%s9923_s9 + $0x8] sm:$0xff]  }
 0x8f2   : > { %1565 = vmax.xlane.f32.xlu0 %v1564_v17  ;;  %v7787_v17 = vld [vmem:[%s9923_s9 + $0x10] sm:$0xff]  }
 0x8f6   : > { %1248 = vadd.xlane.f32.xlu0 %v1247_v18 }
 0x8fa   : > { %1254 = vadd.xlane.f32.xlu0 %v1253_v20 }
 0x97a   : > { %v1569_v21 = vpop.xlane.xlu1 %1568 }
 0x97b   : > { %v1572_v22 = vsub.f32 %v7402_v11, %v1569_v21  ;;  %v1563_v23 = vpop.xlane.xlu0 %1562  ;;  %v7788_v21 = vld [vmem:[%s9923_s9 + $0x18] sm:$0xff]  }
 0x97c   : > { %v1570_v43 = vsub.f32 %v1547_v63, %v1563_v23 }
 0x97d   : > { %v1577_v24 = vmul.f32 1.442695, %v1572_v22 }
 0x97e   : > { %v1573_v50 = vmul.f32 1.442695, %v1570_v43  ;;  %v1252_v28 = vpop.xlane.xlu1 %1251 }
 0x97f   : > { %7985 = vpow2.f32 %v1577_v24  ;;  %v1566_v26 = vpop.xlane.xlu0 %1565 }
 0x980   : > { %v1571_v45 = vsub.f32 %v1550_v16, %v1566_v26  ;;  %7987 = vpow2.f32 %v1573_v50  ;;  %v7785_v16 = vld [vmem:[%s9923_s9] sm:$0xff]  }
 0x981   : > { %7989 = vrcp.f32 %v1252_v28 }
 0x982   : > { %v1575_v60 = vmul.f32 1.442695, %v1571_v45 }
 0x983   : > { %v1249_v29 = vpop.xlane.xlu0 %1248 }
 0x984   : > { %7991 = vpow2.f32 %v1575_v60 }
 0x985   : > { %7993 = vrcp.f32 %v1249_v29 }
 0x987   : > { %v1255_v47 = vpop.xlane.xlu0 %1254 }
 0x988   : > { %7995 = vrcp.f32 %v1255_v47 }
 0x989   : > { %v7986_v30 = vpop.eup %7985 }
 0x98a   : > { %v1585_v31 = vsel %vm1068_vm5, %v7986_v30, 0.0  ;;  %v7988_v34 = vpop.eup %7987 }
 0x98b   : > { %1586 = vadd.xlane.f32.xlu1 %v1585_v31  ;;  %v7990_v35 = vpop.eup %7989  ;;  %v1579_v38 = vsel %vm1061_vm4, %v7988_v34, 0.0 }
 0x98c   : > { %v1260_v42 = vmul.f32 %v7990_v35, %v7980_v13 }
 0x98e   : > { %v7992_v37 = vpop.eup %7991 }
 0x98f   : > { %v7994_v39 = vpop.eup %7993  ;;  %1580 = vadd.xlane.f32.xlu1 %v1579_v38  ;;  %v1582_v40 = vsel %vm1061_vm4, %v7992_v37, 0.0 }
 0x990   : > { %1583 = vadd.xlane.f32.xlu0 %v1582_v40  ;;  %v1259_v41 = vmul.f32 %v7994_v39, %v7982_v57 }
 0x992   : > { %v1262_v46 = vpack.c.bf16 %v1260_v42, %v1259_v41  ;;  %v7996_v62 = vpop.eup %7995 }
 0x993   : > { %v1261_v6 = vmul.f32 %v7996_v62, %v7984_v19 }
 0x994   : > { %7376 = vmatprep.mubr.msk.bf16.mxu0 %vm1061_vm4, %v1262_v46 }
 0x995   : > { %v1263_v9 = vpack.c.bf16 %v1261_v6, %v1261_v6 }
 0x9a0   : > { %1268 = vrot.lane.b32.xlu1 %v8517_v58, %s9944_s25 }
 0x9a4   : > { %1596 = vrot.lane.b32.xlu1 %v8500_v44, %s9936_s29 }
 0x9a6   : > { %1266 = vrot.lane.b32.xlu0 %v8500_v44, %s9944_s25  ;;  %s9155_s25 = smul.u32 24, %s9977_s30  ;;  %s9973_s30 = sld [smem:[#allocation8_spill]] }
 0x9a8   : > { %1598 = vrot.lane.b32.xlu1 %v8517_v58, %s9936_s29  ;;  %s617_s1 = scalar_lea.vmem %s9931_s17, %s9155_s25 }
 0x9ac   : > { %s622_s20 = scalar_lea.vmem %s9973_s30, %s9155_s25 }
 0xa18   : > { %v1587_v48 = vpop.xlane.xlu1 %1586 }
 0xa1c   : > { %v1581_v49 = vpop.xlane.xlu1 %1580 }
 0xa1d   : > { %7997 = vrcp.f32 %v1581_v49  ;;  %v1584_v51 = vpop.xlane.xlu0 %1583 }
 0xa1e   : > { %7999 = vrcp.f32 %v1584_v51 }
 0xa1f   : > { %8001 = vrcp.f32 %v1587_v48 }
 0xa20   : > { %v1269_v55 = vpop.permute.xlu1 %1268 }
 0xa21   : > { %v1278_v2 = vand.u32 %v1269_v55, %v8521_v59  ;;  %v1267_v5 = vpop.permute.xlu0 %1266 }
 0xa22   : > { %7372 = vmatprep.subr.bf16.mxu0 %v1267_v5 }
 0xa23   : > { %7373 = vmatpush3.bf16.msra.mxu0 %v1267_v5 }
 0xa24   : > { %7374 = vmatprep.subr.bf16.mxu0 %v1278_v2  ;;  %v1597_v44 = vpop.permute.xlu1 %1596 }
 0xa27   : > { %v7998_v7 = vpop.eup %7997  ;;  %7375 = vmatpush3.bf16.msra.mxu0 %v1278_v2 }
 0xa28   : > { %v8000_v58 = vpop.eup %7999  ;;  %7404 = vmatprep.subr.bf16.mxu0 %v1597_v44  ;;  %v1599_v8 = vpop.permute.xlu1 %1598  ;;  %v1591_v10 = vmul.f32 %v7998_v7, %v7988_v34 }
 0xa29   : > { %v8002_v11 = vpop.eup %8001  ;;  %v1608_v63 = vand.u32 %v1599_v8, %v8521_v59  ;;  %v1592_v12 = vmul.f32 %v8000_v58, %v7992_v37 }
 0xa2a   : > { %7377 = vmatmul.mubr.msk.bf16.vlgmr.msra.gmra.mrb[4].mxu0 %vm1061_vm4, %v1263_v9  ;;  %v1593_v14 = vmul.f32 %v8002_v11, %v7986_v30 }
 0xa2b   : > { %7405 = vmatpush3.bf16.msra.mxu0 %v1597_v44  ;;  %v1594_v13 = vpack.c.bf16 %v1592_v12, %v1591_v10 }
 0xa2c   : > { %7406 = vmatprep.subr.bf16.mxu0 %v1608_v63  ;;  %v1595_v15 = vpack.c.bf16 %v1593_v14, %v1593_v14 }
 0xa2d   : > { %7408 = vmatprep.mubr.msk.bf16.mxu0 %vm1061_vm4, %v1594_v13 }
 0xa2f   : > { %7407 = vmatpush3.bf16.msra.mxu0 %v1608_v63 }
 0xa30   : > { %7412 = vmatprep.subr.bf16.mxu0 %v7785_v16 }
 0xa32   : > { %7409 = vmatmul.mubr.msk.bf16.vlgmr.msra.gmra.mrb[8].mxu0 %vm1061_vm4, %v1595_v15 }
 0xa33   : > { %7413 = vmatpush3.bf16.msra.mxu0 %v7785_v16 }
 0xa34   : > { %7414 = vmatprep.subr.bf16.mxu0 %v7786_v61 }
 0xa37   : > { %7415 = vmatpush3.bf16.msra.mxu0 %v7786_v61 }
 0xa38   : > { %7416 = vmatprep.subr.bf16.mxu0 %v7787_v17 }
 0xa3b   : > { %7417 = vmatpush3.bf16.msra.mxu0 %v7787_v17 }
 0xa3c   : > { %7418 = vmatprep.subr.bf16.mxu0 %v7788_v21 }
 0xa3f   : > { %7419 = vmatpush3.bf16.msra.mxu0 %v7788_v21  ;;  %v7789_v21 = vld [vmem:[%s9927_s13] ss:$8 sps:$4 sm:$0xff]  }
 0xafd   : > { %v7378_v57 = vpop.f32.mrb[4].mxu0 }
 0xafe   : > { %1665 = vrot.lane.b32.xlu1 %v7378_v57, %s9940_s27  ;;  %v1314_v18 = vpop.f32.mrb[5].mxu0 }
 0xaff   : > { %v7379_v19 = vpop.f32.mrb[6].mxu0 }
 0xb00   : > { %v1317_v20 = vpop.f32.mrb[7].mxu0 }
 0xb01   : > { %v7701_v22 = vpack.i.bf16 %v1317_v20, %v1314_v18  ;;  %v7791_v20 = vld [vmem:[%s9927_s13 + $0x4] ss:$8 sps:$4 sm:$0xff]  }
 0xb02   : > { %1677 = vrot.lane.b32.xlu1 %v8612_v52, %s9942_s3  ;;  %1921 = vmatprep.subr.bf16.mxu1 %v7791_v20 }
 0xb03   : > { %7702 = vrot.lane.b32.xlu0 %v7701_v22, %s9940_s27  ;;  %1922 = vmatpush1.bf16.msra.mxu1 %v7789_v21  ;;  %v7794_v22 = vld [vmem:[%s9927_s13 + $0x14] ss:$8 sps:$4 sm:$0xff]   ;;  %s9967_s27 = smov 112  }
 0xb04   : > { %1923 = vmatprep.subr.bf16.mxu1 %v7794_v22 }
 0xb05   : > { %v7410_v23 = vpop.f32.mrb[8].mxu0 }
 0xb06   : > { %1689 = vrot.lane.b32.xlu1 %v7410_v23, %s9948_s24  ;;  %v1644_v43 = vpop.f32.mrb[9].mxu0  ;;  %v7792_v23 = vld [vmem:[%s9927_s13 + $0x10] ss:$8 sps:$4 sm:$0xff]  }
 0xb07   : > { %7707 = vrot.lane.b32.xlu0 %v7706_v4, %s9942_s3  ;;  %v7411_v24 = vpop.f32.mrb[10].mxu0  ;;  %1924 = vmatpush1.bf16.msra.mxu1 %v7792_v23  ;;  %s9966_s3 = smov 64  }
 0xb08   : > { %v1647_v50 = vpop.f32.mrb[11].mxu0  ;;  %v7795_v24 = vld [vmem:[%s9927_s13 + $0x20] ss:$8 sps:$4 sm:$0xff]  }
 0xb09   : > { %v7711_v26 = vpack.i.bf16 %v1647_v50, %v1644_v43  ;;  %v7797_v43 = vld [vmem:[%s9927_s13 + $0x24] ss:$8 sps:$4 sm:$0xff]   ;;  %v7798_v50 = vld [vmem:[%s9927_s13 + $0x30] ss:$8 sps:$4 sm:$0xff]  }
 0xb0a   : > { %1925 = vmatprep.subr.bf16.mxu1 %v7797_v43 }
 0xb0b   : > { %7712 = vrot.lane.b32.xlu0 %v7711_v26, %s9948_s24  ;;  %1926 = vmatpush1.bf16.msra.mxu1 %v7795_v24  ;;  %v7800_v26 = vld [vmem:[%s9927_s13 + $0x34] ss:$8 sps:$4 sm:$0xff]  }
 0xb0c   : > { %1927 = vmatprep.subr.bf16.mxu1 %v7800_v26 }
 0xb0f   : > { %1928 = vmatpush1.bf16.msra.mxu1 %v7798_v50 }
 0xb70   : > { %v1666_v28 = vpop.permute.xlu1 %1665 }
 0xb71   : > { %v1696_v35 = vsel %vm1000_vm3, %v8566_v53, %v1666_v28 }
 0xb74   : > { %v1678_v45 = vpop.permute.xlu1 %1677 }
 0xb75   : > { %v7703_v52 = vpop.permute.xlu0 %7702  ;;  %v1700_v3 = vsel %vm1697_vm6, %v1696_v35, %v1678_v45 }
 0xb76   : > { %v7705_v29 = vunpack.i.h.bf16 %v7703_v52  ;;  %v7704_v30 = vunpack.i.l.bf16 %v7703_v52 }
 0xb78   : > { %v1690_v0 = vpop.permute.xlu1 %1689  ;;  %v1695_v37 = vsel %vm1000_vm3, %v8570_v56, %v7705_v29  ;;  %v1694_v38 = vsel %vm1000_vm3, %v8568_v54, %v7704_v30  ;;  %v6661_v54 = vld [vmem:[%s9924_s10] ss:$0 sm:$0xff] }
 0xb79   : > { %v7708_v60 = vpop.permute.xlu0 %7707  ;;  %v1704_v41 = vsel %vm1701_vm7, %v1700_v3, %v1690_v0 }
 0xb7a   : > { %v7710_v31 = vunpack.i.h.bf16 %v7708_v60  ;;  %v7709_v34 = vunpack.i.l.bf16 %v7708_v60  ;;  %v1706_v49 = vpack.c.bf16 %v1704_v41, %v1704_v41  ;;  %v6669_v41 = vld [vmem:[%s9926_s12] ss:$0 sm:$0xff] }
 0xb7c   : > { %v1698_v42 = vsel %vm1697_vm6, %v1694_v38, %v7709_v34  ;;  %v1699_v46 = vsel %vm1697_vm6, %v1695_v37, %v7710_v31 }
 0xb7d   : > { %v7713_v4 = vpop.permute.xlu0 %7712 }
 0xb7e   : > { %v7715_v39 = vunpack.i.h.bf16 %v7713_v4  ;;  %v7714_v40 = vunpack.i.l.bf16 %v7713_v4  ;;  %v6668_v4 = vld [vmem:[%s9925_s11] ss:$0 sm:$0xff] }
 0xb80   : > { %v1703_v53 = vsel %vm1701_vm7, %v1699_v46, %v7715_v39  ;;  %v1702_v47 = vsel %vm1701_vm7, %v1698_v42, %v7714_v40 }
 0xb81   : > { %v1705_v48 = vpack.c.bf16 %v1703_v53, %v1702_v47 }
 0xb83   : > { %7420 = vmatprep.mubr.msk.bf16.mxu0 %vm738_vm0, %v1705_v48 }
 0xb84   : > { %7421 = vmatmul.mubr.msk.bf16.vlgmr.msra.gmra.mrb[12].mxu0 %vm738_vm0, %v1706_v49 }
 0xc57   : > { %v7422_v56 = vpop.f32.mrb[12].mxu0 }
 0xc58   : > { %v1777_v51 = vpop.f32.mrb[13].mxu0  ;;  %v1786_v55 = vadd.f32 %v7422_v56, %v6661_v54 }
 0xc59   : > { %v1778_v62 = vadd.f32 %v6661_v54, %v1777_v51  ;;  %v7423_v2 = vpop.f32.mrb[14].mxu0  ;;  %v7801_v51 = vld [vmem:[%s9929_s15 + $0x40] sm:$0xff]  }
 0xc5a   : > { %v1780_v5 = vpop.f32.mrb[15].mxu0  ;;  %v8689_v7 = vadd.f32 %v1786_v55, %v8435_v32  ;;  %v7802_v55 = vld [vmem:[%s9929_s15] sm:$0xff]   ;;  %7122 = vmatprep.subr.bf16.mxu0 %v7801_v51  ;;  %v7804_v2 = vld [vmem:[%s9929_s15 + $0x8] sm:$0xff]  }
 0xc5b   : > { %v8686_v44 = vadd.f32 %v1778_v62, %v8438_v33  ;;  %v1781_v6 = vadd.f32 %v6661_v54, %v1780_v5  ;;  %7123 = vmatpush3.bf16.msra.mxu0 %v7802_v55  ;;  %v7803_v62 = vld [vmem:[%s9929_s15 + $0x48] sm:$0xff]   ;;  %v7805_v5 = vld [vmem:[%s9929_s15 + $0x50] sm:$0xff]  }
 0xc5c   : > { %v1802_v10 = vsel %vm806_vm2, %v8689_v7, 0.0  ;;  %7124 = vmatprep.subr.bf16.mxu0 %v7803_v62 }
 0xc5d   : > { %v8692_v58 = vadd.f32 %v1781_v6, %v8446_v36  ;;  %v1796_v8 = vsel %vm738_vm0, %v8686_v44, 0.0  ;;  %v7806_v6 = vld [vmem:[%s9929_s15 + $0x10] sm:$0xff]  }
 0xc5e   : > { %1797 = vadd.xlane.f32.xlu0 %v1796_v8  ;;  %v7807_v8 = vld [vmem:[%s9929_s15 + $0x58] sm:$0xff]  }
 0xc5f   : > { %v1799_v9 = vsel %vm738_vm0, %v8692_v58, 0.0  ;;  %7125 = vmatpush3.bf16.msra.mxu0 %v7804_v2 }
 0xc60   : > { %1800 = vadd.xlane.f32.xlu1 %v1799_v9  ;;  %7126 = vmatprep.subr.bf16.mxu0 %v7805_v5  ;;  %v7808_v9 = vld [vmem:[%s9929_s15 + $0x18] sm:$0xff]  }
 0xc62   : > { %1803 = vadd.xlane.f32.xlu0 %v1802_v10  ;;  %v7809_v10 = vld [vmem:[%s9929_s15 + $0x60] sm:$0xff]  }
 0xc63   : > { %7127 = vmatpush3.bf16.msra.mxu0 %v7806_v6 }
 0xc64   : > { %7128 = vmatprep.subr.bf16.mxu0 %v7807_v8 }
 0xc67   : > { %7129 = vmatpush3.bf16.msra.mxu0 %v7808_v9 }
 0xc68   : > { %7130 = vmatprep.subr.bf16.mxu0 %v7809_v10 }
 0xceb   : > { %v1798_v33 = vpop.xlane.xlu0 %1797 }
 0xcec   : > { %v1805_v11 = vmul.f32 0.015625, %v1798_v33  ;;  %v7810_v33 = vld [vmem:[%s9929_s15 + $0x20] sm:$0xff]  }
 0xced   : > { %v1801_v63 = vpop.xlane.xlu1 %1800  ;;  %7131 = vmatpush3.bf16.msra.mxu0 %v7810_v33 }
 0xcee   : > { %v1808_v32 = vsub.f32 %v8686_v44, %v1805_v11  ;;  %v1806_v12 = vmul.f32 0.015625, %v1801_v63  ;;  %v7811_v11 = vld [vmem:[%s9929_s15 + $0x68] sm:$0xff]  }
 0xcef   : > { %v1804_v36 = vpop.xlane.xlu0 %1803  ;;  %v7812_v63 = vld [vmem:[%s9929_s15 + $0x28] sm:$0xff]   ;;  %7132 = vmatprep.subr.bf16.mxu0 %v7811_v11 }
 0xcf0   : > { %v1809_v13 = vsub.f32 %v8692_v58, %v1806_v12  ;;  %v1807_v14 = vmul.f32 0.015625, %v1804_v36  ;;  %v1811_v15 = vmul.f32 %v1808_v32, %v1808_v32  ;;  %v7814_v12 = vld [vmem:[%s9929_s15 + $0x30] sm:$0xff]   ;;  %v7815_v36 = vld [vmem:[%s9929_s15 + $0x78] sm:$0xff]  }
 0xcf1   : > { %7133 = vmatpush3.bf16.msra.mxu0 %v7812_v63 }
 0xcf2   : > { %v1810_v16 = vsub.f32 %v8689_v7, %v1807_v14  ;;  %v1814_v61 = vsel %vm738_vm0, %v1811_v15, 0.0  ;;  %v1812_v17 = vmul.f32 %v1809_v13, %v1809_v13  ;;  %v1861_v14 = vld [vmem:[%s9928_s14] sm:$0x3] }
 0xcf3   : > { %1815 = vadd.xlane.f32.xlu0 %v1814_v61  ;;  %v1868_v15 = vrot.slane %v1861_v14, %v8489_v25 }
 0xcf4   : > { %v1813_v57 = vmul.f32 %v1810_v16, %v1810_v16  ;;  %v1817_v18 = vsel %vm738_vm0, %v1812_v17, 0.0 }
 0xcf6   : > { %v1820_v19 = vsel %vm806_vm2, %v1813_v57, 0.0 }
 0xcf7   : > { %1818 = vadd.xlane.f32.xlu0 %v1817_v18  ;;  %1821 = vadd.xlane.f32.xlu1 %v1820_v19 }
 0xd80   : > { %v1816_v28 = vpop.xlane.xlu0 %1815 }
 0xd81   : > { %v1823_v52 = vmul.f32 0.015625, %v1816_v28 }
 0xd83   : > { %v1826_v45 = vadd.f32 1e-06, %v1823_v52 }
 0xd84   : > { %v1822_v60 = vpop.xlane.xlu1 %1821  ;;  %v1819_v29 = vpop.xlane.xlu0 %1818 }
 0xd85   : > { %8003 = vrsqrt.f32 %v1826_v45  ;;  %v1825_v30 = vmul.f32 0.015625, %v1822_v60  ;;  %v1824_v31 = vmul.f32 0.015625, %v1819_v29 }
 0xd87   : > { %v1828_v34 = vadd.f32 1e-06, %v1825_v30  ;;  %v1827_v35 = vadd.f32 1e-06, %v1824_v31 }
 0xd89   : > { %8005 = vrsqrt.f32 %v1828_v34 }
 0xd8a   : > { %8007 = vrsqrt.f32 %v1827_v35 }
 0xd8f   : > { %v8004_v0 = vpop.eup %8003 }
 0xd90   : > { %v1832_v3 = vmul.f32 %v8004_v0, %v1808_v32  ;;  %v7813_v32 = vld [vmem:[%s9929_s15 + $0x70] sm:$0xff]  }
 0xd91   : > { %7134 = vmatprep.subr.bf16.mxu0 %v7813_v32 }
 0xd92   : > { %v1841_v39 = vmul.f32 %v6668_v4, %v1832_v3  ;;  %7135 = vmatpush3.bf16.msra.mxu0 %v7814_v12 }
 0xd93   : > { %v8006_v37 = vpop.eup %8005  ;;  %7136 = vmatprep.subr.bf16.mxu0 %v7815_v36 }
 0xd94   : > { %v8008_v38 = vpop.eup %8007  ;;  %v1834_v46 = vmul.f32 %v8006_v37, %v1810_v16  ;;  %v1850_v53 = vadd.f32 %v6669_v41, %v1841_v39  ;;  %v1872_v16 = vrot.slane %v1861_v14, %v8494_v27 }
 0xd95   : > { %v1833_v40 = vmul.f32 %v8008_v38, %v1809_v13  ;;  %v7816_v13 = vld [vmem:[%s9929_s15 + $0x38] sm:$0xff]  }
 0xd96   : > { %v1843_v49 = vmul.f32 %v6668_v4, %v1834_v46  ;;  %7137 = vmatpush3.bf16.msra.mxu0 %v7816_v13 }
 0xd97   : > { %v1842_v42 = vmul.f32 %v6668_v4, %v1833_v40 }
 0xd98   : > { %v1852_v54 = vadd.f32 %v6669_v41, %v1843_v49 }
 0xd99   : > { %v1851_v47 = vadd.f32 %v6669_v41, %v1842_v42 }
 0xd9a   : > { %v1863_v56 = vpack.c.bf16 %v1852_v54, %v1852_v54 }
 0xd9b   : > { %v1862_v48 = vpack.c.bf16 %v1851_v47, %v1850_v53 }
 0xd9d   : > { %6678 = vmatmul.mubr.msk.bf16.vlgmr.msra.gmra.mrb[32].mxu1 %vm738_vm0, %v1862_v48 }
 0xd9e   : > { %1963 = vmatprep.mubr.bf16.mxu1 %v8245_v1 }
 0xda5   : > { %6679 = vmatmul.mubr.msk.bf16.gmra.mrb[36].mxu1 %vm738_vm0, %v1863_v56 }
 0xda6   : > { %2390 = vmatprep.mubr.bf16.mxu1 %v8245_v1 }
 0xe70   : > { %v1955_v61 = vpop.f32.mrb[32].mxu1 }
 0xe71   : > { %v1956_v17 = vadd.f32 %v1955_v61, %v1868_v15  ;;  %v1957_v57 = vpop.f32.mrb[33].mxu1 }
 0xe72   : > { %v1958_v18 = vadd.f32 %v1957_v57, %v1872_v16  ;;  %v1959_v19 = vpop.f32.mrb[34].mxu1 }
 0xe73   : > { %v1972_v20 = vmul.f32 %v1956_v17, %v1956_v17  ;;  %v1960_v21 = vadd.f32 %v1959_v19, %v1868_v15  ;;  %v1961_v22 = vpop.f32.mrb[35].mxu1 }
 0xe74   : > { %v1973_v23 = vmul.f32 %v1958_v18, %v1958_v18  ;;  %v1962_v43 = vadd.f32 %v1961_v22, %v1872_v16 }
 0xe75   : > { %v1978_v24 = vmul.f32 %v1972_v20, %v1956_v17  ;;  %v1974_v50 = vmul.f32 %v1960_v21, %v1960_v21 }
 0xe76   : > { %v1979_v26 = vmul.f32 %v1973_v23, %v1958_v18  ;;  %v1975_v28 = vmul.f32 %v1962_v43, %v1962_v43 }
 0xe77   : > { %v1984_v52 = vmul.f32 0.044715, %v1978_v24  ;;  %v1980_v45 = vmul.f32 %v1974_v50, %v1960_v21 }
 0xe78   : > { %v1985_v60 = vmul.f32 0.044715, %v1979_v26  ;;  %v1981_v29 = vmul.f32 %v1975_v28, %v1962_v43  ;;  %v1965_v30 = vpop.f32.mrb[36].mxu1 }
 0xe79   : > { %v1990_v31 = vadd.f32 %v1984_v52, %v1956_v17  ;;  %v1986_v34 = vmul.f32 0.044715, %v1980_v45  ;;  %v1966_v35 = vadd.f32 %v1965_v30, %v1868_v15  ;;  %v1967_v0 = vpop.f32.mrb[37].mxu1 }
 0xe7a   : > { %v1991_v3 = vadd.f32 %v1985_v60, %v1958_v18  ;;  %v1987_v4 = vmul.f32 0.044715, %v1981_v29  ;;  %v1968_v37 = vadd.f32 %v1967_v0, %v1872_v16  ;;  %v1969_v38 = vpop.f32.mrb[38].mxu1 }
 0xe7b   : > { %v1996_v39 = vmul.f32 0.7978846, %v1990_v31  ;;  %v1992_v40 = vadd.f32 %v1986_v34, %v1960_v21  ;;  %v1976_v41 = vmul.f32 %v1966_v35, %v1966_v35  ;;  %v1970_v42 = vpop.f32.mrb[39].mxu1 }
 0xe7c   : > { %v1997_v46 = vmul.f32 0.7978846, %v1991_v3  ;;  %v1993_v53 = vadd.f32 %v1987_v4, %v1962_v43  ;;  %v1977_v47 = vmul.f32 %v1968_v37, %v1968_v37 }
 0xe7d   : > { %8009 = vtanh.f32 %v1996_v39  ;;  %v1998_v48 = vmul.f32 0.7978846, %v1992_v40  ;;  %v1982_v49 = vmul.f32 %v1976_v41, %v1966_v35 }
 0xe7e   : > { %8011 = vtanh.f32 %v1997_v46  ;;  %v1999_v54 = vmul.f32 0.7978846, %v1993_v53  ;;  %v1983_v56 = vmul.f32 %v1977_v47, %v1968_v37 }
 0xe7f   : > { %8013 = vtanh.f32 %v1998_v48  ;;  %v1988_v51 = vmul.f32 0.044715, %v1982_v49 }
 0xe80   : > { %8015 = vtanh.f32 %v1999_v54  ;;  %v1989_v55 = vmul.f32 0.044715, %v1983_v56 }
 0xe81   : > { %v1994_v62 = vadd.f32 %v1988_v51, %v1966_v35 }
 0xe82   : > { %v1995_v2 = vadd.f32 %v1989_v55, %v1968_v37 }
 0xe83   : > { %v2000_v5 = vmul.f32 0.7978846, %v1994_v62 }
 0xe84   : > { %v2001_v6 = vmul.f32 0.7978846, %v1995_v2 }
 0xe85   : > { %8017 = vtanh.f32 %v2000_v5 }
 0xe86   : > { %8019 = vtanh.f32 %v2001_v6 }
 0xe87   : > { %v8010_v8 = vpop.eup %8009 }
 0xe88   : > { %v8012_v9 = vpop.eup %8011  ;;  %v2008_v10 = vadd.f32 1.0, %v8010_v8 }
 0xe89   : > { %v8014_v33 = vpop.eup %8013  ;;  %v2009_v11 = vadd.f32 1.0, %v8012_v9 }
 0xe8a   : > { %v8016_v63 = vpop.eup %8015  ;;  %v2014_v32 = vmul.f32 0.5, %v2008_v10  ;;  %v2010_v12 = vadd.f32 1.0, %v8014_v33 }
 0xe8b   : > { %v2011_v36 = vadd.f32 1.0, %v8016_v63  ;;  %v2015_v13 = vmul.f32 0.5, %v2009_v11  ;;  %v7819_v11 = vld [vmem:[%s9921_s7 + $0x44] ss:$8 sps:$4 sm:$0xff]   ;;  %v7817_v63 = vld [vmem:[%s9921_s7 + $0x40] ss:$8 sps:$4 sm:$0xff]  }
 0xe8c   : > { %v2016_v14 = vmul.f32 0.5, %v2010_v12  ;;  %v2020_v16 = vmul.f32 %v2014_v32, %v1956_v17  ;;  %2358 = vmatprep.subr.bf16.mxu1 %v7819_v11  ;;  %v7822_v32 = vld [vmem:[%s9921_s7 + $0x54] ss:$8 sps:$4 sm:$0xff]   ;;  %v7820_v12 = vld [vmem:[%s9921_s7 + $0x50] ss:$8 sps:$4 sm:$0xff]  }
 0xe8d   : > { %v2017_v15 = vmul.f32 0.5, %v2011_v36  ;;  %v2021_v19 = vmul.f32 %v2015_v13, %v1958_v18  ;;  %v6680_v18 = vld [vmem:[%s9930_s16] ss:$0 sm:$0xff]  ;;  %2359 = vmatpush1.bf16.msra.mxu1 %v7817_v63  ;;  %v7825_v36 = vld [vmem:[%s9921_s7 + $0x64] ss:$8 sps:$4 sm:$0xff]  }
 0xe8e   : > { %v2022_v61 = vmul.f32 %v2016_v14, %v1960_v21  ;;  %2360 = vmatprep.subr.bf16.mxu1 %v7822_v32  ;;  %v7823_v13 = vld [vmem:[%s9921_s7 + $0x60] ss:$8 sps:$4 sm:$0xff]   ;;  %v7828_v14 = vld [vmem:[%s9921_s7 + $0x74] ss:$8 sps:$4 sm:$0xff]  }
 0xe8f   : > { %v8018_v57 = vpop.eup %8017  ;;  %v2023_v20 = vmul.f32 %v2017_v15, %v1962_v43  ;;  %v7826_v15 = vld [vmem:[%s9921_s7 + $0x70] ss:$8 sps:$4 sm:$0xff]  }
 0xe90   : > { %v8020_v22 = vpop.eup %8019  ;;  %v2059_v23 = vpack.c.bf16 %v2022_v61, %v2020_v16  ;;  %v2012_v24 = vadd.f32 1.0, %v8018_v57 }
 0xe91   : > { %v2060_v50 = vpack.c.bf16 %v2023_v20, %v2021_v19  ;;  %v2013_v26 = vadd.f32 1.0, %v8020_v22  ;;  %2361 = vmatpush1.bf16.msra.mxu1 %v7820_v12 }
 0xe92   : > { %v2018_v28 = vmul.f32 0.5, %v2012_v24  ;;  %2362 = vmatprep.subr.bf16.mxu1 %v7825_v36 }
 0xe93   : > { %2197 = vmatprep.mubr.bf16.mxu0 %v2060_v50  ;;  %v2019_v52 = vmul.f32 0.5, %v2013_v26 }
 0xe94   : > { %2198 = vmatmul.mubr.bf16.vlgmr.msra.gmra.mrb[16].mxu0 %v2059_v23  ;;  %v2024_v60 = vmul.f32 %v2018_v28, %v1966_v35  ;;  %v6699_v28 = vld [vmem:[%s9919_s5 + $0x1] ss:$0 sm:$0xff] }
 0xe95   : > { %v2025_v45 = vmul.f32 %v2019_v52, %v1968_v37  ;;  %2363 = vmatpush1.bf16.msra.mxu1 %v7823_v13 }
 0xe96   : > { %v2061_v30 = vpack.c.bf16 %v2024_v60, %v2024_v60  ;;  %2364 = vmatprep.subr.bf16.mxu1 %v7828_v14 }
 0xe97   : > { %v2062_v29 = vpack.c.bf16 %v2025_v45, %v2025_v45 }
 0xe99   : > { %2205 = vmatprep.mubr.bf16.mxu0 %v2062_v29  ;;  %2365 = vmatpush1.bf16.msra.mxu1 %v7826_v15 }
 0xe9c   : > { %2206 = vmatmul.mubr.bf16.gmra.mrb[20].mxu0 %v2061_v30  ;;  %v6700_v30 = vld [vmem:[%s9920_s6 + $0x1] ss:$0 sm:$0xff] }
 0xf67   : > { %v7138_v17 = vpop.f32.mrb[16].mxu0 }
 0xf68   : > { %v7139_v21 = vpop.f32.mrb[17].mxu0 }
 0xf69   : > { %v7140_v43 = vadd.f32 %v7139_v21, %v7138_v17  ;;  %v7141_v31 = vpop.f32.mrb[18].mxu0 }
 0xf6a   : > { %v7142_v34 = vpop.f32.mrb[19].mxu0 }
 0xf6b   : > { %v2200_v0 = vadd.f32 %v7140_v43, %v6680_v18  ;;  %v7143_v3 = vadd.f32 %v7142_v34, %v7141_v31 }
 0xf6d   : > { %v8797_v4 = vadd.f32 %v2200_v0, %v8686_v44  ;;  %v2203_v37 = vadd.f32 %v7143_v3, %v6680_v18 }
 0xf6f   : > { %v8800_v35 = vadd.f32 %v2203_v37, %v8692_v58  ;;  %v7144_v38 = vpop.f32.mrb[20].mxu0  ;;  %v2220_v39 = vsel %vm738_vm0, %v8797_v4, 0.0 }
 0xf70   : > { %v7145_v40 = vpop.f32.mrb[21].mxu0  ;;  %2221 = vadd.xlane.f32.xlu0 %v2220_v39 }
 0xf71   : > { %v7146_v41 = vadd.f32 %v7145_v40, %v7144_v38  ;;  %v7147_v42 = vpop.f32.mrb[22].mxu0  ;;  %v2223_v46 = vsel %vm738_vm0, %v8800_v35, 0.0  ;;  %v6709_v38 = vld [vmem:[%s9922_s8 + $0x2] sm:$0x3] }
 0xf72   : > { %v7148_v53 = vpop.f32.mrb[23].mxu0  ;;  %2224 = vadd.xlane.f32.xlu1 %v2223_v46  ;;  %v2305_v39 = vrot.slane %v6709_v38, %v8489_v25 }
 0xf73   : > { %v2208_v47 = vadd.f32 %v7146_v41, %v6680_v18  ;;  %v2309_v41 = vrot.slane %v6709_v38, %v8494_v27 }
 0xf75   : > { %v8807_v44 = vadd.f32 %v2208_v47, %v8689_v7 }
 0xf77   : > { %v2226_v58 = vsel %vm806_vm2, %v8807_v44, 0.0 }
 0xf78   : > { %2227 = vadd.xlane.f32.xlu0 %v2226_v58 }
 0xffd   : > { %v2222_v48 = vpop.xlane.xlu0 %2221 }
 0xffe   : > { %v2229_v49 = vmul.f32 0.015625, %v2222_v48 }
 0xfff   : > { %v2225_v54 = vpop.xlane.xlu1 %2224 }
0x1000   : > { %v2232_v56 = vsub.f32 %v8797_v4, %v2229_v49  ;;  %v2230_v51 = vmul.f32 0.015625, %v2225_v54 }
0x1002   : > { %v2233_v55 = vsub.f32 %v8800_v35, %v2230_v51  ;;  %v2235_v62 = vmul.f32 %v2232_v56, %v2232_v56 }
0x1004   : > { %v2238_v2 = vsel %vm738_vm0, %v2235_v62, 0.0  ;;  %v2236_v5 = vmul.f32 %v2233_v55, %v2233_v55 }
0x1005   : > { %2239 = vadd.xlane.f32.xlu1 %v2238_v2  ;;  %v2228_v6 = vpop.xlane.xlu0 %2227 }
0x1006   : > { %v2231_v7 = vmul.f32 0.015625, %v2228_v6  ;;  %v2241_v8 = vsel %vm738_vm0, %v2236_v5, 0.0 }
0x1007   : > { %2242 = vadd.xlane.f32.xlu0 %v2241_v8 }
0x1008   : > { %v2234_v9 = vsub.f32 %v8807_v44, %v2231_v7 }
0x100a   : > { %v2237_v10 = vmul.f32 %v2234_v9, %v2234_v9 }
0x100c   : > { %v2244_v33 = vsel %vm806_vm2, %v2237_v10, 0.0 }
0x100d   : > { %2245 = vadd.xlane.f32.xlu1 %v2244_v33 }
0x1092   : > { %v2240_v16 = vpop.xlane.xlu1 %2239 }
0x1093   : > { %v2247_v61 = vmul.f32 0.015625, %v2240_v16 }
0x1094   : > { %v2243_v57 = vpop.xlane.xlu0 %2242 }
0x1095   : > { %v2250_v19 = vadd.f32 1e-06, %v2247_v61  ;;  %v2248_v20 = vmul.f32 0.015625, %v2243_v57 }
0x1097   : > { %8021 = vrsqrt.f32 %v2250_v19  ;;  %v2251_v22 = vadd.f32 1e-06, %v2248_v20 }
0x1099   : > { %8023 = vrsqrt.f32 %v2251_v22 }
0x109a   : > { %v2246_v23 = vpop.xlane.xlu1 %2245 }
0x109b   : > { %v2249_v24 = vmul.f32 0.015625, %v2246_v23 }
0x109d   : > { %v2252_v50 = vadd.f32 1e-06, %v2249_v24 }
0x109f   : > { %8025 = vrsqrt.f32 %v2252_v50 }
0x10a1   : > { %v8022_v26 = vpop.eup %8021 }
0x10a2   : > { %v2256_v52 = vmul.f32 %v8022_v26, %v2232_v56 }
0x10a3   : > { %v8024_v45 = vpop.eup %8023 }
0x10a4   : > { %v2265_v60 = vmul.f32 %v6699_v28, %v2256_v52  ;;  %v2257_v29 = vmul.f32 %v8024_v45, %v2233_v55 }
0x10a6   : > { %v2266_v17 = vmul.f32 %v6699_v28, %v2257_v29  ;;  %v2274_v18 = vadd.f32 %v6700_v30, %v2265_v60 }
0x10a8   : > { %v2275_v21 = vadd.f32 %v6700_v30, %v2266_v17 }
0x10a9   : > { %v8026_v43 = vpop.eup %8025 }
0x10aa   : > { %v2299_v31 = vpack.c.bf16 %v2275_v21, %v2274_v18  ;;  %v2258_v34 = vmul.f32 %v8026_v43, %v2234_v9 }
0x10ac   : > { %6727 = vmatmul.mubr.msk.bf16.vlgmr.msra.gmra.mrb[40].mxu1 %vm738_vm0, %v2299_v31  ;;  %v2267_v0 = vmul.f32 %v6699_v28, %v2258_v34 }
0x10ad   : > { %2400 = vmatprep.mubr.bf16.mxu1 %v8245_v1 }
0x10ae   : > { %v2276_v3 = vadd.f32 %v6700_v30, %v2267_v0 }
0x10b0   : > { %v2300_v37 = vpack.c.bf16 %v2276_v3, %v2276_v3 }
0x10b4   : > { %6728 = vmatmul.mubr.msk.bf16.gmra.mrb[44].mxu1 %vm738_vm0, %v2300_v37 }
0x117f   : > { %v2392_v40 = vpop.f32.mrb[40].mxu1 }
0x1180   : > { %v2393_v42 = vadd.f32 %v2392_v40, %v2305_v39  ;;  %v2394_v46 = vpop.f32.mrb[41].mxu1 }
0x1181   : > { %v2396_v53 = vpop.f32.mrb[42].mxu1  ;;  %v2395_v48 = vadd.f32 %v2394_v46, %v2309_v41 }
0x1182   : > { %v2397_v47 = vadd.f32 %v2396_v53, %v2305_v39  ;;  %v2398_v58 = vpop.f32.mrb[43].mxu1  ;;  %v2409_v54 = vmul.f32 0.25, %v2393_v42 }
0x1183   : > { %v2399_v49 = vadd.f32 %v2398_v58, %v2309_v41 }
0x1184   : > { %v2410_v56 = vmul.f32 0.25, %v2397_v47  ;;  %v8855_v51 = vpack.c.bf16 %v2397_v47, %v2393_v42 }
0x1185   : > { %v8857_v55 = vpack.c.bf16 %v2399_v49, %v2395_v48 }
0x1186   : > { %v8859_v62 = vpack.c.bf16 %v2410_v56, %v2409_v54  ;;  %2582 = vrot.lane.b32.xlu1 %v8855_v51, %s9948_s24  ;;  %2418 = vrot.lane.b32.xlu0 %v8855_v51, %s9966_s3 }
0x1187   : > { %v2402_v2 = vpop.f32.mrb[44].mxu1 }
0x1188   : > { %v2403_v5 = vadd.f32 %v2402_v2, %v2305_v39  ;;  %v2404_v6 = vpop.f32.mrb[45].mxu1  ;;  %7428 = vmatprep.mubr.msk.bf16.mxu1 %vm1000_vm3, %v8859_v62 }
0x1189   : > { %v2406_v7 = vpop.f32.mrb[46].mxu1  ;;  %v2405_v14 = vadd.f32 %v2404_v6, %v2309_v41 }
0x118a   : > { %v2411_v8 = vmul.f32 0.25, %v2403_v5  ;;  %v8867_v9 = vpack.c.bf16 %v2403_v5, %v2403_v5  ;;  %v2407_v10 = vpop.f32.mrb[47].mxu1  ;;  %2578 = vrot.lane.b32.xlu0 %v8859_v62, %s9967_s27 }
0x118b   : > { %v8897_v57 = vpack.c.bf16 %v2405_v14, %v2405_v14 }
0x118c   : > { %v8871_v33 = vpack.c.bf16 %v2411_v8, %v2411_v8  ;;  %2420 = vrot.lane.b32.xlu1 %v8867_v9, %s9966_s3 }
0x118d   : > { %v2526_v22 = vand.u32 %v8897_v57, %v8521_v59 }
0x118e   : > { %2580 = vrot.lane.b32.xlu0 %v8871_v33, %s9967_s27 }
0x1190   : > { %2584 = vrot.lane.b32.xlu1 %v8867_v9, %s9948_s24 }
0x1192   : > { %2745 = vrot.lane.b32.xlu0 %v8859_v62, %s9968_s22 }
0x1194   : > { %2749 = vrot.lane.b32.xlu1 %v8855_v51, %s9969_s2 }
0x1198   : > { %2751 = vrot.lane.b32.xlu1 %v8867_v9, %s9969_s2 }
0x119c   : > { %2747 = vrot.lane.b32.xlu1 %v8871_v33, %s9968_s22 }
0x11f8   : > { %v2583_v11 = vpop.permute.xlu1 %2582  ;;  %v2419_v63 = vpop.permute.xlu0 %2418 }
0x11f9   : > { %7660 = vmatprep.subr.msk.bf16.mxu1 %vm1000_vm3, %v2419_v63  ;;  %7662 = vmatprep.subr.msk.bf16.mxu0 %vm1000_vm3, %v2583_v11  ;;  %v2429_v32 = vsel %vm1000_vm3, %v2419_v63, 0  ;;  %v2593_v12 = vsel %vm1000_vm3, %v2583_v11, 0 }
0x11fa   : > { %7425 = vmatpush3.bf16.xpose.msra.mxu1 %v2429_v32  ;;  %7441 = vmatpush3.bf16.xpose.msra.mxu0 %v2593_v12 }
0x11fc   : > { %v2579_v36 = vpop.permute.xlu0 %2578 }
0x11fd   : > { %7444 = vmatprep.mubr.msk.bf16.mxu0 %vm1000_vm3, %v2579_v36 }
0x11fe   : > { %v2421_v13 = vpop.permute.xlu1 %2420 }
0x11ff   : > { %7661 = vmatprep.subr.msk.bf16.mxu1 %vm1000_vm3, %v2421_v13  ;;  %v2432_v15 = vsel %vm1000_vm3, %v2421_v13, 0 }
0x1200   : > { %v2581_v19 = vpop.permute.xlu0 %2580 }
0x1202   : > { %v2585_v16 = vpop.permute.xlu1 %2584  ;;  %7427 = vmatpush3.bf16.xpose.msra.mxu1 %v2432_v15 }
0x1203   : > { %7432 = vmatprep.subr.bf16.mxu1 %v8857_v55  ;;  %7663 = vmatprep.subr.msk.bf16.mxu0 %vm1000_vm3, %v2585_v16  ;;  %v2596_v61 = vsel %vm1000_vm3, %v2585_v16, 0 }
0x1204   : > { %7443 = vmatpush3.bf16.xpose.msra.mxu0 %v2596_v61  ;;  %v2746_v23 = vpop.permute.xlu0 %2745 }
0x1206   : > { %v2750_v20 = vpop.permute.xlu1 %2749 }
0x1207   : > { %7664 = vmatprep.subr.msk.bf16.mxu0 %vm1000_vm3, %v2750_v20  ;;  %v2760_v24 = vsel %vm1000_vm3, %v2750_v20, 0 }
0x1209   : > { %7429 = vmatmul.mubr.msk.bf16.vlgmr.msra.gmra.mrb[48].mxu1 %vm1000_vm3, %v8871_v33 }
0x120a   : > { %7433 = vmatpush3.bf16.msra.mxu1 %v8857_v55  ;;  %v2752_v50 = vpop.permute.xlu1 %2751 }
0x120b   : > { %7434 = vmatprep.subr.bf16.mxu1 %v2526_v22  ;;  %7445 = vmatmul.mubr.msk.bf16.vlgmr.msra.gmra.mrb[24].mxu0 %vm1000_vm3, %v2581_v19  ;;  %v2763_v26 = vsel %vm1000_vm3, %v2752_v50, 0 }
0x120c   : > { %7457 = vmatpush3.bf16.xpose.msra.mxu0 %v2760_v24  ;;  %7460 = vmatprep.mubr.msk.bf16.mxu0 %vm1000_vm3, %v2746_v23 }
0x120d   : > { %7665 = vmatprep.subr.msk.bf16.mxu0 %vm1000_vm3, %v2752_v50 }
0x120e   : > { %7435 = vmatpush3.bf16.msra.mxu1 %v2526_v22  ;;  %v2748_v28 = vpop.permute.xlu1 %2747 }
0x1214   : > { %7459 = vmatpush3.bf16.xpose.msra.mxu0 %v2763_v26 }
0x121b   : > { %7461 = vmatmul.mubr.msk.bf16.vlgmr.msra.gmra.mrb[28].mxu0 %vm1000_vm3, %v2748_v28 }
0x12dc   : > { %v7430_v52 = vpop.f32.mrb[48].mxu1 }
0x12dd   : > { %v2468_v45 = vpop.f32.mrb[49].mxu1  ;;  %v2488_v34 = vsel %vm1068_vm5, %v7430_v52, -inf }
0x12de   : > { %v7431_v60 = vpop.f32.mrb[50].mxu1  ;;  %v7446_v29 = vpop.f32.mrb[24].mxu0  ;;  %v2482_v30 = vsel %vm1061_vm4, %v2468_v45, -inf }
0x12df   : > { %v2632_v17 = vpop.f32.mrb[25].mxu0  ;;  %2483 = vmax.xlane.f32.xlu0 %v2482_v30  ;;  %v2471_v18 = vpop.f32.mrb[51].mxu1  ;;  %v2652_v0 = vsel %vm1068_vm5, %v7446_v29, -inf }
0x12e0   : > { %v7447_v21 = vpop.f32.mrb[26].mxu0  ;;  %v2485_v43 = vsel %vm1061_vm4, %v2471_v18, -inf  ;;  %v2646_v3 = vsel %vm1061_vm4, %v2632_v17, -inf }
0x12e1   : > { %v8913_v31 = vpop.f32.mrb[27].mxu0  ;;  %2486 = vmax.xlane.f32.xlu1 %v2485_v43 }
0x12e2   : > { %v2649_v37 = vsel %vm1061_vm4, %v8913_v31, -inf }
0x12e3   : > { %2489 = vmax.xlane.f32.xlu0 %v2488_v34 }
0x12e5   : > { %2653 = vmax.xlane.f32.xlu1 %v2652_v0 }
0x12e7   : > { %2647 = vmax.xlane.f32.xlu0 %v2646_v3 }
0x12eb   : > { %2650 = vmax.xlane.f32.xlu0 %v2649_v37 }
0x12ee   : > { %v7462_v38 = vpop.f32.mrb[28].mxu0 }
0x12ef   : > { %v2799_v39 = vpop.f32.mrb[29].mxu0  ;;  %v2819_v53 = vsel %vm1068_vm5, %v7462_v38, -inf }
0x12f0   : > { %v7463_v40 = vpop.f32.mrb[30].mxu0  ;;  %v2813_v41 = vsel %vm1061_vm4, %v2799_v39, -inf }
0x12f1   : > { %v2802_v42 = vpop.f32.mrb[31].mxu0  ;;  %2814 = vmax.xlane.f32.xlu0 %v2813_v41 }
0x12f2   : > { %v2816_v46 = vsel %vm1061_vm4, %v2802_v42, -inf }
0x12f3   : > { %2817 = vmax.xlane.f32.xlu1 %v2816_v46 }
0x12f5   : > { %2820 = vmax.xlane.f32.xlu0 %v2819_v53 }
0x136c   : > { %v2484_v47 = vpop.xlane.xlu0 %2483 }
0x136d   : > { %v2491_v58 = vsub.f32 %v2468_v45, %v2484_v47 }
0x136e   : > { %v2487_v48 = vpop.xlane.xlu1 %2486 }
0x136f   : > { %v2494_v56 = vmul.f32 1.442695, %v2491_v58  ;;  %v2492_v8 = vsub.f32 %v2471_v18, %v2487_v48 }
0x1370   : > { %v2490_v49 = vpop.xlane.xlu0 %2489 }
0x1371   : > { %v2493_v54 = vsub.f32 %v7430_v52, %v2490_v49  ;;  %v2496_v32 = vmul.f32 1.442695, %v2492_v8 }
0x1372   : > { %v2654_v2 = vpop.xlane.xlu1 %2653 }
0x1373   : > { %v2498_v5 = vmul.f32 1.442695, %v2493_v54  ;;  %v2657_v6 = vsub.f32 %v7446_v29, %v2654_v2 }
0x1374   : > { %v2648_v7 = vpop.xlane.xlu0 %2647 }
0x1375   : > { %8027 = vpow2.f32 %v2498_v5  ;;  %v2662_v10 = vmul.f32 1.442695, %v2657_v6  ;;  %v2655_v11 = vsub.f32 %v2632_v17, %v2648_v7 }
0x1376   : > { %8029 = vpow2.f32 %v2494_v56 }
0x1377   : > { %8031 = vpow2.f32 %v2662_v10  ;;  %v2658_v63 = vmul.f32 1.442695, %v2655_v11 }
0x1378   : > { %v2651_v23 = vpop.xlane.xlu0 %2650 }
0x1379   : > { %8033 = vpow2.f32 %v2658_v63  ;;  %v2656_v26 = vsub.f32 %v8913_v31, %v2651_v23 }
0x137a   : > { %8035 = vpow2.f32 %v2496_v32 }
0x137b   : > { %v2660_v45 = vmul.f32 1.442695, %v2656_v26 }
0x137d   : > { %8037 = vpow2.f32 %v2660_v45 }
0x137e   : > { %v2815_v24 = vpop.xlane.xlu0 %2814 }
0x137f   : > { %v8923_v12 = vpop.eup %8027  ;;  %v2822_v30 = vsub.f32 %v2799_v39, %v2815_v24 }
0x1380   : > { %v8925_v36 = vpop.eup %8029  ;;  %v2506_v13 = vsel %vm1068_vm5, %v8923_v12, 0.0  ;;  %v2818_v50 = vpop.xlane.xlu1 %2817 }
0x1381   : > { %v8929_v14 = vpop.eup %8031  ;;  %2507 = vadd.xlane.f32.xlu1 %v2506_v13  ;;  %v2500_v61 = vsel %vm1061_vm4, %v8925_v36, 0.0  ;;  %v2823_v52 = vsub.f32 %v2802_v42, %v2818_v50  ;;  %v2825_v18 = vmul.f32 1.442695, %v2822_v30 }
0x1382   : > { %v2670_v15 = vsel %vm1068_vm5, %v8929_v14, 0.0  ;;  %v2821_v28 = vpop.xlane.xlu0 %2820 }
0x1383   : > { %v8933_v16 = vpop.eup %8033  ;;  %2671 = vadd.xlane.f32.xlu0 %v2670_v15  ;;  %v2824_v60 = vsub.f32 %v7462_v38, %v2821_v28  ;;  %v2827_v29 = vmul.f32 1.442695, %v2823_v52 }
0x1384   : > { %v2664_v19 = vsel %vm1061_vm4, %v8933_v16, 0.0  ;;  %v8036_v20 = vpop.eup %8035 }
0x1385   : > { %2501 = vadd.xlane.f32.xlu1 %v2500_v61  ;;  %v2503_v22 = vsel %vm1061_vm4, %v8036_v20, 0.0  ;;  %v2829_v17 = vmul.f32 1.442695, %v2824_v60  ;;  %8039 = vpow2.f32 %v2827_v29 }
0x1387   : > { %2665 = vadd.xlane.f32.xlu0 %v2664_v19  ;;  %8041 = vpow2.f32 %v2829_v17  ;;  %v8038_v21 = vpop.eup %8037 }
0x1388   : > { %8043 = vpow2.f32 %v2825_v18  ;;  %v2667_v34 = vsel %vm1061_vm4, %v8038_v21, 0.0 }
0x138b   : > { %2504 = vadd.xlane.f32.xlu0 %v2503_v22 }
0x138f   : > { %v8947_v43 = vpop.eup %8039 }
0x1390   : > { %v2834_v31 = vsel %vm1061_vm4, %v8947_v43, 0.0 }
0x1391   : > { %v8950_v0 = vpop.eup %8041 }
0x1392   : > { %v2837_v3 = vsel %vm1068_vm5, %v8950_v0, 0.0  ;;  %v8956_v37 = vpop.eup %8043 }
0x1393   : > { %v2831_v38 = vsel %vm1061_vm4, %v8956_v37, 0.0 }
0x1396   : > { %2685 = vrot.lane.b32.xlu1 %v8897_v57, %s9967_s27 }
0x139a   : > { %2848 = vrot.lane.b32.xlu1 %v8857_v55, %s9968_s22 }
0x13a1   : > { %2683 = vrot.lane.b32.xlu0 %v8857_v55, %s9967_s27 }
0x13be   : > { %2668 = vadd.xlane.f32.xlu1 %v2667_v34 }
0x13c0   : > { %2835 = vadd.xlane.f32.xlu0 %v2834_v31 }
0x13c2   : > { %2838 = vadd.xlane.f32.xlu1 %v2837_v3 }
0x13c6   : > { %2832 = vadd.xlane.f32.xlu1 %v2831_v38 }
0x13d6   : > { %2914 = vrot.lane.b32.xlu0 %v8855_v51, %s9970_s21 }
0x13d7   : > { %2850 = vrot.lane.b32.xlu1 %v8897_v57, %s9968_s22 }
0x13da   : > { %2910 = vrot.lane.b32.xlu0 %v8859_v62, %s9971_s28 }
0x13db   : > { %2916 = vrot.lane.b32.xlu1 %v8867_v9, %s9970_s21 }
0x13df   : > { %2912 = vrot.lane.b32.xlu1 %v8871_v33, %s9971_s28 }
0x140e   : > { %v2508_v39 = vpop.xlane.xlu1 %2507 }
0x140f   : > { %8045 = vrcp.f32 %v2508_v39 }
0x1410   : > { %v2672_v40 = vpop.xlane.xlu0 %2671 }
0x1412   : > { %v2502_v41 = vpop.xlane.xlu1 %2501 }
0x1413   : > { %8047 = vrcp.f32 %v2502_v41 }
0x1414   : > { %v2666_v42 = vpop.xlane.xlu0 %2665 }
0x1416   : > { %v2686_v49 = vpop.permute.xlu1 %2685 }
0x1417   : > { %v2695_v56 = vand.u32 %v2686_v49, %v8521_v59 }
0x1418   : > { %v2505_v46 = vpop.xlane.xlu0 %2504 }
0x1419   : > { %8049 = vrcp.f32 %v2505_v46  ;;  %v8046_v53 = vpop.eup %8045 }
0x141a   : > { %v2514_v62 = vmul.f32 %v8046_v53, %v8923_v12  ;;  %v2849_v2 = vpop.permute.xlu1 %2848  ;;  %8051 = vrcp.f32 %v2672_v40 }
0x141b   : > { %8053 = vrcp.f32 %v2666_v42 }
0x141c   : > { %v2684_v51 = vpop.permute.xlu0 %2683  ;;  %v2516_v54 = vpack.c.bf16 %v2514_v62, %v2514_v62 }
0x141d   : > { %7448 = vmatprep.subr.bf16.mxu1 %v2684_v51  ;;  %v8048_v47 = vpop.eup %8047 }
0x141e   : > { %v2512_v9 = vmul.f32 %v8048_v47, %v8925_v36 }
0x1423   : > { %v8050_v58 = vpop.eup %8049 }
0x1424   : > { %v2513_v48 = vmul.f32 %v8050_v58, %v8036_v20  ;;  %v8052_v8 = vpop.eup %8051 }
0x1425   : > { %v8054_v11 = vpop.eup %8053  ;;  %v2678_v32 = vmul.f32 %v8052_v8, %v8929_v14 }
0x1426   : > { %v2515_v33 = vpack.c.bf16 %v2513_v48, %v2512_v9  ;;  %v2676_v12 = vmul.f32 %v8054_v11, %v8933_v16 }
0x1427   : > { %v2680_v61 = vpack.c.bf16 %v2678_v32, %v2678_v32 }
0x1428   : > { %7436 = vmatprep.mubr.msk.bf16.mxu1 %vm1061_vm4, %v2515_v33 }
0x1429   : > { %7437 = vmatmul.mubr.msk.bf16.vlgmr.msra.gmra.mrb[52].mxu1 %vm1061_vm4, %v2516_v54 }
0x142a   : > { %7449 = vmatpush3.bf16.msra.mxu1 %v2684_v51 }
0x142b   : > { %7450 = vmatprep.subr.bf16.mxu1 %v2695_v56 }
0x142e   : > { %7451 = vmatpush3.bf16.msra.mxu1 %v2695_v56 }
0x142f   : > { %7464 = vmatprep.subr.bf16.mxu1 %v2849_v2 }
0x144b   : > { %v2669_v5 = vpop.xlane.xlu1 %2668 }
0x144c   : > { %8055 = vrcp.f32 %v2669_v5 }
0x144d   : > { %v2836_v6 = vpop.xlane.xlu0 %2835 }
0x144f   : > { %v2839_v7 = vpop.xlane.xlu1 %2838 }
0x1450   : > { %8057 = vrcp.f32 %v2839_v7 }
0x1451   : > { %8059 = vrcp.f32 %v2836_v6  ;;  %v2915_v24 = vpop.permute.xlu0 %2914 }
0x1452   : > { %v2925_v45 = vsel %vm1000_vm3, %v2915_v24, 0 }
0x1453   : > { %v2833_v10 = vpop.xlane.xlu1 %2832 }
0x1454   : > { %8061 = vrcp.f32 %v2833_v10 }
0x1455   : > { %v2911_v52 = vpop.permute.xlu0 %2910 }
0x1456   : > { %v8056_v63 = vpop.eup %8055 }
0x1457   : > { %v2677_v36 = vmul.f32 %v8056_v63, %v8038_v21  ;;  %v2851_v13 = vpop.permute.xlu1 %2850 }
0x1458   : > { %v2860_v22 = vand.u32 %v2851_v13, %v8521_v59 }
0x1459   : > { %v2679_v15 = vpack.c.bf16 %v2677_v36, %v2676_v12 }
0x145a   : > { %v8058_v19 = vpop.eup %8057 }
0x145b   : > { %7452 = vmatprep.mubr.msk.bf16.mxu1 %vm1061_vm4, %v2679_v15  ;;  %v8060_v20 = vpop.eup %8059  ;;  %v2845_v14 = vmul.f32 %v8058_v19, %v8950_v0  ;;  %v2917_v60 = vpop.permute.xlu1 %2916 }
0x145c   : > { %7453 = vmatmul.mubr.msk.bf16.vlgmr.msra.gmra.mrb[56].mxu1 %vm1061_vm4, %v2680_v61  ;;  %v2844_v50 = vmul.f32 %v8060_v20, %v8947_v43  ;;  %v2928_v29 = vsel %vm1000_vm3, %v2917_v60, 0 }
0x145d   : > { %7465 = vmatpush3.bf16.msra.mxu1 %v2849_v2  ;;  %v2847_v28 = vpack.c.bf16 %v2845_v14, %v2845_v14 }
0x145e   : > { %v8062_v23 = vpop.eup %8061  ;;  %7466 = vmatprep.subr.bf16.mxu1 %v2860_v22 }
0x145f   : > { %v2843_v16 = vmul.f32 %v8062_v23, %v8956_v37  ;;  %v2913_v30 = vpop.permute.xlu1 %2912 }
0x1461   : > { %7467 = vmatpush3.bf16.msra.mxu1 %v2860_v22  ;;  %v2846_v26 = vpack.c.bf16 %v2844_v50, %v2843_v16 }
0x1462   : > { %7666 = vmatprep.subr.msk.bf16.mxu1 %vm1000_vm3, %v2915_v24 }
0x1463   : > { %7468 = vmatprep.mubr.msk.bf16.mxu1 %vm1061_vm4, %v2846_v26  ;;  %v7829_v26 = vld [vmem:[%s9923_s9 + $0x20] sm:$0xff]  }
0x1464   : > { %7469 = vmatmul.mubr.msk.bf16.vlgmr.msra.gmra.mrb[60].mxu1 %vm1061_vm4, %v2847_v28  ;;  %v7830_v28 = vld [vmem:[%s9923_s9 + $0x28] sm:$0xff]  }
0x1465   : > { %7476 = vmatprep.mubr.msk.bf16.mxu1 %vm1000_vm3, %v2911_v52  ;;  %v7831_v52 = vld [vmem:[%s9923_s9 + $0x30] sm:$0xff]  }
0x146a   : > { %7473 = vmatpush3.bf16.xpose.msra.mxu1 %v2925_v45  ;;  %v7832_v45 = vld [vmem:[%s9923_s9 + $0x38] sm:$0xff]  }
0x146b   : > { %7667 = vmatprep.subr.msk.bf16.mxu1 %vm1000_vm3, %v2917_v60 }
0x1472   : > { %7475 = vmatpush3.bf16.xpose.msra.mxu1 %v2928_v29 }
0x1479   : > { %7477 = vmatmul.mubr.msk.bf16.vlgmr.msra.gmra.mrb[64].mxu1 %vm1000_vm3, %v2913_v30 }
0x147a   : > { %3372 = vmatprep.mubr.bf16.mxu1 %v8245_v1 }
0x14fc   : > { %v8992_v17 = vpop.f32.mrb[52].mxu1 }
0x14fd   : > { %v8994_v18 = vpop.f32.mrb[53].mxu1 }
0x14fe   : > { %v7439_v21 = vpop.f32.mrb[54].mxu1 }
0x14ff   : > { %v8996_v43 = vpop.f32.mrb[55].mxu1 }
0x152f   : > { %v7454_v34 = vpop.f32.mrb[56].mxu1 }
0x1530   : > { %v2731_v0 = vpop.f32.mrb[57].mxu1 }
0x1531   : > { %v7455_v31 = vpop.f32.mrb[58].mxu1 }
0x1532   : > { %v2734_v3 = vpop.f32.mrb[59].mxu1 }
0x1533   : > { %v7716_v37 = vpack.i.bf16 %v2734_v3, %v2731_v0 }
0x1537   : > { %v7470_v38 = vpop.f32.mrb[60].mxu1 }
0x1538   : > { %v2896_v39 = vpop.f32.mrb[61].mxu1 }
0x1539   : > { %v7471_v40 = vpop.f32.mrb[62].mxu1 }
0x153a   : > { %v2899_v41 = vpop.f32.mrb[63].mxu1 }
0x153b   : > { %v7721_v42 = vpack.i.bf16 %v2899_v41, %v2896_v39 }
0x154c   : > { %v7478_v46 = vpop.f32.mrb[64].mxu1 }
0x154d   : > { %v2964_v51 = vpop.f32.mrb[65].mxu1  ;;  %v2984_v9 = vsel %vm1068_vm5, %v7478_v46, -inf }
0x154e   : > { %v7479_v53 = vpop.f32.mrb[66].mxu1  ;;  %v2978_v47 = vsel %vm1061_vm4, %v2964_v51, -inf }
0x154f   : > { %2979 = vmax.xlane.f32.xlu0 %v2978_v47  ;;  %v2967_v58 = vpop.f32.mrb[67].mxu1 }
0x1550   : > { %v2981_v62 = vsel %vm1061_vm4, %v2967_v58, -inf }
0x1551   : > { %2982 = vmax.xlane.f32.xlu1 %v2981_v62 }
0x1553   : > { %2985 = vmax.xlane.f32.xlu0 %v2984_v9 }
0x15dc   : > { %v2980_v48 = vpop.xlane.xlu0 %2979 }
0x15dd   : > { %v2987_v49 = vsub.f32 %v2964_v51, %v2980_v48 }
0x15de   : > { %v2983_v33 = vpop.xlane.xlu1 %2982 }
0x15df   : > { %v2990_v54 = vmul.f32 1.442695, %v2987_v49  ;;  %v2988_v56 = vsub.f32 %v2967_v58, %v2983_v33 }
0x15e0   : > { %v2986_v2 = vpop.xlane.xlu0 %2985 }
0x15e1   : > { %8063 = vpow2.f32 %v2990_v54  ;;  %v2992_v5 = vmul.f32 1.442695, %v2988_v56  ;;  %v2989_v6 = vsub.f32 %v7478_v46, %v2986_v2 }
0x15e3   : > { %8065 = vpow2.f32 %v2992_v5  ;;  %v2994_v7 = vmul.f32 1.442695, %v2989_v6 }
0x15e5   : > { %8067 = vpow2.f32 %v2994_v7 }
0x15eb   : > { %v8064_v8 = vpop.eup %8063 }
0x15ec   : > { %v2996_v10 = vsel %vm1061_vm4, %v8064_v8, 0.0 }
0x15ed   : > { %v8066_v11 = vpop.eup %8065  ;;  %2997 = vadd.xlane.f32.xlu0 %v2996_v10 }
0x15ee   : > { %v2999_v12 = vsel %vm1061_vm4, %v8066_v11, 0.0 }
0x15ef   : > { %v8068_v63 = vpop.eup %8067 }
0x15f0   : > { %v3002_v32 = vsel %vm1068_vm5, %v8068_v63, 0.0 }
0x15f1   : > { %3003 = vadd.xlane.f32.xlu1 %v3002_v32  ;;  %3000 = vadd.xlane.f32.xlu0 %v2999_v12 }
0x1602   : > { %3015 = vrot.lane.b32.xlu1 %v8897_v57, %s9971_s28 }
0x1606   : > { %7717 = vrot.lane.b32.xlu1 %v7716_v37, %s9970_s21 }
0x1607   : > { %3013 = vrot.lane.b32.xlu0 %v8857_v55, %s9971_s28 }
0x160a   : > { %3082 = vrot.lane.b32.xlu1 %v7454_v34, %s9970_s21 }
0x160b   : > { %7722 = vrot.lane.b32.xlu0 %v7721_v42, %s9969_s2 }
0x160e   : > { %3094 = vrot.lane.b32.xlu1 %v7470_v38, %s9969_s2 }
0x167a   : > { %v2998_v36 = vpop.xlane.xlu0 %2997 }
0x167b   : > { %8069 = vrcp.f32 %v2998_v36 }
0x167e   : > { %v3001_v13 = vpop.xlane.xlu0 %3000  ;;  %v3004_v15 = vpop.xlane.xlu1 %3003 }
0x167f   : > { %8071 = vrcp.f32 %v3001_v13 }
0x1680   : > { %8073 = vrcp.f32 %v3004_v15 }
0x1682   : > { %v3014_v61 = vpop.permute.xlu0 %3013  ;;  %v3016_v19 = vpop.permute.xlu1 %3015 }
0x1683   : > { %v3025_v57 = vand.u32 %v3016_v19, %v8521_v59  ;;  %7480 = vmatprep.subr.bf16.mxu0 %v3014_v61 }
0x1684   : > { %7481 = vmatpush3.bf16.msra.mxu0 %v3014_v61 }
0x1685   : > { %7482 = vmatprep.subr.bf16.mxu0 %v3025_v57  ;;  %v8070_v55 = vpop.eup %8069 }
0x1686   : > { %v3008_v23 = vmul.f32 %v8070_v55, %v8064_v8  ;;  %v7718_v0 = vpop.permute.xlu1 %7717  ;;  %v7723_v3 = vpop.permute.xlu0 %7722 }
0x1687   : > { %v7720_v37 = vunpack.i.h.bf16 %v7718_v0  ;;  %v7719_v38 = vunpack.i.l.bf16 %v7718_v0  ;;  %v7725_v40 = vunpack.i.h.bf16 %v7723_v3  ;;  %v7724_v41 = vunpack.i.l.bf16 %v7723_v3 }
0x1688   : > { %7483 = vmatpush3.bf16.msra.mxu0 %v3025_v57 }
0x1689   : > { %v8072_v20 = vpop.eup %8071  ;;  %7488 = vmatprep.subr.bf16.mxu0 %v7829_v26  ;;  %v3112_v42 = vsel %vm1000_vm3, %v8996_v43, %v7720_v37  ;;  %v3111_v46 = vsel %vm1000_vm3, %v8994_v18, %v7719_v38 }
0x168a   : > { %v8074_v22 = vpop.eup %8073  ;;  %v3009_v24 = vmul.f32 %v8072_v20, %v8066_v11  ;;  %v3083_v31 = vpop.permute.xlu1 %3082  ;;  %v3114_v49 = vsel %vm1697_vm6, %v3111_v46, %v7724_v41  ;;  %v3115_v33 = vsel %vm1697_vm6, %v3112_v42, %v7725_v40 }
0x168b   : > { %v3010_v14 = vmul.f32 %v8074_v22, %v8068_v63  ;;  %v3113_v53 = vsel %vm1000_vm3, %v8992_v17, %v3083_v31  ;;  %v6745_v17 = vld [vmem:[%s9924_s10 + $0x1] ss:$0 sm:$0xff] }
0x168c   : > { %v3011_v16 = vpack.c.bf16 %v3009_v24, %v3008_v23 }
0x168d   : > { %v3012_v50 = vpack.c.bf16 %v3010_v14, %v3010_v14 }
0x168e   : > { %7484 = vmatprep.mubr.msk.bf16.mxu0 %vm1061_vm4, %v3011_v16  ;;  %v3095_v39 = vpop.permute.xlu1 %3094 }
0x168f   : > { %7485 = vmatmul.mubr.msk.bf16.vlgmr.msra.gmra.mrb[32].mxu0 %vm1061_vm4, %v3012_v50  ;;  %v3116_v58 = vsel %vm1697_vm6, %v3113_v53, %v3095_v39  ;;  %v6754_v53 = vld [vmem:[%s9925_s11 + $0x1] ss:$0 sm:$0xff] }
0x1690   : > { %7489 = vmatpush3.bf16.msra.mxu0 %v7829_v26 }
0x1691   : > { %7490 = vmatprep.subr.bf16.mxu0 %v7830_v28 }
0x1694   : > { %7491 = vmatpush3.bf16.msra.mxu0 %v7830_v28  ;;  %v7835_v28 = vld [vmem:[%s9927_s13 + $0x44] ss:$8 sps:$4 sm:$0xff]  }
0x1695   : > { %7492 = vmatprep.subr.bf16.mxu0 %v7831_v52  ;;  %3340 = vmatprep.subr.bf16.mxu1 %v7835_v28 }
0x1698   : > { %7493 = vmatpush3.bf16.msra.mxu0 %v7831_v52  ;;  %v7833_v52 = vld [vmem:[%s9927_s13 + $0x40] ss:$8 sps:$4 sm:$0xff]  }
0x1699   : > { %7494 = vmatprep.subr.bf16.mxu0 %v7832_v45  ;;  %3341 = vmatpush1.bf16.msra.mxu1 %v7833_v52 }
0x169c   : > { %7495 = vmatpush3.bf16.msra.mxu0 %v7832_v45  ;;  %v7838_v45 = vld [vmem:[%s9927_s13 + $0x54] ss:$8 sps:$4 sm:$0xff]  }
0x169d   : > { %3342 = vmatprep.subr.bf16.mxu1 %v7838_v45 }
0x1762   : > { %v7486_v60 = vpop.f32.mrb[32].mxu0 }
0x1763   : > { %3106 = vrot.lane.b32.xlu1 %v7486_v60, %s9972_s26  ;;  %v3061_v29 = vpop.f32.mrb[33].mxu0  ;;  %v7836_v60 = vld [vmem:[%s9927_s13 + $0x50] ss:$8 sps:$4 sm:$0xff]  }
0x1764   : > { %v7487_v30 = vpop.f32.mrb[34].mxu0  ;;  %3343 = vmatpush1.bf16.msra.mxu1 %v7836_v60 }
0x1765   : > { %v3064_v21 = vpop.f32.mrb[35].mxu0  ;;  %v7839_v30 = vld [vmem:[%s9927_s13 + $0x60] ss:$8 sps:$4 sm:$0xff]  }
0x1766   : > { %v7726_v34 = vpack.i.bf16 %v3064_v21, %v3061_v29  ;;  %v7841_v29 = vld [vmem:[%s9927_s13 + $0x64] ss:$8 sps:$4 sm:$0xff]   ;;  %v7842_v21 = vld [vmem:[%s9927_s13 + $0x70] ss:$8 sps:$4 sm:$0xff]  }
0x1767   : > { %3344 = vmatprep.subr.bf16.mxu1 %v7841_v29 }
0x1768   : > { %7727 = vrot.lane.b32.xlu0 %v7726_v34, %s9972_s26  ;;  %3345 = vmatpush1.bf16.msra.mxu1 %v7839_v30  ;;  %v7844_v34 = vld [vmem:[%s9927_s13 + $0x74] ss:$8 sps:$4 sm:$0xff]  }
0x1769   : > { %3346 = vmatprep.subr.bf16.mxu1 %v7844_v34 }
0x176c   : > { %3347 = vmatpush1.bf16.msra.mxu1 %v7842_v21 }
0x17d5   : > { %v3107_v51 = vpop.permute.xlu1 %3106 }
0x17d6   : > { %v3119_v48 = vsel %vm1701_vm7, %v3116_v58, %v3107_v51 }
0x17d7   : > { %v3121_v56 = vpack.c.bf16 %v3119_v48, %v3119_v48  ;;  %v6755_v48 = vld [vmem:[%s9926_s12 + $0x1] ss:$0 sm:$0xff] }
0x17da   : > { %v7728_v47 = vpop.permute.xlu0 %7727 }
0x17db   : > { %v7730_v62 = vunpack.i.h.bf16 %v7728_v47  ;;  %v7729_v9 = vunpack.i.l.bf16 %v7728_v47 }
0x17dd   : > { %v3117_v43 = vsel %vm1701_vm7, %v3114_v49, %v7729_v9  ;;  %v3118_v54 = vsel %vm1701_vm7, %v3115_v33, %v7730_v62 }
0x17de   : > { %v3120_v18 = vpack.c.bf16 %v3118_v54, %v3117_v43 }
0x17e0   : > { %7496 = vmatprep.mubr.msk.bf16.mxu0 %vm738_vm0, %v3120_v18 }
0x17e1   : > { %7497 = vmatmul.mubr.msk.bf16.vlgmr.msra.gmra.mrb[36].mxu0 %vm738_vm0, %v3121_v56 }
0x18b4   : > { %v7498_v2 = vpop.f32.mrb[36].mxu0 }
0x18b5   : > { %v3192_v5 = vpop.f32.mrb[37].mxu0  ;;  %v3201_v6 = vadd.f32 %v7498_v2, %v6745_v17 }
0x18b6   : > { %v3193_v7 = vadd.f32 %v6745_v17, %v3192_v5  ;;  %v7499_v8 = vpop.f32.mrb[38].mxu0  ;;  %v7845_v5 = vld [vmem:[%s9929_s15 + $0xc0] sm:$0xff]  }
0x18b7   : > { %v3195_v10 = vpop.f32.mrb[39].mxu0  ;;  %v9050_v32 = vadd.f32 %v3201_v6, %v8807_v44  ;;  %v7846_v6 = vld [vmem:[%s9929_s15 + $0x80] sm:$0xff]   ;;  %7188 = vmatprep.subr.bf16.mxu0 %v7845_v5  ;;  %v7848_v8 = vld [vmem:[%s9929_s15 + $0x88] sm:$0xff]  }
0x18b8   : > { %v9047_v11 = vadd.f32 %v3193_v7, %v8797_v4  ;;  %v3196_v63 = vadd.f32 %v6745_v17, %v3195_v10  ;;  %7189 = vmatpush3.bf16.msra.mxu0 %v7846_v6  ;;  %v7847_v7 = vld [vmem:[%s9929_s15 + $0xc8] sm:$0xff]   ;;  %v7849_v10 = vld [vmem:[%s9929_s15 + $0xd0] sm:$0xff]  }
0x18b9   : > { %v3219_v15 = vsel %vm806_vm2, %v9050_v32, 0.0  ;;  %7190 = vmatprep.subr.bf16.mxu0 %v7847_v7 }
0x18ba   : > { %v9053_v12 = vadd.f32 %v3196_v63, %v8800_v35  ;;  %v3213_v36 = vsel %vm738_vm0, %v9047_v11, 0.0  ;;  %v7850_v63 = vld [vmem:[%s9929_s15 + $0x90] sm:$0xff]  }
0x18bb   : > { %3214 = vadd.xlane.f32.xlu0 %v3213_v36  ;;  %v7851_v36 = vld [vmem:[%s9929_s15 + $0xd8] sm:$0xff]  }
0x18bc   : > { %v3216_v13 = vsel %vm738_vm0, %v9053_v12, 0.0  ;;  %7191 = vmatpush3.bf16.msra.mxu0 %v7848_v8 }
0x18bd   : > { %3217 = vadd.xlane.f32.xlu1 %v3216_v13  ;;  %7192 = vmatprep.subr.bf16.mxu0 %v7849_v10  ;;  %v7852_v13 = vld [vmem:[%s9929_s15 + $0x98] sm:$0xff]  }
0x18bf   : > { %3220 = vadd.xlane.f32.xlu0 %v3219_v15  ;;  %v7853_v15 = vld [vmem:[%s9929_s15 + $0xe0] sm:$0xff]  }
0x18c0   : > { %7193 = vmatpush3.bf16.msra.mxu0 %v7850_v63 }
0x18c1   : > { %7194 = vmatprep.subr.bf16.mxu0 %v7851_v36 }
0x18c4   : > { %7195 = vmatpush3.bf16.msra.mxu0 %v7852_v13 }
0x18c5   : > { %7196 = vmatprep.subr.bf16.mxu0 %v7853_v15 }
0x1948   : > { %v3215_v4 = vpop.xlane.xlu0 %3214 }
0x1949   : > { %v3222_v61 = vmul.f32 0.015625, %v3215_v4  ;;  %v7854_v4 = vld [vmem:[%s9929_s15 + $0xa0] sm:$0xff]  }
0x194a   : > { %v3218_v19 = vpop.xlane.xlu1 %3217  ;;  %7197 = vmatpush3.bf16.msra.mxu0 %v7854_v4 }
0x194b   : > { %v3225_v44 = vsub.f32 %v9047_v11, %v3222_v61  ;;  %v3223_v57 = vmul.f32 0.015625, %v3218_v19  ;;  %v7855_v61 = vld [vmem:[%s9929_s15 + $0xe8] sm:$0xff]  }
0x194c   : > { %v3221_v35 = vpop.xlane.xlu0 %3220  ;;  %v7856_v19 = vld [vmem:[%s9929_s15 + $0xa8] sm:$0xff]   ;;  %7198 = vmatprep.subr.bf16.mxu0 %v7855_v61 }
0x194d   : > { %v3226_v55 = vsub.f32 %v9053_v12, %v3223_v57  ;;  %v3224_v20 = vmul.f32 0.015625, %v3221_v35  ;;  %v3228_v22 = vmul.f32 %v3225_v44, %v3225_v44  ;;  %v7858_v57 = vld [vmem:[%s9929_s15 + $0xb0] sm:$0xff]   ;;  %v7859_v35 = vld [vmem:[%s9929_s15 + $0xf8] sm:$0xff]  }
0x194e   : > { %7199 = vmatpush3.bf16.msra.mxu0 %v7856_v19 }
0x194f   : > { %v3227_v23 = vsub.f32 %v9050_v32, %v3224_v20  ;;  %v3231_v24 = vsel %vm738_vm0, %v3228_v22, 0.0  ;;  %v3229_v14 = vmul.f32 %v3226_v55, %v3226_v55  ;;  %v6764_v20 = vld [vmem:[%s9928_s14 + $0x2] sm:$0x3] }
0x1950   : > { %3232 = vadd.xlane.f32.xlu0 %v3231_v24  ;;  %v3287_v22 = vrot.slane %v6764_v20, %v8489_v25 }
0x1951   : > { %v3230_v16 = vmul.f32 %v3227_v23, %v3227_v23  ;;  %v3234_v50 = vsel %vm738_vm0, %v3229_v14, 0.0 }
0x1953   : > { %v3237_v26 = vsel %vm806_vm2, %v3230_v16, 0.0 }
0x1954   : > { %3235 = vadd.xlane.f32.xlu0 %v3234_v50  ;;  %3238 = vadd.xlane.f32.xlu1 %v3237_v26 }
0x19dd   : > { %v3233_v0 = vpop.xlane.xlu0 %3232 }
0x19de   : > { %v3240_v31 = vmul.f32 0.015625, %v3233_v0 }
0x19e0   : > { %v3243_v3 = vadd.f32 1e-06, %v3240_v31 }
0x19e1   : > { %v3239_v37 = vpop.xlane.xlu1 %3238  ;;  %v3236_v38 = vpop.xlane.xlu0 %3235 }
0x19e2   : > { %8075 = vrsqrt.f32 %v3243_v3  ;;  %v3242_v39 = vmul.f32 0.015625, %v3239_v37  ;;  %v3241_v40 = vmul.f32 0.015625, %v3236_v38 }
0x19e4   : > { %v3245_v41 = vadd.f32 1e-06, %v3242_v39  ;;  %v3244_v42 = vadd.f32 1e-06, %v3241_v40 }
0x19e6   : > { %8077 = vrsqrt.f32 %v3245_v41 }
0x19e7   : > { %8079 = vrsqrt.f32 %v3244_v42 }
0x19ec   : > { %v8076_v46 = vpop.eup %8075 }
0x19ed   : > { %v3249_v51 = vmul.f32 %v8076_v46, %v3225_v44  ;;  %v7857_v44 = vld [vmem:[%s9929_s15 + $0xf0] sm:$0xff]  }
0x19ee   : > { %7200 = vmatprep.subr.bf16.mxu0 %v7857_v44 }
0x19ef   : > { %v3258_v62 = vmul.f32 %v6754_v53, %v3249_v51  ;;  %7201 = vmatpush3.bf16.msra.mxu0 %v7858_v57 }
0x19f0   : > { %v8078_v47 = vpop.eup %8077  ;;  %7202 = vmatprep.subr.bf16.mxu0 %v7859_v35 }
0x19f1   : > { %v8080_v58 = vpop.eup %8079  ;;  %v3251_v33 = vmul.f32 %v8078_v47, %v3227_v23  ;;  %v3267_v43 = vadd.f32 %v6755_v48, %v3258_v62  ;;  %v3291_v23 = vrot.slane %v6764_v20, %v8494_v27 }
0x19f2   : > { %v3250_v9 = vmul.f32 %v8080_v58, %v3226_v55  ;;  %v7860_v55 = vld [vmem:[%s9929_s15 + $0xb8] sm:$0xff]  }
0x19f3   : > { %v3260_v56 = vmul.f32 %v6754_v53, %v3251_v33  ;;  %7203 = vmatpush3.bf16.msra.mxu0 %v7860_v55 }
0x19f4   : > { %v3259_v49 = vmul.f32 %v6754_v53, %v3250_v9 }
0x19f5   : > { %v3269_v17 = vadd.f32 %v6755_v48, %v3260_v56 }
0x19f6   : > { %v3268_v54 = vadd.f32 %v6755_v48, %v3259_v49 }
0x19f7   : > { %v3282_v2 = vpack.c.bf16 %v3269_v17, %v3269_v17 }
0x19f8   : > { %v3281_v18 = vpack.c.bf16 %v3268_v54, %v3267_v43 }
0x19fa   : > { %6773 = vmatmul.mubr.msk.bf16.vlgmr.msra.gmra.mrb[68].mxu1 %vm738_vm0, %v3281_v18 }
0x19fb   : > { %3382 = vmatprep.mubr.bf16.mxu1 %v8245_v1 }
0x1a02   : > { %6774 = vmatmul.mubr.msk.bf16.gmra.mrb[72].mxu1 %vm738_vm0, %v3282_v2 }
0x1a03   : > { %3814 = vmatprep.mubr.bf16.mxu1 %v8245_v1 }
0x1acd   : > { %v3374_v24 = vpop.f32.mrb[68].mxu1 }
0x1ace   : > { %v3375_v14 = vadd.f32 %v3374_v24, %v3287_v22  ;;  %v3376_v16 = vpop.f32.mrb[69].mxu1 }
0x1acf   : > { %v3377_v50 = vadd.f32 %v3376_v16, %v3291_v23  ;;  %v3378_v26 = vpop.f32.mrb[70].mxu1 }
0x1ad0   : > { %v3391_v28 = vmul.f32 %v3375_v14, %v3375_v14  ;;  %v3379_v52 = vadd.f32 %v3378_v26, %v3287_v22  ;;  %v3380_v45 = vpop.f32.mrb[71].mxu1 }
0x1ad1   : > { %v3392_v60 = vmul.f32 %v3377_v50, %v3377_v50  ;;  %v3381_v29 = vadd.f32 %v3380_v45, %v3291_v23 }
0x1ad2   : > { %v3397_v30 = vmul.f32 %v3391_v28, %v3375_v14  ;;  %v3393_v21 = vmul.f32 %v3379_v52, %v3379_v52 }
0x1ad3   : > { %v3398_v34 = vmul.f32 %v3392_v60, %v3377_v50  ;;  %v3394_v0 = vmul.f32 %v3381_v29, %v3381_v29 }
0x1ad4   : > { %v3403_v31 = vmul.f32 0.044715, %v3397_v30  ;;  %v3399_v3 = vmul.f32 %v3393_v21, %v3379_v52 }
0x1ad5   : > { %v3404_v37 = vmul.f32 0.044715, %v3398_v34  ;;  %v3400_v38 = vmul.f32 %v3394_v0, %v3381_v29  ;;  %v3384_v39 = vpop.f32.mrb[72].mxu1 }
0x1ad6   : > { %v3409_v40 = vadd.f32 %v3403_v31, %v3375_v14  ;;  %v3405_v41 = vmul.f32 0.044715, %v3399_v3  ;;  %v3385_v42 = vadd.f32 %v3384_v39, %v3287_v22  ;;  %v3386_v46 = vpop.f32.mrb[73].mxu1 }
0x1ad7   : > { %v3410_v51 = vadd.f32 %v3404_v37, %v3377_v50  ;;  %v3406_v53 = vmul.f32 0.044715, %v3400_v38  ;;  %v3387_v47 = vadd.f32 %v3386_v46, %v3291_v23  ;;  %v3388_v58 = vpop.f32.mrb[74].mxu1 }
0x1ad8   : > { %v3415_v62 = vmul.f32 0.7978846, %v3409_v40  ;;  %v3411_v9 = vadd.f32 %v3405_v41, %v3379_v52  ;;  %v3395_v48 = vmul.f32 %v3385_v42, %v3385_v42  ;;  %v3389_v49 = vpop.f32.mrb[75].mxu1 }
0x1ad9   : > { %v3416_v33 = vmul.f32 0.7978846, %v3410_v51  ;;  %v3412_v43 = vadd.f32 %v3406_v53, %v3381_v29  ;;  %v3396_v54 = vmul.f32 %v3387_v47, %v3387_v47 }
0x1ada   : > { %8081 = vtanh.f32 %v3415_v62  ;;  %v3417_v18 = vmul.f32 0.7978846, %v3411_v9  ;;  %v3401_v56 = vmul.f32 %v3395_v48, %v3385_v42 }
0x1adb   : > { %8083 = vtanh.f32 %v3416_v33  ;;  %v3418_v17 = vmul.f32 0.7978846, %v3412_v43  ;;  %v3402_v2 = vmul.f32 %v3396_v54, %v3387_v47 }
0x1adc   : > { %8085 = vtanh.f32 %v3417_v18  ;;  %v3407_v5 = vmul.f32 0.044715, %v3401_v56 }
0x1add   : > { %8087 = vtanh.f32 %v3418_v17  ;;  %v3408_v6 = vmul.f32 0.044715, %v3402_v2 }
0x1ade   : > { %v3413_v7 = vadd.f32 %v3407_v5, %v3385_v42 }
0x1adf   : > { %v3414_v8 = vadd.f32 %v3408_v6, %v3387_v47 }
0x1ae0   : > { %v3419_v10 = vmul.f32 0.7978846, %v3413_v7 }
0x1ae1   : > { %v3420_v63 = vmul.f32 0.7978846, %v3414_v8 }
0x1ae2   : > { %8089 = vtanh.f32 %v3419_v10 }
0x1ae3   : > { %8091 = vtanh.f32 %v3420_v63 }
0x1ae4   : > { %v8082_v36 = vpop.eup %8081 }
0x1ae5   : > { %v8084_v13 = vpop.eup %8083  ;;  %v3427_v15 = vadd.f32 1.0, %v8082_v36 }
0x1ae6   : > { %v8086_v4 = vpop.eup %8085  ;;  %v3428_v61 = vadd.f32 1.0, %v8084_v13 }
0x1ae7   : > { %v8088_v19 = vpop.eup %8087  ;;  %v3433_v44 = vmul.f32 0.5, %v3427_v15  ;;  %v3429_v57 = vadd.f32 1.0, %v8086_v4 }
0x1ae8   : > { %v3430_v35 = vadd.f32 1.0, %v8088_v19  ;;  %v3434_v55 = vmul.f32 0.5, %v3428_v61  ;;  %v7863_v61 = vld [vmem:[%s9921_s7 + $0x84] ss:$8 sps:$4 sm:$0xff]   ;;  %v7861_v19 = vld [vmem:[%s9921_s7 + $0x80] ss:$8 sps:$4 sm:$0xff]  }
0x1ae9   : > { %v3435_v20 = vmul.f32 0.5, %v3429_v57  ;;  %v3439_v23 = vmul.f32 %v3433_v44, %v3375_v14  ;;  %3782 = vmatprep.subr.bf16.mxu1 %v7863_v61  ;;  %v7866_v44 = vld [vmem:[%s9921_s7 + $0x94] ss:$8 sps:$4 sm:$0xff]   ;;  %v7864_v57 = vld [vmem:[%s9921_s7 + $0x90] ss:$8 sps:$4 sm:$0xff]  }
0x1aea   : > { %v3436_v22 = vmul.f32 0.5, %v3430_v35  ;;  %v3440_v26 = vmul.f32 %v3434_v55, %v3377_v50  ;;  %v6808_v50 = vld [vmem:[%s9930_s16 + $0x1] ss:$0 sm:$0xff]  ;;  %3783 = vmatpush1.bf16.msra.mxu1 %v7861_v19  ;;  %v7869_v35 = vld [vmem:[%s9921_s7 + $0xa4] ss:$8 sps:$4 sm:$0xff]  }
0x1aeb   : > { %v3441_v24 = vmul.f32 %v3435_v20, %v3379_v52  ;;  %3784 = vmatprep.subr.bf16.mxu1 %v7866_v44  ;;  %v7867_v55 = vld [vmem:[%s9921_s7 + $0xa0] ss:$8 sps:$4 sm:$0xff]   ;;  %v7872_v20 = vld [vmem:[%s9921_s7 + $0xb4] ss:$8 sps:$4 sm:$0xff]  }
0x1aec   : > { %v8090_v16 = vpop.eup %8089  ;;  %v3442_v28 = vmul.f32 %v3436_v22, %v3381_v29  ;;  %v7870_v22 = vld [vmem:[%s9921_s7 + $0xb0] ss:$8 sps:$4 sm:$0xff]  }
0x1aed   : > { %v8092_v45 = vpop.eup %8091  ;;  %v3480_v60 = vpack.c.bf16 %v3441_v24, %v3439_v23  ;;  %v3431_v30 = vadd.f32 1.0, %v8090_v16 }
0x1aee   : > { %v3481_v21 = vpack.c.bf16 %v3442_v28, %v3440_v26  ;;  %v3432_v34 = vadd.f32 1.0, %v8092_v45  ;;  %3785 = vmatpush1.bf16.msra.mxu1 %v7864_v57 }
0x1aef   : > { %v3437_v0 = vmul.f32 0.5, %v3431_v30  ;;  %3786 = vmatprep.subr.bf16.mxu1 %v7869_v35 }
0x1af0   : > { %3618 = vmatprep.mubr.bf16.mxu0 %v3481_v21  ;;  %v3438_v31 = vmul.f32 0.5, %v3432_v34 }
0x1af1   : > { %3619 = vmatmul.mubr.bf16.vlgmr.msra.gmra.mrb[40].mxu0 %v3480_v60  ;;  %v3443_v37 = vmul.f32 %v3437_v0, %v3385_v42  ;;  %v6827_v0 = vld [vmem:[%s9919_s5 + $0x2] ss:$0 sm:$0xff] }
0x1af2   : > { %v3444_v3 = vmul.f32 %v3438_v31, %v3387_v47  ;;  %3787 = vmatpush1.bf16.msra.mxu1 %v7867_v55 }
0x1af3   : > { %v3482_v39 = vpack.c.bf16 %v3443_v37, %v3443_v37  ;;  %3788 = vmatprep.subr.bf16.mxu1 %v7872_v20 }
0x1af4   : > { %v3483_v38 = vpack.c.bf16 %v3444_v3, %v3444_v3 }
0x1af6   : > { %3626 = vmatprep.mubr.bf16.mxu0 %v3483_v38  ;;  %3789 = vmatpush1.bf16.msra.mxu1 %v7870_v22 }
0x1af9   : > { %3627 = vmatmul.mubr.bf16.gmra.mrb[44].mxu0 %v3482_v39  ;;  %v6828_v39 = vld [vmem:[%s9920_s6 + $0x2] ss:$0 sm:$0xff] }
0x1bc4   : > { %v7204_v14 = vpop.f32.mrb[40].mxu0 }
0x1bc5   : > { %v7205_v52 = vpop.f32.mrb[41].mxu0 }
0x1bc6   : > { %v7206_v29 = vadd.f32 %v7205_v52, %v7204_v14  ;;  %v7207_v40 = vpop.f32.mrb[42].mxu0 }
0x1bc7   : > { %v7208_v41 = vpop.f32.mrb[43].mxu0 }
0x1bc8   : > { %v3621_v46 = vadd.f32 %v7206_v29, %v6808_v50  ;;  %v7209_v51 = vadd.f32 %v7208_v41, %v7207_v40 }
0x1bca   : > { %v9165_v42 = vadd.f32 %v3621_v46, %v9047_v11  ;;  %v3624_v53 = vadd.f32 %v7209_v51, %v6808_v50 }
0x1bcc   : > { %3637 = vst.msk [vmem:[%s617_s1] sm:$0xff] %vm738_vm0, %v9165_v42  ;;  %v9170_v47 = vadd.f32 %v3624_v53, %v9053_v12  ;;  %v7210_v58 = vpop.f32.mrb[44].mxu0  ;;  %v3644_v62 = vsel %vm738_vm0, %v9165_v42, 0.0 }
0x1bcd   : > { %v7211_v9 = vpop.f32.mrb[45].mxu0  ;;  %3645 = vadd.xlane.f32.xlu0 %v3644_v62 }
0x1bce   : > { %3638 = vst.msk [vmem:[%s617_s1 + $0x8] sm:$0xff] %vm738_vm0, %v9170_v47  ;;  %v7212_v48 = vadd.f32 %v7211_v9, %v7210_v58  ;;  %v7213_v49 = vpop.f32.mrb[46].mxu0  ;;  %v3647_v11 = vsel %vm738_vm0, %v9170_v47, 0.0  ;;  %v6837_v58 = vld [vmem:[%s9922_s8 + $0x4] sm:$0x3] }
0x1bcf   : > { %v7214_v33 = vpop.f32.mrb[47].mxu0  ;;  %3648 = vadd.xlane.f32.xlu1 %v3647_v11  ;;  %v3729_v62 = vrot.slane %v6837_v58, %v8489_v25 }
0x1bd0   : > { %v3629_v43 = vadd.f32 %v7212_v48, %v6808_v50  ;;  %v3733_v48 = vrot.slane %v6837_v58, %v8494_v27 }
0x1bd2   : > { %v9179_v12 = vadd.f32 %v3629_v43, %v9050_v32 }
0x1bd4   : > { %3639 = vst.msk [vmem:[%s617_s1 + $0x10] sm:$0x1] %vm806_vm2, %v9179_v12  ;;  %v3650_v54 = vsel %vm806_vm2, %v9179_v12, 0.0 }
0x1bd5   : > { %3651 = vadd.xlane.f32.xlu0 %v3650_v54 }
0x1c5a   : > { %v3646_v18 = vpop.xlane.xlu0 %3645 }
0x1c5b   : > { %v3653_v56 = vmul.f32 0.015625, %v3646_v18 }
0x1c5c   : > { %v3649_v17 = vpop.xlane.xlu1 %3648 }
0x1c5d   : > { %v3656_v2 = vsub.f32 %v9165_v42, %v3653_v56  ;;  %v3654_v5 = vmul.f32 0.015625, %v3649_v17 }
0x1c5f   : > { %v3657_v6 = vsub.f32 %v9170_v47, %v3654_v5  ;;  %v3659_v7 = vmul.f32 %v3656_v2, %v3656_v2 }
0x1c61   : > { %v3662_v8 = vsel %vm738_vm0, %v3659_v7, 0.0  ;;  %v3660_v32 = vmul.f32 %v3657_v6, %v3657_v6 }
0x1c62   : > { %3663 = vadd.xlane.f32.xlu1 %v3662_v8  ;;  %v3652_v10 = vpop.xlane.xlu0 %3651 }
0x1c63   : > { %v3655_v63 = vmul.f32 0.015625, %v3652_v10  ;;  %v3665_v36 = vsel %vm738_vm0, %v3660_v32, 0.0 }
0x1c64   : > { %3666 = vadd.xlane.f32.xlu0 %v3665_v36 }
0x1c65   : > { %v3658_v13 = vsub.f32 %v9179_v12, %v3655_v63 }
0x1c67   : > { %v3661_v15 = vmul.f32 %v3658_v13, %v3658_v13 }
0x1c69   : > { %v3668_v4 = vsel %vm806_vm2, %v3661_v15, 0.0 }
0x1c6a   : > { %3669 = vadd.xlane.f32.xlu1 %v3668_v4 }
0x1cef   : > { %v3664_v23 = vpop.xlane.xlu1 %3663 }
0x1cf0   : > { %v3671_v24 = vmul.f32 0.015625, %v3664_v23 }
0x1cf1   : > { %v3667_v16 = vpop.xlane.xlu0 %3666 }
0x1cf2   : > { %v3674_v26 = vadd.f32 1e-06, %v3671_v24  ;;  %v3672_v28 = vmul.f32 0.015625, %v3667_v16 }
0x1cf4   : > { %8093 = vrsqrt.f32 %v3674_v26  ;;  %v3675_v45 = vadd.f32 1e-06, %v3672_v28 }
0x1cf6   : > { %8095 = vrsqrt.f32 %v3675_v45 }
0x1cf7   : > { %v3670_v60 = vpop.xlane.xlu1 %3669 }
0x1cf8   : > { %v3673_v30 = vmul.f32 0.015625, %v3670_v60 }
0x1cfa   : > { %v3676_v21 = vadd.f32 1e-06, %v3673_v30 }
0x1cfc   : > { %8097 = vrsqrt.f32 %v3676_v21 }
0x1cfe   : > { %v8094_v34 = vpop.eup %8093 }
0x1cff   : > { %v3680_v31 = vmul.f32 %v8094_v34, %v3656_v2 }
0x1d00   : > { %v8096_v3 = vpop.eup %8095 }
0x1d01   : > { %v3689_v37 = vmul.f32 %v6827_v0, %v3680_v31  ;;  %v3681_v38 = vmul.f32 %v8096_v3, %v3657_v6 }
0x1d03   : > { %v3690_v14 = vmul.f32 %v6827_v0, %v3681_v38  ;;  %v3698_v50 = vadd.f32 %v6828_v39, %v3689_v37 }
0x1d05   : > { %v3699_v52 = vadd.f32 %v6828_v39, %v3690_v14 }
0x1d06   : > { %v8098_v29 = vpop.eup %8097 }
0x1d07   : > { %v3723_v40 = vpack.c.bf16 %v3699_v52, %v3698_v50  ;;  %v3682_v41 = vmul.f32 %v8098_v29, %v3658_v13 }
0x1d09   : > { %6855 = vmatmul.mubr.msk.bf16.vlgmr.msra.gmra.mrb[76].mxu1 %vm738_vm0, %v3723_v40  ;;  %v3691_v46 = vmul.f32 %v6827_v0, %v3682_v41 }
0x1d0a   : > { %3824 = vmatprep.mubr.bf16.mxu1 %v8245_v1 }
0x1d0b   : > { %v3700_v51 = vadd.f32 %v6828_v39, %v3691_v46 }
0x1d0d   : > { %v3724_v53 = vpack.c.bf16 %v3700_v51, %v3700_v51 }
0x1d11   : > { %6856 = vmatmul.mubr.msk.bf16.gmra.mrb[80].mxu1 %vm738_vm0, %v3724_v53 }
0x1ddc   : > { %v3816_v9 = vpop.f32.mrb[76].mxu1 }
0x1ddd   : > { %v3817_v49 = vadd.f32 %v3816_v9, %v3729_v62  ;;  %v3818_v11 = vpop.f32.mrb[77].mxu1 }
0x1dde   : > { %v3820_v33 = vpop.f32.mrb[78].mxu1  ;;  %v3819_v18 = vadd.f32 %v3818_v11, %v3733_v48 }
0x1ddf   : > { %v3821_v43 = vadd.f32 %v3820_v33, %v3729_v62  ;;  %v3822_v54 = vpop.f32.mrb[79].mxu1  ;;  %v3833_v17 = vmul.f32 0.25, %v3817_v49 }
0x1de0   : > { %v3823_v56 = vadd.f32 %v3822_v54, %v3733_v48 }
0x1de1   : > { %v3834_v2 = vmul.f32 0.25, %v3821_v43  ;;  %v9229_v5 = vpack.c.bf16 %v3821_v43, %v3817_v49 }
0x1de2   : > { %v9231_v6 = vpack.c.bf16 %v3823_v56, %v3819_v18 }
0x1de3   : > { %v9233_v7 = vpack.c.bf16 %v3834_v2, %v3833_v17  ;;  %4006 = vrot.lane.b32.xlu1 %v9229_v5, %s9972_s26  ;;  %3842 = vrot.lane.b32.xlu0 %v9229_v5, %s9966_s3 }
0x1de4   : > { %v3826_v8 = vpop.f32.mrb[80].mxu1 }
0x1de5   : > { %v3827_v32 = vadd.f32 %v3826_v8, %v3729_v62  ;;  %v3828_v10 = vpop.f32.mrb[81].mxu1  ;;  %7504 = vmatprep.mubr.msk.bf16.mxu1 %vm1000_vm3, %v9233_v7 }
0x1de6   : > { %v3830_v63 = vpop.f32.mrb[82].mxu1  ;;  %v3829_v20 = vadd.f32 %v3828_v10, %v3733_v48 }
0x1de7   : > { %v3835_v36 = vmul.f32 0.25, %v3827_v32  ;;  %v9241_v13 = vpack.c.bf16 %v3827_v32, %v3827_v32  ;;  %v3831_v15 = vpop.f32.mrb[83].mxu1  ;;  %4002 = vrot.lane.b32.xlu0 %v9233_v7, %s9967_s27 }
0x1de8   : > { %v9271_v16 = vpack.c.bf16 %v3829_v20, %v3829_v20 }
0x1de9   : > { %v9245_v4 = vpack.c.bf16 %v3835_v36, %v3835_v36  ;;  %3844 = vrot.lane.b32.xlu1 %v9241_v13, %s9966_s3 }
0x1dea   : > { %v3950_v45 = vand.u32 %v9271_v16, %v8521_v59 }
0x1deb   : > { %4004 = vrot.lane.b32.xlu0 %v9245_v4, %s9967_s27 }
0x1ded   : > { %4008 = vrot.lane.b32.xlu1 %v9241_v13, %s9972_s26 }
0x1def   : > { %4169 = vrot.lane.b32.xlu0 %v9233_v7, %s9968_s22 }
0x1df1   : > { %4173 = vrot.lane.b32.xlu1 %v9229_v5, %s9969_s2 }
0x1df5   : > { %4175 = vrot.lane.b32.xlu1 %v9241_v13, %s9969_s2 }
0x1df9   : > { %4171 = vrot.lane.b32.xlu1 %v9245_v4, %s9968_s22 }
0x1e55   : > { %v4007_v61 = vpop.permute.xlu1 %4006  ;;  %v3843_v19 = vpop.permute.xlu0 %3842 }
0x1e56   : > { %7668 = vmatprep.subr.msk.bf16.mxu1 %vm1000_vm3, %v3843_v19  ;;  %7670 = vmatprep.subr.msk.bf16.mxu0 %vm1000_vm3, %v4007_v61  ;;  %v3853_v44 = vsel %vm1000_vm3, %v3843_v19, 0  ;;  %v4017_v57 = vsel %vm1000_vm3, %v4007_v61, 0 }
0x1e57   : > { %7501 = vmatpush3.bf16.xpose.msra.mxu1 %v3853_v44  ;;  %7517 = vmatpush3.bf16.xpose.msra.mxu0 %v4017_v57 }
0x1e59   : > { %v4003_v35 = vpop.permute.xlu0 %4002 }
0x1e5a   : > { %7520 = vmatprep.mubr.msk.bf16.mxu0 %vm1000_vm3, %v4003_v35 }
0x1e5b   : > { %v3845_v55 = vpop.permute.xlu1 %3844 }
0x1e5c   : > { %7669 = vmatprep.subr.msk.bf16.mxu1 %vm1000_vm3, %v3845_v55  ;;  %v3856_v22 = vsel %vm1000_vm3, %v3845_v55, 0 }
0x1e5d   : > { %v4005_v26 = vpop.permute.xlu0 %4004 }
0x1e5f   : > { %v4009_v23 = vpop.permute.xlu1 %4008  ;;  %7503 = vmatpush3.bf16.xpose.msra.mxu1 %v3856_v22 }
0x1e60   : > { %7508 = vmatprep.subr.bf16.mxu1 %v9231_v6  ;;  %7671 = vmatprep.subr.msk.bf16.mxu0 %vm1000_vm3, %v4009_v23  ;;  %v4020_v24 = vsel %vm1000_vm3, %v4009_v23, 0 }
0x1e61   : > { %7519 = vmatpush3.bf16.xpose.msra.mxu0 %v4020_v24  ;;  %v4170_v60 = vpop.permute.xlu0 %4169 }
0x1e63   : > { %v4174_v28 = vpop.permute.xlu1 %4173 }
0x1e64   : > { %7672 = vmatprep.subr.msk.bf16.mxu0 %vm1000_vm3, %v4174_v28  ;;  %v4184_v30 = vsel %vm1000_vm3, %v4174_v28, 0 }
0x1e66   : > { %7505 = vmatmul.mubr.msk.bf16.vlgmr.msra.gmra.mrb[84].mxu1 %vm1000_vm3, %v9245_v4 }
0x1e67   : > { %7509 = vmatpush3.bf16.msra.mxu1 %v9231_v6  ;;  %v4176_v21 = vpop.permute.xlu1 %4175 }
0x1e68   : > { %7510 = vmatprep.subr.bf16.mxu1 %v3950_v45  ;;  %7521 = vmatmul.mubr.msk.bf16.vlgmr.msra.gmra.mrb[48].mxu0 %vm1000_vm3, %v4005_v26  ;;  %v4187_v34 = vsel %vm1000_vm3, %v4176_v21, 0 }
0x1e69   : > { %7533 = vmatpush3.bf16.xpose.msra.mxu0 %v4184_v30  ;;  %7536 = vmatprep.mubr.msk.bf16.mxu0 %vm1000_vm3, %v4170_v60 }
0x1e6a   : > { %7673 = vmatprep.subr.msk.bf16.mxu0 %vm1000_vm3, %v4176_v21 }
0x1e6b   : > { %7511 = vmatpush3.bf16.msra.mxu1 %v3950_v45  ;;  %v4172_v0 = vpop.permute.xlu1 %4171 }
0x1e71   : > { %7535 = vmatpush3.bf16.xpose.msra.mxu0 %v4187_v34 }
0x1e78   : > { %7537 = vmatmul.mubr.msk.bf16.vlgmr.msra.gmra.mrb[52].mxu0 %vm1000_vm3, %v4172_v0 }
0x1f39   : > { %v7506_v31 = vpop.f32.mrb[84].mxu1 }
0x1f3a   : > { %v3892_v3 = vpop.f32.mrb[85].mxu1  ;;  %v3912_v41 = vsel %vm1068_vm5, %v7506_v31, -inf }
0x1f3b   : > { %v7507_v37 = vpop.f32.mrb[86].mxu1  ;;  %v7522_v38 = vpop.f32.mrb[48].mxu0  ;;  %v3906_v39 = vsel %vm1061_vm4, %v3892_v3, -inf }
0x1f3c   : > { %v4056_v14 = vpop.f32.mrb[49].mxu0  ;;  %3907 = vmax.xlane.f32.xlu0 %v3906_v39  ;;  %v3895_v50 = vpop.f32.mrb[87].mxu1  ;;  %v4076_v46 = vsel %vm1068_vm5, %v7522_v38, -inf }
0x1f3d   : > { %v7523_v52 = vpop.f32.mrb[50].mxu0  ;;  %v3909_v29 = vsel %vm1061_vm4, %v3895_v50, -inf  ;;  %v4070_v51 = vsel %vm1061_vm4, %v4056_v14, -inf }
0x1f3e   : > { %v9287_v40 = vpop.f32.mrb[51].mxu0  ;;  %3910 = vmax.xlane.f32.xlu1 %v3909_v29 }
0x1f3f   : > { %v4073_v53 = vsel %vm1061_vm4, %v9287_v40, -inf }
0x1f40   : > { %3913 = vmax.xlane.f32.xlu0 %v3912_v41 }
0x1f42   : > { %4077 = vmax.xlane.f32.xlu1 %v4076_v46 }
0x1f44   : > { %4071 = vmax.xlane.f32.xlu0 %v4070_v51 }
0x1f48   : > { %4074 = vmax.xlane.f32.xlu0 %v4073_v53 }
0x1f4b   : > { %v7538_v58 = vpop.f32.mrb[52].mxu0 }
0x1f4c   : > { %v4223_v62 = vpop.f32.mrb[53].mxu0  ;;  %v4243_v33 = vsel %vm1068_vm5, %v7538_v58, -inf }
0x1f4d   : > { %v7539_v9 = vpop.f32.mrb[54].mxu0  ;;  %v4237_v48 = vsel %vm1061_vm4, %v4223_v62, -inf }
0x1f4e   : > { %v4226_v49 = vpop.f32.mrb[55].mxu0  ;;  %4238 = vmax.xlane.f32.xlu0 %v4237_v48 }
0x1f4f   : > { %v4240_v11 = vsel %vm1061_vm4, %v4226_v49, -inf }
0x1f50   : > { %4241 = vmax.xlane.f32.xlu1 %v4240_v11 }
0x1f52   : > { %4244 = vmax.xlane.f32.xlu0 %v4243_v33 }
0x1fc9   : > { %v3908_v43 = vpop.xlane.xlu0 %3907 }
0x1fca   : > { %v3915_v54 = vsub.f32 %v3892_v3, %v3908_v43 }
0x1fcb   : > { %v3911_v18 = vpop.xlane.xlu1 %3910 }
0x1fcc   : > { %v3918_v2 = vmul.f32 1.442695, %v3915_v54  ;;  %v3916_v36 = vsub.f32 %v3895_v50, %v3911_v18 }
0x1fcd   : > { %v3914_v56 = vpop.xlane.xlu0 %3913 }
0x1fce   : > { %v3917_v17 = vsub.f32 %v7506_v31, %v3914_v56  ;;  %v3920_v44 = vmul.f32 1.442695, %v3916_v36 }
0x1fcf   : > { %v4078_v8 = vpop.xlane.xlu1 %4077 }
0x1fd0   : > { %v3922_v32 = vmul.f32 1.442695, %v3917_v17  ;;  %v4081_v10 = vsub.f32 %v7522_v38, %v4078_v8 }
0x1fd1   : > { %v4072_v63 = vpop.xlane.xlu0 %4071 }
0x1fd2   : > { %8099 = vpow2.f32 %v3922_v32  ;;  %v4086_v15 = vmul.f32 1.442695, %v4081_v10  ;;  %v4079_v61 = vsub.f32 %v4056_v14, %v4072_v63 }
0x1fd3   : > { %8101 = vpow2.f32 %v3918_v2 }
0x1fd4   : > { %8103 = vpow2.f32 %v4086_v15  ;;  %v4082_v19 = vmul.f32 1.442695, %v4079_v61 }
0x1fd5   : > { %v4075_v60 = vpop.xlane.xlu0 %4074 }
0x1fd6   : > { %8105 = vpow2.f32 %v4082_v19  ;;  %v4080_v34 = vsub.f32 %v9287_v40, %v4075_v60 }
0x1fd7   : > { %8107 = vpow2.f32 %v3920_v44 }
0x1fd8   : > { %v4084_v3 = vmul.f32 1.442695, %v4080_v34 }
0x1fda   : > { %8109 = vpow2.f32 %v4084_v3 }
0x1fdb   : > { %v4239_v30 = vpop.xlane.xlu0 %4238 }
0x1fdc   : > { %v9297_v57 = vpop.eup %8099  ;;  %v4246_v39 = vsub.f32 %v4223_v62, %v4239_v30 }
0x1fdd   : > { %v9299_v35 = vpop.eup %8101  ;;  %v3930_v55 = vsel %vm1068_vm5, %v9297_v57, 0.0  ;;  %v4242_v21 = vpop.xlane.xlu1 %4241 }
0x1fde   : > { %v9303_v20 = vpop.eup %8103  ;;  %3931 = vadd.xlane.f32.xlu1 %v3930_v55  ;;  %v3924_v24 = vsel %vm1061_vm4, %v9299_v35, 0.0  ;;  %v4247_v31 = vsub.f32 %v4226_v49, %v4242_v21  ;;  %v4249_v50 = vmul.f32 1.442695, %v4246_v39 }
0x1fdf   : > { %v4094_v22 = vsel %vm1068_vm5, %v9303_v20, 0.0  ;;  %v4245_v0 = vpop.xlane.xlu0 %4244 }
0x1fe0   : > { %v9307_v23 = vpop.eup %8105  ;;  %4095 = vadd.xlane.f32.xlu0 %v4094_v22  ;;  %v4248_v37 = vsub.f32 %v7538_v58, %v4245_v0  ;;  %v4251_v38 = vmul.f32 1.442695, %v4247_v31 }
0x1fe1   : > { %v4088_v26 = vsel %vm1061_vm4, %v9307_v23, 0.0  ;;  %v8108_v28 = vpop.eup %8107 }
0x1fe2   : > { %3925 = vadd.xlane.f32.xlu1 %v3924_v24  ;;  %v3927_v45 = vsel %vm1061_vm4, %v8108_v28, 0.0  ;;  %v4253_v14 = vmul.f32 1.442695, %v4248_v37  ;;  %8111 = vpow2.f32 %v4251_v38 }
0x1fe4   : > { %4089 = vadd.xlane.f32.xlu0 %v4088_v26  ;;  %8113 = vpow2.f32 %v4253_v14  ;;  %v8110_v52 = vpop.eup %8109 }
0x1fe5   : > { %8115 = vpow2.f32 %v4249_v50  ;;  %v4091_v41 = vsel %vm1061_vm4, %v8110_v52, 0.0 }
0x1fe8   : > { %3928 = vadd.xlane.f32.xlu0 %v3927_v45 }
0x1fec   : > { %v9321_v29 = vpop.eup %8111 }
0x1fed   : > { %v4258_v40 = vsel %vm1061_vm4, %v9321_v29, 0.0 }
0x1fee   : > { %v9324_v46 = vpop.eup %8113 }
0x1fef   : > { %v4261_v51 = vsel %vm1068_vm5, %v9324_v46, 0.0  ;;  %v9330_v53 = vpop.eup %8115 }
0x1ff0   : > { %v4255_v58 = vsel %vm1061_vm4, %v9330_v53, 0.0 }
0x1ff3   : > { %4109 = vrot.lane.b32.xlu1 %v9271_v16, %s9967_s27 }
0x1ff7   : > { %4272 = vrot.lane.b32.xlu1 %v9231_v6, %s9968_s22 }
0x1ffe   : > { %4107 = vrot.lane.b32.xlu0 %v9231_v6, %s9967_s27 }
0x201b   : > { %4092 = vadd.xlane.f32.xlu1 %v4091_v41 }
0x201d   : > { %4259 = vadd.xlane.f32.xlu0 %v4258_v40 }
0x201f   : > { %4262 = vadd.xlane.f32.xlu1 %v4261_v51 }
0x2023   : > { %4256 = vadd.xlane.f32.xlu1 %v4255_v58 }
0x2033   : > { %4338 = vrot.lane.b32.xlu0 %v9229_v5, %s9970_s21 }
0x2034   : > { %4274 = vrot.lane.b32.xlu1 %v9271_v16, %s9968_s22 }
0x2037   : > { %4334 = vrot.lane.b32.xlu0 %v9233_v7, %s9971_s28 }
0x2038   : > { %4340 = vrot.lane.b32.xlu1 %v9241_v13, %s9970_s21 }
0x203c   : > { %4336 = vrot.lane.b32.xlu1 %v9245_v4, %s9971_s28 }
0x206b   : > { %v3932_v62 = vpop.xlane.xlu1 %3931 }
0x206c   : > { %8117 = vrcp.f32 %v3932_v62 }
0x206d   : > { %v4096_v9 = vpop.xlane.xlu0 %4095 }
0x206f   : > { %v3926_v48 = vpop.xlane.xlu1 %3925 }
0x2070   : > { %8119 = vrcp.f32 %v3926_v48 }
0x2071   : > { %v4090_v49 = vpop.xlane.xlu0 %4089 }
0x2073   : > { %v4110_v56 = vpop.permute.xlu1 %4109 }
0x2074   : > { %v4119_v2 = vand.u32 %v4110_v56, %v8521_v59 }
0x2075   : > { %v3929_v11 = vpop.xlane.xlu0 %3928 }
0x2076   : > { %8121 = vrcp.f32 %v3929_v11  ;;  %v8118_v33 = vpop.eup %8117 }
0x2077   : > { %v3938_v7 = vmul.f32 %v8118_v33, %v9297_v57  ;;  %v4273_v8 = vpop.permute.xlu1 %4272  ;;  %8123 = vrcp.f32 %v4096_v9 }
0x2078   : > { %8125 = vrcp.f32 %v4090_v49 }
0x2079   : > { %v4108_v5 = vpop.permute.xlu0 %4107  ;;  %v3940_v17 = vpack.c.bf16 %v3938_v7, %v3938_v7 }
0x207a   : > { %7524 = vmatprep.subr.bf16.mxu1 %v4108_v5  ;;  %v8120_v43 = vpop.eup %8119 }
0x207b   : > { %v3936_v13 = vmul.f32 %v8120_v43, %v9299_v35 }
0x2080   : > { %v8122_v54 = vpop.eup %8121 }
0x2081   : > { %v3937_v18 = vmul.f32 %v8122_v54, %v8108_v28  ;;  %v8124_v36 = vpop.eup %8123 }
0x2082   : > { %v8126_v61 = vpop.eup %8125  ;;  %v4102_v44 = vmul.f32 %v8124_v36, %v9303_v20 }
0x2083   : > { %v3939_v4 = vpack.c.bf16 %v3937_v18, %v3936_v13  ;;  %v4100_v57 = vmul.f32 %v8126_v61, %v9307_v23 }
0x2084   : > { %v4104_v24 = vpack.c.bf16 %v4102_v44, %v4102_v44 }
0x2085   : > { %7512 = vmatprep.mubr.msk.bf16.mxu1 %vm1061_vm4, %v3939_v4 }
0x2086   : > { %7513 = vmatmul.mubr.msk.bf16.vlgmr.msra.gmra.mrb[88].mxu1 %vm1061_vm4, %v3940_v17 }
0x2087   : > { %7525 = vmatpush3.bf16.msra.mxu1 %v4108_v5 }
0x2088   : > { %7526 = vmatprep.subr.bf16.mxu1 %v4119_v2 }
0x208b   : > { %7527 = vmatpush3.bf16.msra.mxu1 %v4119_v2 }
0x208c   : > { %7540 = vmatprep.subr.bf16.mxu1 %v4273_v8 }
0x20a8   : > { %v4093_v32 = vpop.xlane.xlu1 %4092 }
0x20a9   : > { %8127 = vrcp.f32 %v4093_v32 }
0x20aa   : > { %v4260_v10 = vpop.xlane.xlu0 %4259 }
0x20ac   : > { %v4263_v63 = vpop.xlane.xlu1 %4262 }
0x20ad   : > { %8129 = vrcp.f32 %v4263_v63 }
0x20ae   : > { %8131 = vrcp.f32 %v4260_v10  ;;  %v4339_v21 = vpop.permute.xlu0 %4338 }
0x20af   : > { %v4349_v3 = vsel %vm1000_vm3, %v4339_v21, 0 }
0x20b0   : > { %v4257_v15 = vpop.xlane.xlu1 %4256 }
0x20b1   : > { %8133 = vrcp.f32 %v4257_v15 }
0x20b2   : > { %v4335_v31 = vpop.permute.xlu0 %4334 }
0x20b3   : > { %v8128_v19 = vpop.eup %8127 }
0x20b4   : > { %v4101_v35 = vmul.f32 %v8128_v19, %v8110_v52  ;;  %v4275_v55 = vpop.permute.xlu1 %4274 }
0x20b5   : > { %v4284_v45 = vand.u32 %v4275_v55, %v8521_v59 }
0x20b6   : > { %v4103_v22 = vpack.c.bf16 %v4101_v35, %v4100_v57 }
0x20b7   : > { %v8130_v26 = vpop.eup %8129 }
0x20b8   : > { %7528 = vmatprep.mubr.msk.bf16.mxu1 %vm1061_vm4, %v4103_v22  ;;  %v8132_v28 = vpop.eup %8131  ;;  %v4269_v30 = vmul.f32 %v8130_v26, %v9324_v46  ;;  %v4341_v37 = vpop.permute.xlu1 %4340 }
0x20b9   : > { %7529 = vmatmul.mubr.msk.bf16.vlgmr.msra.gmra.mrb[92].mxu1 %vm1061_vm4, %v4104_v24  ;;  %v4268_v23 = vmul.f32 %v8132_v28, %v9321_v29  ;;  %v4352_v38 = vsel %vm1000_vm3, %v4341_v37, 0 }
0x20ba   : > { %7541 = vmatpush3.bf16.msra.mxu1 %v4273_v8  ;;  %v4271_v0 = vpack.c.bf16 %v4269_v30, %v4269_v30 }
0x20bb   : > { %v8134_v60 = vpop.eup %8133  ;;  %7542 = vmatprep.subr.bf16.mxu1 %v4284_v45 }
0x20bc   : > { %v4267_v20 = vmul.f32 %v8134_v60, %v9330_v53  ;;  %v4337_v39 = vpop.permute.xlu1 %4336 }
0x20be   : > { %7543 = vmatpush3.bf16.msra.mxu1 %v4284_v45  ;;  %v4270_v34 = vpack.c.bf16 %v4268_v23, %v4267_v20 }
0x20bf   : > { %7674 = vmatprep.subr.msk.bf16.mxu1 %vm1000_vm3, %v4339_v21 }
0x20c0   : > { %7544 = vmatprep.mubr.msk.bf16.mxu1 %vm1061_vm4, %v4270_v34  ;;  %v7873_v34 = vld [vmem:[%s9923_s9 + $0x40] sm:$0xff]  }
0x20c1   : > { %7545 = vmatmul.mubr.msk.bf16.vlgmr.msra.gmra.mrb[96].mxu1 %vm1061_vm4, %v4271_v0  ;;  %v7874_v0 = vld [vmem:[%s9923_s9 + $0x48] sm:$0xff]  }
0x20c2   : > { %7552 = vmatprep.mubr.msk.bf16.mxu1 %vm1000_vm3, %v4335_v31  ;;  %v7875_v31 = vld [vmem:[%s9923_s9 + $0x50] sm:$0xff]  }
0x20c7   : > { %7549 = vmatpush3.bf16.xpose.msra.mxu1 %v4349_v3  ;;  %v7876_v3 = vld [vmem:[%s9923_s9 + $0x58] sm:$0xff]  }
0x20c8   : > { %7675 = vmatprep.subr.msk.bf16.mxu1 %vm1000_vm3, %v4341_v37 }
0x20cf   : > { %7551 = vmatpush3.bf16.xpose.msra.mxu1 %v4352_v38 }
0x20d6   : > { %7553 = vmatmul.mubr.msk.bf16.vlgmr.msra.gmra.mrb[100].mxu1 %vm1000_vm3, %v4337_v39 }
0x20d7   : > { %4796 = vmatprep.mubr.bf16.mxu1 %v8245_v1 }
0x2159   : > { %v9366_v14 = vpop.f32.mrb[88].mxu1 }
0x215a   : > { %v9368_v50 = vpop.f32.mrb[89].mxu1 }
0x215b   : > { %v7515_v52 = vpop.f32.mrb[90].mxu1 }
0x215c   : > { %v9370_v29 = vpop.f32.mrb[91].mxu1 }
0x218c   : > { %v7530_v41 = vpop.f32.mrb[92].mxu1 }
0x218d   : > { %v4155_v46 = vpop.f32.mrb[93].mxu1 }
0x218e   : > { %v7531_v40 = vpop.f32.mrb[94].mxu1 }
0x218f   : > { %v4158_v51 = vpop.f32.mrb[95].mxu1 }
0x2190   : > { %v7731_v53 = vpack.i.bf16 %v4158_v51, %v4155_v46 }
0x2194   : > { %v7546_v58 = vpop.f32.mrb[96].mxu1 }
0x2195   : > { %v4320_v62 = vpop.f32.mrb[97].mxu1 }
0x2196   : > { %v7547_v9 = vpop.f32.mrb[98].mxu1 }
0x2197   : > { %v4323_v48 = vpop.f32.mrb[99].mxu1 }
0x2198   : > { %v7736_v49 = vpack.i.bf16 %v4323_v48, %v4320_v62 }
0x21a9   : > { %v7554_v11 = vpop.f32.mrb[100].mxu1 }
0x21aa   : > { %v4388_v5 = vpop.f32.mrb[101].mxu1  ;;  %v4408_v13 = vsel %vm1068_vm5, %v7554_v11, -inf }
0x21ab   : > { %v7555_v33 = vpop.f32.mrb[102].mxu1  ;;  %v4402_v43 = vsel %vm1061_vm4, %v4388_v5, -inf }
0x21ac   : > { %4403 = vmax.xlane.f32.xlu0 %v4402_v43  ;;  %v4391_v54 = vpop.f32.mrb[103].mxu1 }
0x21ad   : > { %v4405_v7 = vsel %vm1061_vm4, %v4391_v54, -inf }
0x21ae   : > { %4406 = vmax.xlane.f32.xlu1 %v4405_v7 }
0x21b0   : > { %4409 = vmax.xlane.f32.xlu0 %v4408_v13 }
0x2239   : > { %v4404_v18 = vpop.xlane.xlu0 %4403 }
0x223a   : > { %v4411_v56 = vsub.f32 %v4388_v5, %v4404_v18 }
0x223b   : > { %v4407_v4 = vpop.xlane.xlu1 %4406 }
0x223c   : > { %v4414_v17 = vmul.f32 1.442695, %v4411_v56  ;;  %v4412_v2 = vsub.f32 %v4391_v54, %v4407_v4 }
0x223d   : > { %v4410_v8 = vpop.xlane.xlu0 %4409 }
0x223e   : > { %8135 = vpow2.f32 %v4414_v17  ;;  %v4416_v32 = vmul.f32 1.442695, %v4412_v2  ;;  %v4413_v10 = vsub.f32 %v7554_v11, %v4410_v8 }
0x2240   : > { %8137 = vpow2.f32 %v4416_v32  ;;  %v4418_v63 = vmul.f32 1.442695, %v4413_v10 }
0x2242   : > { %8139 = vpow2.f32 %v4418_v63 }
0x2248   : > { %v8136_v36 = vpop.eup %8135 }
0x2249   : > { %v4420_v15 = vsel %vm1061_vm4, %v8136_v36, 0.0 }
0x224a   : > { %v8138_v61 = vpop.eup %8137  ;;  %4421 = vadd.xlane.f32.xlu0 %v4420_v15 }
0x224b   : > { %v4423_v57 = vsel %vm1061_vm4, %v8138_v61, 0.0 }
0x224c   : > { %v8140_v19 = vpop.eup %8139 }
0x224d   : > { %v4426_v44 = vsel %vm1068_vm5, %v8140_v19, 0.0 }
0x224e   : > { %4427 = vadd.xlane.f32.xlu1 %v4426_v44  ;;  %4424 = vadd.xlane.f32.xlu0 %v4423_v57 }
0x225f   : > { %4439 = vrot.lane.b32.xlu1 %v9271_v16, %s9971_s28 }
0x2263   : > { %7732 = vrot.lane.b32.xlu1 %v7731_v53, %s9970_s21 }
0x2264   : > { %4437 = vrot.lane.b32.xlu0 %v9231_v6, %s9971_s28 }
0x2267   : > { %4506 = vrot.lane.b32.xlu1 %v7530_v41, %s9970_s21 }
0x2268   : > { %7737 = vrot.lane.b32.xlu0 %v7736_v49, %s9969_s2 }
0x226b   : > { %4518 = vrot.lane.b32.xlu1 %v7546_v58, %s9969_s2 }
0x22d7   : > { %v4422_v35 = vpop.xlane.xlu0 %4421 }
0x22d8   : > { %8141 = vrcp.f32 %v4422_v35 }
0x22db   : > { %v4425_v55 = vpop.xlane.xlu0 %4424  ;;  %v4428_v22 = vpop.xlane.xlu1 %4427 }
0x22dc   : > { %8143 = vrcp.f32 %v4425_v55 }
0x22dd   : > { %8145 = vrcp.f32 %v4428_v22 }
0x22df   : > { %v4438_v24 = vpop.permute.xlu0 %4437  ;;  %v4440_v26 = vpop.permute.xlu1 %4439 }
0x22e0   : > { %v4449_v16 = vand.u32 %v4440_v26, %v8521_v59  ;;  %7556 = vmatprep.subr.bf16.mxu0 %v4438_v24 }
0x22e1   : > { %7557 = vmatpush3.bf16.msra.mxu0 %v4438_v24 }
0x22e2   : > { %7558 = vmatprep.subr.bf16.mxu0 %v4449_v16  ;;  %v8142_v6 = vpop.eup %8141 }
0x22e3   : > { %v4432_v60 = vmul.f32 %v8142_v6, %v8136_v36  ;;  %v7733_v46 = vpop.permute.xlu1 %7732  ;;  %v7738_v51 = vpop.permute.xlu0 %7737 }
0x22e4   : > { %v7735_v53 = vunpack.i.h.bf16 %v7733_v46  ;;  %v7734_v58 = vunpack.i.l.bf16 %v7733_v46  ;;  %v7740_v9 = vunpack.i.h.bf16 %v7738_v51  ;;  %v7739_v48 = vunpack.i.l.bf16 %v7738_v51 }
0x22e5   : > { %7559 = vmatpush3.bf16.msra.mxu0 %v4449_v16 }
0x22e6   : > { %v8144_v28 = vpop.eup %8143  ;;  %7564 = vmatprep.subr.bf16.mxu0 %v7873_v34  ;;  %v4536_v49 = vsel %vm1000_vm3, %v9370_v29, %v7735_v53  ;;  %v4535_v11 = vsel %vm1000_vm3, %v9368_v50, %v7734_v58 }
0x22e7   : > { %v8146_v45 = vpop.eup %8145  ;;  %v4433_v30 = vmul.f32 %v8144_v28, %v8138_v61  ;;  %v4507_v40 = vpop.permute.xlu1 %4506  ;;  %v4538_v56 = vsel %vm1697_vm6, %v4535_v11, %v7739_v48  ;;  %v4539_v4 = vsel %vm1697_vm6, %v4536_v49, %v7740_v9 }
0x22e8   : > { %v4434_v21 = vmul.f32 %v8146_v45, %v8140_v19  ;;  %v4537_v33 = vsel %vm1000_vm3, %v9366_v14, %v4507_v40  ;;  %v6873_v14 = vld [vmem:[%s9924_s10 + $0x2] ss:$0 sm:$0xff] }
0x22e9   : > { %v4435_v20 = vpack.c.bf16 %v4433_v30, %v4432_v60 }
0x22ea   : > { %v4436_v23 = vpack.c.bf16 %v4434_v21, %v4434_v21 }
0x22eb   : > { %7560 = vmatprep.mubr.msk.bf16.mxu0 %vm1061_vm4, %v4435_v20  ;;  %v4519_v62 = vpop.permute.xlu1 %4518 }
0x22ec   : > { %7561 = vmatmul.mubr.msk.bf16.vlgmr.msra.gmra.mrb[56].mxu0 %vm1061_vm4, %v4436_v23  ;;  %v4540_v54 = vsel %vm1697_vm6, %v4537_v33, %v4519_v62  ;;  %v6882_v33 = vld [vmem:[%s9925_s11 + $0x2] ss:$0 sm:$0xff] }
0x22ed   : > { %7565 = vmatpush3.bf16.msra.mxu0 %v7873_v34 }
0x22ee   : > { %7566 = vmatprep.subr.bf16.mxu0 %v7874_v0 }
0x22f1   : > { %7567 = vmatpush3.bf16.msra.mxu0 %v7874_v0  ;;  %v7879_v0 = vld [vmem:[%s9927_s13 + $0x84] ss:$8 sps:$4 sm:$0xff]  }
0x22f2   : > { %7568 = vmatprep.subr.bf16.mxu0 %v7875_v31  ;;  %4764 = vmatprep.subr.bf16.mxu1 %v7879_v0 }
0x22f5   : > { %7569 = vmatpush3.bf16.msra.mxu0 %v7875_v31  ;;  %v7877_v31 = vld [vmem:[%s9927_s13 + $0x80] ss:$8 sps:$4 sm:$0xff]  }
0x22f6   : > { %7570 = vmatprep.subr.bf16.mxu0 %v7876_v3  ;;  %4765 = vmatpush1.bf16.msra.mxu1 %v7877_v31 }
0x22f9   : > { %7571 = vmatpush3.bf16.msra.mxu0 %v7876_v3  ;;  %v7882_v3 = vld [vmem:[%s9927_s13 + $0x94] ss:$8 sps:$4 sm:$0xff]  }
0x22fa   : > { %4766 = vmatprep.subr.bf16.mxu1 %v7882_v3 }
0x23bf   : > { %v7562_v37 = vpop.f32.mrb[56].mxu0 }
0x23c0   : > { %4530 = vrot.lane.b32.xlu1 %v7562_v37, %s9972_s26  ;;  %v4485_v38 = vpop.f32.mrb[57].mxu0  ;;  %v7880_v37 = vld [vmem:[%s9927_s13 + $0x90] ss:$8 sps:$4 sm:$0xff]  }
0x23c1   : > { %v7563_v39 = vpop.f32.mrb[58].mxu0  ;;  %4767 = vmatpush1.bf16.msra.mxu1 %v7880_v37 }
0x23c2   : > { %v4488_v52 = vpop.f32.mrb[59].mxu0  ;;  %v7883_v39 = vld [vmem:[%s9927_s13 + $0xa0] ss:$8 sps:$4 sm:$0xff]  }
0x23c3   : > { %v7741_v41 = vpack.i.bf16 %v4488_v52, %v4485_v38  ;;  %v7885_v38 = vld [vmem:[%s9927_s13 + $0xa4] ss:$8 sps:$4 sm:$0xff]   ;;  %v7886_v52 = vld [vmem:[%s9927_s13 + $0xb0] ss:$8 sps:$4 sm:$0xff]  }
0x23c4   : > { %4768 = vmatprep.subr.bf16.mxu1 %v7885_v38 }
0x23c5   : > { %7742 = vrot.lane.b32.xlu0 %v7741_v41, %s9972_s26  ;;  %4769 = vmatpush1.bf16.msra.mxu1 %v7883_v39  ;;  %v7888_v41 = vld [vmem:[%s9927_s13 + $0xb4] ss:$8 sps:$4 sm:$0xff]  }
0x23c6   : > { %4770 = vmatprep.subr.bf16.mxu1 %v7888_v41 }
0x23c9   : > { %4771 = vmatpush1.bf16.msra.mxu1 %v7886_v52 }
0x2432   : > { %v4531_v5 = vpop.permute.xlu1 %4530 }
0x2433   : > { %v4543_v18 = vsel %vm1701_vm7, %v4540_v54, %v4531_v5 }
0x2434   : > { %v4545_v2 = vpack.c.bf16 %v4543_v18, %v4543_v18  ;;  %v6883_v18 = vld [vmem:[%s9926_s12 + $0x2] ss:$0 sm:$0xff] }
0x2437   : > { %v7743_v43 = vpop.permute.xlu0 %7742 }
0x2438   : > { %v7745_v7 = vunpack.i.h.bf16 %v7743_v43  ;;  %v7744_v13 = vunpack.i.l.bf16 %v7743_v43 }
0x243a   : > { %v4541_v29 = vsel %vm1701_vm7, %v4538_v56, %v7744_v13  ;;  %v4542_v17 = vsel %vm1701_vm7, %v4539_v4, %v7745_v7 }
0x243b   : > { %v4544_v50 = vpack.c.bf16 %v4542_v17, %v4541_v29 }
0x243d   : > { %7572 = vmatprep.mubr.msk.bf16.mxu0 %vm738_vm0, %v4544_v50 }
0x243e   : > { %7573 = vmatmul.mubr.msk.bf16.vlgmr.msra.gmra.mrb[60].mxu0 %vm738_vm0, %v4545_v2 }
0x2511   : > { %v7574_v8 = vpop.f32.mrb[60].mxu0 }
0x2512   : > { %v4616_v32 = vpop.f32.mrb[61].mxu0  ;;  %v4625_v10 = vadd.f32 %v7574_v8, %v6873_v14 }
0x2513   : > { %v4617_v63 = vadd.f32 %v6873_v14, %v4616_v32  ;;  %v7575_v36 = vpop.f32.mrb[62].mxu0  ;;  %v7889_v32 = vld [vmem:[%s9929_s15 + $0x140] sm:$0xff]  }
0x2514   : > { %v4619_v15 = vpop.f32.mrb[63].mxu0  ;;  %v9424_v44 = vadd.f32 %v4625_v10, %v9179_v12  ;;  %v7890_v10 = vld [vmem:[%s9929_s15 + $0x100] sm:$0xff]   ;;  %7254 = vmatprep.subr.bf16.mxu0 %v7889_v32  ;;  %v7892_v36 = vld [vmem:[%s9929_s15 + $0x108] sm:$0xff]  }
0x2515   : > { %v9421_v61 = vadd.f32 %v4617_v63, %v9165_v42  ;;  %v4620_v19 = vadd.f32 %v6873_v14, %v4619_v15  ;;  %7255 = vmatpush3.bf16.msra.mxu0 %v7890_v10  ;;  %v7891_v63 = vld [vmem:[%s9929_s15 + $0x148] sm:$0xff]   ;;  %v7893_v15 = vld [vmem:[%s9929_s15 + $0x150] sm:$0xff]  }
0x2516   : > { %v4643_v22 = vsel %vm806_vm2, %v9424_v44, 0.0  ;;  %7256 = vmatprep.subr.bf16.mxu0 %v7891_v63 }
0x2517   : > { %v9427_v57 = vadd.f32 %v4620_v19, %v9170_v47  ;;  %v4637_v35 = vsel %vm738_vm0, %v9421_v61, 0.0  ;;  %v7894_v19 = vld [vmem:[%s9929_s15 + $0x110] sm:$0xff]  }
0x2518   : > { %4638 = vadd.xlane.f32.xlu0 %v4637_v35  ;;  %v7895_v35 = vld [vmem:[%s9929_s15 + $0x158] sm:$0xff]  }
0x2519   : > { %v4640_v55 = vsel %vm738_vm0, %v9427_v57, 0.0  ;;  %7257 = vmatpush3.bf16.msra.mxu0 %v7892_v36 }
0x251a   : > { %4641 = vadd.xlane.f32.xlu1 %v4640_v55  ;;  %7258 = vmatprep.subr.bf16.mxu0 %v7893_v15  ;;  %v7896_v55 = vld [vmem:[%s9929_s15 + $0x118] sm:$0xff]  }
0x251c   : > { %4644 = vadd.xlane.f32.xlu0 %v4643_v22  ;;  %v7897_v22 = vld [vmem:[%s9929_s15 + $0x160] sm:$0xff]  }
0x251d   : > { %7259 = vmatpush3.bf16.msra.mxu0 %v7894_v19 }
0x251e   : > { %7260 = vmatprep.subr.bf16.mxu0 %v7895_v35 }
0x2521   : > { %7261 = vmatpush3.bf16.msra.mxu0 %v7896_v55 }
0x2522   : > { %7262 = vmatprep.subr.bf16.mxu0 %v7897_v22 }
0x25a5   : > { %v4639_v42 = vpop.xlane.xlu0 %4638 }
0x25a6   : > { %v4646_v24 = vmul.f32 0.015625, %v4639_v42  ;;  %v7898_v42 = vld [vmem:[%s9929_s15 + $0x120] sm:$0xff]  }
0x25a7   : > { %v4642_v26 = vpop.xlane.xlu1 %4641  ;;  %7263 = vmatpush3.bf16.msra.mxu0 %v7898_v42 }
0x25a8   : > { %v4649_v12 = vsub.f32 %v9421_v61, %v4646_v24  ;;  %v4647_v16 = vmul.f32 0.015625, %v4642_v26  ;;  %v7899_v24 = vld [vmem:[%s9929_s15 + $0x168] sm:$0xff]  }
0x25a9   : > { %v4645_v47 = vpop.xlane.xlu0 %4644  ;;  %v7900_v26 = vld [vmem:[%s9929_s15 + $0x128] sm:$0xff]   ;;  %7264 = vmatprep.subr.bf16.mxu0 %v7899_v24 }
0x25aa   : > { %v4650_v6 = vsub.f32 %v9427_v57, %v4647_v16  ;;  %v4648_v28 = vmul.f32 0.015625, %v4645_v47  ;;  %v4652_v45 = vmul.f32 %v4649_v12, %v4649_v12  ;;  %v7902_v16 = vld [vmem:[%s9929_s15 + $0x130] sm:$0xff]   ;;  %v7903_v47 = vld [vmem:[%s9929_s15 + $0x178] sm:$0xff]  }
0x25ab   : > { %7265 = vmatpush3.bf16.msra.mxu0 %v7900_v26 }
0x25ac   : > { %v4651_v60 = vsub.f32 %v9424_v44, %v4648_v28  ;;  %v4655_v30 = vsel %vm738_vm0, %v4652_v45, 0.0  ;;  %v4653_v21 = vmul.f32 %v4650_v6, %v4650_v6  ;;  %v6892_v28 = vld [vmem:[%s9928_s14 + $0x4] sm:$0x3] }
0x25ad   : > { %4656 = vadd.xlane.f32.xlu0 %v4655_v30  ;;  %v4711_v45 = vrot.slane %v6892_v28, %v8489_v25 }
0x25ae   : > { %v4654_v20 = vmul.f32 %v4651_v60, %v4651_v60  ;;  %v4658_v23 = vsel %vm738_vm0, %v4653_v21, 0.0 }
0x25b0   : > { %v4661_v34 = vsel %vm806_vm2, %v4654_v20, 0.0 }
0x25b1   : > { %4659 = vadd.xlane.f32.xlu0 %v4658_v23  ;;  %4662 = vadd.xlane.f32.xlu1 %v4661_v34 }
0x263a   : > { %v4657_v46 = vpop.xlane.xlu0 %4656 }
0x263b   : > { %v4664_v40 = vmul.f32 0.015625, %v4657_v46 }
0x263d   : > { %v4667_v51 = vadd.f32 1e-06, %v4664_v40 }
0x263e   : > { %v4663_v53 = vpop.xlane.xlu1 %4662  ;;  %v4660_v58 = vpop.xlane.xlu0 %4659 }
0x263f   : > { %8147 = vrsqrt.f32 %v4667_v51  ;;  %v4666_v62 = vmul.f32 0.015625, %v4663_v53  ;;  %v4665_v9 = vmul.f32 0.015625, %v4660_v58 }
0x2641   : > { %v4669_v48 = vadd.f32 1e-06, %v4666_v62  ;;  %v4668_v49 = vadd.f32 1e-06, %v4665_v9 }
0x2643   : > { %8149 = vrsqrt.f32 %v4669_v48 }
0x2644   : > { %8151 = vrsqrt.f32 %v4668_v49 }
0x2649   : > { %v8148_v11 = vpop.eup %8147 }
0x264a   : > { %v4673_v5 = vmul.f32 %v8148_v11, %v4649_v12  ;;  %v7901_v12 = vld [vmem:[%s9929_s15 + $0x170] sm:$0xff]  }
0x264b   : > { %7266 = vmatprep.subr.bf16.mxu0 %v7901_v12 }
0x264c   : > { %v4682_v7 = vmul.f32 %v6882_v33, %v4673_v5  ;;  %7267 = vmatpush3.bf16.msra.mxu0 %v7902_v16 }
0x264d   : > { %v8150_v43 = vpop.eup %8149  ;;  %7268 = vmatprep.subr.bf16.mxu0 %v7903_v47 }
0x264e   : > { %v8152_v54 = vpop.eup %8151  ;;  %v4675_v4 = vmul.f32 %v8150_v43, %v4651_v60  ;;  %v4691_v29 = vadd.f32 %v6883_v18, %v4682_v7  ;;  %v4715_v60 = vrot.slane %v6892_v28, %v8494_v27 }
0x264f   : > { %v4674_v13 = vmul.f32 %v8152_v54, %v4650_v6  ;;  %v7904_v6 = vld [vmem:[%s9929_s15 + $0x138] sm:$0xff]  }
0x2650   : > { %v4684_v2 = vmul.f32 %v6882_v33, %v4675_v4  ;;  %7269 = vmatpush3.bf16.msra.mxu0 %v7904_v6 }
0x2651   : > { %v4683_v56 = vmul.f32 %v6882_v33, %v4674_v13 }
0x2652   : > { %v4693_v14 = vadd.f32 %v6883_v18, %v4684_v2 }
0x2653   : > { %v4692_v17 = vadd.f32 %v6883_v18, %v4683_v56 }
0x2654   : > { %v4706_v8 = vpack.c.bf16 %v4693_v14, %v4693_v14 }
0x2655   : > { %v4705_v50 = vpack.c.bf16 %v4692_v17, %v4691_v29 }
0x2657   : > { %6901 = vmatmul.mubr.msk.bf16.vlgmr.msra.gmra.mrb[104].mxu1 %vm738_vm0, %v4705_v50 }
0x2658   : > { %4806 = vmatprep.mubr.bf16.mxu1 %v8245_v1 }
0x265f   : > { %6902 = vmatmul.mubr.msk.bf16.gmra.mrb[108].mxu1 %vm738_vm0, %v4706_v8 }
0x2660   : > { %5238 = vmatprep.mubr.bf16.mxu1 %v8245_v1 }
0x272a   : > { %v4798_v30 = vpop.f32.mrb[104].mxu1 }
0x272b   : > { %v4799_v21 = vadd.f32 %v4798_v30, %v4711_v45  ;;  %v4800_v20 = vpop.f32.mrb[105].mxu1 }
0x272c   : > { %v4801_v23 = vadd.f32 %v4800_v20, %v4715_v60  ;;  %v4802_v34 = vpop.f32.mrb[106].mxu1 }
0x272d   : > { %v4815_v0 = vmul.f32 %v4799_v21, %v4799_v21  ;;  %v4803_v31 = vadd.f32 %v4802_v34, %v4711_v45  ;;  %v4804_v3 = vpop.f32.mrb[107].mxu1 }
0x272e   : > { %v4816_v37 = vmul.f32 %v4801_v23, %v4801_v23  ;;  %v4805_v38 = vadd.f32 %v4804_v3, %v4715_v60 }
0x272f   : > { %v4821_v39 = vmul.f32 %v4815_v0, %v4799_v21  ;;  %v4817_v52 = vmul.f32 %v4803_v31, %v4803_v31 }
0x2730   : > { %v4822_v41 = vmul.f32 %v4816_v37, %v4801_v23  ;;  %v4818_v46 = vmul.f32 %v4805_v38, %v4805_v38 }
0x2731   : > { %v4827_v40 = vmul.f32 0.044715, %v4821_v39  ;;  %v4823_v51 = vmul.f32 %v4817_v52, %v4803_v31 }
0x2732   : > { %v4828_v53 = vmul.f32 0.044715, %v4822_v41  ;;  %v4824_v58 = vmul.f32 %v4818_v46, %v4805_v38  ;;  %v4808_v62 = vpop.f32.mrb[108].mxu1 }
0x2733   : > { %v4833_v9 = vadd.f32 %v4827_v40, %v4799_v21  ;;  %v4829_v48 = vmul.f32 0.044715, %v4823_v51  ;;  %v4809_v49 = vadd.f32 %v4808_v62, %v4711_v45  ;;  %v4810_v11 = vpop.f32.mrb[109].mxu1 }
0x2734   : > { %v4834_v5 = vadd.f32 %v4828_v53, %v4801_v23  ;;  %v4830_v33 = vmul.f32 0.044715, %v4824_v58  ;;  %v4811_v43 = vadd.f32 %v4810_v11, %v4715_v60  ;;  %v4812_v54 = vpop.f32.mrb[110].mxu1 }
0x2735   : > { %v4839_v7 = vmul.f32 0.7978846, %v4833_v9  ;;  %v4835_v13 = vadd.f32 %v4829_v48, %v4803_v31  ;;  %v4819_v18 = vmul.f32 %v4809_v49, %v4809_v49  ;;  %v4813_v56 = vpop.f32.mrb[111].mxu1 }
0x2736   : > { %v4840_v4 = vmul.f32 0.7978846, %v4834_v5  ;;  %v4836_v29 = vadd.f32 %v4830_v33, %v4805_v38  ;;  %v4820_v17 = vmul.f32 %v4811_v43, %v4811_v43 }
0x2737   : > { %8153 = vtanh.f32 %v4839_v7  ;;  %v4841_v50 = vmul.f32 0.7978846, %v4835_v13  ;;  %v4825_v2 = vmul.f32 %v4819_v18, %v4809_v49 }
0x2738   : > { %8155 = vtanh.f32 %v4840_v4  ;;  %v4842_v14 = vmul.f32 0.7978846, %v4836_v29  ;;  %v4826_v8 = vmul.f32 %v4820_v17, %v4811_v43 }
0x2739   : > { %8157 = vtanh.f32 %v4841_v50  ;;  %v4831_v32 = vmul.f32 0.044715, %v4825_v2 }
0x273a   : > { %8159 = vtanh.f32 %v4842_v14  ;;  %v4832_v10 = vmul.f32 0.044715, %v4826_v8 }
0x273b   : > { %v4837_v63 = vadd.f32 %v4831_v32, %v4809_v49 }
0x273c   : > { %v4838_v36 = vadd.f32 %v4832_v10, %v4811_v43 }
0x273d   : > { %v4843_v15 = vmul.f32 0.7978846, %v4837_v63 }
0x273e   : > { %v4844_v19 = vmul.f32 0.7978846, %v4838_v36 }
0x273f   : > { %8161 = vtanh.f32 %v4843_v15 }
0x2740   : > { %8163 = vtanh.f32 %v4844_v19 }
0x2741   : > { %v8154_v35 = vpop.eup %8153 }
0x2742   : > { %v8156_v55 = vpop.eup %8155  ;;  %v4851_v22 = vadd.f32 1.0, %v8154_v35 }
0x2743   : > { %v8158_v42 = vpop.eup %8157  ;;  %v4852_v24 = vadd.f32 1.0, %v8156_v55 }
0x2744   : > { %v8160_v26 = vpop.eup %8159  ;;  %v4857_v12 = vmul.f32 0.5, %v4851_v22  ;;  %v4853_v16 = vadd.f32 1.0, %v8158_v42 }
0x2745   : > { %v4854_v47 = vadd.f32 1.0, %v8160_v26  ;;  %v4858_v6 = vmul.f32 0.5, %v4852_v24  ;;  %v7907_v24 = vld [vmem:[%s9921_s7 + $0xc4] ss:$8 sps:$4 sm:$0xff]   ;;  %v7905_v26 = vld [vmem:[%s9921_s7 + $0xc0] ss:$8 sps:$4 sm:$0xff]  }
0x2746   : > { %v4859_v28 = vmul.f32 0.5, %v4853_v16  ;;  %v4863_v60 = vmul.f32 %v4857_v12, %v4799_v21  ;;  %5206 = vmatprep.subr.bf16.mxu1 %v7907_v24  ;;  %v7910_v12 = vld [vmem:[%s9921_s7 + $0xd4] ss:$8 sps:$4 sm:$0xff]   ;;  %v7908_v16 = vld [vmem:[%s9921_s7 + $0xd0] ss:$8 sps:$4 sm:$0xff]  }
0x2747   : > { %v4860_v45 = vmul.f32 0.5, %v4854_v47  ;;  %v4864_v34 = vmul.f32 %v4858_v6, %v4801_v23  ;;  %v6936_v23 = vld [vmem:[%s9930_s16 + $0x2] ss:$0 sm:$0xff]  ;;  %5207 = vmatpush1.bf16.msra.mxu1 %v7905_v26  ;;  %v7913_v47 = vld [vmem:[%s9921_s7 + $0xe4] ss:$8 sps:$4 sm:$0xff]  }
0x2748   : > { %v4865_v30 = vmul.f32 %v4859_v28, %v4803_v31  ;;  %5208 = vmatprep.subr.bf16.mxu1 %v7910_v12  ;;  %v7911_v6 = vld [vmem:[%s9921_s7 + $0xe0] ss:$8 sps:$4 sm:$0xff]   ;;  %v7916_v28 = vld [vmem:[%s9921_s7 + $0xf4] ss:$8 sps:$4 sm:$0xff]  }
0x2749   : > { %v8162_v20 = vpop.eup %8161  ;;  %v4866_v0 = vmul.f32 %v4860_v45, %v4805_v38  ;;  %v7914_v45 = vld [vmem:[%s9921_s7 + $0xf0] ss:$8 sps:$4 sm:$0xff]  }
0x274a   : > { %v8164_v3 = vpop.eup %8163  ;;  %v4904_v37 = vpack.c.bf16 %v4865_v30, %v4863_v60  ;;  %v4855_v39 = vadd.f32 1.0, %v8162_v20 }
0x274b   : > { %v4905_v52 = vpack.c.bf16 %v4866_v0, %v4864_v34  ;;  %v4856_v41 = vadd.f32 1.0, %v8164_v3  ;;  %5209 = vmatpush1.bf16.msra.mxu1 %v7908_v16 }
0x274c   : > { %v4861_v46 = vmul.f32 0.5, %v4855_v39  ;;  %5210 = vmatprep.subr.bf16.mxu1 %v7913_v47 }
0x274d   : > { %5042 = vmatprep.mubr.bf16.mxu0 %v4905_v52  ;;  %v4862_v40 = vmul.f32 0.5, %v4856_v41 }
0x274e   : > { %5043 = vmatmul.mubr.bf16.vlgmr.msra.gmra.mrb[64].mxu0 %v4904_v37  ;;  %v4867_v53 = vmul.f32 %v4861_v46, %v4809_v49  ;;  %v6955_v46 = vld [vmem:[%s9919_s5 + $0x3] ss:$0 sm:$0xff] }
0x274f   : > { %v4868_v51 = vmul.f32 %v4862_v40, %v4811_v43  ;;  %5211 = vmatpush1.bf16.msra.mxu1 %v7911_v6 }
0x2750   : > { %v4906_v62 = vpack.c.bf16 %v4867_v53, %v4867_v53  ;;  %5212 = vmatprep.subr.bf16.mxu1 %v7916_v28 }
0x2751   : > { %v4907_v58 = vpack.c.bf16 %v4868_v51, %v4868_v51 }
0x2753   : > { %5050 = vmatprep.mubr.bf16.mxu0 %v4907_v58  ;;  %5213 = vmatpush1.bf16.msra.mxu1 %v7914_v45 }
0x2756   : > { %5051 = vmatmul.mubr.bf16.gmra.mrb[68].mxu0 %v4906_v62  ;;  %v6956_v62 = vld [vmem:[%s9920_s6 + $0x3] ss:$0 sm:$0xff] }
0x2821   : > { %v7270_v21 = vpop.f32.mrb[64].mxu0 }
0x2822   : > { %v7271_v31 = vpop.f32.mrb[65].mxu0 }
0x2823   : > { %v7272_v38 = vadd.f32 %v7271_v31, %v7270_v21  ;;  %v7273_v9 = vpop.f32.mrb[66].mxu0 }
0x2824   : > { %v7274_v48 = vpop.f32.mrb[67].mxu0 }
0x2825   : > { %v5045_v11 = vadd.f32 %v7272_v38, %v6936_v23  ;;  %v7275_v5 = vadd.f32 %v7274_v48, %v7273_v9 }
0x2827   : > { %v9536_v49 = vadd.f32 %v5045_v11, %v9421_v61  ;;  %v5048_v33 = vadd.f32 %v7275_v5, %v6936_v23 }
0x2829   : > { %5061 = vst.msk [vmem:[%s622_s20] sm:$0xff] %vm738_vm0, %v9536_v49  ;;  %v9541_v43 = vadd.f32 %v5048_v33, %v9427_v57  ;;  %v7276_v54 = vpop.f32.mrb[68].mxu0  ;;  %v5068_v7 = vsel %vm738_vm0, %v9536_v49, 0.0 }
0x282a   : > { %v7277_v13 = vpop.f32.mrb[69].mxu0  ;;  %5069 = vadd.xlane.f32.xlu0 %v5068_v7 }
0x282b   : > { %5062 = vst.msk [vmem:[%s622_s20 + $0x8] sm:$0xff] %vm738_vm0, %v9541_v43  ;;  %v7278_v18 = vadd.f32 %v7277_v13, %v7276_v54  ;;  %v7279_v56 = vpop.f32.mrb[70].mxu0  ;;  %v5071_v61 = vsel %vm738_vm0, %v9541_v43, 0.0  ;;  %v6965_v54 = vld [vmem:[%s9922_s8 + $0x6] sm:$0x3] }
0x282c   : > { %v7280_v4 = vpop.f32.mrb[71].mxu0  ;;  %5072 = vadd.xlane.f32.xlu1 %v5071_v61  ;;  %v5153_v7 = vrot.slane %v6965_v54, %v8489_v25 }
0x282d   : > { %v5053_v29 = vadd.f32 %v7278_v18, %v6936_v23  ;;  %v5157_v18 = vrot.slane %v6965_v54, %v8494_v27 }
0x282f   : > { %v9550_v57 = vadd.f32 %v5053_v29, %v9424_v44 }
0x2831   : > { %5063 = vst.msk [vmem:[%s622_s20 + $0x10] sm:$0x1] %vm806_vm2, %v9550_v57  ;;  %v5074_v17 = vsel %vm806_vm2, %v9550_v57, 0.0 }
0x2832   : > { %5075 = vadd.xlane.f32.xlu0 %v5074_v17 }
0x28b7   : > { %v5070_v50 = vpop.xlane.xlu0 %5069 }
0x28b8   : > { %v5077_v2 = vmul.f32 0.015625, %v5070_v50 }
0x28b9   : > { %v5073_v14 = vpop.xlane.xlu1 %5072 }
0x28ba   : > { %v5080_v8 = vsub.f32 %v9536_v49, %v5077_v2  ;;  %v5078_v32 = vmul.f32 0.015625, %v5073_v14 }
0x28bc   : > { %v5081_v10 = vsub.f32 %v9541_v43, %v5078_v32  ;;  %v5083_v63 = vmul.f32 %v5080_v8, %v5080_v8 }
0x28be   : > { %v5086_v36 = vsel %vm738_vm0, %v5083_v63, 0.0  ;;  %v5084_v44 = vmul.f32 %v5081_v10, %v5081_v10 }
0x28bf   : > { %5087 = vadd.xlane.f32.xlu1 %v5086_v36  ;;  %v5076_v15 = vpop.xlane.xlu0 %5075 }
0x28c0   : > { %v5079_v19 = vmul.f32 0.015625, %v5076_v15  ;;  %v5089_v35 = vsel %vm738_vm0, %v5084_v44, 0.0 }
0x28c1   : > { %5090 = vadd.xlane.f32.xlu0 %v5089_v35 }
0x28c2   : > { %v5082_v55 = vsub.f32 %v9550_v57, %v5079_v19 }
0x28c4   : > { %v5085_v22 = vmul.f32 %v5082_v55, %v5082_v55 }
0x28c6   : > { %v5092_v42 = vsel %vm806_vm2, %v5085_v22, 0.0 }
0x28c7   : > { %5093 = vadd.xlane.f32.xlu1 %v5092_v42 }
0x294c   : > { %v5088_v60 = vpop.xlane.xlu1 %5087 }
0x294d   : > { %v5095_v30 = vmul.f32 0.015625, %v5088_v60 }
0x294e   : > { %v5091_v20 = vpop.xlane.xlu0 %5090 }
0x294f   : > { %v5098_v34 = vadd.f32 1e-06, %v5095_v30  ;;  %v5096_v0 = vmul.f32 0.015625, %v5091_v20 }
0x2951   : > { %8165 = vrsqrt.f32 %v5098_v34  ;;  %v5099_v3 = vadd.f32 1e-06, %v5096_v0 }
0x2953   : > { %8167 = vrsqrt.f32 %v5099_v3 }
0x2954   : > { %v5094_v37 = vpop.xlane.xlu1 %5093 }
0x2955   : > { %v5097_v39 = vmul.f32 0.015625, %v5094_v37 }
0x2957   : > { %v5100_v52 = vadd.f32 1e-06, %v5097_v39 }
0x2959   : > { %8169 = vrsqrt.f32 %v5100_v52 }
0x295b   : > { %v8166_v41 = vpop.eup %8165 }
0x295c   : > { %v5104_v40 = vmul.f32 %v8166_v41, %v5080_v8 }
0x295d   : > { %v8168_v51 = vpop.eup %8167 }
0x295e   : > { %v5113_v53 = vmul.f32 %v6955_v46, %v5104_v40  ;;  %v5105_v58 = vmul.f32 %v8168_v51, %v5081_v10 }
0x2960   : > { %v5114_v21 = vmul.f32 %v6955_v46, %v5105_v58  ;;  %v5122_v23 = vadd.f32 %v6956_v62, %v5113_v53 }
0x2962   : > { %v5123_v31 = vadd.f32 %v6956_v62, %v5114_v21 }
0x2963   : > { %v8170_v38 = vpop.eup %8169 }
0x2964   : > { %v5147_v9 = vpack.c.bf16 %v5123_v31, %v5122_v23  ;;  %v5106_v48 = vmul.f32 %v8170_v38, %v5082_v55 }
0x2966   : > { %6983 = vmatmul.mubr.msk.bf16.vlgmr.msra.gmra.mrb[112].mxu1 %vm738_vm0, %v5147_v9  ;;  %v5115_v11 = vmul.f32 %v6955_v46, %v5106_v48 }
0x2967   : > { %5248 = vmatprep.mubr.bf16.mxu1 %v8245_v1 }
0x2968   : > { %v5124_v5 = vadd.f32 %v6956_v62, %v5115_v11 }
0x296a   : > { %v5148_v33 = vpack.c.bf16 %v5124_v5, %v5124_v5 }
0x296e   : > { %6984 = vmatmul.mubr.msk.bf16.gmra.mrb[116].mxu1 %vm738_vm0, %v5148_v33 }
0x2a39   : > { %v5240_v13 = vpop.f32.mrb[112].mxu1 }
0x2a3a   : > { %v5241_v56 = vadd.f32 %v5240_v13, %v5153_v7  ;;  %v5242_v61 = vpop.f32.mrb[113].mxu1 }
0x2a3b   : > { %v5244_v4 = vpop.f32.mrb[114].mxu1  ;;  %v5243_v50 = vadd.f32 %v5242_v61, %v5157_v18 }
0x2a3c   : > { %v5245_v29 = vadd.f32 %v5244_v4, %v5153_v7  ;;  %v5246_v17 = vpop.f32.mrb[115].mxu1  ;;  %v5257_v14 = vmul.f32 0.25, %v5241_v56 }
0x2a3d   : > { %v5247_v2 = vadd.f32 %v5246_v17, %v5157_v18 }
0x2a3e   : > { %v5258_v8 = vmul.f32 0.25, %v5245_v29  ;;  %v9600_v32 = vpack.c.bf16 %v5245_v29, %v5241_v56 }
0x2a3f   : > { %v9602_v10 = vpack.c.bf16 %v5247_v2, %v5243_v50 }
0x2a40   : > { %v9604_v63 = vpack.c.bf16 %v5258_v8, %v5257_v14  ;;  %5430 = vrot.lane.b32.xlu1 %v9600_v32, %s9972_s26  ;;  %5266 = vrot.lane.b32.xlu0 %v9600_v32, %s9966_s3 }
0x2a41   : > { %v5250_v36 = vpop.f32.mrb[116].mxu1 }
0x2a42   : > { %v5251_v44 = vadd.f32 %v5250_v36, %v5153_v7  ;;  %v5252_v15 = vpop.f32.mrb[117].mxu1  ;;  %7580 = vmatprep.mubr.msk.bf16.mxu1 %vm1000_vm3, %v9604_v63 }
0x2a43   : > { %v5254_v19 = vpop.f32.mrb[118].mxu1  ;;  %v5253_v28 = vadd.f32 %v5252_v15, %v5157_v18 }
0x2a44   : > { %v5259_v35 = vmul.f32 0.25, %v5251_v44  ;;  %v9612_v55 = vpack.c.bf16 %v5251_v44, %v5251_v44  ;;  %v5255_v22 = vpop.f32.mrb[119].mxu1  ;;  %5426 = vrot.lane.b32.xlu0 %v9604_v63, %s9967_s27 }
0x2a45   : > { %v9642_v20 = vpack.c.bf16 %v5253_v28, %v5253_v28 }
0x2a46   : > { %v9616_v42 = vpack.c.bf16 %v5259_v35, %v5259_v35  ;;  %5268 = vrot.lane.b32.xlu1 %v9612_v55, %s9966_s3  ;;  %s9974_s3 = sld [smem:[#allocation9_spill]] }
0x2a47   : > { %v5374_v3 = vand.u32 %v9642_v20, %v8521_v59 }
0x2a48   : > { %5428 = vrot.lane.b32.xlu0 %v9616_v42, %s9967_s27 }
0x2a4a   : > { %5432 = vrot.lane.b32.xlu1 %v9612_v55, %s9972_s26 }
0x2a4c   : > { %5593 = vrot.lane.b32.xlu0 %v9604_v63, %s9968_s22 }
0x2a4e   : > { %5597 = vrot.lane.b32.xlu1 %v9600_v32, %s9969_s2 }
0x2a52   : > { %5599 = vrot.lane.b32.xlu1 %v9612_v55, %s9969_s2 }
0x2a56   : > { %5595 = vrot.lane.b32.xlu1 %v9616_v42, %s9968_s22 }
0x2ab2   : > { %v5431_v24 = vpop.permute.xlu1 %5430  ;;  %v5267_v26 = vpop.permute.xlu0 %5266 }
0x2ab3   : > { %v5441_v12 = vsel %vm1000_vm3, %v5431_v24, 0  ;;  %v5277_v16 = vsel %vm1000_vm3, %v5267_v26, 0  ;;  %7676 = vmatprep.subr.msk.bf16.mxu1 %vm1000_vm3, %v5267_v26  ;;  %7678 = vmatprep.subr.msk.bf16.mxu0 %vm1000_vm3, %v5431_v24 }
0x2ab4   : > { %7577 = vmatpush3.bf16.xpose.msra.mxu1 %v5277_v16  ;;  %7593 = vmatpush3.bf16.xpose.msra.mxu0 %v5441_v12 }
0x2ab6   : > { %v5427_v47 = vpop.permute.xlu0 %5426 }
0x2ab7   : > { %7596 = vmatprep.mubr.msk.bf16.mxu0 %vm1000_vm3, %v5427_v47 }
0x2ab8   : > { %v5269_v6 = vpop.permute.xlu1 %5268 }
0x2ab9   : > { %7677 = vmatprep.subr.msk.bf16.mxu1 %vm1000_vm3, %v5269_v6  ;;  %v5280_v45 = vsel %vm1000_vm3, %v5269_v6, 0 }
0x2aba   : > { %v5429_v34 = vpop.permute.xlu0 %5428 }
0x2abc   : > { %v5433_v60 = vpop.permute.xlu1 %5432  ;;  %7579 = vmatpush3.bf16.xpose.msra.mxu1 %v5280_v45 }
0x2abd   : > { %v5444_v30 = vsel %vm1000_vm3, %v5433_v60, 0  ;;  %7584 = vmatprep.subr.bf16.mxu1 %v9602_v10  ;;  %7679 = vmatprep.subr.msk.bf16.mxu0 %vm1000_vm3, %v5433_v60 }
0x2abe   : > { %7595 = vmatpush3.bf16.xpose.msra.mxu0 %v5444_v30  ;;  %v5594_v37 = vpop.permute.xlu0 %5593 }
0x2ac0   : > { %v5598_v0 = vpop.permute.xlu1 %5597 }
0x2ac1   : > { %7680 = vmatprep.subr.msk.bf16.mxu0 %vm1000_vm3, %v5598_v0  ;;  %v5608_v39 = vsel %vm1000_vm3, %v5598_v0, 0 }
0x2ac3   : > { %7581 = vmatmul.mubr.msk.bf16.vlgmr.msra.gmra.mrb[120].mxu1 %vm1000_vm3, %v9616_v42 }
0x2ac4   : > { %7585 = vmatpush3.bf16.msra.mxu1 %v9602_v10  ;;  %v5600_v52 = vpop.permute.xlu1 %5599 }
0x2ac5   : > { %7586 = vmatprep.subr.bf16.mxu1 %v5374_v3  ;;  %7597 = vmatmul.mubr.msk.bf16.vlgmr.msra.gmra.mrb[72].mxu0 %vm1000_vm3, %v5429_v34  ;;  %v5611_v41 = vsel %vm1000_vm3, %v5600_v52, 0 }
0x2ac6   : > { %7609 = vmatpush3.bf16.xpose.msra.mxu0 %v5608_v39  ;;  %7612 = vmatprep.mubr.msk.bf16.mxu0 %vm1000_vm3, %v5594_v37 }
0x2ac7   : > { %7681 = vmatprep.subr.msk.bf16.mxu0 %vm1000_vm3, %v5600_v52 }
0x2ac8   : > { %7587 = vmatpush3.bf16.msra.mxu1 %v5374_v3  ;;  %v5596_v46 = vpop.permute.xlu1 %5595 }
0x2ace   : > { %7611 = vmatpush3.bf16.xpose.msra.mxu0 %v5611_v41 }
0x2ad5   : > { %7613 = vmatmul.mubr.msk.bf16.vlgmr.msra.gmra.mrb[76].mxu0 %vm1000_vm3, %v5596_v46 }
0x2b96   : > { %v7582_v40 = vpop.f32.mrb[120].mxu1 }
0x2b97   : > { %v5316_v51 = vpop.f32.mrb[121].mxu1  ;;  %v5336_v48 = vsel %vm1068_vm5, %v7582_v40, -inf }
0x2b98   : > { %v7583_v53 = vpop.f32.mrb[122].mxu1  ;;  %v7598_v58 = vpop.f32.mrb[72].mxu0  ;;  %v5330_v62 = vsel %vm1061_vm4, %v5316_v51, -inf }
0x2b99   : > { %v5480_v21 = vpop.f32.mrb[73].mxu0  ;;  %5331 = vmax.xlane.f32.xlu0 %v5330_v62  ;;  %v5319_v23 = vpop.f32.mrb[123].mxu1  ;;  %v5500_v11 = vsel %vm1068_vm5, %v7598_v58, -inf }
0x2b9a   : > { %v7599_v31 = vpop.f32.mrb[74].mxu0  ;;  %v5333_v38 = vsel %vm1061_vm4, %v5319_v23, -inf  ;;  %v5494_v5 = vsel %vm1061_vm4, %v5480_v21, -inf }
0x2b9b   : > { %v9658_v9 = vpop.f32.mrb[75].mxu0  ;;  %5334 = vmax.xlane.f32.xlu1 %v5333_v38 }
0x2b9c   : > { %v5497_v33 = vsel %vm1061_vm4, %v9658_v9, -inf }
0x2b9d   : > { %5337 = vmax.xlane.f32.xlu0 %v5336_v48 }
0x2b9f   : > { %5501 = vmax.xlane.f32.xlu1 %v5500_v11 }
0x2ba1   : > { %5495 = vmax.xlane.f32.xlu0 %v5494_v5 }
0x2ba5   : > { %5498 = vmax.xlane.f32.xlu0 %v5497_v33 }
0x2ba8   : > { %v7614_v54 = vpop.f32.mrb[76].mxu0 }
0x2ba9   : > { %v5647_v7 = vpop.f32.mrb[77].mxu0  ;;  %v5667_v4 = vsel %vm1068_vm5, %v7614_v54, -inf }
0x2baa   : > { %v7615_v13 = vpop.f32.mrb[78].mxu0  ;;  %v5661_v18 = vsel %vm1061_vm4, %v5647_v7, -inf }
0x2bab   : > { %v5650_v56 = vpop.f32.mrb[79].mxu0  ;;  %5662 = vmax.xlane.f32.xlu0 %v5661_v18 }
0x2bac   : > { %v5664_v61 = vsel %vm1061_vm4, %v5650_v56, -inf }
0x2bad   : > { %5665 = vmax.xlane.f32.xlu1 %v5664_v61 }
0x2baf   : > { %5668 = vmax.xlane.f32.xlu0 %v5667_v4 }
0x2c26   : > { %v5332_v29 = vpop.xlane.xlu0 %5331 }
0x2c27   : > { %v5339_v17 = vsub.f32 %v5316_v51, %v5332_v29 }
0x2c28   : > { %v5335_v50 = vpop.xlane.xlu1 %5334 }
0x2c29   : > { %v5342_v8 = vmul.f32 1.442695, %v5339_v17  ;;  %v5340_v35 = vsub.f32 %v5319_v23, %v5335_v50 }
0x2c2a   : > { %v5338_v2 = vpop.xlane.xlu0 %5337 }
0x2c2b   : > { %v5341_v14 = vsub.f32 %v7582_v40, %v5338_v2  ;;  %v5344_v12 = vmul.f32 1.442695, %v5340_v35 }
0x2c2c   : > { %v5502_v36 = vpop.xlane.xlu1 %5501 }
0x2c2d   : > { %v5346_v44 = vmul.f32 1.442695, %v5341_v14  ;;  %v5505_v15 = vsub.f32 %v7598_v58, %v5502_v36 }
0x2c2e   : > { %v5496_v19 = vpop.xlane.xlu0 %5495 }
0x2c2f   : > { %8171 = vpow2.f32 %v5346_v44  ;;  %v5510_v22 = vmul.f32 1.442695, %v5505_v15  ;;  %v5503_v24 = vsub.f32 %v5480_v21, %v5496_v19 }
0x2c30   : > { %8173 = vpow2.f32 %v5342_v8 }
0x2c31   : > { %8175 = vpow2.f32 %v5510_v22  ;;  %v5506_v26 = vmul.f32 1.442695, %v5503_v24 }
0x2c32   : > { %v5499_v37 = vpop.xlane.xlu0 %5498 }
0x2c33   : > { %8177 = vpow2.f32 %v5506_v26  ;;  %v5504_v41 = vsub.f32 %v9658_v9, %v5499_v37 }
0x2c34   : > { %8179 = vpow2.f32 %v5344_v12 }
0x2c35   : > { %v5508_v51 = vmul.f32 1.442695, %v5504_v41 }
0x2c37   : > { %8181 = vpow2.f32 %v5508_v51 }
0x2c38   : > { %v5663_v39 = vpop.xlane.xlu0 %5662 }
0x2c39   : > { %v9668_v16 = vpop.eup %8171  ;;  %v5670_v62 = vsub.f32 %v5647_v7, %v5663_v39 }
0x2c3a   : > { %v9670_v47 = vpop.eup %8173  ;;  %v5354_v6 = vsel %vm1068_vm5, %v9668_v16, 0.0  ;;  %v5666_v52 = vpop.xlane.xlu1 %5665 }
0x2c3b   : > { %v9674_v28 = vpop.eup %8175  ;;  %5355 = vadd.xlane.f32.xlu1 %v5354_v6  ;;  %v5348_v30 = vsel %vm1061_vm4, %v9670_v47, 0.0  ;;  %v5671_v40 = vsub.f32 %v5650_v56, %v5666_v52  ;;  %v5673_v23 = vmul.f32 1.442695, %v5670_v62 }
0x2c3c   : > { %v5518_v45 = vsel %vm1068_vm5, %v9674_v28, 0.0  ;;  %v5669_v46 = vpop.xlane.xlu0 %5668 }
0x2c3d   : > { %v9678_v60 = vpop.eup %8177  ;;  %5519 = vadd.xlane.f32.xlu0 %v5518_v45  ;;  %v5672_v53 = vsub.f32 %v7614_v54, %v5669_v46  ;;  %v5675_v58 = vmul.f32 1.442695, %v5671_v40 }
0x2c3e   : > { %v5512_v34 = vsel %vm1061_vm4, %v9678_v60, 0.0  ;;  %v8180_v0 = vpop.eup %8179 }
0x2c3f   : > { %5349 = vadd.xlane.f32.xlu1 %v5348_v30  ;;  %v5351_v3 = vsel %vm1061_vm4, %v8180_v0, 0.0  ;;  %v5677_v21 = vmul.f32 1.442695, %v5672_v53  ;;  %8183 = vpow2.f32 %v5675_v58 }
0x2c41   : > { %5513 = vadd.xlane.f32.xlu0 %v5512_v34  ;;  %8185 = vpow2.f32 %v5677_v21  ;;  %v8182_v31 = vpop.eup %8181 }
0x2c42   : > { %8187 = vpow2.f32 %v5673_v23  ;;  %v5515_v48 = vsel %vm1061_vm4, %v8182_v31, 0.0 }
0x2c45   : > { %5352 = vadd.xlane.f32.xlu0 %v5351_v3 }
0x2c49   : > { %v9692_v38 = vpop.eup %8183 }
0x2c4a   : > { %v5682_v9 = vsel %vm1061_vm4, %v9692_v38, 0.0 }
0x2c4b   : > { %v9695_v11 = vpop.eup %8185 }
0x2c4c   : > { %v5685_v5 = vsel %vm1068_vm5, %v9695_v11, 0.0  ;;  %v9701_v33 = vpop.eup %8187 }
0x2c4d   : > { %v5679_v54 = vsel %vm1061_vm4, %v9701_v33, 0.0 }
0x2c50   : > { %5533 = vrot.lane.b32.xlu1 %v9642_v20, %s9967_s27 }
0x2c54   : > { %5696 = vrot.lane.b32.xlu1 %v9602_v10, %s9968_s22 }
0x2c5b   : > { %5531 = vrot.lane.b32.xlu0 %v9602_v10, %s9967_s27  ;;  %s627_s27 = scalar_lea.vmem %s9974_s3, %s9155_s25 }
0x2c78   : > { %5516 = vadd.xlane.f32.xlu1 %v5515_v48 }
0x2c7a   : > { %5683 = vadd.xlane.f32.xlu0 %v5682_v9 }
0x2c7c   : > { %5686 = vadd.xlane.f32.xlu1 %v5685_v5 }
0x2c80   : > { %5680 = vadd.xlane.f32.xlu1 %v5679_v54 }
0x2c90   : > { %5762 = vrot.lane.b32.xlu0 %v9600_v32, %s9970_s21 }
0x2c91   : > { %5698 = vrot.lane.b32.xlu1 %v9642_v20, %s9968_s22 }
0x2c94   : > { %5758 = vrot.lane.b32.xlu0 %v9604_v63, %s9971_s28 }
0x2c95   : > { %5764 = vrot.lane.b32.xlu1 %v9612_v55, %s9970_s21 }
0x2c99   : > { %5760 = vrot.lane.b32.xlu1 %v9616_v42, %s9971_s28 }
0x2cc8   : > { %v5356_v7 = vpop.xlane.xlu1 %5355 }
0x2cc9   : > { %8189 = vrcp.f32 %v5356_v7 }
0x2cca   : > { %v5520_v13 = vpop.xlane.xlu0 %5519 }
0x2ccc   : > { %v5350_v18 = vpop.xlane.xlu1 %5349 }
0x2ccd   : > { %8191 = vrcp.f32 %v5350_v18 }
0x2cce   : > { %v5514_v56 = vpop.xlane.xlu0 %5513 }
0x2cd0   : > { %v5534_v2 = vpop.permute.xlu1 %5533 }
0x2cd1   : > { %v5543_v8 = vand.u32 %v5534_v2, %v8521_v59 }
0x2cd2   : > { %v5353_v61 = vpop.xlane.xlu0 %5352 }
0x2cd3   : > { %8193 = vrcp.f32 %v5353_v61  ;;  %v8190_v4 = vpop.eup %8189 }
0x2cd4   : > { %v5362_v63 = vmul.f32 %v8190_v4, %v9668_v16  ;;  %v5697_v36 = vpop.permute.xlu1 %5696  ;;  %8195 = vrcp.f32 %v5520_v13 }
0x2cd5   : > { %8197 = vrcp.f32 %v5514_v56 }
0x2cd6   : > { %v5532_v32 = vpop.permute.xlu0 %5531  ;;  %v5364_v14 = vpack.c.bf16 %v5362_v63, %v5362_v63 }
0x2cd7   : > { %7600 = vmatprep.subr.bf16.mxu1 %v5532_v32  ;;  %v8192_v29 = vpop.eup %8191 }
0x2cd8   : > { %v5360_v55 = vmul.f32 %v8192_v29, %v9670_v47 }
0x2cdd   : > { %v8194_v17 = vpop.eup %8193 }
0x2cde   : > { %v5361_v50 = vmul.f32 %v8194_v17, %v8180_v0  ;;  %v8196_v35 = vpop.eup %8195 }
0x2cdf   : > { %v8198_v24 = vpop.eup %8197  ;;  %v5526_v12 = vmul.f32 %v8196_v35, %v9674_v28 }
0x2ce0   : > { %v5363_v42 = vpack.c.bf16 %v5361_v50, %v5360_v55  ;;  %v5524_v16 = vmul.f32 %v8198_v24, %v9678_v60 }
0x2ce1   : > { %v5528_v30 = vpack.c.bf16 %v5526_v12, %v5526_v12 }
0x2ce2   : > { %7588 = vmatprep.mubr.msk.bf16.mxu1 %vm1061_vm4, %v5363_v42 }
0x2ce3   : > { %7589 = vmatmul.mubr.msk.bf16.vlgmr.msra.gmra.mrb[124].mxu1 %vm1061_vm4, %v5364_v14 }
0x2ce4   : > { %7601 = vmatpush3.bf16.msra.mxu1 %v5532_v32 }
0x2ce5   : > { %7602 = vmatprep.subr.bf16.mxu1 %v5543_v8 }
0x2ce8   : > { %7603 = vmatpush3.bf16.msra.mxu1 %v5543_v8 }
0x2ce9   : > { %7616 = vmatprep.subr.bf16.mxu1 %v5697_v36 }
0x2d05   : > { %v5517_v44 = vpop.xlane.xlu1 %5516 }
0x2d06   : > { %8199 = vrcp.f32 %v5517_v44 }
0x2d07   : > { %v5684_v15 = vpop.xlane.xlu0 %5683 }
0x2d09   : > { %v5687_v19 = vpop.xlane.xlu1 %5686 }
0x2d0a   : > { %8201 = vrcp.f32 %v5687_v19 }
0x2d0b   : > { %8203 = vrcp.f32 %v5684_v15  ;;  %v5763_v52 = vpop.permute.xlu0 %5762 }
0x2d0c   : > { %v5773_v51 = vsel %vm1000_vm3, %v5763_v52, 0 }
0x2d0d   : > { %v5681_v22 = vpop.xlane.xlu1 %5680 }
0x2d0e   : > { %8205 = vrcp.f32 %v5681_v22 }
0x2d0f   : > { %v5759_v40 = vpop.permute.xlu0 %5758 }
0x2d10   : > { %v8200_v26 = vpop.eup %8199 }
0x2d11   : > { %v5525_v47 = vmul.f32 %v8200_v26, %v8182_v31  ;;  %v5699_v6 = vpop.permute.xlu1 %5698 }
0x2d12   : > { %v5708_v3 = vand.u32 %v5699_v6, %v8521_v59 }
0x2d13   : > { %v5527_v45 = vpack.c.bf16 %v5525_v47, %v5524_v16 }
0x2d14   : > { %v8202_v34 = vpop.eup %8201 }
0x2d15   : > { %7604 = vmatprep.mubr.msk.bf16.mxu1 %vm1061_vm4, %v5527_v45  ;;  %v8204_v0 = vpop.eup %8203  ;;  %v5693_v39 = vmul.f32 %v8202_v34, %v9695_v11  ;;  %v5765_v53 = vpop.permute.xlu1 %5764 }
0x2d16   : > { %7605 = vmatmul.mubr.msk.bf16.vlgmr.msra.gmra.mrb[128].mxu1 %vm1061_vm4, %v5528_v30  ;;  %v5692_v60 = vmul.f32 %v8204_v0, %v9692_v38  ;;  %v5776_v58 = vsel %vm1000_vm3, %v5765_v53, 0 }
0x2d17   : > { %7617 = vmatpush3.bf16.msra.mxu1 %v5697_v36  ;;  %v5695_v46 = vpack.c.bf16 %v5693_v39, %v5693_v39 }
0x2d18   : > { %v8206_v37 = vpop.eup %8205  ;;  %7618 = vmatprep.subr.bf16.mxu1 %v5708_v3 }
0x2d19   : > { %v5691_v28 = vmul.f32 %v8206_v37, %v9701_v33  ;;  %v5761_v62 = vpop.permute.xlu1 %5760 }
0x2d1b   : > { %7619 = vmatpush3.bf16.msra.mxu1 %v5708_v3  ;;  %v5694_v41 = vpack.c.bf16 %v5692_v60, %v5691_v28 }
0x2d1c   : > { %7682 = vmatprep.subr.msk.bf16.mxu1 %vm1000_vm3, %v5763_v52 }
0x2d1d   : > { %7620 = vmatprep.mubr.msk.bf16.mxu1 %vm1061_vm4, %v5694_v41  ;;  %v7918_v41 = vld [vmem:[%s9923_s9 + $0x68] sm:$0xff]  }
0x2d1e   : > { %7621 = vmatmul.mubr.msk.bf16.vlgmr.msra.gmra.mrb[132].mxu1 %vm1061_vm4, %v5695_v46  ;;  %v7919_v46 = vld [vmem:[%s9923_s9 + $0x70] sm:$0xff]  }
0x2d1f   : > { %7628 = vmatprep.mubr.msk.bf16.mxu1 %vm1000_vm3, %v5759_v40  ;;  %v7920_v40 = vld [vmem:[%s9923_s9 + $0x78] sm:$0xff]  }
0x2d24   : > { %7625 = vmatpush3.bf16.xpose.msra.mxu1 %v5773_v51 }
0x2d25   : > { %7683 = vmatprep.subr.msk.bf16.mxu1 %vm1000_vm3, %v5765_v53 }
0x2d2c   : > { %7627 = vmatpush3.bf16.xpose.msra.mxu1 %v5776_v58 }
0x2d33   : > { %7629 = vmatmul.mubr.msk.bf16.vlgmr.msra.gmra.mrb[136].mxu1 %vm1000_vm3, %v5761_v62 }
0x2d34   : > { %6220 = vmatprep.mubr.bf16.mxu1 %v8245_v1 }
0x2db6   : > { %v9737_v21 = vpop.f32.mrb[124].mxu1 }
0x2db7   : > { %v9739_v23 = vpop.f32.mrb[125].mxu1 }
0x2db8   : > { %v7591_v31 = vpop.f32.mrb[126].mxu1 }
0x2db9   : > { %v9741_v38 = vpop.f32.mrb[127].mxu1 }
0x2de9   : > { %v7606_v48 = vpop.f32.mrb[128].mxu1 }
0x2dea   : > { %v5579_v11 = vpop.f32.mrb[129].mxu1 }
0x2deb   : > { %v7607_v9 = vpop.f32.mrb[130].mxu1 }
0x2dec   : > { %v5582_v5 = vpop.f32.mrb[131].mxu1 }
0x2ded   : > { %v7746_v33 = vpack.i.bf16 %v5582_v5, %v5579_v11 }
0x2df1   : > { %v7622_v54 = vpop.f32.mrb[132].mxu1 }
0x2df2   : > { %v5744_v7 = vpop.f32.mrb[133].mxu1 }
0x2df3   : > { %v7623_v13 = vpop.f32.mrb[134].mxu1 }
0x2df4   : > { %v5747_v18 = vpop.f32.mrb[135].mxu1 }
0x2df5   : > { %v7751_v56 = vpack.i.bf16 %v5747_v18, %v5744_v7 }
0x2e06   : > { %v7630_v61 = vpop.f32.mrb[136].mxu1 }
0x2e07   : > { %v5812_v32 = vpop.f32.mrb[137].mxu1  ;;  %v5832_v55 = vsel %vm1068_vm5, %v7630_v61, -inf }
0x2e08   : > { %v7631_v4 = vpop.f32.mrb[138].mxu1  ;;  %v5826_v29 = vsel %vm1061_vm4, %v5812_v32, -inf }
0x2e09   : > { %5827 = vmax.xlane.f32.xlu0 %v5826_v29  ;;  %v5815_v17 = vpop.f32.mrb[139].mxu1 }
0x2e0a   : > { %v5829_v63 = vsel %vm1061_vm4, %v5815_v17, -inf }
0x2e0b   : > { %5830 = vmax.xlane.f32.xlu1 %v5829_v63 }
0x2e0d   : > { %5833 = vmax.xlane.f32.xlu0 %v5832_v55 }
0x2e96   : > { %v5828_v50 = vpop.xlane.xlu0 %5827 }
0x2e97   : > { %v5835_v2 = vsub.f32 %v5812_v32, %v5828_v50 }
0x2e98   : > { %v5831_v42 = vpop.xlane.xlu1 %5830 }
0x2e99   : > { %v5838_v14 = vmul.f32 1.442695, %v5835_v2  ;;  %v5836_v8 = vsub.f32 %v5815_v17, %v5831_v42 }
0x2e9a   : > { %v5834_v36 = vpop.xlane.xlu0 %5833 }
0x2e9b   : > { %8207 = vpow2.f32 %v5838_v14  ;;  %v5840_v44 = vmul.f32 1.442695, %v5836_v8  ;;  %v5837_v15 = vsub.f32 %v7630_v61, %v5834_v36 }
0x2e9d   : > { %8209 = vpow2.f32 %v5840_v44  ;;  %v5842_v19 = vmul.f32 1.442695, %v5837_v15 }
0x2e9f   : > { %8211 = vpow2.f32 %v5842_v19 }
0x2ea5   : > { %v8208_v35 = vpop.eup %8207 }
0x2ea6   : > { %v5844_v22 = vsel %vm1061_vm4, %v8208_v35, 0.0 }
0x2ea7   : > { %v8210_v24 = vpop.eup %8209  ;;  %5845 = vadd.xlane.f32.xlu0 %v5844_v22 }
0x2ea8   : > { %v5847_v16 = vsel %vm1061_vm4, %v8210_v24, 0.0 }
0x2ea9   : > { %v8212_v26 = vpop.eup %8211 }
0x2eaa   : > { %v5850_v12 = vsel %vm1068_vm5, %v8212_v26, 0.0 }
0x2eab   : > { %5851 = vadd.xlane.f32.xlu1 %v5850_v12  ;;  %5848 = vadd.xlane.f32.xlu0 %v5847_v16 }
0x2ebc   : > { %5863 = vrot.lane.b32.xlu1 %v9642_v20, %s9971_s28 }
0x2ec0   : > { %7747 = vrot.lane.b32.xlu1 %v7746_v33, %s9970_s21 }
0x2ec1   : > { %5861 = vrot.lane.b32.xlu0 %v9602_v10, %s9971_s28 }
0x2ec4   : > { %5930 = vrot.lane.b32.xlu1 %v7606_v48, %s9970_s21 }
0x2ec5   : > { %7752 = vrot.lane.b32.xlu0 %v7751_v56, %s9969_s2 }
0x2ec8   : > { %5942 = vrot.lane.b32.xlu1 %v7622_v54, %s9969_s2 }
0x2f34   : > { %v5846_v47 = vpop.xlane.xlu0 %5845 }
0x2f35   : > { %8213 = vrcp.f32 %v5846_v47 }
0x2f38   : > { %v5849_v6 = vpop.xlane.xlu0 %5848  ;;  %v5852_v45 = vpop.xlane.xlu1 %5851 }
0x2f39   : > { %8215 = vrcp.f32 %v5849_v6 }
0x2f3a   : > { %8217 = vrcp.f32 %v5852_v45 }
0x2f3c   : > { %v5862_v30 = vpop.permute.xlu0 %5861  ;;  %v5864_v34 = vpop.permute.xlu1 %5863 }
0x2f3d   : > { %v5873_v20 = vand.u32 %v5864_v34, %v8521_v59  ;;  %7632 = vmatprep.subr.bf16.mxu0 %v5862_v30  ;;  %v7917_v59 = vld [vmem:[%s9923_s9 + $0x60] sm:$0xff]  }
0x2f3e   : > { %7633 = vmatpush3.bf16.msra.mxu0 %v5862_v30 }
0x2f3f   : > { %7634 = vmatprep.subr.bf16.mxu0 %v5873_v20  ;;  %v8214_v10 = vpop.eup %8213 }
0x2f40   : > { %v5856_v37 = vmul.f32 %v8214_v10, %v8208_v35  ;;  %v7748_v48 = vpop.permute.xlu1 %7747  ;;  %v7753_v9 = vpop.permute.xlu0 %7752 }
0x2f41   : > { %v7750_v5 = vunpack.i.h.bf16 %v7748_v48  ;;  %v7749_v33 = vunpack.i.l.bf16 %v7748_v48  ;;  %v7755_v7 = vunpack.i.h.bf16 %v7753_v9  ;;  %v7754_v13 = vunpack.i.l.bf16 %v7753_v9 }
0x2f42   : > { %7635 = vmatpush3.bf16.msra.mxu0 %v5873_v20 }
0x2f43   : > { %v8216_v0 = vpop.eup %8215  ;;  %7640 = vmatprep.subr.bf16.mxu0 %v7917_v59  ;;  %v5960_v18 = vsel %vm1000_vm3, %v9741_v38, %v7750_v5  ;;  %v5959_v56 = vsel %vm1000_vm3, %v9739_v23, %v7749_v33 }
0x2f44   : > { %v8218_v3 = vpop.eup %8217  ;;  %v5857_v39 = vmul.f32 %v8216_v0, %v8210_v24  ;;  %v5931_v11 = vpop.permute.xlu1 %5930  ;;  %v5962_v50 = vsel %vm1697_vm6, %v5959_v56, %v7754_v13  ;;  %v5963_v2 = vsel %vm1697_vm6, %v5960_v18, %v7755_v7 }
0x2f45   : > { %v5858_v52 = vmul.f32 %v8218_v3, %v8212_v26  ;;  %v5961_v32 = vsel %vm1000_vm3, %v9737_v21, %v5931_v11  ;;  %v7001_v21 = vld [vmem:[%s9924_s10 + $0x3] ss:$0 sm:$0xff] }
0x2f46   : > { %v5859_v28 = vpack.c.bf16 %v5857_v39, %v5856_v37 }
0x2f47   : > { %v5860_v60 = vpack.c.bf16 %v5858_v52, %v5858_v52 }
0x2f48   : > { %7636 = vmatprep.mubr.msk.bf16.mxu0 %vm1061_vm4, %v5859_v28  ;;  %v5943_v54 = vpop.permute.xlu1 %5942 }
0x2f49   : > { %7637 = vmatmul.mubr.msk.bf16.vlgmr.msra.gmra.mrb[80].mxu0 %vm1061_vm4, %v5860_v60  ;;  %v5964_v29 = vsel %vm1697_vm6, %v5961_v32, %v5943_v54 }
0x2f4a   : > { %7641 = vmatpush3.bf16.msra.mxu0 %v7917_v59  ;;  %v7923_v59 = vld [vmem:[%s9927_s13 + $0xc4] ss:$8 sps:$4 sm:$0xff]  }
0x2f4b   : > { %7642 = vmatprep.subr.bf16.mxu0 %v7918_v41  ;;  %6188 = vmatprep.subr.bf16.mxu1 %v7923_v59 }
0x2f4e   : > { %7643 = vmatpush3.bf16.msra.mxu0 %v7918_v41  ;;  %v7921_v41 = vld [vmem:[%s9927_s13 + $0xc0] ss:$8 sps:$4 sm:$0xff]  }
0x2f4f   : > { %7644 = vmatprep.subr.bf16.mxu0 %v7919_v46  ;;  %6189 = vmatpush1.bf16.msra.mxu1 %v7921_v41 }
0x2f52   : > { %7645 = vmatpush3.bf16.msra.mxu0 %v7919_v46  ;;  %v7926_v46 = vld [vmem:[%s9927_s13 + $0xd4] ss:$8 sps:$4 sm:$0xff]  }
0x2f53   : > { %7646 = vmatprep.subr.bf16.mxu0 %v7920_v40  ;;  %6190 = vmatprep.subr.bf16.mxu1 %v7926_v46 }
0x2f56   : > { %7647 = vmatpush3.bf16.msra.mxu0 %v7920_v40  ;;  %v7924_v40 = vld [vmem:[%s9927_s13 + $0xd0] ss:$8 sps:$4 sm:$0xff]  }
0x2f57   : > { %6191 = vmatpush1.bf16.msra.mxu1 %v7924_v40 }
0x301c   : > { %v7638_v51 = vpop.f32.mrb[80].mxu0 }
0x301d   : > { %5954 = vrot.lane.b32.xlu1 %v7638_v51, %s9972_s26  ;;  %v5909_v53 = vpop.f32.mrb[81].mxu0  ;;  %v7929_v51 = vld [vmem:[%s9927_s13 + $0xe4] ss:$8 sps:$4 sm:$0xff]  }
0x301e   : > { %v7639_v58 = vpop.f32.mrb[82].mxu0  ;;  %6192 = vmatprep.subr.bf16.mxu1 %v7929_v51 }
0x301f   : > { %v5912_v62 = vpop.f32.mrb[83].mxu0  ;;  %v7930_v58 = vld [vmem:[%s9927_s13 + $0xf0] ss:$8 sps:$4 sm:$0xff]  }
0x3020   : > { %v7756_v31 = vpack.i.bf16 %v5912_v62, %v5909_v53  ;;  %v7927_v53 = vld [vmem:[%s9927_s13 + $0xe0] ss:$8 sps:$4 sm:$0xff]   ;;  %v7932_v62 = vld [vmem:[%s9927_s13 + $0xf4] ss:$8 sps:$4 sm:$0xff]  }
0x3021   : > { %6193 = vmatpush1.bf16.msra.mxu1 %v7927_v53 }
0x3022   : > { %7757 = vrot.lane.b32.xlu0 %v7756_v31, %s9972_s26  ;;  %6194 = vmatprep.subr.bf16.mxu1 %v7932_v62 }
0x3025   : > { %6195 = vmatpush1.bf16.msra.mxu1 %v7930_v58 }
0x308f   : > { %v5955_v61 = vpop.permute.xlu1 %5954 }
0x3090   : > { %v5967_v55 = vsel %vm1701_vm7, %v5964_v29, %v5955_v61  ;;  %v7010_v61 = vld [vmem:[%s9925_s11 + $0x3] ss:$0 sm:$0xff] }
0x3091   : > { %v5969_v14 = vpack.c.bf16 %v5967_v55, %v5967_v55 }
0x3094   : > { %v7758_v4 = vpop.permute.xlu0 %7757 }
0x3095   : > { %v7760_v17 = vunpack.i.h.bf16 %v7758_v4  ;;  %v7759_v63 = vunpack.i.l.bf16 %v7758_v4 }
0x3097   : > { %v5965_v38 = vsel %vm1701_vm7, %v5962_v50, %v7759_v63  ;;  %v5966_v42 = vsel %vm1701_vm7, %v5963_v2, %v7760_v17  ;;  %v7011_v63 = vld [vmem:[%s9926_s12 + $0x3] ss:$0 sm:$0xff] }
0x3098   : > { %v5968_v23 = vpack.c.bf16 %v5966_v42, %v5965_v38 }
0x309a   : > { %7648 = vmatprep.mubr.msk.bf16.mxu0 %vm738_vm0, %v5968_v23 }
0x309b   : > { %7649 = vmatmul.mubr.msk.bf16.vlgmr.msra.gmra.mrb[84].mxu0 %vm738_vm0, %v5969_v14 }
0x316e   : > { %v7650_v8 = vpop.f32.mrb[84].mxu0 }
0x316f   : > { %v6040_v36 = vpop.f32.mrb[85].mxu0  ;;  %v6049_v44 = vadd.f32 %v7650_v8, %v7001_v21  ;;  %v7933_v8 = vld [vmem:[%s9929_s15 + $0x1c0] sm:$0xff]  }
0x3170   : > { %v6041_v15 = vadd.f32 %v7001_v21, %v6040_v36  ;;  %v7651_v19 = vpop.f32.mrb[86].mxu0  ;;  %v7934_v36 = vld [vmem:[%s9929_s15 + $0x180] sm:$0xff]   ;;  %7320 = vmatprep.subr.bf16.mxu0 %v7933_v8 }
0x3171   : > { %v6043_v35 = vpop.f32.mrb[87].mxu0  ;;  %v9795_v26 = vadd.f32 %v6049_v44, %v9550_v57  ;;  %7321 = vmatpush3.bf16.msra.mxu0 %v7934_v36  ;;  %v7935_v44 = vld [vmem:[%s9929_s15 + $0x1c8] sm:$0xff]   ;;  %v7938_v19 = vld [vmem:[%s9929_s15 + $0x190] sm:$0xff]  }
0x3172   : > { %v9792_v22 = vadd.f32 %v6041_v15, %v9536_v49  ;;  %v6044_v24 = vadd.f32 %v7001_v21, %v6043_v35  ;;  %7322 = vmatprep.subr.bf16.mxu0 %v7935_v44  ;;  %v7937_v15 = vld [vmem:[%s9929_s15 + $0x1d0] sm:$0xff]   ;;  %v7939_v35 = vld [vmem:[%s9929_s15 + $0x1d8] sm:$0xff]  }
0x3173   : > { %v6067_v6 = vsel %vm806_vm2, %v9795_v26, 0.0 }
0x3174   : > { %v9798_v12 = vadd.f32 %v6044_v24, %v9541_v43  ;;  %v6061_v16 = vsel %vm738_vm0, %v9792_v22, 0.0  ;;  %v7940_v24 = vld [vmem:[%s9929_s15 + $0x198] sm:$0xff]  }
0x3175   : > { %6062 = vadd.xlane.f32.xlu0 %v6061_v16  ;;  %v7941_v16 = vld [vmem:[%s9929_s15 + $0x1e0] sm:$0xff]  }
0x3176   : > { %v6064_v47 = vsel %vm738_vm0, %v9798_v12, 0.0 }
0x3177   : > { %6065 = vadd.xlane.f32.xlu1 %v6064_v47  ;;  %v7942_v47 = vld [vmem:[%s9929_s15 + $0x1a0] sm:$0xff]  }
0x3179   : > { %6068 = vadd.xlane.f32.xlu0 %v6067_v6  ;;  %v7943_v6 = vld [vmem:[%s9929_s15 + $0x1e8] sm:$0xff]  }
0x3202   : > { %v6063_v49 = vpop.xlane.xlu0 %6062 }
0x3203   : > { %v6070_v45 = vmul.f32 0.015625, %v6063_v49  ;;  %v7944_v49 = vld [vmem:[%s9929_s15 + $0x1a8] sm:$0xff]  }
0x3204   : > { %v6066_v30 = vpop.xlane.xlu1 %6065 }
0x3205   : > { %v6073_v57 = vsub.f32 %v9792_v22, %v6070_v45  ;;  %v6071_v34 = vmul.f32 0.015625, %v6066_v30  ;;  %v7945_v45 = vld [vmem:[%s9929_s15 + $0x1f0] sm:$0xff]  }
0x3206   : > { %v6069_v43 = vpop.xlane.xlu0 %6068  ;;  %v7946_v30 = vld [vmem:[%s9929_s15 + $0x1b0] sm:$0xff]  }
0x3207   : > { %v6074_v20 = vsub.f32 %v9798_v12, %v6071_v34  ;;  %v6072_v10 = vmul.f32 0.015625, %v6069_v43  ;;  %v6076_v0 = vmul.f32 %v6073_v57, %v6073_v57  ;;  %v7948_v34 = vld [vmem:[%s9929_s15 + $0x1b8] sm:$0xff]   ;;  %v7020_v43 = vld [vmem:[%s9928_s14 + $0x6] sm:$0x3] }
0x3209   : > { %v6075_v3 = vsub.f32 %v9795_v26, %v6072_v10  ;;  %v6079_v37 = vsel %vm738_vm0, %v6076_v0, 0.0  ;;  %v6077_v39 = vmul.f32 %v6074_v20, %v6074_v20  ;;  %v6139_v10 = vrot.slane %v7020_v43, %v8494_v27 }
0x320a   : > { %6080 = vadd.xlane.f32.xlu0 %v6079_v37 }
0x320b   : > { %v6078_v52 = vmul.f32 %v6075_v3, %v6075_v3  ;;  %v6082_v28 = vsel %vm738_vm0, %v6077_v39, 0.0 }
0x320d   : > { %v6085_v60 = vsel %vm806_vm2, %v6078_v52, 0.0 }
0x320e   : > { %6083 = vadd.xlane.f32.xlu0 %v6082_v28  ;;  %6086 = vadd.xlane.f32.xlu1 %v6085_v60 }
0x3297   : > { %v6081_v31 = vpop.xlane.xlu0 %6080 }
0x3298   : > { %v6088_v48 = vmul.f32 0.015625, %v6081_v31 }
0x329a   : > { %v6091_v11 = vadd.f32 1e-06, %v6088_v48 }
0x329b   : > { %v6087_v9 = vpop.xlane.xlu1 %6086  ;;  %v6084_v5 = vpop.xlane.xlu0 %6083 }
0x329c   : > { %8219 = vrsqrt.f32 %v6091_v11  ;;  %v6090_v33 = vmul.f32 0.015625, %v6087_v9  ;;  %v6089_v54 = vmul.f32 0.015625, %v6084_v5 }
0x329e   : > { %v6093_v7 = vadd.f32 1e-06, %v6090_v33  ;;  %v6092_v13 = vadd.f32 1e-06, %v6089_v54 }
0x32a0   : > { %8221 = vrsqrt.f32 %v6093_v7 }
0x32a1   : > { %8223 = vrsqrt.f32 %v6092_v13 }
0x32a6   : > { %v8220_v18 = vpop.eup %8219 }
0x32a7   : > { %v6097_v56 = vmul.f32 %v8220_v18, %v6073_v57  ;;  %v7947_v57 = vld [vmem:[%s9929_s15 + $0x1f8] sm:$0xff]  }
0x32a9   : > { %v6106_v29 = vmul.f32 %v7010_v61, %v6097_v56 }
0x32aa   : > { %v8222_v32 = vpop.eup %8221 }
0x32ab   : > { %v8224_v4 = vpop.eup %8223  ;;  %v6099_v55 = vmul.f32 %v8222_v32, %v6075_v3  ;;  %v6115_v2 = vadd.f32 %v7011_v63, %v6106_v29 }
0x32ac   : > { %v6098_v17 = vmul.f32 %v8224_v4, %v6074_v20  ;;  %v6135_v20 = vrot.slane %v7020_v43, %v8489_v25 }
0x32ad   : > { %v6108_v23 = vmul.f32 %v7010_v61, %v6099_v55 }
0x32ae   : > { %v6107_v50 = vmul.f32 %v7010_v61, %v6098_v17 }
0x32af   : > { %v6117_v14 = vadd.f32 %v7011_v63, %v6108_v23 }
0x32b0   : > { %v6116_v38 = vadd.f32 %v7011_v63, %v6107_v50 }
0x32b1   : > { %v6130_v21 = vpack.c.bf16 %v6117_v14, %v6117_v14 }
0x32b2   : > { %v6129_v42 = vpack.c.bf16 %v6116_v38, %v6115_v2 }
0x32b4   : > { %7029 = vmatmul.mubr.msk.bf16.vlgmr.msra.gmra.mrb[140].mxu1 %vm738_vm0, %v6129_v42 }
0x32b5   : > { %6230 = vmatprep.mubr.bf16.mxu1 %v8245_v1  ;;  %v7936_v1 = vld [vmem:[%s9929_s15 + $0x188] sm:$0xff]  }
0x32b6   : > { %7323 = vmatpush3.bf16.msra.mxu0 %v7936_v1 }
0x32b7   : > { %7324 = vmatprep.subr.bf16.mxu0 %v7937_v15 }
0x32ba   : > { %7325 = vmatpush3.bf16.msra.mxu0 %v7938_v19 }
0x32bb   : > { %7326 = vmatprep.subr.bf16.mxu0 %v7939_v35 }
0x32bc   : > { %7030 = vmatmul.mubr.msk.bf16.gmra.mrb[144].mxu1 %vm738_vm0, %v6130_v21 }
0x32be   : > { %7327 = vmatpush3.bf16.msra.mxu0 %v7940_v24 }
0x32bf   : > { %7328 = vmatprep.subr.bf16.mxu0 %v7941_v16 }
0x32c2   : > { %7329 = vmatpush3.bf16.msra.mxu0 %v7942_v47 }
0x32c3   : > { %7330 = vmatprep.subr.bf16.mxu0 %v7943_v6 }
0x32c6   : > { %7331 = vmatpush3.bf16.msra.mxu0 %v7944_v49 }
0x32c7   : > { %7332 = vmatprep.subr.bf16.mxu0 %v7945_v45 }
0x32ca   : > { %7333 = vmatpush3.bf16.msra.mxu0 %v7946_v30 }
0x32cb   : > { %7334 = vmatprep.subr.bf16.mxu0 %v7947_v57 }
0x32ce   : > { %7335 = vmatpush3.bf16.msra.mxu0 %v7948_v34 }
0x3387   : > { %v6222_v0 = vpop.f32.mrb[140].mxu1 }
0x3388   : > { %v6223_v3 = vadd.f32 %v6222_v0, %v6135_v20  ;;  %v6224_v37 = vpop.f32.mrb[141].mxu1 }
0x3389   : > { %v6225_v39 = vadd.f32 %v6224_v37, %v6139_v10  ;;  %v6226_v52 = vpop.f32.mrb[142].mxu1 }
0x338a   : > { %v6239_v28 = vmul.f32 %v6223_v3, %v6223_v3  ;;  %v6227_v60 = vadd.f32 %v6226_v52, %v6135_v20  ;;  %v6228_v59 = vpop.f32.mrb[143].mxu1 }
0x338b   : > { %v6240_v41 = vmul.f32 %v6225_v39, %v6225_v39  ;;  %v6229_v46 = vadd.f32 %v6228_v59, %v6139_v10 }
0x338c   : > { %v6245_v40 = vmul.f32 %v6239_v28, %v6223_v3  ;;  %v6241_v51 = vmul.f32 %v6227_v60, %v6227_v60 }
0x338d   : > { %v6246_v53 = vmul.f32 %v6240_v41, %v6225_v39  ;;  %v6242_v58 = vmul.f32 %v6229_v46, %v6229_v46 }
0x338e   : > { %v6251_v62 = vmul.f32 0.044715, %v6245_v40  ;;  %v6247_v31 = vmul.f32 %v6241_v51, %v6227_v60 }
0x338f   : > { %v6252_v48 = vmul.f32 0.044715, %v6246_v53  ;;  %v6248_v25 = vmul.f32 %v6242_v58, %v6229_v46  ;;  %v6232_v11 = vpop.f32.mrb[144].mxu1 }
0x3390   : > { %v6257_v27 = vadd.f32 %v6251_v62, %v6223_v3  ;;  %v6253_v9 = vmul.f32 0.044715, %v6247_v31  ;;  %v6233_v5 = vadd.f32 %v6232_v11, %v6135_v20  ;;  %v6234_v33 = vpop.f32.mrb[145].mxu1 }
0x3391   : > { %v6258_v54 = vadd.f32 %v6252_v48, %v6225_v39  ;;  %v6254_v7 = vmul.f32 0.044715, %v6248_v25  ;;  %v6235_v13 = vadd.f32 %v6234_v33, %v6139_v10  ;;  %v6236_v18 = vpop.f32.mrb[146].mxu1 }
0x3392   : > { %v6263_v56 = vmul.f32 0.7978846, %v6257_v27  ;;  %v6259_v61 = vadd.f32 %v6253_v9, %v6227_v60  ;;  %v6243_v32 = vmul.f32 %v6233_v5, %v6233_v5  ;;  %v6237_v4 = vpop.f32.mrb[147].mxu1 }
0x3393   : > { %v6264_v29 = vmul.f32 0.7978846, %v6258_v54  ;;  %v6260_v17 = vadd.f32 %v6254_v7, %v6229_v46  ;;  %v6244_v63 = vmul.f32 %v6235_v13, %v6235_v13 }
0x3394   : > { %8225 = vtanh.f32 %v6263_v56  ;;  %v6265_v55 = vmul.f32 0.7978846, %v6259_v61  ;;  %v6249_v50 = vmul.f32 %v6243_v32, %v6233_v5 }
0x3395   : > { %8227 = vtanh.f32 %v6264_v29  ;;  %v6266_v2 = vmul.f32 0.7978846, %v6260_v17  ;;  %v6250_v38 = vmul.f32 %v6244_v63, %v6235_v13 }
0x3396   : > { %8229 = vtanh.f32 %v6265_v55  ;;  %v6255_v42 = vmul.f32 0.044715, %v6249_v50 }
0x3397   : > { %8231 = vtanh.f32 %v6266_v2  ;;  %v6256_v23 = vmul.f32 0.044715, %v6250_v38 }
0x3398   : > { %v6261_v14 = vadd.f32 %v6255_v42, %v6233_v5 }
0x3399   : > { %v6262_v21 = vadd.f32 %v6256_v23, %v6235_v13 }
0x339a   : > { %v6267_v8 = vmul.f32 0.7978846, %v6261_v14 }
0x339b   : > { %v6268_v36 = vmul.f32 0.7978846, %v6262_v21 }
0x339c   : > { %8233 = vtanh.f32 %v6267_v8 }
0x339d   : > { %8235 = vtanh.f32 %v6268_v36 }
0x339e   : > { %v8226_v44 = vpop.eup %8225 }
0x339f   : > { %v8228_v1 = vpop.eup %8227  ;;  %v6275_v15 = vadd.f32 1.0, %v8226_v44 }
0x33a0   : > { %v8230_v19 = vpop.eup %8229  ;;  %v6276_v35 = vadd.f32 1.0, %v8228_v1 }
0x33a1   : > { %v8232_v24 = vpop.eup %8231  ;;  %v6281_v16 = vmul.f32 0.5, %v6275_v15  ;;  %v6277_v47 = vadd.f32 1.0, %v8230_v19 }
0x33a2   : > { %v6278_v6 = vadd.f32 1.0, %v8232_v24  ;;  %v6282_v49 = vmul.f32 0.5, %v6276_v35 }
0x33a3   : > { %v6283_v45 = vmul.f32 0.5, %v6277_v47  ;;  %v6287_v57 = vmul.f32 %v6281_v16, %v6223_v3 }
0x33a4   : > { %v6284_v30 = vmul.f32 0.5, %v6278_v6  ;;  %v6288_v20 = vmul.f32 %v6282_v49, %v6225_v39  ;;  %v7064_v39 = vld [vmem:[%s9930_s16 + $0x3] ss:$0 sm:$0xff] }
0x33a5   : > { %v6289_v34 = vmul.f32 %v6283_v45, %v6227_v60 }
0x33a6   : > { %v8234_v43 = vpop.eup %8233  ;;  %v6290_v10 = vmul.f32 %v6284_v30, %v6229_v46 }
0x33a7   : > { %v8236_v0 = vpop.eup %8235  ;;  %v6328_v37 = vpack.c.bf16 %v6289_v34, %v6287_v57  ;;  %v6279_v52 = vadd.f32 1.0, %v8234_v43 }
0x33a8   : > { %v6329_v28 = vpack.c.bf16 %v6290_v10, %v6288_v20  ;;  %v6280_v59 = vadd.f32 1.0, %v8236_v0 }
0x33a9   : > { %v6285_v41 = vmul.f32 0.5, %v6279_v52 }
0x33aa   : > { %6466 = vmatprep.mubr.bf16.mxu0 %v6329_v28  ;;  %v6286_v40 = vmul.f32 0.5, %v6280_v59 }
0x33ab   : > { %6467 = vmatmul.mubr.bf16.vlgmr.msra.gmra.mrb[88].mxu0 %v6328_v37  ;;  %v6291_v53 = vmul.f32 %v6285_v41, %v6233_v5 }
0x33ac   : > { %v6292_v51 = vmul.f32 %v6286_v40, %v6235_v13 }
0x33ad   : > { %v6330_v62 = vpack.c.bf16 %v6291_v53, %v6291_v53 }
0x33ae   : > { %v6331_v58 = vpack.c.bf16 %v6292_v51, %v6292_v51 }
0x33b0   : > { %6474 = vmatprep.mubr.bf16.mxu0 %v6331_v58 }
0x33b3   : > { %6475 = vmatmul.mubr.bf16.gmra.mrb[92].mxu0 %v6330_v62 }
0x347e   : > { %v7336_v3 = vpop.f32.mrb[88].mxu0 }
0x347f   : > { %v7337_v60 = vpop.f32.mrb[89].mxu0 }
0x3480   : > { %v7338_v46 = vadd.f32 %v7337_v60, %v7336_v3  ;;  %v7339_v31 = vpop.f32.mrb[90].mxu0 }
0x3481   : > { %v7340_v48 = vpop.f32.mrb[91].mxu0 }
0x3482   : > { %v6469_v25 = vadd.f32 %v7338_v46, %v7064_v39  ;;  %v7341_v11 = vadd.f32 %v7340_v48, %v7339_v31 }
0x3484   : > { %v6482_v27 = vadd.f32 %v6469_v25, %v9792_v22  ;;  %v6472_v9 = vadd.f32 %v7341_v11, %v7064_v39 }
0x3486   : > { %6485 = vst.msk [vmem:[%s627_s27] sm:$0xff] %vm738_vm0, %v6482_v27  ;;  %v6483_v5 = vadd.f32 %v6472_v9, %v9798_v12  ;;  %v7342_v33 = vpop.f32.mrb[92].mxu0 }
0x3487   : > { %v7343_v54 = vpop.f32.mrb[93].mxu0 }
0x3488   : > { %6486 = vst.msk [vmem:[%s627_s27 + $0x8] sm:$0xff] %vm738_vm0, %v6483_v5  ;;  %v7344_v7 = vadd.f32 %v7343_v54, %v7342_v33  ;;  %v7345_v13 = vpop.f32.mrb[94].mxu0 }
0x3489   : > { %v7346_v18 = vpop.f32.mrb[95].mxu0 }
0x348a   : > { %v6477_v56 = vadd.f32 %v7344_v7, %v7064_v39 }
0x348c   : > { %v6484_v61 = vadd.f32 %v6477_v56, %v9795_v26 }
0x348e   : > { %6487 = vst.msk [vmem:[%s627_s27 + $0x10] sm:$0x1] %vm806_vm2, %v6484_v61 }
0x348f PF: > { %s9975_s25 = sld [smem:[#allocation2_spill]] }
0x3495   : > { %s30_s0 = sadd.s32 1, %s9975_s25  }
0x3496   : > { %p27_p4 = scmp.ge.s32.totalorder %s30_s0, 4  }
0x3498   :  { %29 = sbr.rel (!%p27_p4) target bundleno = 8 (0x8), region = 178 }

</bundles_post_ra>
